<compile_context>
chip_gen: v6e
topology: v6e:2x2x1
jax: 0.10.0
libtpu: 0.0.40
codegen_flags: <defaults>
</compile_context>

<pallas_src>
import functools

import jax
import jax.numpy as jnp
from jax.experimental import pallas as pl
from jax.experimental.pallas import tpu as pltpu


# ----------------------------------------------------------------------------
# Fused matmul (single K step) + per-output-channel shift + LeakyReLU kernel.
# ----------------------------------------------------------------------------
def _fused_matmul_kernel(a_ref, b_ref, shift_ref, o_ref, *, alpha):
    y = jnp.dot(a_ref[...], b_ref[...], preferred_element_type=jnp.float32)
    y = y + shift_ref[...]
    y = jnp.where(y >= 0.0, y, alpha * y)
    o_ref[...] = y.astype(o_ref.dtype)


def fused_matmul(a, b, shift, *, tm, tn, alpha=0.2, out_dtype=jnp.bfloat16):
    """out[m, n] = leaky_relu( sum_k a[m,k] * b[k,n] + shift[n] ), bf16 out.

    Whole K handled in one grid step (full-K blocks are <= ~1 MiB bf16 here),
    so there is no accumulator scratch and no reduction grid axis.  Inputs are
    already bf16 (activations come out of the previous kernel in bf16, weights
    are pre-cast at prep time); accumulation is f32 in the MXU.
    """
    M, K = a.shape
    K2, N = b.shape
    assert K == K2 and M % tm == 0 and N % tn == 0
    kernel = functools.partial(_fused_matmul_kernel, alpha=alpha)
    out_isz = jnp.dtype(out_dtype).itemsize
    cost = pl.CostEstimate(
        flops=2 * M * K * N,
        transcendentals=0,
        bytes_accessed=M * K * a.dtype.itemsize + K * N * b.dtype.itemsize
        + M * N * out_isz + N * 4)
    return pl.pallas_call(
        kernel,
        out_shape=jax.ShapeDtypeStruct((M, N), out_dtype),
        grid=(M // tm, N // tn),
        in_specs=[
            pl.BlockSpec((tm, K), lambda i, j: (i, 0)),
            pl.BlockSpec((K, tn), lambda i, j: (0, j)),
            pl.BlockSpec((1, tn), lambda i, j: (0, j)),
        ],
        out_specs=pl.BlockSpec((tm, tn), lambda i, j: (i, j)),
        compiler_params=pltpu.CompilerParams(
            dimension_semantics=("parallel", "parallel")),
        cost_estimate=cost,
    )(a, b, shift)


# ----------------------------------------------------------------------------
# Fused conv3 matmul + BN shift + LeakyReLU + flatten + Linear(->1) kernel.
# ----------------------------------------------------------------------------
def _conv3_fc_kernel(a_ref, b_ref, shift_ref, wfc_ref, bias_ref, o_ref, *,
                     alpha, batch, spatial):
    # Conv3 as a single matmul: (batch*spatial, K) x (K, N) -> (batch*spatial, N)
    y = jnp.dot(a_ref[...], b_ref[...], preferred_element_type=jnp.float32)
    y = y + shift_ref[...]
    y = jnp.where(y >= 0.0, y, alpha * y)
    # Linear(256*8*8 -> 1): wfc is pre-permuted to (spatial, N) so the dot
    # product is a dense elementwise-mul + reduce over a (spatial, N) tile.
    w = wfc_ref[...].astype(jnp.float32)                     # (spatial, N)
    for b in range(batch):                                   # batch is static
        yb = y[b * spatial:(b + 1) * spatial, :]             # (spatial, N)
        per_row = jnp.sum(yb * w, axis=-1, keepdims=True)    # (spatial, 1)
        tot = jnp.sum(per_row, axis=0, keepdims=True)        # (1, 1)
        tot = tot + bias_ref[...]
        o_ref[pl.ds(b, 1), :] = jnp.broadcast_to(tot, (1, 128))


def conv3_fc(cols, w, shift, wfc, bias, *, batch, spatial, alpha=0.2):
    M, K = cols.shape
    N = w.shape[1]
    assert M == batch * spatial
    kernel = functools.partial(_conv3_fc_kernel, alpha=alpha, batch=batch,
                               spatial=spatial)
    cost = pl.CostEstimate(
        flops=2 * M * K * N + 4 * M * N,
        transcendentals=0,
        bytes_accessed=M * K * 2 + K * N * 2 + spatial * N * 2
        + N * 4 + batch * 128 * 4)
    out = pl.pallas_call(
        kernel,
        out_shape=jax.ShapeDtypeStruct((batch, 128), jnp.float32),
        grid=(1,),
        in_specs=[
            pl.BlockSpec((M, K), lambda i: (0, 0)),
            pl.BlockSpec((K, N), lambda i: (0, 0)),
            pl.BlockSpec((1, N), lambda i: (0, 0)),
            pl.BlockSpec((spatial, N), lambda i: (0, 0)),
            pl.BlockSpec((1, 1), lambda i: (0, 0)),
        ],
        out_specs=pl.BlockSpec((batch, 128), lambda i: (0, 0)),
        compiler_params=pltpu.CompilerParams(
            dimension_semantics=("arbitrary",)),
        cost_estimate=cost,
    )(cols, w, shift, wfc, bias)
    return out[:, :1]


# ----------------------------------------------------------------------------
# im2col glue (XLA, bf16) for Conv2d(k=4, s=2, p=1).
# ----------------------------------------------------------------------------
def im2col(x_nhwc, k=4, stride=2, pad=1):
    B, H, W, C = x_nhwc.shape
    Ho = (H + 2 * pad - k) // stride + 1
    Wo = (W + 2 * pad - k) // stride + 1
    xp = jnp.pad(x_nhwc, ((0, 0), (pad, pad), (pad, pad), (0, 0)))
    cols = []
    for di in range(k):
        for dj in range(k):
            cols.append(
                xp[:, di:di + stride * Ho:stride, dj:dj + stride * Wo:stride, :])
    # (B, Ho, Wo, kh*kw, C) flattened in (kh, kw, C) order.
    patches = jnp.stack(cols, axis=3)
    return patches.reshape(B * Ho * Wo, k * k * C), (B, Ho, Wo)


# ----------------------------------------------------------------------------
# Parameters: PyTorch-layout init + one-time preparation (fold / relayout).
# ----------------------------------------------------------------------------
def init_params(key):
    ks = jax.random.split(key, 8)
    return {
        "w1": 0.02 * jax.random.normal(ks[0], (64, 3, 4, 4), jnp.float32),
        "w2": 0.02 * jax.random.normal(ks[1], (128, 64, 4, 4), jnp.float32),
        "w3": 0.02 * jax.random.normal(ks[2], (256, 128, 4, 4), jnp.float32),
        # BatchNorm affine params (running stats: mean=0, var=1 by default).
        "g2": 1.0 + 0.1 * jax.random.normal(ks[3], (128,), jnp.float32),
        "b2": 0.1 * jax.random.normal(ks[4], (128,), jnp.float32),
        "g3": 1.0 + 0.1 * jax.random.normal(ks[5], (256,), jnp.float32),
        "b3": 0.1 * jax.random.normal(ks[6], (256,), jnp.float32),
        "rm2": jnp.zeros((128,), jnp.float32),
        "rv2": jnp.ones((128,), jnp.float32),
        "rm3": jnp.zeros((256,), jnp.float32),
        "rv3": jnp.ones((256,), jnp.float32),
        # Linear(256*8*8, 1): PyTorch layout (out_features, in_features) + bias.
        "wfc": 0.02 * jax.random.normal(ks[7], (1, 256 * 8 * 8), jnp.float32),
        "bfc": jnp.zeros((1,), jnp.float32),
    }


def prepare_params(params, eps=1e-5):
    """One-time weight fold/relayout/cast (hoisted out of the forward path)."""
    # Conv1: pad Cin 3->8 (lane-dense cols) and Cout 64->128 (lane-dense out).
    w1 = jnp.pad(params["w1"], ((0, 64), (0, 5), (0, 0), (0, 0)))
    w1m = jnp.transpose(w1, (2, 3, 1, 0)).reshape(-1, 128).astype(jnp.bfloat16)
    s1 = jnp.zeros((1, 128), jnp.float32)                      # no BN on conv1

    # Conv2: Cin extended 64->128 with zeros (consumes conv1's zero channels),
    # BN scale folded into weight columns (exact; eval-mode running stats).
    scale2 = params["g2"] / jnp.sqrt(params["rv2"] + eps)
    s2 = (params["b2"] - params["rm2"] * scale2).reshape(1, 128).astype(jnp.float32)
    w2 = jnp.pad(params["w2"], ((0, 0), (0, 64), (0, 0), (0, 0)))
    w2m = (jnp.transpose(w2, (2, 3, 1, 0)).reshape(-1, 128)
           * scale2.reshape(1, 128)).astype(jnp.bfloat16)

    # Conv3: BN scale folded into weight columns.
    scale3 = params["g3"] / jnp.sqrt(params["rv3"] + eps)
    s3 = (params["b3"] - params["rm3"] * scale3).reshape(1, 256).astype(jnp.float32)
    w3m = (jnp.transpose(params["w3"], (2, 3, 1, 0)).reshape(-1, 256)
           * scale3.reshape(1, 256)).astype(jnp.bfloat16)

    # FC: PyTorch flattens NCHW, i.e. index = c*64 + i*8 + j.  Re-order once to
    # (spatial=i*8+j, channel=c) so the fused kernel reduces dense (64, 256)
    # tiles and no NHWC->NCHW transpose is needed at runtime.
    wfc = params["wfc"].reshape(256, 8, 8)
    wfc_k = jnp.transpose(wfc, (1, 2, 0)).reshape(64, 256).astype(jnp.bfloat16)
    bfc = params["bfc"].reshape(1, 1).astype(jnp.float32)

    return {"w1": w1m, "s1": s1, "w2": w2m, "s2": s2,
            "w3": w3m, "s3": s3, "wfc": wfc_k, "bfc": bfc}


# ----------------------------------------------------------------------------
# Discriminator forward.
# ----------------------------------------------------------------------------
def discriminator_forward(x_nchw, pp):
    # NCHW -> NHWC, bf16 end-to-end for the conv path, channels padded 3 -> 8.
    x = jnp.transpose(x_nchw, (0, 2, 3, 1)).astype(jnp.bfloat16)
    x = jnp.pad(x, ((0, 0), (0, 0), (0, 0), (0, 8 - x.shape[-1])))

    # Conv1 (3->64, padded to 128) + LeakyReLU : M=B*32*32, K=128, N=128.
    cols1, (B1, H1, W1) = im2col(x)
    tm1 = min(1024, cols1.shape[0])
    h = fused_matmul(cols1, pp["w1"], pp["s1"], tm=tm1, tn=128)
    h = h.reshape(B1, H1, W1, 128)

    # Conv2 (64->128) + BN + LeakyReLU : M=B*16*16, K=2048, N=128.
    cols2, (B2, H2, W2) = im2col(h)
    tm2 = min(256, cols2.shape[0])
    h = fused_matmul(cols2, pp["w2"], pp["s2"], tm=tm2, tn=128)
    h = h.reshape(B2, H2, W2, 128)

    # Conv3 (128->256) + BN + LeakyReLU + Flatten + Linear(16384 -> 1),
    # fused in one kernel (single grid step; FC reduces over the whole tile).
    cols3, (B3, H3, W3) = im2col(h)
    return conv3_fc(cols3, pp["w3"], pp["s3"], pp["wfc"], pp["bfc"],
                    batch=B3, spatial=H3 * W3)                 # (B, 1) f32


if __name__ == "__main__":
    key = jax.random.PRNGKey(0)
    k_x, k_p = jax.random.split(key)
    # Input must be 64x64 spatial so that Flatten produces 256*8*8 features.
    x = jax.random.normal(k_x, (2, 3, 64, 64), jnp.float32)
    params = init_params(k_p)
    prepped = prepare_params(params)      # weight fold/cast done once, not per call

    fwd = jax.jit(discriminator_forward)
    y = fwd(x, prepped)
    jax.block_until_ready(y)
    assert y.shape == (2, 1) and y.dtype == jnp.float32
    print("KERNEL_OK")
</pallas_src>

<mosaic_0001>
module attributes {stable_mosaic.version = 11 : i64} {
  func.func @_fused_matmul_kernel(%arg0: i32, %arg1: i32, %arg2: memref<1024x128xbf16, #tpu.memory_space<vmem>>, %arg3: memref<128x128xbf16, #tpu.memory_space<vmem>>, %arg4: memref<1x128xf32, #tpu.memory_space<vmem>>, %arg5: memref<1024x128xbf16, #tpu.memory_space<vmem>>) attributes {dimension_semantics = [#tpu.dimension_semantics<parallel>, #tpu.dimension_semantics<parallel>], iteration_bounds = array<i64: 2, 1>, scalar_prefetch = 0 : i64, scratch_operands = 0 : i64, tpu.core_type = #tpu.core_type<tc>, window_params = [{transform_indices = @transform_0, window_bounds = array<i64: 1024, 128>}, {transform_indices = @transform_1, window_bounds = array<i64: 128, 128>}, {transform_indices = @transform_2, window_bounds = array<i64: 1, 128>}, {transform_indices = @transform_3, window_bounds = array<i64: 1024, 128>}]} {
    %c0 = arith.constant 0 : index
    %c0_0 = arith.constant 0 : index
    %0 = vector.load %arg2[%c0, %c0_0] : memref<1024x128xbf16, #tpu.memory_space<vmem>>, vector<1024x128xbf16>
    %c0_1 = arith.constant 0 : index
    %c0_2 = arith.constant 0 : index
    %1 = vector.load %arg3[%c0_1, %c0_2] : memref<128x128xbf16, #tpu.memory_space<vmem>>, vector<128x128xbf16>
    %cst = arith.constant dense<0.000000e+00> : vector<1024x128xf32>
    %2 = tpu.matmul %0, %1, %cst {dimension_numbers = #tpu.dot_dimension_numbers<[1], [0], [0], [1], [0, 0, 1, 1], [], []>} : vector<1024x128xbf16>, vector<128x128xbf16>, vector<1024x128xf32> -> vector<1024x128xf32>
    %c0_3 = arith.constant 0 : index
    %c0_4 = arith.constant 0 : index
    %3 = vector.load %arg4[%c0_3, %c0_4] : memref<1x128xf32, #tpu.memory_space<vmem>>, vector<1x128xf32>
    %4 = vector.broadcast %3 : vector<1x128xf32> to vector<1024x128xf32>
    %5 = arith.addf %2, %4 : vector<1024x128xf32>
    %cst_5 = arith.constant 0.000000e+00 : f32
    %6 = vector.broadcast %cst_5 : f32 to vector<1024x128xf32>
    %7 = arith.cmpf oge, %5, %6 : vector<1024x128xf32>
    %cst_6 = arith.constant 2.000000e-01 : f32
    %8 = vector.broadcast %cst_6 : f32 to vector<1024x128xf32>
    %9 = arith.mulf %8, %5 : vector<1024x128xf32>
    %10 = arith.select %7, %5, %9 : vector<1024x128xi1>, vector<1024x128xf32>
    %11 = arith.truncf %10 : vector<1024x128xf32> to vector<1024x128xbf16>
    %c0_7 = arith.constant 0 : index
    %c0_8 = arith.constant 0 : index
    %12 = vector.load %arg5[%c0_7, %c0_8] : memref<1024x128xbf16, #tpu.memory_space<vmem>>, vector<1024x128xbf16>
    tpu.vector_store %arg5[%c0_7, %c0_8], %11 {strides = array<i32>} : memref<1024x128xbf16, #tpu.memory_space<vmem>>, vector<1024x128xbf16>,
    return
  }
  func.func @transform_0(%arg0: i32, %arg1: i32) -> (i32, i32) {
    %c0_i32 = arith.constant 0 : i32
    %c0_i32_0 = arith.constant 0 : i32
    return %arg0, %c0_i32 : i32, i32
  }
  func.func @transform_1(%arg0: i32, %arg1: i32) -> (i32, i32) {
    %c0_i32 = arith.constant 0 : i32
    %c0_i32_0 = arith.constant 0 : i32
    return %c0_i32, %arg1 : i32, i32
  }
  func.func @transform_2(%arg0: i32, %arg1: i32) -> (i32, i32) {
    %c0_i32 = arith.constant 0 : i32
    %c0_i32_0 = arith.constant 0 : i32
    return %c0_i32, %arg1 : i32, i32
  }
  func.func @transform_3(%arg0: i32, %arg1: i32) -> (i32, i32) {
    %c0_i32 = arith.constant 0 : i32
    return %arg0, %arg1 : i32, i32
  }
}

module attributes {stable_mosaic.version = 11 : i64} {
  func.func @_fused_matmul_kernel(%arg0: i32, %arg1: i32, %arg2: memref<256x2048xbf16, #tpu.memory_space<vmem>>, %arg3: memref<2048x128xbf16, #tpu.memory_space<vmem>>, %arg4: memref<1x128xf32, #tpu.memory_space<vmem>>, %arg5: memref<256x128xbf16, #tpu.memory_space<vmem>>) attributes {dimension_semantics = [#tpu.dimension_semantics<parallel>, #tpu.dimension_semantics<parallel>], iteration_bounds = array<i64: 2, 1>, scalar_prefetch = 0 : i64, scratch_operands = 0 : i64, tpu.core_type = #tpu.core_type<tc>, window_params = [{transform_indices = @transform_0, window_bounds = array<i64: 256, 2048>}, {transform_indices = @transform_1, window_bounds = array<i64: 2048, 128>}, {transform_indices = @transform_2, window_bounds = array<i64: 1, 128>}, {transform_indices = @transform_3, window_bounds = array<i64: 256, 128>}]} {
    %c0 = arith.constant 0 : index
    %c0_0 = arith.constant 0 : index
    %0 = vector.load %arg2[%c0, %c0_0] : memref<256x2048xbf16, #tpu.memory_space<vmem>>, vector<256x2048xbf16>
    %c0_1 = arith.constant 0 : index
    %c0_2 = arith.constant 0 : index
    %1 = vector.load %arg3[%c0_1, %c0_2] : memref<2048x128xbf16, #tpu.memory_space<vmem>>, vector<2048x128xbf16>
    %cst = arith.constant dense<0.000000e+00> : vector<256x128xf32>
    %2 = tpu.matmul %0, %1, %cst {dimension_numbers = #tpu.dot_dimension_numbers<[1], [0], [0], [1], [0, 0, 1, 1], [], []>} : vector<256x2048xbf16>, vector<2048x128xbf16>, vector<256x128xf32> -> vector<256x128xf32>
    %c0_3 = arith.constant 0 : index
    %c0_4 = arith.constant 0 : index
    %3 = vector.load %arg4[%c0_3, %c0_4] : memref<1x128xf32, #tpu.memory_space<vmem>>, vector<1x128xf32>
    %4 = vector.broadcast %3 : vector<1x128xf32> to vector<256x128xf32>
    %5 = arith.addf %2, %4 : vector<256x128xf32>
    %cst_5 = arith.constant 0.000000e+00 : f32
    %6 = vector.broadcast %cst_5 : f32 to vector<256x128xf32>
    %7 = arith.cmpf oge, %5, %6 : vector<256x128xf32>
    %cst_6 = arith.constant 2.000000e-01 : f32
    %8 = vector.broadcast %cst_6 : f32 to vector<256x128xf32>
    %9 = arith.mulf %8, %5 : vector<256x128xf32>
    %10 = arith.select %7, %5, %9 : vector<256x128xi1>, vector<256x128xf32>
    %11 = arith.truncf %10 : vector<256x128xf32> to vector<256x128xbf16>
    %c0_7 = arith.constant 0 : index
    %c0_8 = arith.constant 0 : index
    %12 = vector.load %arg5[%c0_7, %c0_8] : memref<256x128xbf16, #tpu.memory_space<vmem>>, vector<256x128xbf16>
    tpu.vector_store %arg5[%c0_7, %c0_8], %11 {strides = array<i32>} : memref<256x128xbf16, #tpu.memory_space<vmem>>, vector<256x128xbf16>,
    return
  }
  func.func @transform_0(%arg0: i32, %arg1: i32) -> (i32, i32) {
    %c0_i32 = arith.constant 0 : i32
    %c0_i32_0 = arith.constant 0 : i32
    return %arg0, %c0_i32 : i32, i32
  }
  func.func @transform_1(%arg0: i32, %arg1: i32) -> (i32, i32) {
    %c0_i32 = arith.constant 0 : i32
    %c0_i32_0 = arith.constant 0 : i32
    return %c0_i32, %arg1 : i32, i32
  }
  func.func @transform_2(%arg0: i32, %arg1: i32) -> (i32, i32) {
    %c0_i32 = arith.constant 0 : i32
    %c0_i32_0 = arith.constant 0 : i32
    return %c0_i32, %arg1 : i32, i32
  }
  func.func @transform_3(%arg0: i32, %arg1: i32) -> (i32, i32) {
    %c0_i32 = arith.constant 0 : i32
    return %arg0, %arg1 : i32, i32
  }
}

module attributes {stable_mosaic.version = 11 : i64} {
  func.func @_conv3_fc_kernel(%arg0: i32, %arg1: memref<128x2048xbf16, #tpu.memory_space<vmem>>, %arg2: memref<2048x256xbf16, #tpu.memory_space<vmem>>, %arg3: memref<1x256xf32, #tpu.memory_space<vmem>>, %arg4: memref<64x256xbf16, #tpu.memory_space<vmem>>, %arg5: memref<1x1xf32, #tpu.memory_space<vmem>>, %arg6: memref<2x128xf32, #tpu.memory_space<vmem>>) attributes {dimension_semantics = [#tpu.dimension_semantics<arbitrary>], iteration_bounds = array<i64: 1>, scalar_prefetch = 0 : i64, scratch_operands = 0 : i64, tpu.core_type = #tpu.core_type<tc>, window_params = [{pipeline_mode = #tpu.pipeline_mode<synchronous>, transform_indices = @transform_0, window_bounds = array<i64: 128, 2048>}, {pipeline_mode = #tpu.pipeline_mode<synchronous>, transform_indices = @transform_1, window_bounds = array<i64: 2048, 256>}, {pipeline_mode = #tpu.pipeline_mode<synchronous>, transform_indices = @transform_2, window_bounds = array<i64: 1, 256>}, {pipeline_mode = #tpu.pipeline_mode<synchronous>, transform_indices = @transform_3, window_bounds = array<i64: 64, 256>}, {pipeline_mode = #tpu.pipeline_mode<synchronous>, transform_indices = @transform_4, window_bounds = array<i64: 1, 1>}, {pipeline_mode = #tpu.pipeline_mode<synchronous>, transform_indices = @transform_5, window_bounds = array<i64: 2, 128>}]} {
    %c0 = arith.constant 0 : index
    %c0_0 = arith.constant 0 : index
    %0 = vector.load %arg1[%c0, %c0_0] : memref<128x2048xbf16, #tpu.memory_space<vmem>>, vector<128x2048xbf16>
    %c0_1 = arith.constant 0 : index
    %c0_2 = arith.constant 0 : index
    %1 = vector.load %arg2[%c0_1, %c0_2] : memref<2048x256xbf16, #tpu.memory_space<vmem>>, vector<2048x256xbf16>
    %cst = arith.constant dense<0.000000e+00> : vector<128x256xf32>
    %2 = tpu.matmul %0, %1, %cst {dimension_numbers = #tpu.dot_dimension_numbers<[1], [0], [0], [1], [0, 0, 1, 1], [], []>} : vector<128x2048xbf16>, vector<2048x256xbf16>, vector<128x256xf32> -> vector<128x256xf32>
    %c0_3 = arith.constant 0 : index
    %c0_4 = arith.constant 0 : index
    %3 = vector.load %arg3[%c0_3, %c0_4] : memref<1x256xf32, #tpu.memory_space<vmem>>, vector<1x256xf32>
    %4 = vector.broadcast %3 : vector<1x256xf32> to vector<128x256xf32>
    %5 = arith.addf %2, %4 : vector<128x256xf32>
    %cst_5 = arith.constant 0.000000e+00 : f32
    %6 = vector.broadcast %cst_5 : f32 to vector<128x256xf32>
    %7 = arith.cmpf oge, %5, %6 : vector<128x256xf32>
    %cst_6 = arith.constant 2.000000e-01 : f32
    %8 = vector.broadcast %cst_6 : f32 to vector<128x256xf32>
    %9 = arith.mulf %8, %5 : vector<128x256xf32>
    %10 = arith.select %7, %5, %9 : vector<128x256xi1>, vector<128x256xf32>
    %c0_7 = arith.constant 0 : index
    %c0_8 = arith.constant 0 : index
    %11 = vector.load %arg4[%c0_7, %c0_8] : memref<64x256xbf16, #tpu.memory_space<vmem>>, vector<64x256xbf16>
    %12 = arith.extf %11 : vector<64x256xbf16> to vector<64x256xf32>
    %13 = vector.extract_strided_slice %10 {offsets = [0, 0], sizes = [64, 256], strides = [1, 1]} : vector<128x256xf32> to vector<64x256xf32>
    %14 = arith.mulf %13, %12 : vector<64x256xf32>
    %cst_9 = arith.constant dense<0.000000e+00> : vector<64xf32>
    %15 = vector.multi_reduction <add>, %14, %cst_9 [1] : vector<64x256xf32> to vector<64xf32>
    %16 = vector.shape_cast %15 : vector<64xf32> to vector<64x1xf32>
    %cst_10 = arith.constant dense<0.000000e+00> : vector<1xf32>
    %17 = vector.multi_reduction <add>, %16, %cst_10 [0] : vector<64x1xf32> to vector<1xf32>
    %18 = vector.shape_cast %17 : vector<1xf32> to vector<1x1xf32>
    %c0_11 = arith.constant 0 : index
    %c0_12 = arith.constant 0 : index
    %19 = vector.load %arg5[%c0_11, %c0_12] : memref<1x1xf32, #tpu.memory_space<vmem>>, vector<1x1xf32>
    %20 = arith.addf %18, %19 : vector<1x1xf32>
    %21 = vector.shape_cast %20 : vector<1x1xf32> to vector<1x1xf32>
    %22 = vector.broadcast %21 : vector<1x1xf32> to vector<1x128xf32>
    %c0_13 = arith.constant 0 : index
    %c0_14 = arith.constant 0 : index
    %23 = vector.load %arg6[%c0_13, %c0_14] : memref<2x128xf32, #tpu.memory_space<vmem>>, vector<1x128xf32>
    tpu.vector_store %arg6[%c0_13, %c0_14], %22 {strides = array<i32>} : memref<2x128xf32, #tpu.memory_space<vmem>>, vector<1x128xf32>,
    %24 = vector.extract_strided_slice %10 {offsets = [64, 0], sizes = [64, 256], strides = [1, 1]} : vector<128x256xf32> to vector<64x256xf32>
    %25 = arith.mulf %24, %12 : vector<64x256xf32>
    %cst_15 = arith.constant dense<0.000000e+00> : vector<64xf32>
    %26 = vector.multi_reduction <add>, %25, %cst_15 [1] : vector<64x256xf32> to vector<64xf32>
    %27 = vector.shape_cast %26 : vector<64xf32> to vector<64x1xf32>
    %cst_16 = arith.constant dense<0.000000e+00> : vector<1xf32>
    %28 = vector.multi_reduction <add>, %27, %cst_16 [0] : vector<64x1xf32> to vector<1xf32>
    %29 = vector.shape_cast %28 : vector<1xf32> to vector<1x1xf32>
    %c0_17 = arith.constant 0 : index
    %c0_18 = arith.constant 0 : index
    %30 = vector.load %arg5[%c0_17, %c0_18] : memref<1x1xf32, #tpu.memory_space<vmem>>, vector<1x1xf32>
    %31 = arith.addf %29, %30 : vector<1x1xf32>
    %32 = vector.shape_cast %31 : vector<1x1xf32> to vector<1x1xf32>
    %33 = vector.broadcast %32 : vector<1x1xf32> to vector<1x128xf32>
    %c1 = arith.constant 1 : index
    %c0_19 = arith.constant 0 : index
    %34 = vector.load %arg6[%c1, %c0_19] : memref<2x128xf32, #tpu.memory_space<vmem>>, vector<1x128xf32>
    tpu.vector_store %arg6[%c1, %c0_19], %33 {strides = array<i32>} : memref<2x128xf32, #tpu.memory_space<vmem>>, vector<1x128xf32>,
    return
  }
  func.func @transform_0(%arg0: i32) -> (i32, i32) {
    %c0_i32 = arith.constant 0 : i32
    %c0_i32_0 = arith.constant 0 : i32
    %c0_i32_1 = arith.constant 0 : i32
    return %c0_i32, %c0_i32_0 : i32, i32
  }
  func.func @transform_1(%arg0: i32) -> (i32, i32) {
    %c0_i32 = arith.constant 0 : i32
    %c0_i32_0 = arith.constant 0 : i32
    %c0_i32_1 = arith.constant 0 : i32
    return %c0_i32, %c0_i32_0 : i32, i32
  }
  func.func @transform_2(%arg0: i32) -> (i32, i32) {
    %c0_i32 = arith.constant 0 : i32
    %c0_i32_0 = arith.constant 0 : i32
    %c0_i32_1 = arith.constant 0 : i32
    return %c0_i32, %c0_i32_0 : i32, i32
  }
  func.func @transform_3(%arg0: i32) -> (i32, i32) {
    %c0_i32 = arith.constant 0 : i32
    %c0_i32_0 = arith.constant 0 : i32
    %c0_i32_1 = arith.constant 0 : i32
    return %c0_i32, %c0_i32_0 : i32, i32
  }
  func.func @transform_4(%arg0: i32) -> (i32, i32) {
    %c0_i32 = arith.constant 0 : i32
    %c0_i32_0 = arith.constant 0 : i32
    %c0_i32_1 = arith.constant 0 : i32
    return %c0_i32, %c0_i32_0 : i32, i32
  }
  func.func @transform_5(%arg0: i32) -> (i32, i32) {
    %c0_i32 = arith.constant 0 : i32
    %c0_i32_0 = arith.constant 0 : i32
    %c0_i32_1 = arith.constant 0 : i32
    return %c0_i32, %c0_i32_0 : i32, i32
  }
}

</mosaic_0001>

<bundles_post_ra>
// kernel: discriminator_forward.3
= control target key start
LH: loop header
LB: loop body
LE: loop exit
PB: predicated region body
PF: predicated region fallthrough
CT: control target
= control target key end

     0   :  { %s3578_s12 = smov 0   ;;  %s3580_s13 = smov 0   ;;  %s4010_s0 = inlined_call_operand.vmem [shape: bf16[2048,128], index: 0, kind: input, shape index: {}]   ;;  %s4011_s1 = inlined_call_operand.vmem [shape: bf16[128,128], index: 1, kind: input, shape index: {}]   ;;  %s4012_s2 = inlined_call_operand.vmem [shape: f32[1,128], index: 2, kind: input, shape index: {}]   ;;  %s4013_s3 = inlined_call_operand.vmem [shape: bf16[2048,128], index: 3, kind: output, shape index: {}]  }
   0x1   :  { %s3582_s14 = smov 0  }
   0x2 LB: > { %s25_s15 = sadd.s32 1, %s3552_s13  ;;  %p2486_p0 = scmp.ge.s32.totalorder %s3556_s14, 1  ;;  %s3556_s14 = sphi %s3582_s14, %s13_s14   ;;  %s3552_s13 = sphi %s3580_s13, %s4015_s13   ;;  %s3548_s12 = sphi %s3578_s12, %s4014_s12  }
   0x3   : > { %p27_p1 = scmp.ge.s32.totalorder %s25_s15, 2  ;;  %p169_p2 = scmp.lt.s32.totalorder %s3556_s14, 3 }
   0x5   : > { %s4017_s15 = smov (%p27_p1, %s25_s15), 0  ;;  %p170_p3 = pnand %p2486_p0, %p169_p2 }
   0x6   : > { %s2487_s18 = sshll.u32 (!%p170_p3), %s3548_s12, 7 }
   0x7   : > { %173 = sbr.rel (%p170_p3) target bundleno = 389 (0x185), region = 32  ;;  %p204_p4 = scmp.lt.s32.totalorder (!%p170_p3), %s2487_s18, 255 }
   0xc   : > { %v3461_v0 = vld [vmem:[%s4011_s1 + $0x38] sm:$0xff]   ;;  %v3462_v1 = vld [vmem:[%s4011_s1 + $0x30] sm:$0xff]   ;;  %s4019_s18 = smov (!%p204_p4, %s2487_s18), 255  ;;  %v3463_v2 = vld [vmem:[%s4011_s1 + $0x28] sm:$0xff]  }
   0xd   : > { %3277 = vmatprep.subr.bf16.mxu0 %v3461_v0  ;;  %3421 = vmatprep.subr.bf16.mxu1 %v3461_v0  ;;  %s2488_s23 = sshll.u32 %s4019_s18, 2  ;;  %v3464_v3 = vld [vmem:[%s4011_s1 + $0x20] sm:$0xff]   ;;  %v3465_v6 = vld [vmem:[%s4011_s1 + $0x18] sm:$0xff]   ;;  %v3466_v7 = vld [vmem:[%s4011_s1 + $0x10] sm:$0xff]  }
   0xe   : > { %3278 = vmatpush3.bf16.msra.mxu0 %v3461_v0  ;;  %3429 = vmatpush3.bf16.msra.mxu1 %v3461_v0  ;;  %s3613_s26 = scalar_lea.vmem %s4010_s0, %s2488_s23  ;;  %v3467_v8 = vld [vmem:[%s4011_s1 + $0x8] sm:$0xff]   ;;  %v3468_v9 = vld [vmem:[%s4011_s1] sm:$0xff]   ;;  %s3712_s17 = scalar_lea.vmem %s4013_s3, %s2488_s23 }
   0xf   : > { %3279 = vmatprep.subr.bf16.mxu0 %v3462_v1  ;;  %3422 = vmatprep.subr.bf16.mxu1 %v3462_v1  ;;  %v3469_v4 = vld [vmem:[%s3613_s26] sm:$0xff]   ;;  %v3471_v10 = vld [vmem:[%s3613_s26 + $0x8] sm:$0xff]   ;;  %v3473_v12 = vld [vmem:[%s3613_s26 + $0x10] sm:$0xff]  }
  0x10   : > { %v3470_v5 = vld [vmem:[%s3613_s26 + $0x100] sm:$0xff]   ;;  %3293 = vmatprep.mubr.bf16.mxu0 %v3469_v4  ;;  %v3472_v11 = vld [vmem:[%s3613_s26 + $0x108] sm:$0xff]   ;;  %v3474_v13 = vld [vmem:[%s3613_s26 + $0x110] sm:$0xff]  }
  0x11   : > { %3357 = vmatprep.mubr.bf16.mxu1 %v3470_v5  ;;  %v3475_v14 = vld [vmem:[%s3613_s26 + $0x18] sm:$0xff]   ;;  %v3477_v16 = vld [vmem:[%s3613_s26 + $0x20] sm:$0xff]   ;;  %v3479_v18 = vld [vmem:[%s3613_s26 + $0x28] sm:$0xff]  }
  0x12   : > { %3280 = vmatpush3.bf16.msra.mxu0 %v3462_v1  ;;  %3430 = vmatpush3.bf16.msra.mxu1 %v3462_v1  ;;  %v3476_v15 = vld [vmem:[%s3613_s26 + $0x118] sm:$0xff]   ;;  %v3478_v17 = vld [vmem:[%s3613_s26 + $0x120] sm:$0xff]   ;;  %v3480_v19 = vld [vmem:[%s3613_s26 + $0x128] sm:$0xff]  }
  0x13   : > { %3281 = vmatprep.subr.bf16.mxu0 %v3463_v2  ;;  %3423 = vmatprep.subr.bf16.mxu1 %v3463_v2  ;;  %v3481_v20 = vld [vmem:[%s3613_s26 + $0x30] sm:$0xff]   ;;  %v3483_v22 = vld [vmem:[%s3613_s26 + $0x38] sm:$0xff]   ;;  %v3485_v24 = vld [vmem:[%s3613_s26 + $0x40] sm:$0xff]  }
  0x14   : > { %v3482_v21 = vld [vmem:[%s3613_s26 + $0x130] sm:$0xff]   ;;  %v3484_v23 = vld [vmem:[%s3613_s26 + $0x138] sm:$0xff]   ;;  %v3486_v25 = vld [vmem:[%s3613_s26 + $0x140] sm:$0xff]  }
  0x15   : > { %v3487_v26 = vld [vmem:[%s3613_s26 + $0x48] sm:$0xff]   ;;  %v3489_v28 = vld [vmem:[%s3613_s26 + $0x50] sm:$0xff]   ;;  %v3491_v30 = vld [vmem:[%s3613_s26 + $0x58] sm:$0xff]  }
  0x16   : > { %3282 = vmatpush3.bf16.msra.mxu0 %v3463_v2  ;;  %3431 = vmatpush3.bf16.msra.mxu1 %v3463_v2  ;;  %v3488_v27 = vld [vmem:[%s3613_s26 + $0x148] sm:$0xff]   ;;  %v3490_v29 = vld [vmem:[%s3613_s26 + $0x150] sm:$0xff]   ;;  %v3492_v31 = vld [vmem:[%s3613_s26 + $0x158] sm:$0xff]  }
  0x17   : > { %3283 = vmatprep.subr.bf16.mxu0 %v3464_v3  ;;  %3424 = vmatprep.subr.bf16.mxu1 %v3464_v3  ;;  %v3493_v32 = vld [vmem:[%s3613_s26 + $0x60] sm:$0xff]   ;;  %v3495_v34 = vld [vmem:[%s3613_s26 + $0x68] sm:$0xff]   ;;  %v3497_v36 = vld [vmem:[%s3613_s26 + $0x70] sm:$0xff]  }
  0x18   : > { %v3494_v33 = vld [vmem:[%s3613_s26 + $0x160] sm:$0xff]   ;;  %v3496_v35 = vld [vmem:[%s3613_s26 + $0x168] sm:$0xff]   ;;  %v3498_v37 = vld [vmem:[%s3613_s26 + $0x170] sm:$0xff]  }
  0x19   : > { %v3499_v38 = vld [vmem:[%s3613_s26 + $0x78] sm:$0xff]   ;;  %v3501_v40 = vld [vmem:[%s3613_s26 + $0x80] sm:$0xff]   ;;  %v3503_v42 = vld [vmem:[%s3613_s26 + $0x88] sm:$0xff]  }
  0x1a   : > { %3284 = vmatpush3.bf16.msra.mxu0 %v3464_v3  ;;  %3432 = vmatpush3.bf16.msra.mxu1 %v3464_v3  ;;  %v3500_v39 = vld [vmem:[%s3613_s26 + $0x178] sm:$0xff]   ;;  %v3502_v41 = vld [vmem:[%s3613_s26 + $0x180] sm:$0xff]   ;;  %v3504_v43 = vld [vmem:[%s3613_s26 + $0x188] sm:$0xff]  }
  0x1b   : > { %3285 = vmatprep.subr.bf16.mxu0 %v3465_v6  ;;  %3425 = vmatprep.subr.bf16.mxu1 %v3465_v6  ;;  %v3505_v44 = vld [vmem:[%s3613_s26 + $0x90] sm:$0xff]   ;;  %v3507_v46 = vld [vmem:[%s3613_s26 + $0x98] sm:$0xff]   ;;  %v3509_v48 = vld [vmem:[%s3613_s26 + $0xa0] sm:$0xff]  }
  0x1c   : > { %v3506_v45 = vld [vmem:[%s3613_s26 + $0x190] sm:$0xff]   ;;  %v3508_v47 = vld [vmem:[%s3613_s26 + $0x198] sm:$0xff]   ;;  %v3510_v49 = vld [vmem:[%s3613_s26 + $0x1a0] sm:$0xff]  }
  0x1d   : > { %v3511_v50 = vld [vmem:[%s3613_s26 + $0xa8] sm:$0xff]   ;;  %v3513_v52 = vld [vmem:[%s3613_s26 + $0xb0] sm:$0xff]   ;;  %v3515_v54 = vld [vmem:[%s3613_s26 + $0xb8] sm:$0xff]  }
  0x1e   : > { %3286 = vmatpush3.bf16.msra.mxu0 %v3465_v6  ;;  %3433 = vmatpush3.bf16.msra.mxu1 %v3465_v6  ;;  %v3512_v51 = vld [vmem:[%s3613_s26 + $0x1a8] sm:$0xff]   ;;  %v3514_v53 = vld [vmem:[%s3613_s26 + $0x1b0] sm:$0xff]   ;;  %v3516_v55 = vld [vmem:[%s3613_s26 + $0x1b8] sm:$0xff]  }
  0x1f   : > { %3287 = vmatprep.subr.bf16.mxu0 %v3466_v7  ;;  %3426 = vmatprep.subr.bf16.mxu1 %v3466_v7  ;;  %v3517_v56 = vld [vmem:[%s3613_s26 + $0xc0] sm:$0xff]   ;;  %v3519_v58 = vld [vmem:[%s3613_s26 + $0xc8] sm:$0xff]   ;;  %v3521_v60 = vld [vmem:[%s3613_s26 + $0xd0] sm:$0xff]  }
  0x20   : > { %v3518_v57 = vld [vmem:[%s3613_s26 + $0x1c0] sm:$0xff]   ;;  %v3520_v59 = vld [vmem:[%s3613_s26 + $0x1c8] sm:$0xff]   ;;  %v3522_v61 = vld [vmem:[%s3613_s26 + $0x1d0] sm:$0xff]  }
  0x21   : > { %v3523_v62 = vld [vmem:[%s3613_s26 + $0xd8] sm:$0xff]   ;;  %v3525_v0 = vld [vmem:[%s3613_s26 + $0xe0] sm:$0xff]   ;;  %v3527_v2 = vld [vmem:[%s3613_s26 + $0xe8] sm:$0xff]  }
  0x22   : > { %3288 = vmatpush3.bf16.msra.mxu0 %v3466_v7  ;;  %3434 = vmatpush3.bf16.msra.mxu1 %v3466_v7  ;;  %v3524_v63 = vld [vmem:[%s3613_s26 + $0x1d8] sm:$0xff]   ;;  %v3526_v1 = vld [vmem:[%s3613_s26 + $0x1e0] sm:$0xff]   ;;  %v3528_v3 = vld [vmem:[%s3613_s26 + $0x1e8] sm:$0xff]  }
  0x23   : > { %3289 = vmatprep.subr.bf16.mxu0 %v3467_v8  ;;  %3427 = vmatprep.subr.bf16.mxu1 %v3467_v8  ;;  %v3529_v4 = vld [vmem:[%s3613_s26 + $0xf0] sm:$0xff]   ;;  %v3531_v6 = vld [vmem:[%s3613_s26 + $0xf8] sm:$0xff]  }
  0x24   : > { %v3530_v5 = vld [vmem:[%s3613_s26 + $0x1f0] sm:$0xff]   ;;  %v3532_v7 = vld [vmem:[%s3613_s26 + $0x1f8] sm:$0xff]  }
  0x26   : > { %3290 = vmatpush3.bf16.msra.mxu0 %v3467_v8  ;;  %3435 = vmatpush3.bf16.msra.mxu1 %v3467_v8  ;;  %v3697_v8 = vld [vmem:[%s4012_s2] ss:$0 sm:$0xff] }
  0x27   : > { %3291 = vmatprep.subr.bf16.mxu0 %v3468_v9  ;;  %3428 = vmatprep.subr.bf16.mxu1 %v3468_v9 }
  0x2a   : > { %3292 = vmatpush3.bf16.msra.mxu0 %v3468_v9  ;;  %3436 = vmatpush3.bf16.msra.mxu1 %v3468_v9 }
  0x2d   : > { %3294 = vmatmul.mubr.bf16.vlgmr.msra.gmra.mxu0 %v3471_v10  ;;  %3358 = vmatmul.mubr.bf16.vlgmr.msra.gmra.mxu1 %v3472_v11 }
  0x2e   : > { %3297 = vmatprep.mubr.bf16.mxu0 %v3473_v12  ;;  %3361 = vmatprep.mubr.bf16.mxu1 %v3474_v13 }
  0x35   : > { %3298 = vmatmul.mubr.bf16.gmra.mxu0 %v3475_v14  ;;  %3362 = vmatmul.mubr.bf16.gmra.mxu1 %v3476_v15 }
  0x36   : > { %3301 = vmatprep.mubr.bf16.mxu0 %v3477_v16  ;;  %3365 = vmatprep.mubr.bf16.mxu1 %v3478_v17 }
  0x3d   : > { %3302 = vmatmul.mubr.bf16.gmra.mxu0 %v3479_v18  ;;  %3366 = vmatmul.mubr.bf16.gmra.mxu1 %v3480_v19 }
  0x3e   : > { %3305 = vmatprep.mubr.bf16.mxu0 %v3481_v20  ;;  %3369 = vmatprep.mubr.bf16.mxu1 %v3482_v21 }
  0x45   : > { %3306 = vmatmul.mubr.bf16.gmra.mxu0 %v3483_v22  ;;  %3370 = vmatmul.mubr.bf16.gmra.mxu1 %v3484_v23 }
  0x46   : > { %3309 = vmatprep.mubr.bf16.mxu0 %v3485_v24  ;;  %3373 = vmatprep.mubr.bf16.mxu1 %v3486_v25 }
  0x4d   : > { %3310 = vmatmul.mubr.bf16.gmra.mxu0 %v3487_v26  ;;  %3374 = vmatmul.mubr.bf16.gmra.mxu1 %v3488_v27 }
  0x4e   : > { %3313 = vmatprep.mubr.bf16.mxu0 %v3489_v28  ;;  %3377 = vmatprep.mubr.bf16.mxu1 %v3490_v29 }
  0x55   : > { %3314 = vmatmul.mubr.bf16.gmra.mxu0 %v3491_v30  ;;  %3378 = vmatmul.mubr.bf16.gmra.mxu1 %v3492_v31 }
  0x56   : > { %3317 = vmatprep.mubr.bf16.mxu0 %v3493_v32  ;;  %3381 = vmatprep.mubr.bf16.mxu1 %v3494_v33 }
  0x5d   : > { %3318 = vmatmul.mubr.bf16.gmra.mxu0 %v3495_v34  ;;  %3382 = vmatmul.mubr.bf16.gmra.mxu1 %v3496_v35 }
  0x5e   : > { %3321 = vmatprep.mubr.bf16.mxu0 %v3497_v36  ;;  %3385 = vmatprep.mubr.bf16.mxu1 %v3498_v37 }
  0x65   : > { %3322 = vmatmul.mubr.bf16.gmra.mxu0 %v3499_v38  ;;  %3386 = vmatmul.mubr.bf16.gmra.mxu1 %v3500_v39 }
  0x66   : > { %3325 = vmatprep.mubr.bf16.mxu0 %v3501_v40  ;;  %3389 = vmatprep.mubr.bf16.mxu1 %v3502_v41 }
  0x6d   : > { %3326 = vmatmul.mubr.bf16.gmra.mxu0 %v3503_v42  ;;  %3390 = vmatmul.mubr.bf16.gmra.mxu1 %v3504_v43 }
  0x6e   : > { %3329 = vmatprep.mubr.bf16.mxu0 %v3505_v44  ;;  %3393 = vmatprep.mubr.bf16.mxu1 %v3506_v45 }
  0x75   : > { %3330 = vmatmul.mubr.bf16.gmra.mxu0 %v3507_v46  ;;  %3394 = vmatmul.mubr.bf16.gmra.mxu1 %v3508_v47 }
  0x76   : > { %3333 = vmatprep.mubr.bf16.mxu0 %v3509_v48  ;;  %3397 = vmatprep.mubr.bf16.mxu1 %v3510_v49 }
  0x7d   : > { %3334 = vmatmul.mubr.bf16.gmra.mxu0 %v3511_v50  ;;  %3398 = vmatmul.mubr.bf16.gmra.mxu1 %v3512_v51 }
  0x7e   : > { %3337 = vmatprep.mubr.bf16.mxu0 %v3513_v52  ;;  %3401 = vmatprep.mubr.bf16.mxu1 %v3514_v53 }
  0x85   : > { %3338 = vmatmul.mubr.bf16.gmra.mxu0 %v3515_v54  ;;  %3402 = vmatmul.mubr.bf16.gmra.mxu1 %v3516_v55 }
  0x86   : > { %3341 = vmatprep.mubr.bf16.mxu0 %v3517_v56  ;;  %3405 = vmatprep.mubr.bf16.mxu1 %v3518_v57 }
  0x8d   : > { %3342 = vmatmul.mubr.bf16.gmra.mxu0 %v3519_v58  ;;  %3406 = vmatmul.mubr.bf16.gmra.mxu1 %v3520_v59 }
  0x8e   : > { %3345 = vmatprep.mubr.bf16.mxu0 %v3521_v60  ;;  %3409 = vmatprep.mubr.bf16.mxu1 %v3522_v61 }
  0x95   : > { %3346 = vmatmul.mubr.bf16.gmra.mxu0 %v3523_v62  ;;  %3410 = vmatmul.mubr.bf16.gmra.mxu1 %v3524_v63 }
  0x96   : > { %3349 = vmatprep.mubr.bf16.mxu0 %v3525_v0  ;;  %3413 = vmatprep.mubr.bf16.mxu1 %v3526_v1 }
  0x9d   : > { %3350 = vmatmul.mubr.bf16.gmra.mxu0 %v3527_v2  ;;  %3414 = vmatmul.mubr.bf16.gmra.mxu1 %v3528_v3 }
  0x9e   : > { %3353 = vmatprep.mubr.bf16.mxu0 %v3529_v4  ;;  %3417 = vmatprep.mubr.bf16.mxu1 %v3530_v5 }
  0xa5   : > { %3354 = vmatmul.mubr.bf16.gmra.mxu0 %v3531_v6  ;;  %3418 = vmatmul.mubr.bf16.gmra.mxu1 %v3532_v7 }
  0xed   : > { %v3295_v9 = vpop.f32.mrf.mxu0  ;;  %v3359_v10 = vpop.f32.mrf.mxu1 }
  0xee   : > { %v852_v11 = vadd.f32 %v3295_v9, %v3697_v8  ;;  %v1108_v12 = vadd.f32 %v3359_v10, %v3697_v8 }
  0xef   : > { %v843_v13 = vpop.f32.mrf.mxu0  ;;  %v1099_v14 = vpop.f32.mrf.mxu1 }
  0xf0   : > { %vm1356_vm0 = vcmp.ge.f32.partialorder %v852_v11, 0.0  ;;  %v1484_v15 = vmul.f32 0.2, %v852_v11  ;;  %vm1420_vm1 = vcmp.ge.f32.partialorder %v1108_v12, 0.0  ;;  %v1548_v16 = vmul.f32 0.2, %v1108_v12 }
  0xf1   : > { %v844_v17 = vadd.f32 %v3697_v8, %v843_v13  ;;  %v1100_v18 = vadd.f32 %v3697_v8, %v1099_v14  ;;  %v3296_v19 = vpop.f32.mrf.mxu0  ;;  %v3360_v20 = vpop.f32.mrf.mxu1 }
  0xf2   : > { %v1612_v21 = vsel %vm1356_vm0, %v852_v11, %v1484_v15  ;;  %v855_v22 = vadd.f32 %v3296_v19, %v3697_v8  ;;  %v1111_v23 = vadd.f32 %v3360_v20, %v3697_v8  ;;  %v1676_v24 = vsel %vm1420_vm1, %v1108_v12, %v1548_v16 }
  0xf3   : > { %vm1354_vm2 = vcmp.ge.f32.partialorder %v844_v17, 0.0  ;;  %v1482_v25 = vmul.f32 0.2, %v844_v17  ;;  %vm1418_vm3 = vcmp.ge.f32.partialorder %v1100_v18, 0.0  ;;  %v846_v26 = vpop.f32.mrf.mxu0  ;;  %v1102_v27 = vpop.f32.mrf.mxu1  ;;  %v1546_v31 = vmul.f32 0.2, %v1100_v18 }
  0xf4   : > { %vm1357_vm4 = vcmp.ge.f32.partialorder %v855_v22, 0.0  ;;  %v1485_v28 = vmul.f32 0.2, %v855_v22  ;;  %vm1421_vm5 = vcmp.ge.f32.partialorder %v1111_v23, 0.0  ;;  %v1549_v29 = vmul.f32 0.2, %v1111_v23 }
  0xf5   : > { %v1610_v30 = vsel %vm1354_vm2, %v844_v17, %v1482_v25  ;;  %v847_v32 = vadd.f32 %v3697_v8, %v846_v26  ;;  %v1103_v33 = vadd.f32 %v3697_v8, %v1102_v27  ;;  %v3299_v34 = vpop.f32.mrf.mxu0  ;;  %v3363_v35 = vpop.f32.mrf.mxu1  ;;  %v1674_v47 = vsel %vm1418_vm3, %v1100_v18, %v1546_v31 }
  0xf6   : > { %v1613_v36 = vsel %vm1357_vm4, %v855_v22, %v1485_v28  ;;  %v1677_v37 = vsel %vm1421_vm5, %v1111_v23, %v1549_v29  ;;  %v868_v38 = vadd.f32 %v3299_v34, %v3697_v8  ;;  %v1124_v39 = vadd.f32 %v3363_v35, %v3697_v8 }
  0xf7   : > { %v2830_v40 = vpack.c.bf16 %v1613_v36, %v1612_v21  ;;  %v2990_v41 = vpack.c.bf16 %v1677_v37, %v1676_v24  ;;  %vm1355_vm6 = vcmp.ge.f32.partialorder %v847_v32, 0.0  ;;  %v1483_v42 = vmul.f32 0.2, %v847_v32  ;;  %v859_v43 = vpop.f32.mrf.mxu0  ;;  %v1115_v44 = vpop.f32.mrf.mxu1 }
  0xf8   : > { %vm1419_vm7 = vcmp.ge.f32.partialorder %v1103_v33, 0.0  ;;  %v1547_v45 = vmul.f32 0.2, %v1103_v33  ;;  %vm1360_vm8 = vcmp.ge.f32.partialorder %v868_v38, 0.0  ;;  %v1488_v46 = vmul.f32 0.2, %v868_v38 }
  0xf9   : > { %3142 = vst [vmem:[%s3712_s17 + $0x8] sm:$0xff] %v2830_v40   ;;  %3174 = vst [vmem:[%s3712_s17 + $0x108] sm:$0xff] %v2990_v41   ;;  %v1611_v48 = vsel %vm1355_vm6, %v847_v32, %v1483_v42  ;;  %v1552_v49 = vmul.f32 0.2, %v1124_v39  ;;  %v860_v50 = vadd.f32 %v3697_v8, %v859_v43  ;;  %v3300_v51 = vpop.f32.mrf.mxu0  ;;  %v3364_v52 = vpop.f32.mrf.mxu1  ;;  %vm1424_vm9 = vcmp.ge.f32.partialorder %v1124_v39, 0.0 }
  0xfa   : > { %v2825_v53 = vpack.c.bf16 %v1611_v48, %v1610_v30  ;;  %v1675_v54 = vsel %vm1419_vm7, %v1103_v33, %v1547_v45  ;;  %v1116_v55 = vadd.f32 %v3697_v8, %v1115_v44  ;;  %v1616_v57 = vsel %vm1360_vm8, %v868_v38, %v1488_v46 }
  0xfb   : > { %v2985_v56 = vpack.c.bf16 %v1675_v54, %v1674_v47  ;;  %vm1358_vm10 = vcmp.ge.f32.partialorder %v860_v50, 0.0  ;;  %v1486_v58 = vmul.f32 0.2, %v860_v50  ;;  %v862_v59 = vpop.f32.mrf.mxu0  ;;  %v1118_v60 = vpop.f32.mrf.mxu1  ;;  %v871_v62 = vadd.f32 %v3300_v51, %v3697_v8 }
  0xfc   : > { %2826 = vst [vmem:[%s3712_s17] sm:$0xff] %v2825_v53   ;;  %vm1422_vm11 = vcmp.ge.f32.partialorder %v1116_v55, 0.0  ;;  %v1550_v61 = vmul.f32 0.2, %v1116_v55  ;;  %v1127_v63 = vadd.f32 %v3364_v52, %v3697_v8  ;;  %v1680_v0 = vsel %vm1424_vm9, %v1124_v39, %v1552_v49 }
  0xfd   : > { %3173 = vst [vmem:[%s3712_s17 + $0x100] sm:$0xff] %v2985_v56   ;;  %v1614_v1 = vsel %vm1358_vm10, %v860_v50, %v1486_v58  ;;  %v863_v2 = vadd.f32 %v3697_v8, %v862_v59  ;;  %v1119_v3 = vadd.f32 %v3697_v8, %v1118_v60  ;;  %v3303_v4 = vpop.f32.mrf.mxu0  ;;  %v3367_v5 = vpop.f32.mrf.mxu1  ;;  %vm1361_vm12 = vcmp.ge.f32.partialorder %v871_v62, 0.0 }
  0xfe   : > { %v1678_v6 = vsel %vm1422_vm11, %v1116_v55, %v1550_v61  ;;  %v1489_v7 = vmul.f32 0.2, %v871_v62  ;;  %vm1425_vm13 = vcmp.ge.f32.partialorder %v1127_v63, 0.0  ;;  %v1553_v9 = vmul.f32 0.2, %v1127_v63 }
  0xff   : > { %vm1359_vm14 = vcmp.ge.f32.partialorder %v863_v2, 0.0  ;;  %v1487_v10 = vmul.f32 0.2, %v863_v2  ;;  %vm1423_vm15 = vcmp.ge.f32.partialorder %v1119_v3, 0.0  ;;  %v875_v11 = vpop.f32.mrf.mxu0  ;;  %v1131_v12 = vpop.f32.mrf.mxu1  ;;  %v1551_v14 = vmul.f32 0.2, %v1119_v3 }
 0x100   : > { %v1617_v13 = vsel %vm1361_vm12, %v871_v62, %v1489_v7  ;;  %v884_v15 = vadd.f32 %v3303_v4, %v3697_v8  ;;  %v1140_v16 = vadd.f32 %v3367_v5, %v3697_v8  ;;  %v1681_v18 = vsel %vm1425_vm13, %v1127_v63, %v1553_v9 }
 0x101   : > { %v2840_v17 = vpack.c.bf16 %v1617_v13, %v1616_v57  ;;  %v1615_v19 = vsel %vm1359_vm14, %v863_v2, %v1487_v10  ;;  %v876_v20 = vadd.f32 %v3697_v8, %v875_v11  ;;  %v3304_v21 = vpop.f32.mrf.mxu0  ;;  %v3368_v22 = vpop.f32.mrf.mxu1  ;;  %v3000_v23 = vpack.c.bf16 %v1681_v18, %v1680_v0 }
 0x102   : > { %v2835_v24 = vpack.c.bf16 %v1615_v19, %v1614_v1  ;;  %v1679_v25 = vsel %vm1423_vm15, %v1119_v3, %v1551_v14  ;;  %vm1364_vm0 = vcmp.ge.f32.partialorder %v884_v15, 0.0  ;;  %v1492_v27 = vmul.f32 0.2, %v884_v15 }
 0x103   : > { %3144 = vst [vmem:[%s3712_s17 + $0x18] sm:$0xff] %v2840_v17   ;;  %v2995_v26 = vpack.c.bf16 %v1679_v25, %v1678_v6  ;;  %vm1428_vm1 = vcmp.ge.f32.partialorder %v1140_v16, 0.0  ;;  %v1556_v28 = vmul.f32 0.2, %v1140_v16  ;;  %v878_v29 = vpop.f32.mrf.mxu0  ;;  %v1134_v30 = vpop.f32.mrf.mxu1  ;;  %3176 = vst [vmem:[%s3712_s17 + $0x118] sm:$0xff] %v3000_v23   ;;  %vm1362_vm2 = vcmp.ge.f32.partialorder %v876_v20, 0.0 }
 0x104   : > { %3143 = vst [vmem:[%s3712_s17 + $0x10] sm:$0xff] %v2835_v24   ;;  %v1490_v31 = vmul.f32 0.2, %v876_v20  ;;  %v1132_v32 = vadd.f32 %v3697_v8, %v1131_v12  ;;  %v887_v33 = vadd.f32 %v3304_v21, %v3697_v8  ;;  %v1620_v34 = vsel %vm1364_vm0, %v884_v15, %v1492_v27 }
 0x105   : > { %3175 = vst [vmem:[%s3712_s17 + $0x110] sm:$0xff] %v2995_v26   ;;  %v1684_v35 = vsel %vm1428_vm1, %v1140_v16, %v1556_v28  ;;  %v1143_v36 = vadd.f32 %v3368_v22, %v3697_v8  ;;  %v879_v37 = vadd.f32 %v3697_v8, %v878_v29  ;;  %v3307_v38 = vpop.f32.mrf.mxu0  ;;  %v3371_v39 = vpop.f32.mrf.mxu1  ;;  %v1135_v48 = vadd.f32 %v3697_v8, %v1134_v30 }
 0x106   : > { %v1618_v40 = vsel %vm1362_vm2, %v876_v20, %v1490_v31  ;;  %vm1426_vm3 = vcmp.ge.f32.partialorder %v1132_v32, 0.0  ;;  %v1554_v41 = vmul.f32 0.2, %v1132_v32  ;;  %vm1365_vm4 = vcmp.ge.f32.partialorder %v887_v33, 0.0 }
 0x107   : > { %v1493_v42 = vmul.f32 0.2, %v887_v33  ;;  %vm1429_vm5 = vcmp.ge.f32.partialorder %v1143_v36, 0.0  ;;  %v1557_v43 = vmul.f32 0.2, %v1143_v36  ;;  %vm1363_vm6 = vcmp.ge.f32.partialorder %v879_v37, 0.0  ;;  %v891_v44 = vpop.f32.mrf.mxu0  ;;  %v1147_v45 = vpop.f32.mrf.mxu1 }
 0x108   : > { %v1682_v46 = vsel %vm1426_vm3, %v1132_v32, %v1554_v41  ;;  %v1491_v47 = vmul.f32 0.2, %v879_v37  ;;  %v900_v49 = vadd.f32 %v3307_v38, %v3697_v8  ;;  %v1156_v52 = vadd.f32 %v3371_v39, %v3697_v8 }
 0x109   : > { %v1621_v50 = vsel %vm1365_vm4, %v887_v33, %v1493_v42  ;;  %v1685_v51 = vsel %vm1429_vm5, %v1143_v36, %v1557_v43  ;;  %v892_v53 = vadd.f32 %v3697_v8, %v891_v44  ;;  %v3308_v54 = vpop.f32.mrf.mxu0  ;;  %v3372_v55 = vpop.f32.mrf.mxu1  ;;  %vm1427_vm7 = vcmp.ge.f32.partialorder %v1135_v48, 0.0 }
 0x10a   : > { %v2850_v56 = vpack.c.bf16 %v1621_v50, %v1620_v34  ;;  %v3010_v57 = vpack.c.bf16 %v1685_v51, %v1684_v35  ;;  %v1619_v58 = vsel %vm1363_vm6, %v879_v37, %v1491_v47  ;;  %v1555_v60 = vmul.f32 0.2, %v1135_v48 }
 0x10b   : > { %v2845_v59 = vpack.c.bf16 %v1619_v58, %v1618_v40  ;;  %vm1368_vm8 = vcmp.ge.f32.partialorder %v900_v49, 0.0  ;;  %v1496_v61 = vmul.f32 0.2, %v900_v49  ;;  %v894_v62 = vpop.f32.mrf.mxu0  ;;  %v1150_v63 = vpop.f32.mrf.mxu1  ;;  %vm1432_vm9 = vcmp.ge.f32.partialorder %v1156_v52, 0.0 }
 0x10c   : > { %3146 = vst [vmem:[%s3712_s17 + $0x28] sm:$0xff] %v2850_v56   ;;  %3178 = vst [vmem:[%s3712_s17 + $0x128] sm:$0xff] %v3010_v57   ;;  %v1560_v0 = vmul.f32 0.2, %v1156_v52  ;;  %vm1366_vm10 = vcmp.ge.f32.partialorder %v892_v53, 0.0  ;;  %v1683_v2 = vsel %vm1427_vm7, %v1135_v48, %v1555_v60  ;;  %v1148_v4 = vadd.f32 %v3697_v8, %v1147_v45 }
 0x10d   : > { %v1494_v1 = vmul.f32 0.2, %v892_v53  ;;  %3145 = vst [vmem:[%s3712_s17 + $0x20] sm:$0xff] %v2845_v59   ;;  %v1624_v3 = vsel %vm1368_vm8, %v900_v49, %v1496_v61  ;;  %v903_v5 = vadd.f32 %v3308_v54, %v3697_v8  ;;  %v3311_v6 = vpop.f32.mrf.mxu0  ;;  %v3375_v7 = vpop.f32.mrf.mxu1  ;;  %v3005_v9 = vpack.c.bf16 %v1683_v2, %v1682_v46 }
 0x10e   : > { %v1688_v10 = vsel %vm1432_vm9, %v1156_v52, %v1560_v0  ;;  %v1159_v12 = vadd.f32 %v3372_v55, %v3697_v8  ;;  %vm1430_vm11 = vcmp.ge.f32.partialorder %v1148_v4, 0.0  ;;  %v1558_v13 = vmul.f32 0.2, %v1148_v4 }
 0x10f   : > { %v1622_v11 = vsel %vm1366_vm10, %v892_v53, %v1494_v1  ;;  %vm1369_vm12 = vcmp.ge.f32.partialorder %v903_v5, 0.0  ;;  %v1497_v14 = vmul.f32 0.2, %v903_v5  ;;  %v907_v15 = vpop.f32.mrf.mxu0  ;;  %v1163_v16 = vpop.f32.mrf.mxu1  ;;  %3177 = vst [vmem:[%s3712_s17 + $0x120] sm:$0xff] %v3005_v9   ;;  %v895_v18 = vadd.f32 %v3697_v8, %v894_v62 }
 0x110   : > { %vm1433_vm13 = vcmp.ge.f32.partialorder %v1159_v12, 0.0  ;;  %v1561_v17 = vmul.f32 0.2, %v1159_v12  ;;  %v1151_v19 = vadd.f32 %v3697_v8, %v1150_v63  ;;  %v1686_v20 = vsel %vm1430_vm11, %v1148_v4, %v1558_v13 }
 0x111   : > { %v1625_v21 = vsel %vm1369_vm12, %v903_v5, %v1497_v14  ;;  %v916_v22 = vadd.f32 %v3311_v6, %v3697_v8  ;;  %v1172_v23 = vadd.f32 %v3375_v7, %v3697_v8  ;;  %v3312_v24 = vpop.f32.mrf.mxu0  ;;  %v3376_v25 = vpop.f32.mrf.mxu1  ;;  %vm1367_vm14 = vcmp.ge.f32.partialorder %v895_v18, 0.0 }
 0x112   : > { %v2860_v26 = vpack.c.bf16 %v1625_v21, %v1624_v3  ;;  %v1689_v27 = vsel %vm1433_vm13, %v1159_v12, %v1561_v17  ;;  %v1495_v28 = vmul.f32 0.2, %v895_v18  ;;  %vm1431_vm15 = vcmp.ge.f32.partialorder %v1151_v19, 0.0 }
 0x113   : > { %v3020_v29 = vpack.c.bf16 %v1689_v27, %v1688_v10  ;;  %v1559_v30 = vmul.f32 0.2, %v1151_v19  ;;  %vm1372_vm0 = vcmp.ge.f32.partialorder %v916_v22, 0.0  ;;  %v910_v31 = vpop.f32.mrf.mxu0  ;;  %v1166_v32 = vpop.f32.mrf.mxu1  ;;  %v1500_v34 = vmul.f32 0.2, %v916_v22 }
 0x114   : > { %3148 = vst [vmem:[%s3712_s17 + $0x38] sm:$0xff] %v2860_v26   ;;  %v1623_v33 = vsel %vm1367_vm14, %v895_v18, %v1495_v28  ;;  %vm1436_vm1 = vcmp.ge.f32.partialorder %v1172_v23, 0.0  ;;  %v1564_v35 = vmul.f32 0.2, %v1172_v23  ;;  %v908_v38 = vadd.f32 %v3697_v8, %v907_v15 }
 0x115   : > { %3180 = vst [vmem:[%s3712_s17 + $0x138] sm:$0xff] %v3020_v29   ;;  %v2855_v36 = vpack.c.bf16 %v1623_v33, %v1622_v11  ;;  %v1687_v37 = vsel %vm1431_vm15, %v1151_v19, %v1559_v30  ;;  %v1164_v39 = vadd.f32 %v3697_v8, %v1163_v16  ;;  %v3315_v40 = vpop.f32.mrf.mxu0  ;;  %v3379_v41 = vpop.f32.mrf.mxu1  ;;  %v1628_v43 = vsel %vm1372_vm0, %v916_v22, %v1500_v34 }
 0x116   : > { %v3015_v42 = vpack.c.bf16 %v1687_v37, %v1686_v20  ;;  %v1692_v44 = vsel %vm1436_vm1, %v1172_v23, %v1564_v35  ;;  %v919_v45 = vadd.f32 %v3312_v24, %v3697_v8  ;;  %vm1370_vm2 = vcmp.ge.f32.partialorder %v908_v38, 0.0 }
 0x117   : > { %3147 = vst [vmem:[%s3712_s17 + $0x30] sm:$0xff] %v2855_v36   ;;  %v1498_v46 = vmul.f32 0.2, %v908_v38  ;;  %vm1434_vm3 = vcmp.ge.f32.partialorder %v1164_v39, 0.0  ;;  %v1562_v47 = vmul.f32 0.2, %v1164_v39  ;;  %v923_v48 = vpop.f32.mrf.mxu0  ;;  %v1179_v49 = vpop.f32.mrf.mxu1  ;;  %v1175_v51 = vadd.f32 %v3376_v25, %v3697_v8 }
 0x118   : > { %3179 = vst [vmem:[%s3712_s17 + $0x130] sm:$0xff] %v3015_v42   ;;  %vm1373_vm4 = vcmp.ge.f32.partialorder %v919_v45, 0.0  ;;  %v1501_v50 = vmul.f32 0.2, %v919_v45  ;;  %v911_v52 = vadd.f32 %v3697_v8, %v910_v31  ;;  %v1167_v55 = vadd.f32 %v3697_v8, %v1166_v32 }
 0x119   : > { %v1626_v53 = vsel %vm1370_vm2, %v908_v38, %v1498_v46  ;;  %v1690_v54 = vsel %vm1434_vm3, %v1164_v39, %v1562_v47  ;;  %v932_v56 = vadd.f32 %v3315_v40, %v3697_v8  ;;  %v3316_v57 = vpop.f32.mrf.mxu0  ;;  %v3380_v58 = vpop.f32.mrf.mxu1  ;;  %vm1437_vm5 = vcmp.ge.f32.partialorder %v1175_v51, 0.0 }
 0x11a   : > { %v1629_v59 = vsel %vm1373_vm4, %v919_v45, %v1501_v50  ;;  %v1565_v60 = vmul.f32 0.2, %v1175_v51  ;;  %vm1371_vm6 = vcmp.ge.f32.partialorder %v911_v52, 0.0  ;;  %v1499_v62 = vmul.f32 0.2, %v911_v52 }
 0x11b   : > { %v2870_v61 = vpack.c.bf16 %v1629_v59, %v1628_v43  ;;  %vm1435_vm7 = vcmp.ge.f32.partialorder %v1167_v55, 0.0  ;;  %v1563_v63 = vmul.f32 0.2, %v1167_v55  ;;  %v926_v0 = vpop.f32.mrf.mxu0  ;;  %v1182_v1 = vpop.f32.mrf.mxu1  ;;  %vm1376_vm8 = vcmp.ge.f32.partialorder %v932_v56, 0.0 }
 0x11c   : > { %v1693_v2 = vsel %vm1437_vm5, %v1175_v51, %v1565_v60  ;;  %v1504_v3 = vmul.f32 0.2, %v932_v56  ;;  %v1188_v4 = vadd.f32 %v3379_v41, %v3697_v8  ;;  %v1627_v6 = vsel %vm1371_vm6, %v911_v52, %v1499_v62 }
 0x11d   : > { %3150 = vst [vmem:[%s3712_s17 + $0x48] sm:$0xff] %v2870_v61   ;;  %v3030_v5 = vpack.c.bf16 %v1693_v2, %v1692_v44  ;;  %v1691_v7 = vsel %vm1435_vm7, %v1167_v55, %v1563_v63  ;;  %v924_v9 = vadd.f32 %v3697_v8, %v923_v48  ;;  %v3319_v10 = vpop.f32.mrf.mxu0  ;;  %v3383_v11 = vpop.f32.mrf.mxu1  ;;  %v2865_v12 = vpack.c.bf16 %v1627_v6, %v1626_v53 }
 0x11e   : > { %v3025_v13 = vpack.c.bf16 %v1691_v7, %v1690_v54  ;;  %v1632_v14 = vsel %vm1376_vm8, %v932_v56, %v1504_v3  ;;  %vm1440_vm9 = vcmp.ge.f32.partialorder %v1188_v4, 0.0  ;;  %v1568_v15 = vmul.f32 0.2, %v1188_v4 }
 0x11f   : > { %3182 = vst [vmem:[%s3712_s17 + $0x148] sm:$0xff] %v3030_v5   ;;  %vm1374_vm10 = vcmp.ge.f32.partialorder %v924_v9, 0.0  ;;  %v1502_v16 = vmul.f32 0.2, %v924_v9  ;;  %v1180_v17 = vadd.f32 %v3697_v8, %v1179_v49  ;;  %v939_v18 = vpop.f32.mrf.mxu0  ;;  %v1195_v19 = vpop.f32.mrf.mxu1  ;;  %3149 = vst [vmem:[%s3712_s17 + $0x40] sm:$0xff] %v2865_v12   ;;  %v935_v20 = vadd.f32 %v3316_v57, %v3697_v8 }
 0x120   : > { %3181 = vst [vmem:[%s3712_s17 + $0x140] sm:$0xff] %v3025_v13   ;;  %v1191_v21 = vadd.f32 %v3380_v58, %v3697_v8  ;;  %v927_v22 = vadd.f32 %v3697_v8, %v926_v0  ;;  %v1183_v23 = vadd.f32 %v3697_v8, %v1182_v1  ;;  %v1696_v24 = vsel %vm1440_vm9, %v1188_v4, %v1568_v15 }
 0x121   : > { %v1630_v25 = vsel %vm1374_vm10, %v924_v9, %v1502_v16  ;;  %vm1438_vm11 = vcmp.ge.f32.partialorder %v1180_v17, 0.0  ;;  %v1566_v26 = vmul.f32 0.2, %v1180_v17  ;;  %v3320_v27 = vpop.f32.mrf.mxu0  ;;  %v3384_v28 = vpop.f32.mrf.mxu1  ;;  %vm1377_vm12 = vcmp.ge.f32.partialorder %v935_v20, 0.0 }
 0x122   : > { %v1505_v29 = vmul.f32 0.2, %v935_v20  ;;  %vm1441_vm13 = vcmp.ge.f32.partialorder %v1191_v21, 0.0  ;;  %v1569_v30 = vmul.f32 0.2, %v1191_v21  ;;  %vm1375_vm14 = vcmp.ge.f32.partialorder %v927_v22, 0.0 }
 0x123   : > { %v1694_v31 = vsel %vm1438_vm11, %v1180_v17, %v1566_v26  ;;  %v1503_v32 = vmul.f32 0.2, %v927_v22  ;;  %vm1439_vm15 = vcmp.ge.f32.partialorder %v1183_v23, 0.0  ;;  %v942_v33 = vpop.f32.mrf.mxu0  ;;  %v1198_v34 = vpop.f32.mrf.mxu1  ;;  %v1567_v37 = vmul.f32 0.2, %v1183_v23 }
 0x124   : > { %v1633_v35 = vsel %vm1377_vm12, %v935_v20, %v1505_v29  ;;  %v1697_v36 = vsel %vm1441_vm13, %v1191_v21, %v1569_v30  ;;  %v948_v38 = vadd.f32 %v3319_v10, %v3697_v8  ;;  %v1204_v42 = vadd.f32 %v3383_v11, %v3697_v8 }
 0x125   : > { %v2880_v39 = vpack.c.bf16 %v1633_v35, %v1632_v14  ;;  %v3040_v40 = vpack.c.bf16 %v1697_v36, %v1696_v24  ;;  %v1631_v41 = vsel %vm1375_vm14, %v927_v22, %v1503_v32  ;;  %v3323_v43 = vpop.f32.mrf.mxu0  ;;  %v3387_v44 = vpop.f32.mrf.mxu1  ;;  %v1695_v46 = vsel %vm1439_vm15, %v1183_v23, %v1567_v37 }
 0x126   : > { %v2875_v45 = vpack.c.bf16 %v1631_v41, %v1630_v25  ;;  %vm1380_vm0 = vcmp.ge.f32.partialorder %v948_v38, 0.0  ;;  %v1508_v47 = vmul.f32 0.2, %v948_v38  ;;  %v3035_v48 = vpack.c.bf16 %v1695_v46, %v1694_v31 }
 0x127   : > { %3152 = vst [vmem:[%s3712_s17 + $0x58] sm:$0xff] %v2880_v39   ;;  %3184 = vst [vmem:[%s3712_s17 + $0x158] sm:$0xff] %v3040_v40   ;;  %vm1444_vm1 = vcmp.ge.f32.partialorder %v1204_v42, 0.0  ;;  %v1572_v49 = vmul.f32 0.2, %v1204_v42  ;;  %v940_v50 = vadd.f32 %v3697_v8, %v939_v18  ;;  %v955_v51 = vpop.f32.mrf.mxu0  ;;  %v1211_v52 = vpop.f32.mrf.mxu1  ;;  %v1196_v54 = vadd.f32 %v3697_v8, %v1195_v19 }
 0x128   : > { %3151 = vst [vmem:[%s3712_s17 + $0x50] sm:$0xff] %v2875_v45   ;;  %v1636_v53 = vsel %vm1380_vm0, %v948_v38, %v1508_v47  ;;  %v951_v55 = vadd.f32 %v3320_v27, %v3697_v8  ;;  %v1207_v56 = vadd.f32 %v3384_v28, %v3697_v8  ;;  %3183 = vst [vmem:[%s3712_s17 + $0x150] sm:$0xff] %v3035_v48  }
 0x129   : > { %v1700_v57 = vsel %vm1444_vm1, %v1204_v42, %v1572_v49  ;;  %vm1378_vm2 = vcmp.ge.f32.partialorder %v940_v50, 0.0  ;;  %v1506_v58 = vmul.f32 0.2, %v940_v50  ;;  %v943_v59 = vadd.f32 %v3697_v8, %v942_v33  ;;  %v3324_v60 = vpop.f32.mrf.mxu0  ;;  %v3388_v61 = vpop.f32.mrf.mxu1 }
 0x12a   : > { %vm1442_vm3 = vcmp.ge.f32.partialorder %v1196_v54, 0.0  ;;  %v1570_v62 = vmul.f32 0.2, %v1196_v54  ;;  %vm1381_vm4 = vcmp.ge.f32.partialorder %v951_v55, 0.0  ;;  %v1509_v63 = vmul.f32 0.2, %v951_v55 }
 0x12b   : > { %v1634_v0 = vsel %vm1378_vm2, %v940_v50, %v1506_v58  ;;  %vm1445_vm5 = vcmp.ge.f32.partialorder %v1207_v56, 0.0  ;;  %v1573_v1 = vmul.f32 0.2, %v1207_v56  ;;  %vm1379_vm6 = vcmp.ge.f32.partialorder %v943_v59, 0.0  ;;  %v958_v2 = vpop.f32.mrf.mxu0  ;;  %v1214_v3 = vpop.f32.mrf.mxu1 }
 0x12c   : > { %v1698_v4 = vsel %vm1442_vm3, %v1196_v54, %v1570_v62  ;;  %v1637_v5 = vsel %vm1381_vm4, %v951_v55, %v1509_v63  ;;  %v1507_v6 = vmul.f32 0.2, %v943_v59  ;;  %v1199_v7 = vadd.f32 %v3697_v8, %v1198_v34 }
 0x12d   : > { %v2890_v9 = vpack.c.bf16 %v1637_v5, %v1636_v53  ;;  %v1701_v10 = vsel %vm1445_vm5, %v1207_v56, %v1573_v1  ;;  %v964_v11 = vadd.f32 %v3323_v43, %v3697_v8  ;;  %v1220_v12 = vadd.f32 %v3387_v44, %v3697_v8  ;;  %v3327_v13 = vpop.f32.mrf.mxu0  ;;  %v3391_v14 = vpop.f32.mrf.mxu1 }
 0x12e   : > { %v3050_v15 = vpack.c.bf16 %v1701_v10, %v1700_v57  ;;  %v1635_v16 = vsel %vm1379_vm6, %v943_v59, %v1507_v6  ;;  %vm1443_vm7 = vcmp.ge.f32.partialorder %v1199_v7, 0.0  ;;  %v1571_v17 = vmul.f32 0.2, %v1199_v7 }
 0x12f   : > { %3154 = vst [vmem:[%s3712_s17 + $0x68] sm:$0xff] %v2890_v9   ;;  %v2885_v18 = vpack.c.bf16 %v1635_v16, %v1634_v0  ;;  %vm1384_vm8 = vcmp.ge.f32.partialorder %v964_v11, 0.0  ;;  %v1512_v19 = vmul.f32 0.2, %v964_v11  ;;  %vm1448_vm9 = vcmp.ge.f32.partialorder %v1220_v12, 0.0  ;;  %v971_v20 = vpop.f32.mrf.mxu0  ;;  %v1227_v21 = vpop.f32.mrf.mxu1 }
 0x130   : > { %3186 = vst [vmem:[%s3712_s17 + $0x168] sm:$0xff] %v3050_v15   ;;  %v1699_v22 = vsel %vm1443_vm7, %v1199_v7, %v1571_v17  ;;  %v1576_v23 = vmul.f32 0.2, %v1220_v12  ;;  %v956_v24 = vadd.f32 %v3697_v8, %v955_v51  ;;  %v1212_v25 = vadd.f32 %v3697_v8, %v1211_v52 }
 0x131   : > { %3153 = vst [vmem:[%s3712_s17 + $0x60] sm:$0xff] %v2885_v18   ;;  %v3045_v26 = vpack.c.bf16 %v1699_v22, %v1698_v4  ;;  %v1640_v27 = vsel %vm1384_vm8, %v964_v11, %v1512_v19  ;;  %v967_v28 = vadd.f32 %v3324_v60, %v3697_v8  ;;  %v1223_v29 = vadd.f32 %v3388_v61, %v3697_v8  ;;  %v3328_v30 = vpop.f32.mrf.mxu0  ;;  %v3392_v31 = vpop.f32.mrf.mxu1 }
 0x132   : > { %v1704_v32 = vsel %vm1448_vm9, %v1220_v12, %v1576_v23  ;;  %vm1382_vm10 = vcmp.ge.f32.partialorder %v956_v24, 0.0  ;;  %v1510_v33 = vmul.f32 0.2, %v956_v24  ;;  %vm1446_vm11 = vcmp.ge.f32.partialorder %v1212_v25, 0.0 }
 0x133   : > { %3185 = vst [vmem:[%s3712_s17 + $0x160] sm:$0xff] %v3045_v26   ;;  %v1574_v34 = vmul.f32 0.2, %v1212_v25  ;;  %vm1385_vm12 = vcmp.ge.f32.partialorder %v967_v28, 0.0  ;;  %v1513_v35 = vmul.f32 0.2, %v967_v28  ;;  %v974_v36 = vpop.f32.mrf.mxu0  ;;  %v1230_v37 = vpop.f32.mrf.mxu1  ;;  %v959_v40 = vadd.f32 %v3697_v8, %v958_v2 }
 0x134   : > { %vm1449_vm13 = vcmp.ge.f32.partialorder %v1223_v29, 0.0  ;;  %v1638_v38 = vsel %vm1382_vm10, %v956_v24, %v1510_v33  ;;  %v1577_v39 = vmul.f32 0.2, %v1223_v29  ;;  %v1215_v41 = vadd.f32 %v3697_v8, %v1214_v3 }
 0x135   : > { %v1702_v42 = vsel %vm1446_vm11, %v1212_v25, %v1574_v34  ;;  %v1641_v43 = vsel %vm1385_vm12, %v967_v28, %v1513_v35  ;;  %v980_v44 = vadd.f32 %v3327_v13, %v3697_v8  ;;  %v1236_v45 = vadd.f32 %v3391_v14, %v3697_v8  ;;  %v3331_v46 = vpop.f32.mrf.mxu0  ;;  %v3395_v47 = vpop.f32.mrf.mxu1 }
 0x136   : > { %v2900_v48 = vpack.c.bf16 %v1641_v43, %v1640_v27  ;;  %v1705_v49 = vsel %vm1449_vm13, %v1223_v29, %v1577_v39  ;;  %vm1383_vm14 = vcmp.ge.f32.partialorder %v959_v40, 0.0  ;;  %v1511_v50 = vmul.f32 0.2, %v959_v40 }
 0x137   : > { %v3060_v51 = vpack.c.bf16 %v1705_v49, %v1704_v32  ;;  %vm1447_vm15 = vcmp.ge.f32.partialorder %v1215_v41, 0.0  ;;  %v1575_v52 = vmul.f32 0.2, %v1215_v41  ;;  %vm1388_vm0 = vcmp.ge.f32.partialorder %v980_v44, 0.0  ;;  %v987_v53 = vpop.f32.mrf.mxu0  ;;  %v3802_v54 = vpop.f32.mrf.mxu1 }
 0x138   : > { %3156 = vst [vmem:[%s3712_s17 + $0x78] sm:$0xff] %v2900_v48   ;;  %v1639_v55 = vsel %vm1383_vm14, %v959_v40, %v1511_v50  ;;  %v1516_v56 = vmul.f32 0.2, %v980_v44  ;;  %vm1452_vm1 = vcmp.ge.f32.partialorder %v1236_v45, 0.0  ;;  %v1580_v57 = vmul.f32 0.2, %v1236_v45 }
 0x139   : > { %3188 = vst [vmem:[%s3712_s17 + $0x178] sm:$0xff] %v3060_v51   ;;  %v2895_v58 = vpack.c.bf16 %v1639_v55, %v1638_v38  ;;  %v1703_v59 = vsel %vm1447_vm15, %v1215_v41, %v1575_v52  ;;  %v972_v60 = vadd.f32 %v3697_v8, %v971_v20  ;;  %v1228_v61 = vadd.f32 %v3697_v8, %v1227_v21  ;;  %v3332_v62 = vpop.f32.mrf.mxu0  ;;  %v3396_v63 = vpop.f32.mrf.mxu1 }
 0x13a   : > { %v3055_v0 = vpack.c.bf16 %v1703_v59, %v1702_v42  ;;  %v1644_v1 = vsel %vm1388_vm0, %v980_v44, %v1516_v56  ;;  %v1708_v2 = vsel %vm1452_vm1, %v1236_v45, %v1580_v57  ;;  %v983_v3 = vadd.f32 %v3328_v30, %v3697_v8 }
 0x13b   : > { %3155 = vst [vmem:[%s3712_s17 + $0x70] sm:$0xff] %v2895_v58   ;;  %vm1386_vm2 = vcmp.ge.f32.partialorder %v972_v60, 0.0  ;;  %v1514_v4 = vmul.f32 0.2, %v972_v60  ;;  %vm1450_vm3 = vcmp.ge.f32.partialorder %v1228_v61, 0.0  ;;  %v990_v6 = vpop.f32.mrf.mxu0  ;;  %v1246_v7 = vpop.f32.mrf.mxu1  ;;  %v1239_v10 = vadd.f32 %v3392_v31, %v3697_v8 }
 0x13c   : > { %v1578_v5 = vmul.f32 0.2, %v1228_v61  ;;  %3187 = vst [vmem:[%s3712_s17 + $0x170] sm:$0xff] %v3055_v0   ;;  %vm1389_vm4 = vcmp.ge.f32.partialorder %v983_v3, 0.0  ;;  %v1517_v9 = vmul.f32 0.2, %v983_v3  ;;  %v975_v11 = vadd.f32 %v3697_v8, %v974_v36 }
 0x13d   : > { %v1642_v12 = vsel %vm1386_vm2, %v972_v60, %v1514_v4  ;;  %v1231_v14 = vadd.f32 %v3697_v8, %v1230_v37  ;;  %v996_v15 = vadd.f32 %v3331_v46, %v3697_v8  ;;  %v3335_v16 = vpop.f32.mrf.mxu0  ;;  %v3816_v17 = vpop.f32.mrf.mxu1  ;;  %vm1453_vm5 = vcmp.ge.f32.partialorder %v1239_v10, 0.0 }
 0x13e   : > { %v1706_v13 = vsel %vm1450_vm3, %v1228_v61, %v1578_v5  ;;  %v1645_v18 = vsel %vm1389_vm4, %v983_v3, %v1517_v9  ;;  %v1581_v19 = vmul.f32 0.2, %v1239_v10  ;;  %vm1387_vm6 = vcmp.ge.f32.partialorder %v975_v11, 0.0 }
 0x13f   : > { %v2910_v20 = vpack.c.bf16 %v1645_v18, %v1644_v1  ;;  %v1515_v21 = vmul.f32 0.2, %v975_v11  ;;  %vm1451_vm7 = vcmp.ge.f32.partialorder %v1231_v14, 0.0  ;;  %v1579_v22 = vmul.f32 0.2, %v1231_v14  ;;  %v3818_v23 = vpop.f32.mrf.mxu0  ;;  %v3820_v24 = vpop.f32.mrf.mxu1 }
 0x140   : > { %v1709_v25 = vsel %vm1453_vm5, %v1239_v10, %v1581_v19  ;;  %vm1392_vm8 = vcmp.ge.f32.partialorder %v996_v15, 0.0  ;;  %v1520_v26 = vmul.f32 0.2, %v996_v15  ;;  %v1252_v27 = vadd.f32 %v3395_v47, %v3697_v8  ;;  %v3868_v18 = vld [vmem:[%s4012_s2] ss:$0 sm:$0xff] }
 0x141   : > { %3158 = vst [vmem:[%s3712_s17 + $0x88] sm:$0xff] %v2910_v20   ;;  %v3070_v28 = vpack.c.bf16 %v1709_v25, %v1708_v2  ;;  %v1643_v29 = vsel %vm1387_vm6, %v975_v11, %v1515_v21  ;;  %v1707_v30 = vsel %vm1451_vm7, %v1231_v14, %v1579_v22  ;;  %v988_v31 = vadd.f32 %v3697_v8, %v987_v53  ;;  %v3336_v32 = vpop.f32.mrf.mxu0  ;;  %v3400_v33 = vpop.f32.mrf.mxu1 }
 0x142   : > { %v2905_v34 = vpack.c.bf16 %v1643_v29, %v1642_v12  ;;  %v3065_v35 = vpack.c.bf16 %v1707_v30, %v1706_v13  ;;  %v1648_v36 = vsel %vm1392_vm8, %v996_v15, %v1520_v26  ;;  %vm1456_vm9 = vcmp.ge.f32.partialorder %v1252_v27, 0.0 }
 0x143   : > { %3190 = vst [vmem:[%s3712_s17 + $0x188] sm:$0xff] %v3070_v28   ;;  %v1584_v37 = vmul.f32 0.2, %v1252_v27  ;;  %vm1390_vm10 = vcmp.ge.f32.partialorder %v988_v31, 0.0  ;;  %v1518_v38 = vmul.f32 0.2, %v988_v31  ;;  %v1244_v39 = vadd.f32 %v3697_v8, %v3802_v54  ;;  %v1006_v40 = vpop.f32.mrf.mxu0  ;;  %v3828_v41 = vpop.f32.mrf.mxu1 }
 0x144   : > { %3157 = vst [vmem:[%s3712_s17 + $0x80] sm:$0xff] %v2905_v34   ;;  %3189 = vst [vmem:[%s3712_s17 + $0x180] sm:$0xff] %v3065_v35   ;;  %v999_v42 = vadd.f32 %v3332_v62, %v3697_v8  ;;  %v1255_v43 = vadd.f32 %v3396_v63, %v3697_v8  ;;  %v991_v44 = vadd.f32 %v3697_v8, %v990_v6 }
 0x145   : > { %v1247_v45 = vadd.f32 %v3697_v8, %v1246_v7  ;;  %v1712_v46 = vsel %vm1456_vm9, %v1252_v27, %v1584_v37  ;;  %v1646_v47 = vsel %vm1390_vm10, %v988_v31, %v1518_v38  ;;  %vm1454_vm11 = vcmp.ge.f32.partialorder %v1244_v39, 0.0  ;;  %v3836_v49 = vpop.f32.mrf.mxu0  ;;  %v3838_v50 = vpop.f32.mrf.mxu1 }
 0x146   : > { %v1582_v48 = vmul.f32 0.2, %v1244_v39  ;;  %vm1393_vm12 = vcmp.ge.f32.partialorder %v999_v42, 0.0  ;;  %v1521_v51 = vmul.f32 0.2, %v999_v42  ;;  %vm1457_vm13 = vcmp.ge.f32.partialorder %v1255_v43, 0.0 }
 0x147   : > { %v1585_v52 = vmul.f32 0.2, %v1255_v43  ;;  %vm1391_vm14 = vcmp.ge.f32.partialorder %v991_v44, 0.0  ;;  %v1519_v54 = vmul.f32 0.2, %v991_v44  ;;  %vm1455_vm15 = vcmp.ge.f32.partialorder %v1247_v45, 0.0  ;;  %v3840_v55 = vpop.f32.mrf.mxu0  ;;  %v3842_v56 = vpop.f32.mrf.mxu1 }
 0x148   : > { %v1710_v53 = vsel %vm1454_vm11, %v1244_v39, %v1582_v48  ;;  %v1649_v57 = vsel %vm1393_vm12, %v999_v42, %v1521_v51  ;;  %v1583_v59 = vmul.f32 0.2, %v1247_v45  ;;  %v1012_v60 = vadd.f32 %v3335_v16, %v3697_v8 }
 0x149   : > { %v1713_v58 = vsel %vm1457_vm13, %v1255_v43, %v1585_v52  ;;  %v2920_v61 = vpack.c.bf16 %v1649_v57, %v1648_v36  ;;  %v1647_v63 = vsel %vm1391_vm14, %v991_v44, %v1519_v54  ;;  %v1268_v0 = vadd.f32 %v3816_v17, %v3697_v8  ;;  %v3847_v1 = vpop.f32.mrf.mxu0  ;;  %v3849_v2 = vpop.f32.mrf.mxu1 }
 0x14a   : > { %v3080_v62 = vpack.c.bf16 %v1713_v58, %v1712_v46  ;;  %v2915_v3 = vpack.c.bf16 %v1647_v63, %v1646_v47  ;;  %v1711_v4 = vsel %vm1455_vm15, %v1247_v45, %v1583_v59  ;;  %vm1396_vm0 = vcmp.ge.f32.partialorder %v1012_v60, 0.0 }
 0x14b   : > { %v1524_v5 = vmul.f32 0.2, %v1012_v60  ;;  %3160 = vst [vmem:[%s3712_s17 + $0x98] sm:$0xff] %v2920_v61   ;;  %v3075_v6 = vpack.c.bf16 %v1711_v4, %v1710_v53  ;;  %vm1460_vm1 = vcmp.ge.f32.partialorder %v1268_v0, 0.0  ;;  %v1588_v7 = vmul.f32 0.2, %v1268_v0  ;;  %v3855_v10 = vpop.f32.mrf.mxu0  ;;  %v3857_v11 = vpop.f32.mrf.mxu1 }
 0x14c   : > { %3192 = vst [vmem:[%s3712_s17 + $0x198] sm:$0xff] %v3080_v62   ;;  %v1004_v9 = vadd.f32 %v3697_v8, %v3818_v23  ;;  %3159 = vst [vmem:[%s3712_s17 + $0x90] sm:$0xff] %v2915_v3   ;;  %v1260_v13 = vadd.f32 %v3697_v8, %v3820_v24  ;;  %v1015_v14 = vadd.f32 %v3336_v32, %v3697_v8 }
 0x14d   : > { %v1652_v12 = vsel %vm1396_vm0, %v1012_v60, %v1524_v5  ;;  %v1271_v15 = vadd.f32 %v3400_v33, %v3697_v8  ;;  %3191 = vst [vmem:[%s3712_s17 + $0x190] sm:$0xff] %v3075_v6   ;;  %v1716_v16 = vsel %vm1460_vm1, %v1268_v0, %v1588_v7  ;;  %v1007_v19 = vadd.f32 %v3868_v18, %v1006_v40  ;;  %v3871_v20 = vpop.f32.mrf.mxu0  ;;  %v3407_v21 = vpop.f32.mrf.mxu1 }
 0x14e   : > { %vm1394_vm2 = vcmp.ge.f32.partialorder %v1004_v9, 0.0  ;;  %v1522_v17 = vmul.f32 0.2, %v1004_v9  ;;  %vm1458_vm3 = vcmp.ge.f32.partialorder %v1260_v13, 0.0  ;;  %v1586_v22 = vmul.f32 0.2, %v1260_v13 }
 0x14f   : > { %vm1397_vm4 = vcmp.ge.f32.partialorder %v1015_v14, 0.0  ;;  %v1525_v23 = vmul.f32 0.2, %v1015_v14  ;;  %vm1461_vm5 = vcmp.ge.f32.partialorder %v1271_v15, 0.0  ;;  %v1589_v8 = vmul.f32 0.2, %v1271_v15  ;;  %v3873_v25 = vpop.f32.mrf.mxu0  ;;  %v3875_v26 = vpop.f32.mrf.mxu1 }
 0x150   : > { %v1650_v24 = vsel %vm1394_vm2, %v1004_v9, %v1522_v17  ;;  %vm1395_vm6 = vcmp.ge.f32.partialorder %v1007_v19, 0.0  ;;  %v1714_v27 = vsel %vm1458_vm3, %v1260_v13, %v1586_v22  ;;  %v1523_v29 = vmul.f32 0.2, %v1007_v19 }
 0x151   : > { %v1653_v28 = vsel %vm1397_vm4, %v1015_v14, %v1525_v23  ;;  %v1263_v30 = vadd.f32 %v3868_v18, %v3828_v41  ;;  %v1717_v32 = vsel %vm1461_vm5, %v1271_v15, %v1589_v8  ;;  %v1028_v33 = vadd.f32 %v3868_v18, %v3836_v49  ;;  %v3883_v35 = vpop.f32.mrf.mxu0  ;;  %v3885_v36 = vpop.f32.mrf.mxu1 }
 0x152   : > { %v2930_v31 = vpack.c.bf16 %v1653_v28, %v1652_v12  ;;  %v1284_v34 = vadd.f32 %v3868_v18, %v3838_v50  ;;  %v3090_v37 = vpack.c.bf16 %v1717_v32, %v1716_v16  ;;  %v1651_v38 = vsel %vm1395_vm6, %v1007_v19, %v1523_v29 }
 0x153   : > { %vm1459_vm7 = vcmp.ge.f32.partialorder %v1263_v30, 0.0  ;;  %v1587_v39 = vmul.f32 0.2, %v1263_v30  ;;  %v2925_v40 = vpack.c.bf16 %v1651_v38, %v1650_v24  ;;  %vm1400_vm8 = vcmp.ge.f32.partialorder %v1028_v33, 0.0  ;;  %v3888_v42 = vpop.f32.mrf.mxu0  ;;  %v3890_v43 = vpop.f32.mrf.mxu1 }
 0x154   : > { %3162 = vst [vmem:[%s3712_s17 + $0xa8] sm:$0xff] %v2930_v31   ;;  %v1528_v41 = vmul.f32 0.2, %v1028_v33  ;;  %vm1464_vm9 = vcmp.ge.f32.partialorder %v1284_v34, 0.0  ;;  %3194 = vst [vmem:[%s3712_s17 + $0x1a8] sm:$0xff] %v3090_v37   ;;  %v1020_v46 = vadd.f32 %v3868_v18, %v3840_v55  ;;  %v1276_v47 = vadd.f32 %v3868_v18, %v3842_v56 }
 0x155   : > { %v1715_v44 = vsel %vm1459_vm7, %v1263_v30, %v1587_v39  ;;  %v1592_v45 = vmul.f32 0.2, %v1284_v34  ;;  %3161 = vst [vmem:[%s3712_s17 + $0xa0] sm:$0xff] %v2925_v40   ;;  %v1031_v50 = vadd.f32 %v3868_v18, %v3847_v1  ;;  %v1287_v51 = vadd.f32 %v3868_v18, %v3849_v2  ;;  %v3347_v52 = vpop.f32.mrf.mxu0  ;;  %v3902_v53 = vpop.f32.mrf.mxu1 }
 0x156   : > { %v3085_v48 = vpack.c.bf16 %v1715_v44, %v1714_v27  ;;  %v1656_v49 = vsel %vm1400_vm8, %v1028_v33, %v1528_v41  ;;  %vm1398_vm10 = vcmp.ge.f32.partialorder %v1020_v46, 0.0  ;;  %v1526_v57 = vmul.f32 0.2, %v1020_v46 }
 0x157   : > { %v1720_v54 = vsel %vm1464_vm9, %v1284_v34, %v1592_v45  ;;  %vm1462_vm11 = vcmp.ge.f32.partialorder %v1276_v47, 0.0  ;;  %v1590_v55 = vmul.f32 0.2, %v1276_v47  ;;  %vm1401_vm12 = vcmp.ge.f32.partialorder %v1031_v50, 0.0  ;;  %v3905_v58 = vpop.f32.mrf.mxu0  ;;  %v3907_v59 = vpop.f32.mrf.mxu1 }
 0x158   : > { %3193 = vst [vmem:[%s3712_s17 + $0x1a0] sm:$0xff] %v3085_v48   ;;  %v1529_v56 = vmul.f32 0.2, %v1031_v50  ;;  %vm1465_vm13 = vcmp.ge.f32.partialorder %v1287_v51, 0.0  ;;  %v1654_v60 = vsel %vm1398_vm10, %v1020_v46, %v1526_v57  ;;  %v1593_v61 = vmul.f32 0.2, %v1287_v51 }
 0x159   : > { %v1023_v62 = vadd.f32 %v3868_v18, %v3855_v10  ;;  %v1279_v63 = vadd.f32 %v3868_v18, %v3857_v11  ;;  %v1718_v0 = vsel %vm1462_vm11, %v1276_v47, %v1590_v55  ;;  %v1044_v2 = vadd.f32 %v3868_v18, %v3871_v20  ;;  %v3916_v4 = vpop.f32.mrf.mxu0  ;;  %v3918_v5 = vpop.f32.mrf.mxu1 }
 0x15a   : > { %v1657_v1 = vsel %vm1401_vm12, %v1031_v50, %v1529_v56  ;;  %v1300_v3 = vadd.f32 %v3868_v18, %v3407_v21  ;;  %v1721_v7 = vsel %vm1465_vm13, %v1287_v51, %v1593_v61  ;;  %v1036_v20 = vadd.f32 %v3868_v18, %v3873_v25 }
 0x15b   : > { %v2940_v6 = vpack.c.bf16 %v1657_v1, %v1656_v49  ;;  %vm1399_vm14 = vcmp.ge.f32.partialorder %v1023_v62, 0.0  ;;  %v1527_v9 = vmul.f32 0.2, %v1023_v62  ;;  %v3100_v10 = vpack.c.bf16 %v1721_v7, %v1720_v54  ;;  %v3920_v12 = vpop.f32.mrf.mxu0  ;;  %v3922_v13 = vpop.f32.mrf.mxu1 }
 0x15c   : > { %vm1463_vm15 = vcmp.ge.f32.partialorder %v1279_v63, 0.0  ;;  %v1591_v11 = vmul.f32 0.2, %v1279_v63  ;;  %vm1404_vm0 = vcmp.ge.f32.partialorder %v1044_v2, 0.0  ;;  %v1532_v15 = vmul.f32 0.2, %v1044_v2 }
 0x15d   : > { %3164 = vst [vmem:[%s3712_s17 + $0xb8] sm:$0xff] %v2940_v6   ;;  %v1655_v14 = vsel %vm1399_vm14, %v1023_v62, %v1527_v9  ;;  %vm1468_vm1 = vcmp.ge.f32.partialorder %v1300_v3, 0.0  ;;  %v1596_v16 = vmul.f32 0.2, %v1300_v3  ;;  %3196 = vst [vmem:[%s3712_s17 + $0x1b8] sm:$0xff] %v3100_v10   ;;  %v1292_v21 = vadd.f32 %v3868_v18, %v3875_v26  ;;  %v3930_v22 = vpop.f32.mrf.mxu0  ;;  %v3932_v23 = vpop.f32.mrf.mxu1 }
 0x15e   : > { %v2935_v17 = vpack.c.bf16 %v1655_v14, %v1654_v60  ;;  %v1719_v19 = vsel %vm1463_vm15, %v1279_v63, %v1591_v11  ;;  %v1660_v8 = vsel %vm1404_vm0, %v1044_v2, %v1532_v15  ;;  %v1047_v28 = vadd.f32 %v3868_v18, %v3883_v35 }
 0x15f   : > { %v3095_v24 = vpack.c.bf16 %v1719_v19, %v1718_v0  ;;  %v1724_v27 = vsel %vm1468_vm1, %v1300_v3, %v1596_v16  ;;  %vm1402_vm2 = vcmp.ge.f32.partialorder %v1036_v20, 0.0  ;;  %v1530_v29 = vmul.f32 0.2, %v1036_v20  ;;  %v3946_v37 = vpop.f32.mrf.mxu0  ;;  %v3948_v38 = vpop.f32.mrf.mxu1 }
 0x160   : > { %3163 = vst [vmem:[%s3712_s17 + $0xb0] sm:$0xff] %v2935_v17   ;;  %vm1466_vm3 = vcmp.ge.f32.partialorder %v1292_v21, 0.0  ;;  %v1594_v30 = vmul.f32 0.2, %v1292_v21  ;;  %vm1405_vm4 = vcmp.ge.f32.partialorder %v1047_v28, 0.0  ;;  %v1303_v26 = vadd.f32 %v3868_v18, %v3885_v36 }
 0x161   : > { %3195 = vst [vmem:[%s3712_s17 + $0x1b0] sm:$0xff] %v3095_v24   ;;  %v1533_v25 = vmul.f32 0.2, %v1047_v28  ;;  %v1039_v31 = vadd.f32 %v3868_v18, %v3888_v42  ;;  %v1658_v32 = vsel %vm1402_vm2, %v1036_v20, %v1530_v29  ;;  %v1295_v34 = vadd.f32 %v3868_v18, %v3890_v43  ;;  %v3352_v50 = vpop.f32.mrf.mxu0  ;;  %v3416_v51 = vpop.f32.mrf.mxu1 }
 0x162   : > { %v1722_v33 = vsel %vm1466_vm3, %v1292_v21, %v1594_v30  ;;  %v1060_v35 = vadd.f32 %v3868_v18, %v3347_v52  ;;  %vm1469_vm5 = vcmp.ge.f32.partialorder %v1303_v26, 0.0  ;;  %v1597_v40 = vmul.f32 0.2, %v1303_v26 }
 0x163   : > { %v1661_v39 = vsel %vm1405_vm4, %v1047_v28, %v1533_v25  ;;  %vm1403_vm6 = vcmp.ge.f32.partialorder %v1039_v31, 0.0  ;;  %v1531_v41 = vmul.f32 0.2, %v1039_v31  ;;  %vm1467_vm7 = vcmp.ge.f32.partialorder %v1295_v34, 0.0  ;;  %v1070_v2 = vpop.f32.mrf.mxu0 }
 0x164   : > { %v2950_v36 = vpack.c.bf16 %v1661_v39, %v1660_v8  ;;  %v1595_v42 = vmul.f32 0.2, %v1295_v34  ;;  %v1725_v44 = vsel %vm1469_vm5, %v1303_v26, %v1597_v40  ;;  %vm1408_vm8 = vcmp.ge.f32.partialorder %v1060_v35, 0.0 }
 0x165   : > { %v1536_v45 = vmul.f32 0.2, %v1060_v35  ;;  %v1316_v43 = vadd.f32 %v3868_v18, %v3902_v53  ;;  %v3110_v46 = vpack.c.bf16 %v1725_v44, %v1724_v27  ;;  %v1659_v47 = vsel %vm1403_vm6, %v1039_v31, %v1531_v41  ;;  %v3355_v16 = vpop.f32.mrf.mxu0 }
 0x166   : > { %3166 = vst [vmem:[%s3712_s17 + $0xc8] sm:$0xff] %v2950_v36   ;;  %v1723_v48 = vsel %vm1467_vm7, %v1295_v34, %v1595_v42  ;;  %v1052_v49 = vadd.f32 %v3868_v18, %v3905_v58  ;;  %v2945_v52 = vpack.c.bf16 %v1659_v47, %v1658_v32  ;;  %v1308_v53 = vadd.f32 %v3868_v18, %v3907_v59  ;;  %v1326_v59 = vpop.f32.mrf.mxu1 }
 0x167   : > { %v3105_v54 = vpack.c.bf16 %v1723_v48, %v1722_v33  ;;  %v1664_v57 = vsel %vm1408_vm8, %v1060_v35, %v1536_v45  ;;  %vm1472_vm9 = vcmp.ge.f32.partialorder %v1316_v43, 0.0  ;;  %3198 = vst [vmem:[%s3712_s17 + $0x1c8] sm:$0xff] %v3110_v46   ;;  %v1600_v55 = vmul.f32 0.2, %v1316_v43  ;;  %v1083_v26 = vpop.f32.mrf.mxu0 }
 0x168   : > { %vm1406_vm10 = vcmp.ge.f32.partialorder %v1052_v49, 0.0  ;;  %v1534_v56 = vmul.f32 0.2, %v1052_v49  ;;  %3165 = vst [vmem:[%s3712_s17 + $0xc0] sm:$0xff] %v2945_v52   ;;  %v1063_v60 = vadd.f32 %v3868_v18, %v3916_v4  ;;  %v1319_v58 = vadd.f32 %v3868_v18, %v3918_v5  ;;  %v3419_v17 = vpop.f32.mrf.mxu1 }
 0x169   : > { %3197 = vst [vmem:[%s3712_s17 + $0x1c0] sm:$0xff] %v3105_v54   ;;  %v1055_v61 = vadd.f32 %v3868_v18, %v3920_v12  ;;  %v1311_v62 = vadd.f32 %v3868_v18, %v3922_v13  ;;  %v1728_v63 = vsel %vm1472_vm9, %v1316_v43, %v1600_v55  ;;  %vm1470_vm11 = vcmp.ge.f32.partialorder %v1308_v53, 0.0  ;;  %v3356_v45 = vpop.f32.mrf.mxu0 }
 0x16a   : > { %v1662_v0 = vsel %vm1406_vm10, %v1052_v49, %v1534_v56  ;;  %v1598_v1 = vmul.f32 0.2, %v1308_v53  ;;  %vm1409_vm12 = vcmp.ge.f32.partialorder %v1063_v60, 0.0  ;;  %v1537_v3 = vmul.f32 0.2, %v1063_v60  ;;  %v1339_v31 = vpop.f32.mrf.mxu1 }
 0x16b   : > { %vm1473_vm13 = vcmp.ge.f32.partialorder %v1319_v58, 0.0  ;;  %v1601_v6 = vmul.f32 0.2, %v1319_v58  ;;  %vm1407_vm14 = vcmp.ge.f32.partialorder %v1055_v61, 0.0  ;;  %v1535_v7 = vmul.f32 0.2, %v1055_v61 }
 0x16c   : > { %v1726_v4 = vsel %vm1470_vm11, %v1308_v53, %v1598_v1  ;;  %vm1471_vm15 = vcmp.ge.f32.partialorder %v1311_v62, 0.0  ;;  %v1665_v5 = vsel %vm1409_vm12, %v1063_v60, %v1537_v3  ;;  %v1599_v10 = vmul.f32 0.2, %v1311_v62  ;;  %v3420_v43 = vpop.f32.mrf.mxu1 }
 0x16d   : > { %v1729_v9 = vsel %vm1473_vm13, %v1319_v58, %v1601_v6  ;;  %v1076_v11 = vadd.f32 %v3868_v18, %v3930_v22  ;;  %v2960_v12 = vpack.c.bf16 %v1665_v5, %v1664_v57  ;;  %v1663_v14 = vsel %vm1407_vm14, %v1055_v61, %v1535_v7  ;;  %v1086_v58 = vpop.f32.mrf.mxu0 }
 0x16e   : > { %v3120_v13 = vpack.c.bf16 %v1729_v9, %v1728_v63  ;;  %v1332_v15 = vadd.f32 %v3868_v18, %v3932_v23  ;;  %v2955_v19 = vpack.c.bf16 %v1663_v14, %v1662_v0  ;;  %v1727_v20 = vsel %vm1471_vm15, %v1311_v62, %v1599_v10  ;;  %v1342_v61 = vpop.f32.mrf.mxu1 }
 0x16f   : > { %vm1412_vm0 = vcmp.ge.f32.partialorder %v1076_v11, 0.0  ;;  %v1540_v21 = vmul.f32 0.2, %v1076_v11  ;;  %3168 = vst [vmem:[%s3712_s17 + $0xd8] sm:$0xff] %v2960_v12   ;;  %v3115_v24 = vpack.c.bf16 %v1727_v20, %v1726_v4  ;;  %v1068_v22 = vadd.f32 %v3868_v18, %v3946_v37 }
 0x170   : > { %3200 = vst [vmem:[%s3712_s17 + $0x1d8] sm:$0xff] %v3120_v13   ;;  %vm1476_vm1 = vcmp.ge.f32.partialorder %v1332_v15, 0.0  ;;  %v1604_v8 = vmul.f32 0.2, %v1332_v15  ;;  %3167 = vst [vmem:[%s3712_s17 + $0xd0] sm:$0xff] %v2955_v19   ;;  %v1324_v27 = vadd.f32 %v3868_v18, %v3948_v38  ;;  %v1079_v23 = vadd.f32 %v3868_v18, %v3352_v50 }
 0x171   : > { %v1335_v28 = vadd.f32 %v3868_v18, %v3416_v51  ;;  %3199 = vst [vmem:[%s3712_s17 + $0x1d0] sm:$0xff] %v3115_v24   ;;  %v1668_v29 = vsel %vm1412_vm0, %v1076_v11, %v1540_v21  ;;  %vm1410_vm2 = vcmp.ge.f32.partialorder %v1068_v22, 0.0  ;;  %v1538_v30 = vmul.f32 0.2, %v1068_v22 }
 0x172   : > { %v1071_v25 = vadd.f32 %v3868_v18, %v1070_v2  ;;  %v1732_v32 = vsel %vm1476_vm1, %v1332_v15, %v1604_v8  ;;  %vm1474_vm3 = vcmp.ge.f32.partialorder %v1324_v27, 0.0  ;;  %vm1413_vm4 = vcmp.ge.f32.partialorder %v1079_v23, 0.0 }
 0x173   : > { %v1541_v33 = vmul.f32 0.2, %v1079_v23  ;;  %v1602_v34 = vmul.f32 0.2, %v1324_v27  ;;  %vm1477_vm5 = vcmp.ge.f32.partialorder %v1335_v28, 0.0  ;;  %v1666_v37 = vsel %vm1410_vm2, %v1068_v22, %v1538_v30 }
 0x174   : > { %v1605_v35 = vmul.f32 0.2, %v1335_v28  ;;  %vm1411_vm6 = vcmp.ge.f32.partialorder %v1071_v25, 0.0  ;;  %v1539_v39 = vmul.f32 0.2, %v1071_v25  ;;  %v1327_v40 = vadd.f32 %v3868_v18, %v1326_v59 }
 0x175   : > { %v1669_v38 = vsel %vm1413_vm4, %v1079_v23, %v1541_v33  ;;  %v1092_v42 = vadd.f32 %v3868_v18, %v3355_v16  ;;  %v1348_v44 = vadd.f32 %v3868_v18, %v3419_v17  ;;  %v1730_v49 = vsel %vm1474_vm3, %v1324_v27, %v1602_v34 }
 0x176   : > { %v2970_v36 = vpack.c.bf16 %v1669_v38, %v1668_v29  ;;  %v1733_v41 = vsel %vm1477_vm5, %v1335_v28, %v1605_v35  ;;  %v1667_v47 = vsel %vm1411_vm6, %v1071_v25, %v1539_v39  ;;  %vm1475_vm7 = vcmp.ge.f32.partialorder %v1327_v40, 0.0 }
 0x177   : > { %v3130_v46 = vpack.c.bf16 %v1733_v41, %v1732_v32  ;;  %v1603_v48 = vmul.f32 0.2, %v1327_v40  ;;  %v2965_v50 = vpack.c.bf16 %v1667_v47, %v1666_v37  ;;  %vm1416_vm8 = vcmp.ge.f32.partialorder %v1092_v42, 0.0 }
 0x178   : > { %3170 = vst [vmem:[%s3712_s17 + $0xe8] sm:$0xff] %v2970_v36   ;;  %v1544_v51 = vmul.f32 0.2, %v1092_v42  ;;  %vm1480_vm9 = vcmp.ge.f32.partialorder %v1348_v44, 0.0  ;;  %v1608_v54 = vmul.f32 0.2, %v1348_v44  ;;  %v1084_v57 = vadd.f32 %v3868_v18, %v1083_v26 }
 0x179   : > { %3202 = vst [vmem:[%s3712_s17 + $0x1e8] sm:$0xff] %v3130_v46   ;;  %v1731_v52 = vsel %vm1475_vm7, %v1327_v40, %v1603_v48  ;;  %3169 = vst [vmem:[%s3712_s17 + $0xe0] sm:$0xff] %v2965_v50   ;;  %v1340_v56 = vadd.f32 %v3868_v18, %v1339_v31  ;;  %v1095_v53 = vadd.f32 %v3868_v18, %v3356_v45 }
 0x17a   : > { %v3125_v55 = vpack.c.bf16 %v1731_v52, %v1730_v49  ;;  %v1351_v60 = vadd.f32 %v3868_v18, %v3420_v43  ;;  %v1672_v62 = vsel %vm1416_vm8, %v1092_v42, %v1544_v51  ;;  %v1736_v63 = vsel %vm1480_vm9, %v1348_v44, %v1608_v54 }
 0x17b   : > { %vm1417_vm10 = vcmp.ge.f32.partialorder %v1095_v53, 0.0  ;;  %v1545_v0 = vmul.f32 0.2, %v1095_v53  ;;  %v1542_v1 = vmul.f32 0.2, %v1084_v57  ;;  %v1087_v59 = vadd.f32 %v3868_v18, %v1086_v58 }
 0x17c   : > { %3201 = vst [vmem:[%s3712_s17 + $0x1e0] sm:$0xff] %v3125_v55   ;;  %vm1481_vm11 = vcmp.ge.f32.partialorder %v1351_v60, 0.0  ;;  %v1609_v2 = vmul.f32 0.2, %v1351_v60  ;;  %v1343_v3 = vadd.f32 %v3868_v18, %v1342_v61  ;;  %vm1414_vm12 = vcmp.ge.f32.partialorder %v1084_v57, 0.0 }
 0x17d   : > { %vm1478_vm13 = vcmp.ge.f32.partialorder %v1340_v56, 0.0  ;;  %v1606_v6 = vmul.f32 0.2, %v1340_v56  ;;  %v1673_v4 = vsel %vm1417_vm10, %v1095_v53, %v1545_v0  ;;  %vm1415_vm14 = vcmp.ge.f32.partialorder %v1087_v59, 0.0 }
 0x17e   : > { %v2980_v7 = vpack.c.bf16 %v1673_v4, %v1672_v62  ;;  %v1737_v5 = vsel %vm1481_vm11, %v1351_v60, %v1609_v2  ;;  %v1543_v9 = vmul.f32 0.2, %v1087_v59  ;;  %vm1479_vm15 = vcmp.ge.f32.partialorder %v1343_v3, 0.0 }
 0x17f   : > { %v3140_v10 = vpack.c.bf16 %v1737_v5, %v1736_v63  ;;  %v1607_v11 = vmul.f32 0.2, %v1343_v3  ;;  %v1670_v12 = vsel %vm1414_vm12, %v1084_v57, %v1542_v1  ;;  %v1734_v14 = vsel %vm1478_vm13, %v1340_v56, %v1606_v6 }
 0x180   : > { %3172 = vst [vmem:[%s3712_s17 + $0xf8] sm:$0xff] %v2980_v7   ;;  %v1671_v13 = vsel %vm1415_vm14, %v1087_v59, %v1543_v9 }
 0x181   : > { %3204 = vst [vmem:[%s3712_s17 + $0x1f8] sm:$0xff] %v3140_v10   ;;  %v2975_v18 = vpack.c.bf16 %v1671_v13, %v1670_v12  ;;  %v1735_v15 = vsel %vm1479_vm15, %v1343_v3, %v1607_v11 }
 0x182   : > { %v3135_v16 = vpack.c.bf16 %v1735_v15, %v1734_v14 }
 0x183   : > { %3171 = vst [vmem:[%s3712_s17 + $0xf0] sm:$0xff] %v2975_v18  }
 0x184   : > { %3203 = vst [vmem:[%s3712_s17 + $0x1f0] sm:$0xff] %v3135_v16  }
 0x185 PF: > { %s13_s14 = sadd.s32 1, %s3556_s14   ;;  %s4014_s12 = smov %s3552_s13 }
 0x186   : > { %p10_p5 = scmp.ge.s32.totalorder %s13_s14, 4   ;;  %s4015_s13 = smov %s4017_s15 }
 0x188   :  { %12 = sbr.rel (!%p10_p5) target bundleno = 2 (0x2), region = 68 }

// kernel: discriminator_forward.4
= control target key start
LH: loop header
LB: loop body
LE: loop exit
PB: predicated region body
PF: predicated region fallthrough
CT: control target
= control target key end

     0   :  { %s6093_s12 = smov 0   ;;  %s6095_s13 = smov 0   ;;  %s7182_s0 = inlined_call_operand.vmem [shape: bf16[512,2048], index: 0, kind: input, shape index: {}]   ;;  %s7183_s1 = inlined_call_operand.vmem [shape: bf16[2048,128], index: 1, kind: input, shape index: {}]   ;;  %s7184_s2 = inlined_call_operand.vmem [shape: f32[1,128], index: 2, kind: input, shape index: {}]   ;;  %s7185_s3 = inlined_call_operand.vmem [shape: bf16[512,128], index: 3, kind: output, shape index: {}]  }
   0x1   :  { %s6097_s14 = smov 0  }
   0x2 LB: > { %s25_s15 = sadd.s32 1, %s6067_s13  ;;  %p4448_p0 = scmp.ge.s32.totalorder %s6071_s14, 1  ;;  %s6071_s14 = sphi %s6097_s14, %s13_s14   ;;  %s6067_s13 = sphi %s6095_s13, %s7187_s13   ;;  %s6063_s12 = sphi %s6093_s12, %s7186_s12  }
   0x3   : > { %p27_p1 = scmp.ge.s32.totalorder %s25_s15, 2  ;;  %p170_p2 = scmp.lt.s32.totalorder %s6071_s14, 3 }
   0x5   : > { %s7189_s15 = smov (%p27_p1, %s25_s15), 0  ;;  %p171_p3 = pnand %p4448_p0, %p170_p2 }
   0x6   : > { %s4449_s25 = sshll.u32 (!%p171_p3), %s6063_s12, 5 }
   0x7   : > { %174 = sbr.rel (%p171_p3) target bundleno = 761 (0x2f9), region = 32  ;;  %p206_p4 = scmp.lt.s32.totalorder (!%p171_p3), %s4449_s25, 63 }
   0xc   : > { %v5921_v0 = vld [vmem:[%s7183_s1 + $0x78] sm:$0xff]   ;;  %v5925_v4 = vld [vmem:[%s7183_s1 + $0x70] sm:$0xff]   ;;  %v5929_v8 = vld [vmem:[%s7183_s1 + $0x68] sm:$0xff]   ;;  %s7191_s25 = smov (!%p206_p4, %s4449_s25), 63 }
   0xd   : > { %v5922_v1 = vld [vmem:[%s7183_s1 + $0xf8] sm:$0xff]   ;;  %5001 = vmatprep.subr.bf16.mxu0 %v5921_v0  ;;  %v5926_v5 = vld [vmem:[%s7183_s1 + $0xf0] sm:$0xff]   ;;  %v5930_v9 = vld [vmem:[%s7183_s1 + $0xe8] sm:$0xff]   ;;  %s4873_s24 = sshll.u32 %s7191_s25, 6 }
   0xe   : > { %v5923_v2 = vld [vmem:[%s7183_s1 + $0x38] sm:$0xff]   ;;  %5113 = vmatprep.subr.bf16.mxu1 %v5922_v1  ;;  %v5927_v6 = vld [vmem:[%s7183_s1 + $0x30] sm:$0xff]   ;;  %v5931_v10 = vld [vmem:[%s7183_s1 + $0x28] sm:$0xff]   ;;  %s6210_s12 = scalar_lea.vmem %s7182_s0, %s4873_s24 }
   0xf   : > { %v5924_v3 = vld [vmem:[%s7183_s1 + $0xb8] sm:$0xff]   ;;  %5002 = vmatpush3.bf16.msra.mxu0 %v5923_v2  ;;  %v5928_v7 = vld [vmem:[%s7183_s1 + $0xb0] sm:$0xff]   ;;  %v5932_v11 = vld [vmem:[%s7183_s1 + $0xa8] sm:$0xff]  }
  0x10   : > { %5114 = vmatpush3.bf16.msra.mxu1 %v5924_v3  ;;  %5003 = vmatprep.subr.bf16.mxu0 %v5925_v4  ;;  %v5933_v12 = vld [vmem:[%s7183_s1 + $0x60] sm:$0xff]   ;;  %v5937_v16 = vld [vmem:[%s7183_s1 + $0x58] sm:$0xff]   ;;  %v5941_v20 = vld [vmem:[%s7183_s1 + $0x50] sm:$0xff]  }
  0x11   : > { %5115 = vmatprep.subr.bf16.mxu1 %v5926_v5  ;;  %v5934_v13 = vld [vmem:[%s7183_s1 + $0xe0] sm:$0xff]   ;;  %v5938_v17 = vld [vmem:[%s7183_s1 + $0xd8] sm:$0xff]   ;;  %v5942_v21 = vld [vmem:[%s7183_s1 + $0xd0] sm:$0xff]  }
  0x12   : > { %v5935_v14 = vld [vmem:[%s7183_s1 + $0x20] sm:$0xff]   ;;  %v5939_v18 = vld [vmem:[%s7183_s1 + $0x18] sm:$0xff]   ;;  %v5943_v22 = vld [vmem:[%s7183_s1 + $0x10] sm:$0xff]  }
  0x13   : > { %5004 = vmatpush3.bf16.msra.mxu0 %v5927_v6  ;;  %v5936_v15 = vld [vmem:[%s7183_s1 + $0xa0] sm:$0xff]   ;;  %v5940_v19 = vld [vmem:[%s7183_s1 + $0x98] sm:$0xff]   ;;  %v5944_v23 = vld [vmem:[%s7183_s1 + $0x90] sm:$0xff]  }
  0x14   : > { %5116 = vmatpush3.bf16.msra.mxu1 %v5928_v7  ;;  %5005 = vmatprep.subr.bf16.mxu0 %v5929_v8  ;;  %v5945_v24 = vld [vmem:[%s7183_s1 + $0x48] sm:$0xff]   ;;  %v5949_v28 = vld [vmem:[%s7183_s1 + $0x40] sm:$0xff]   ;;  %v5953_v40 = vld [vmem:[%s7183_s1 + $0x178] sm:$0xff]  }
  0x15   : > { %5117 = vmatprep.subr.bf16.mxu1 %v5930_v9  ;;  %v5946_v25 = vld [vmem:[%s7183_s1 + $0xc8] sm:$0xff]   ;;  %v5950_v29 = vld [vmem:[%s7183_s1 + $0xc0] sm:$0xff]   ;;  %v5954_v41 = vld [vmem:[%s7183_s1 + $0x138] sm:$0xff]  }
  0x16   : > { %v5947_v26 = vld [vmem:[%s7183_s1 + $0x8] sm:$0xff]   ;;  %v5951_v30 = vld [vmem:[%s7183_s1] sm:$0xff]   ;;  %v5955_v42 = vld [vmem:[%s7183_s1 + $0x1f8] sm:$0xff]  }
  0x17   : > { %5006 = vmatpush3.bf16.msra.mxu0 %v5931_v10  ;;  %v5948_v27 = vld [vmem:[%s7183_s1 + $0x88] sm:$0xff]   ;;  %v5952_v31 = vld [vmem:[%s7183_s1 + $0x80] sm:$0xff]   ;;  %v5956_v43 = vld [vmem:[%s7183_s1 + $0x1b8] sm:$0xff]  }
  0x18   : > { %5118 = vmatpush3.bf16.msra.mxu1 %v5932_v11  ;;  %5007 = vmatprep.subr.bf16.mxu0 %v5933_v12  ;;  %v229_v32 = vld [vmem:[%s6210_s12] sm:$0xff]  ;;  %v230_v34 = vld [vmem:[%s6210_s12 + $0x8] sm:$0xff]  ;;  %v5957_v55 = vld [vmem:[%s7183_s1 + $0x170] sm:$0xff]  }
  0x19   : > { %5119 = vmatprep.subr.bf16.mxu1 %v5934_v13  ;;  %v237_v33 = vld [vmem:[%s6210_s12 + $0x40] sm:$0xff]  ;;  %v238_v37 = vld [vmem:[%s6210_s12 + $0x48] sm:$0xff]  ;;  %v5958_v58 = vld [vmem:[%s7183_s1 + $0x130] sm:$0xff]  }
  0x1a   : > { %v4455_v35 = vcombine.low %v229_v32, %v237_v33  ;;  %v4456_v36 = vcombine.high %v229_v32, %v237_v33  ;;  %v4457_v38 = vcombine.low %v230_v34, %v238_v37  ;;  %v4458_v39 = vcombine.high %v230_v34, %v238_v37  ;;  %v245_v44 = vld [vmem:[%s6210_s12 + $0x80] sm:$0xff]  ;;  %v246_v47 = vld [vmem:[%s6210_s12 + $0x88] sm:$0xff]  ;;  %v5959_v60 = vld [vmem:[%s7183_s1 + $0x1f0] sm:$0xff]  }
  0x1b   : > { %5008 = vmatpush3.bf16.msra.mxu0 %v5935_v14  ;;  %v253_v45 = vld [vmem:[%s6210_s12 + $0xc0] sm:$0xff]  ;;  %v254_v48 = vld [vmem:[%s6210_s12 + $0xc8] sm:$0xff]  ;;  %v5960_v61 = vld [vmem:[%s7183_s1 + $0x1b0] sm:$0xff]  }
  0x1c   : > { %5120 = vmatpush3.bf16.msra.mxu1 %v5936_v15  ;;  %5009 = vmatprep.subr.bf16.mxu0 %v5937_v16  ;;  %v4472_v46 = vcombine.high %v245_v44, %v253_v45  ;;  %v261_v49 = vld [vmem:[%s6210_s12 + $0x100] sm:$0xff]  ;;  %v4474_v50 = vcombine.high %v246_v47, %v254_v48  ;;  %v262_v52 = vld [vmem:[%s6210_s12 + $0x108] sm:$0xff]  ;;  %v4471_v54 = vcombine.low %v245_v44, %v253_v45  ;;  %v5973_v34 = vld [vmem:[%s7183_s1 + $0x150] sm:$0xff]  }
  0x1d   : > { %5121 = vmatprep.subr.bf16.mxu1 %v5938_v17  ;;  %2828 = vmatprep.mubr.bf16.mxu0 %v4456_v36  ;;  %v269_v51 = vld [vmem:[%s6210_s12 + $0x140] sm:$0xff]  ;;  %v270_v53 = vld [vmem:[%s6210_s12 + $0x148] sm:$0xff]  ;;  %v4473_v56 = vcombine.low %v246_v47, %v254_v48  ;;  %v5974_v36 = vld [vmem:[%s7183_s1 + $0x110] sm:$0xff]  }
  0x1e   : > { %2989 = vmatprep.mubr.bf16.mxu1 %v4458_v39  ;;  %v4488_v57 = vcombine.high %v261_v49, %v269_v51  ;;  %v4490_v59 = vcombine.high %v262_v52, %v270_v53  ;;  %v277_v62 = vld [vmem:[%s6210_s12 + $0x180] sm:$0xff]  ;;  %v278_v0 = vld [vmem:[%s6210_s12 + $0x188] sm:$0xff]  ;;  %v4487_v3 = vcombine.low %v261_v49, %v269_v51  ;;  %v4489_v5 = vcombine.low %v262_v52, %v270_v53  ;;  %v5975_v37 = vld [vmem:[%s7183_s1 + $0x1d0] sm:$0xff]  }
  0x1f   : > { %5010 = vmatpush3.bf16.msra.mxu0 %v5939_v18  ;;  %v285_v63 = vld [vmem:[%s6210_s12 + $0x1c0] sm:$0xff]  ;;  %v286_v1 = vld [vmem:[%s6210_s12 + $0x1c8] sm:$0xff]  ;;  %v5976_v39 = vld [vmem:[%s7183_s1 + $0x190] sm:$0xff]  }
  0x20   : > { %5122 = vmatpush3.bf16.msra.mxu1 %v5940_v19  ;;  %5011 = vmatprep.subr.bf16.mxu0 %v5941_v20  ;;  %v5961_v2 = vld [vmem:[%s7183_s1 + $0x168] sm:$0xff]   ;;  %v4504_v6 = vcombine.high %v277_v62, %v285_v63  ;;  %v4506_v8 = vcombine.high %v278_v0, %v286_v1  ;;  %v293_v10 = vld [vmem:[%s6210_s12 + $0x200] sm:$0xff]  ;;  %v4503_v16 = vcombine.low %v277_v62, %v285_v63 }
  0x21   : > { %5123 = vmatprep.subr.bf16.mxu1 %v5942_v21  ;;  %v5962_v4 = vld [vmem:[%s7183_s1 + $0x128] sm:$0xff]   ;;  %v301_v11 = vld [vmem:[%s6210_s12 + $0x240] sm:$0xff]  ;;  %v4505_v18 = vcombine.low %v278_v0, %v286_v1 }
  0x22   : > { %v5963_v7 = vld [vmem:[%s7183_s1 + $0x1e8] sm:$0xff]   ;;  %v5965_v14 = vld [vmem:[%s7183_s1 + $0x160] sm:$0xff]   ;;  %v4520_v19 = vcombine.high %v293_v10, %v301_v11 }
  0x23   : > { %5012 = vmatpush3.bf16.msra.mxu0 %v5943_v22  ;;  %v5964_v9 = vld [vmem:[%s7183_s1 + $0x1a8] sm:$0xff]   ;;  %v5966_v15 = vld [vmem:[%s7183_s1 + $0x120] sm:$0xff]  }
  0x24   : > { %5124 = vmatpush3.bf16.msra.mxu1 %v5944_v23  ;;  %5013 = vmatprep.subr.bf16.mxu0 %v5945_v24  ;;  %v294_v12 = vld [vmem:[%s6210_s12 + $0x208] sm:$0xff]  ;;  %v5967_v17 = vld [vmem:[%s7183_s1 + $0x1e0] sm:$0xff]   ;;  %v5969_v24 = vld [vmem:[%s7183_s1 + $0x158] sm:$0xff]  }
  0x25   : > { %5125 = vmatprep.subr.bf16.mxu1 %v5946_v25  ;;  %v302_v13 = vld [vmem:[%s6210_s12 + $0x248] sm:$0xff]  ;;  %v5968_v20 = vld [vmem:[%s7183_s1 + $0x1a0] sm:$0xff]  }
  0x26   : > { %v4522_v21 = vcombine.high %v294_v12, %v302_v13  ;;  %v309_v22 = vld [vmem:[%s6210_s12 + $0x280] sm:$0xff]  ;;  %v310_v25 = vld [vmem:[%s6210_s12 + $0x288] sm:$0xff] }
  0x27   : > { %5014 = vmatpush3.bf16.msra.mxu0 %v5947_v26  ;;  %v317_v23 = vld [vmem:[%s6210_s12 + $0x2c0] sm:$0xff]  ;;  %v318_v26 = vld [vmem:[%s6210_s12 + $0x2c8] sm:$0xff] }
  0x28   : > { %5126 = vmatpush3.bf16.msra.mxu1 %v5948_v27  ;;  %5015 = vmatprep.subr.bf16.mxu0 %v5949_v28  ;;  %v5970_v27 = vld [vmem:[%s7183_s1 + $0x118] sm:$0xff]   ;;  %v4536_v32 = vcombine.high %v309_v22, %v317_v23  ;;  %v4538_v33 = vcombine.high %v310_v25, %v318_v26  ;;  %v5978_v47 = vld [vmem:[%s7183_s1 + $0x108] sm:$0xff]   ;;  %v349_v51 = vld [vmem:[%s6210_s12 + $0x3c0] sm:$0xff] }
  0x29   : > { %5127 = vmatprep.subr.bf16.mxu1 %v5950_v29  ;;  %v5971_v28 = vld [vmem:[%s7183_s1 + $0x1d8] sm:$0xff]   ;;  %v5979_v48 = vld [vmem:[%s7183_s1 + $0x1c8] sm:$0xff]   ;;  %v357_v62 = vld [vmem:[%s6210_s12 + $0x400] sm:$0xff] }
  0x2a   : > { %v5972_v29 = vld [vmem:[%s7183_s1 + $0x198] sm:$0xff]   ;;  %v5980_v49 = vld [vmem:[%s7183_s1 + $0x188] sm:$0xff]   ;;  %v365_v63 = vld [vmem:[%s6210_s12 + $0x440] sm:$0xff] }
  0x2b   : > { %5016 = vmatpush3.bf16.msra.mxu0 %v5951_v30  ;;  %v4519_v30 = vcombine.low %v293_v10, %v301_v11  ;;  %v342_v52 = vld [vmem:[%s6210_s12 + $0x388] sm:$0xff] }
  0x2c   : > { %5128 = vmatpush3.bf16.msra.mxu1 %v5952_v31  ;;  %5225 = vmatprep.subr.bf16.mxu0 %v5953_v40  ;;  %v4521_v31 = vcombine.low %v294_v12, %v302_v13  ;;  %v326_v40 = vld [vmem:[%s6210_s12 + $0x308] sm:$0xff]  ;;  %v4583_v12 = vcombine.low %v357_v62, %v365_v63 }
  0x2d   : > { %5337 = vmatprep.subr.bf16.mxu1 %v5955_v42  ;;  %v4535_v42 = vcombine.low %v309_v22, %v317_v23  ;;  %v350_v53 = vld [vmem:[%s6210_s12 + $0x3c8] sm:$0xff] }
  0x2e   : > { %2829 = vmatmul.mubr.bf16.vlgmr.msra.gmra.mxu0 %v4455_v35  ;;  %v325_v35 = vld [vmem:[%s6210_s12 + $0x300] sm:$0xff]  ;;  %v358_v0 = vld [vmem:[%s6210_s12 + $0x408] sm:$0xff] }
  0x2f   : > { %2990 = vmatmul.mubr.bf16.vlgmr.msra.gmra.mxu1 %v4457_v38  ;;  %5226 = vmatpush3.bf16.msra.mxu0 %v5954_v41  ;;  %v333_v38 = vld [vmem:[%s6210_s12 + $0x340] sm:$0xff]  ;;  %v334_v41 = vld [vmem:[%s6210_s12 + $0x348] sm:$0xff] }
  0x30   : > { %5338 = vmatpush3.bf16.msra.mxu1 %v5956_v43  ;;  %2836 = vmatprep.mubr.bf16.mxu0 %v4472_v46  ;;  %v4537_v43 = vcombine.low %v310_v25, %v318_v26  ;;  %v4552_v44 = vcombine.high %v325_v35, %v333_v38  ;;  %v4554_v45 = vcombine.high %v326_v40, %v334_v41  ;;  %v5977_v46 = vld [vmem:[%s7183_s1 + $0x148] sm:$0xff]   ;;  %v413_v25 = vld [vmem:[%s6210_s12 + $0x5c0] sm:$0xff] }
  0x31   : > { %2997 = vmatprep.mubr.bf16.mxu1 %v4474_v50  ;;  %5227 = vmatprep.subr.bf16.mxu0 %v5957_v55  ;;  %v341_v50 = vld [vmem:[%s6210_s12 + $0x380] sm:$0xff]  ;;  %v366_v1 = vld [vmem:[%s6210_s12 + $0x448] sm:$0xff] }
  0x32   : > { %5339 = vmatprep.subr.bf16.mxu1 %v5959_v60  ;;  %v5981_v55 = vld [vmem:[%s7183_s1 + $0x140] sm:$0xff]   ;;  %v374_v10 = vld [vmem:[%s6210_s12 + $0x488] sm:$0xff]  ;;  %v4585_v13 = vcombine.low %v358_v0, %v366_v1 }
  0x33   : > { %5228 = vmatpush3.bf16.msra.mxu0 %v5958_v58  ;;  %v5982_v58 = vld [vmem:[%s7183_s1 + $0x100] sm:$0xff]   ;;  %v382_v11 = vld [vmem:[%s6210_s12 + $0x4c8] sm:$0xff] }
  0x34   : > { %5340 = vmatpush3.bf16.msra.mxu1 %v5960_v61  ;;  %5229 = vmatprep.subr.bf16.mxu0 %v5961_v2  ;;  %v5983_v60 = vld [vmem:[%s7183_s1 + $0x1c0] sm:$0xff]   ;;  %v5985_v2 = vld [vmem:[%s7183_s1 + $0x278] sm:$0xff]   ;;  %v406_v26 = vld [vmem:[%s6210_s12 + $0x588] sm:$0xff] }
  0x35   : > { %5341 = vmatprep.subr.bf16.mxu1 %v5963_v7  ;;  %v5984_v61 = vld [vmem:[%s7183_s1 + $0x180] sm:$0xff]   ;;  %v4586_v7 = vcombine.high %v358_v0, %v366_v1  ;;  %v231_v0 = vld [vmem:[%s6210_s12 + $0x10] sm:$0xff] }
  0x36   : > { %2837 = vmatmul.mubr.bf16.gmra.mxu0 %v4471_v54  ;;  %v4551_v54 = vcombine.low %v325_v35, %v333_v38  ;;  %v430_v35 = vld [vmem:[%s6210_s12 + $0x648] sm:$0xff]  ;;  %v239_v1 = vld [vmem:[%s6210_s12 + $0x50] sm:$0xff] }
  0x37   : > { %2998 = vmatmul.mubr.bf16.gmra.mxu1 %v4473_v56  ;;  %2844 = vmatprep.mubr.bf16.mxu0 %v4488_v57  ;;  %v4553_v56 = vcombine.low %v326_v40, %v334_v41  ;;  %v4568_v57 = vcombine.high %v341_v50, %v349_v51  ;;  %v437_v40 = vld [vmem:[%s6210_s12 + $0x680] sm:$0xff] }
  0x38   : > { %3005 = vmatprep.mubr.bf16.mxu1 %v4490_v59  ;;  %5230 = vmatpush3.bf16.msra.mxu0 %v5962_v4  ;;  %v4570_v59 = vcombine.high %v342_v52, %v350_v53  ;;  %v4569_v4 = vcombine.low %v342_v52, %v350_v53  ;;  %v445_v41 = vld [vmem:[%s6210_s12 + $0x6c0] sm:$0xff] }
  0x39   : > { %5342 = vmatpush3.bf16.msra.mxu1 %v5964_v9  ;;  %5231 = vmatprep.subr.bf16.mxu0 %v5965_v14  ;;  %v381_v9 = vld [vmem:[%s6210_s12 + $0x4c0] sm:$0xff]  ;;  %v4663_v52 = vcombine.low %v437_v40, %v445_v41 }
  0x3a   : > { %5343 = vmatprep.subr.bf16.mxu1 %v5967_v17  ;;  %v397_v17 = vld [vmem:[%s6210_s12 + $0x540] sm:$0xff] }
  0x3c   : > { %5232 = vmatpush3.bf16.msra.mxu0 %v5966_v15  ;;  %v4602_v15 = vcombine.high %v374_v10, %v382_v11 }
  0x3d   : > { %5344 = vmatpush3.bf16.msra.mxu1 %v5968_v20  ;;  %5233 = vmatprep.subr.bf16.mxu0 %v5969_v24  ;;  %v405_v24 = vld [vmem:[%s6210_s12 + $0x580] sm:$0xff] }
  0x3e   : > { %2845 = vmatmul.mubr.bf16.gmra.mxu0 %v4487_v3  ;;  %5345 = vmatprep.subr.bf16.mxu1 %v5971_v28  ;;  %v4567_v3 = vcombine.low %v341_v50, %v349_v51  ;;  %v454_v50 = vld [vmem:[%s6210_s12 + $0x708] sm:$0xff] }
  0x3f   : > { %3006 = vmatmul.mubr.bf16.gmra.mxu1 %v4489_v5  ;;  %2852 = vmatprep.mubr.bf16.mxu0 %v4504_v6  ;;  %v4584_v5 = vcombine.high %v357_v62, %v365_v63  ;;  %v5987_v6 = vld [vmem:[%s7183_s1 + $0x2f8] sm:$0xff]   ;;  %v462_v51 = vld [vmem:[%s6210_s12 + $0x748] sm:$0xff] }
  0x40   : > { %3013 = vmatprep.mubr.bf16.mxu1 %v4506_v8  ;;  %5234 = vmatpush3.bf16.msra.mxu0 %v5970_v27  ;;  %v373_v8 = vld [vmem:[%s6210_s12 + $0x480] sm:$0xff]  ;;  %v414_v27 = vld [vmem:[%s6210_s12 + $0x5c8] sm:$0xff] }
  0x41   : > { %5346 = vmatpush3.bf16.msra.mxu1 %v5972_v29  ;;  %5235 = vmatprep.subr.bf16.mxu0 %v5973_v34  ;;  %v4600_v14 = vcombine.high %v373_v8, %v381_v9  ;;  %v4599_v20 = vcombine.low %v373_v8, %v381_v9  ;;  %v422_v34 = vld [vmem:[%s6210_s12 + $0x608] sm:$0xff]  ;;  %v247_v8 = vld [vmem:[%s6210_s12 + $0x90] sm:$0xff] }
  0x42   : > { %5347 = vmatprep.subr.bf16.mxu1 %v5975_v37  ;;  %v4633_v37 = vcombine.low %v406_v26, %v414_v27  ;;  %v255_v9 = vld [vmem:[%s6210_s12 + $0xd0] sm:$0xff] }
  0x44   : > { %5236 = vmatpush3.bf16.msra.mxu0 %v5974_v36  ;;  %v4631_v36 = vcombine.low %v405_v24, %v413_v25 }
  0x45   : > { %5348 = vmatpush3.bf16.msra.mxu1 %v5976_v39  ;;  %5237 = vmatprep.subr.bf16.mxu0 %v5977_v46  ;;  %v4650_v39 = vcombine.high %v422_v34, %v430_v35  ;;  %v4664_v46 = vcombine.high %v437_v40, %v445_v41  ;;  %v288_v40 = vld [vmem:[%s6210_s12 + $0x1d8] sm:$0xff]  ;;  %v6000_v41 = vld [vmem:[%s7183_s1 + $0x2a0] sm:$0xff]  }
  0x46   : > { %2853 = vmatmul.mubr.bf16.gmra.mxu0 %v4503_v16  ;;  %5349 = vmatprep.subr.bf16.mxu1 %v5979_v48  ;;  %v389_v16 = vld [vmem:[%s6210_s12 + $0x500] sm:$0xff] }
  0x47   : > { %3014 = vmatmul.mubr.bf16.gmra.mxu1 %v4505_v18  ;;  %2860 = vmatprep.mubr.bf16.mxu0 %v4520_v19  ;;  %v390_v18 = vld [vmem:[%s6210_s12 + $0x508] sm:$0xff]  ;;  %v4616_v22 = vcombine.high %v389_v16, %v397_v17  ;;  %v4615_v28 = vcombine.low %v389_v16, %v397_v17  ;;  %v453_v48 = vld [vmem:[%s6210_s12 + $0x700] sm:$0xff]  ;;  %v4476_v16 = vcombine.high %v247_v8, %v255_v9 }
  0x48   : > { %3021 = vmatprep.mubr.bf16.mxu1 %v4522_v21  ;;  %5238 = vmatpush3.bf16.msra.mxu0 %v5978_v47  ;;  %v398_v19 = vld [vmem:[%s6210_s12 + $0x548] sm:$0xff]  ;;  %v4601_v21 = vcombine.low %v374_v10, %v382_v11  ;;  %v4459_v10 = vcombine.low %v231_v0, %v239_v1  ;;  %v248_v11 = vld [vmem:[%s6210_s12 + $0x98] sm:$0xff] }
  0x49   : > { %5350 = vmatpush3.bf16.msra.mxu1 %v5980_v49  ;;  %5239 = vmatprep.subr.bf16.mxu0 %v5981_v55  ;;  %v4618_v23 = vcombine.high %v390_v18, %v398_v19  ;;  %v4617_v29 = vcombine.low %v390_v18, %v398_v19  ;;  %v461_v49 = vld [vmem:[%s6210_s12 + $0x740] sm:$0xff]  ;;  %v4682_v55 = vcombine.high %v454_v50, %v462_v51  ;;  %v5989_v18 = vld [vmem:[%s7183_s1 + $0x270] sm:$0xff]  }
  0x4a   : > { %5351 = vmatprep.subr.bf16.mxu1 %v5983_v60  ;;  %v4679_v60 = vcombine.low %v453_v48, %v461_v49  ;;  %v5991_v19 = vld [vmem:[%s7183_s1 + $0x2f0] sm:$0xff]  }
  0x4c   : > { %5240 = vmatpush3.bf16.msra.mxu0 %v5982_v58  ;;  %v470_v58 = vld [vmem:[%s6210_s12 + $0x788] sm:$0xff] }
  0x4d   : > { %5352 = vmatpush3.bf16.msra.mxu1 %v5984_v61  ;;  %5449 = vmatprep.subr.bf16.mxu0 %v5985_v2  ;;  %v4681_v61 = vcombine.low %v454_v50, %v462_v51  ;;  %v232_v2 = vld [vmem:[%s6210_s12 + $0x18] sm:$0xff]  ;;  %v6005_v50 = vld [vmem:[%s7183_s1 + $0x250] sm:$0xff]  }
  0x4e   : > { %2861 = vmatmul.mubr.bf16.gmra.mxu0 %v4519_v30  ;;  %5561 = vmatprep.subr.bf16.mxu1 %v5987_v6  ;;  %v4632_v30 = vcombine.high %v405_v24, %v413_v25  ;;  %v4460_v6 = vcombine.high %v231_v0, %v239_v1  ;;  %v5993_v24 = vld [vmem:[%s7183_s1 + $0x268] sm:$0xff]   ;;  %v264_v25 = vld [vmem:[%s6210_s12 + $0x118] sm:$0xff]  ;;  %v6007_v51 = vld [vmem:[%s7183_s1 + $0x2d0] sm:$0xff]  }
  0x4f   : > { %3022 = vmatmul.mubr.bf16.gmra.mxu1 %v4521_v31  ;;  %2868 = vmatprep.mubr.bf16.mxu0 %v4536_v32  ;;  %v4634_v31 = vcombine.high %v406_v26, %v414_v27  ;;  %v421_v32 = vld [vmem:[%s6210_s12 + $0x600] sm:$0xff]  ;;  %v272_v26 = vld [vmem:[%s6210_s12 + $0x158] sm:$0xff]  ;;  %v5995_v27 = vld [vmem:[%s7183_s1 + $0x2e8] sm:$0xff]  }
  0x50   : > { %3029 = vmatprep.mubr.bf16.mxu1 %v4538_v33  ;;  %v429_v33 = vld [vmem:[%s6210_s12 + $0x640] sm:$0xff]  ;;  %v6010_v0 = vld [vmem:[%s7183_s1 + $0x208] sm:$0xff]  }
  0x51   : > { %v4648_v38 = vcombine.high %v421_v32, %v429_v33  ;;  %v6012_v1 = vld [vmem:[%s7183_s1 + $0x288] sm:$0xff]  }
  0x56   : > { %2869 = vmatmul.mubr.bf16.gmra.mxu0 %v4535_v42  ;;  %v438_v42 = vld [vmem:[%s6210_s12 + $0x688] sm:$0xff] }
  0x57   : > { %3030 = vmatmul.mubr.bf16.gmra.mxu1 %v4537_v43  ;;  %2876 = vmatprep.mubr.bf16.mxu0 %v4552_v44  ;;  %v446_v43 = vld [vmem:[%s6210_s12 + $0x6c8] sm:$0xff]  ;;  %v4647_v44 = vcombine.low %v421_v32, %v429_v33 }
  0x58   : > { %3037 = vmatprep.mubr.bf16.mxu1 %v4554_v45  ;;  %v4649_v45 = vcombine.low %v422_v34, %v430_v35  ;;  %v4666_v47 = vcombine.high %v438_v42, %v446_v43  ;;  %v4665_v53 = vcombine.low %v438_v42, %v446_v43  ;;  %v5994_v32 = vld [vmem:[%s7183_s1 + $0x228] sm:$0xff]   ;;  %v5997_v34 = vld [vmem:[%s7183_s1 + $0x260] sm:$0xff]   ;;  %v6001_v42 = vld [vmem:[%s7183_s1 + $0x258] sm:$0xff]  }
  0x59   : > { %v5996_v33 = vld [vmem:[%s7183_s1 + $0x2a8] sm:$0xff]   ;;  %v5999_v35 = vld [vmem:[%s7183_s1 + $0x2e0] sm:$0xff]  }
  0x5e   : > { %2877 = vmatmul.mubr.bf16.gmra.mxu0 %v4551_v54  ;;  %v4680_v54 = vcombine.high %v453_v48, %v461_v49  ;;  %v6002_v48 = vld [vmem:[%s7183_s1 + $0x218] sm:$0xff]  }
  0x5f   : > { %3038 = vmatmul.mubr.bf16.gmra.mxu1 %v4553_v56  ;;  %2884 = vmatprep.mubr.bf16.mxu0 %v4568_v57  ;;  %v469_v56 = vld [vmem:[%s6210_s12 + $0x780] sm:$0xff]  ;;  %v6004_v49 = vld [vmem:[%s7183_s1 + $0x298] sm:$0xff]  }
  0x60   : > { %3045 = vmatprep.mubr.bf16.mxu1 %v4570_v59  ;;  %v477_v57 = vld [vmem:[%s6210_s12 + $0x7c0] sm:$0xff]  ;;  %v478_v59 = vld [vmem:[%s6210_s12 + $0x7c8] sm:$0xff] }
  0x61   : > { %v4696_v62 = vcombine.high %v469_v56, %v477_v57  ;;  %v4698_v63 = vcombine.high %v470_v58, %v478_v59 }
  0x66   : > { %2885 = vmatmul.mubr.bf16.gmra.mxu0 %v4567_v3  ;;  %v240_v3 = vld [vmem:[%s6210_s12 + $0x58] sm:$0xff] }
  0x67   : > { %3046 = vmatmul.mubr.bf16.gmra.mxu1 %v4569_v4  ;;  %2892 = vmatprep.mubr.bf16.mxu0 %v4584_v5  ;;  %v4695_v4 = vcombine.low %v469_v56, %v477_v57  ;;  %v4697_v5 = vcombine.low %v470_v58, %v478_v59  ;;  %v304_v56 = vld [vmem:[%s6210_s12 + $0x258] sm:$0xff]  ;;  %v6008_v57 = vld [vmem:[%s7183_s1 + $0x290] sm:$0xff]   ;;  %v6009_v58 = vld [vmem:[%s7183_s1 + $0x248] sm:$0xff]  }
  0x68   : > { %3053 = vmatprep.mubr.bf16.mxu1 %v4586_v7  ;;  %v4462_v7 = vcombine.high %v232_v2, %v240_v3 }
  0x6e   : > { %2893 = vmatmul.mubr.bf16.gmra.mxu0 %v4583_v12  ;;  %v256_v12 = vld [vmem:[%s6210_s12 + $0xd8] sm:$0xff] }
  0x6f   : > { %3054 = vmatmul.mubr.bf16.gmra.mxu1 %v4585_v13  ;;  %2900 = vmatprep.mubr.bf16.mxu0 %v4600_v14  ;;  %v4461_v13 = vcombine.low %v232_v2, %v240_v3  ;;  %v5986_v14 = vld [vmem:[%s7183_s1 + $0x238] sm:$0xff]   ;;  %v4478_v17 = vcombine.high %v248_v11, %v256_v12  ;;  %v6013_v2 = vld [vmem:[%s7183_s1 + $0x240] sm:$0xff]  }
  0x70   : > { %3061 = vmatprep.mubr.bf16.mxu1 %v4602_v15  ;;  %v5988_v15 = vld [vmem:[%s7183_s1 + $0x2b8] sm:$0xff]   ;;  %v6015_v3 = vld [vmem:[%s7183_s1 + $0x2c0] sm:$0xff]  }
  0x76   : > { %2901 = vmatmul.mubr.bf16.gmra.mxu0 %v4599_v20  ;;  %v263_v20 = vld [vmem:[%s6210_s12 + $0x110] sm:$0xff] }
  0x77   : > { %3062 = vmatmul.mubr.bf16.gmra.mxu1 %v4601_v21  ;;  %2908 = vmatprep.mubr.bf16.mxu0 %v4616_v22  ;;  %v5990_v21 = vld [vmem:[%s7183_s1 + $0x230] sm:$0xff]  }
  0x78   : > { %3069 = vmatprep.mubr.bf16.mxu1 %v4618_v23  ;;  %v271_v22 = vld [vmem:[%s6210_s12 + $0x150] sm:$0xff] }
  0x79   : > { %v5992_v23 = vld [vmem:[%s7183_s1 + $0x2b0] sm:$0xff]   ;;  %v4491_v43 = vcombine.low %v263_v20, %v271_v22 }
  0x7e   : > { %2909 = vmatmul.mubr.bf16.gmra.mxu0 %v4615_v28  ;;  %v4475_v28 = vcombine.low %v247_v8, %v255_v9  ;;  %v320_v8 = vld [vmem:[%s6210_s12 + $0x2d8] sm:$0xff]  ;;  %v6016_v9 = vld [vmem:[%s7183_s1 + $0x280] sm:$0xff]  }
  0x7f   : > { %3070 = vmatmul.mubr.bf16.gmra.mxu1 %v4617_v29  ;;  %2916 = vmatprep.mubr.bf16.mxu0 %v4632_v30  ;;  %v4477_v29 = vcombine.low %v248_v11, %v256_v12  ;;  %v4492_v30 = vcombine.high %v263_v20, %v271_v22  ;;  %v6019_v12 = vld [vmem:[%s7183_s1 + $0x3f8] sm:$0xff]  }
  0x80   : > { %3077 = vmatprep.mubr.bf16.mxu1 %v4634_v31  ;;  %v4494_v31 = vcombine.high %v264_v25, %v272_v26 }
  0x86   : > { %2917 = vmatmul.mubr.bf16.gmra.mxu0 %v4631_v36  ;;  %v279_v36 = vld [vmem:[%s6210_s12 + $0x190] sm:$0xff] }
  0x87   : > { %3078 = vmatmul.mubr.bf16.gmra.mxu1 %v4633_v37  ;;  %2924 = vmatprep.mubr.bf16.mxu0 %v4648_v38  ;;  %v287_v37 = vld [vmem:[%s6210_s12 + $0x1d0] sm:$0xff]  ;;  %v280_v38 = vld [vmem:[%s6210_s12 + $0x198] sm:$0xff] }
  0x88   : > { %3085 = vmatprep.mubr.bf16.mxu1 %v4650_v39  ;;  %v5998_v39 = vld [vmem:[%s7183_s1 + $0x220] sm:$0xff]   ;;  %v4507_v59 = vcombine.low %v279_v36, %v287_v37 }
  0x8e   : > { %2925 = vmatmul.mubr.bf16.gmra.mxu0 %v4647_v44  ;;  %v6003_v44 = vld [vmem:[%s7183_s1 + $0x2d8] sm:$0xff]  }
  0x8f   : > { %3086 = vmatmul.mubr.bf16.gmra.mxu1 %v4649_v45  ;;  %2932 = vmatprep.mubr.bf16.mxu0 %v4664_v46  ;;  %v4493_v45 = vcombine.low %v264_v25, %v272_v26  ;;  %v4508_v46 = vcombine.high %v279_v36, %v287_v37  ;;  %v351_v25 = vld [vmem:[%s6210_s12 + $0x3d0] sm:$0xff]  ;;  %v344_v26 = vld [vmem:[%s6210_s12 + $0x398] sm:$0xff] }
  0x90   : > { %3093 = vmatprep.mubr.bf16.mxu1 %v4666_v47  ;;  %v4510_v47 = vcombine.high %v280_v38, %v288_v40 }
  0x96   : > { %2933 = vmatmul.mubr.bf16.gmra.mxu0 %v4663_v52  ;;  %v295_v52 = vld [vmem:[%s6210_s12 + $0x210] sm:$0xff] }
  0x97   : > { %3094 = vmatmul.mubr.bf16.gmra.mxu1 %v4665_v53  ;;  %2940 = vmatprep.mubr.bf16.mxu0 %v4680_v54  ;;  %v303_v53 = vld [vmem:[%s6210_s12 + $0x250] sm:$0xff]  ;;  %v296_v54 = vld [vmem:[%s6210_s12 + $0x218] sm:$0xff] }
  0x98   : > { %3101 = vmatprep.mubr.bf16.mxu1 %v4682_v55  ;;  %v6006_v55 = vld [vmem:[%s7183_s1 + $0x210] sm:$0xff]   ;;  %v4523_v11 = vcombine.low %v295_v52, %v303_v53 }
  0x9e   : > { %2941 = vmatmul.mubr.bf16.gmra.mxu0 %v4679_v60  ;;  %v6011_v60 = vld [vmem:[%s7183_s1 + $0x2c8] sm:$0xff]  }
  0x9f   : > { %3102 = vmatmul.mubr.bf16.gmra.mxu1 %v4681_v61  ;;  %2948 = vmatprep.mubr.bf16.mxu0 %v4696_v62  ;;  %v4509_v61 = vcombine.low %v280_v38, %v288_v40  ;;  %v4524_v62 = vcombine.high %v295_v52, %v303_v53  ;;  %v375_v40 = vld [vmem:[%s6210_s12 + $0x490] sm:$0xff] }
  0xa0   : > { %3109 = vmatprep.mubr.bf16.mxu1 %v4698_v63  ;;  %v4526_v63 = vcombine.high %v296_v54, %v304_v56  ;;  %v391_v52 = vld [vmem:[%s6210_s12 + $0x510] sm:$0xff] }
  0xa1   : > { %v399_v53 = vld [vmem:[%s6210_s12 + $0x550] sm:$0xff] }
  0xa6   : > { %2949 = vmatmul.mubr.bf16.gmra.mxu0 %v4695_v4  ;;  %v311_v4 = vld [vmem:[%s6210_s12 + $0x290] sm:$0xff] }
  0xa7   : > { %3110 = vmatmul.mubr.bf16.gmra.mxu1 %v4697_v5  ;;  %3150 = vmatprep.mubr.bf16.mxu0 %v4460_v6  ;;  %v319_v5 = vld [vmem:[%s6210_s12 + $0x2d0] sm:$0xff]  ;;  %v312_v6 = vld [vmem:[%s6210_s12 + $0x298] sm:$0xff] }
  0xa8   : > { %3311 = vmatprep.mubr.bf16.mxu1 %v4462_v7  ;;  %v6014_v7 = vld [vmem:[%s7183_s1 + $0x200] sm:$0xff]   ;;  %v4539_v20 = vcombine.low %v311_v4, %v319_v5 }
  0xae   : > { %3151 = vmatmul.mubr.bf16.vlgmr.msra.gmra.mxu0 %v4459_v10  ;;  %v6017_v10 = vld [vmem:[%s7183_s1 + $0x378] sm:$0xff]  }
  0xaf   : > { %3312 = vmatmul.mubr.bf16.vlgmr.msra.gmra.mxu1 %v4461_v13  ;;  %5450 = vmatpush3.bf16.msra.mxu0 %v5986_v14  ;;  %v4525_v13 = vcombine.low %v296_v54, %v304_v56  ;;  %v4540_v14 = vcombine.high %v311_v4, %v319_v5  ;;  %v392_v56 = vld [vmem:[%s6210_s12 + $0x518] sm:$0xff] }
  0xb0   : > { %5562 = vmatpush3.bf16.msra.mxu1 %v5988_v15  ;;  %3158 = vmatprep.mubr.bf16.mxu0 %v4476_v16  ;;  %v4542_v15 = vcombine.high %v312_v6, %v320_v8  ;;  %v327_v16 = vld [vmem:[%s6210_s12 + $0x310] sm:$0xff] }
  0xb1   : > { %3319 = vmatprep.mubr.bf16.mxu1 %v4478_v17  ;;  %5451 = vmatprep.subr.bf16.mxu0 %v5989_v18  ;;  %v335_v17 = vld [vmem:[%s6210_s12 + $0x350] sm:$0xff]  ;;  %v328_v18 = vld [vmem:[%s6210_s12 + $0x318] sm:$0xff] }
  0xb2   : > { %5563 = vmatprep.subr.bf16.mxu1 %v5991_v19  ;;  %v336_v19 = vld [vmem:[%s6210_s12 + $0x358] sm:$0xff]  ;;  %v4556_v22 = vcombine.high %v327_v16, %v335_v17 }
  0xb3   : > { %5452 = vmatpush3.bf16.msra.mxu0 %v5990_v21  ;;  %v4541_v21 = vcombine.low %v312_v6, %v320_v8 }
  0xb4   : > { %5564 = vmatpush3.bf16.msra.mxu1 %v5992_v23  ;;  %5453 = vmatprep.subr.bf16.mxu0 %v5993_v24  ;;  %v4558_v23 = vcombine.high %v328_v18, %v336_v19  ;;  %v343_v24 = vld [vmem:[%s6210_s12 + $0x390] sm:$0xff] }
  0xb5   : > { %5565 = vmatprep.subr.bf16.mxu1 %v5995_v27  ;;  %v352_v27 = vld [vmem:[%s6210_s12 + $0x3d8] sm:$0xff]  ;;  %v4571_v36 = vcombine.low %v343_v24, %v351_v25 }
  0xb6   : > { %3159 = vmatmul.mubr.bf16.gmra.mxu0 %v4475_v28  ;;  %v4555_v28 = vcombine.low %v327_v16, %v335_v17  ;;  %v4573_v37 = vcombine.low %v344_v26, %v352_v27  ;;  %v408_v16 = vld [vmem:[%s6210_s12 + $0x598] sm:$0xff] }
  0xb7   : > { %3320 = vmatmul.mubr.bf16.gmra.mxu1 %v4477_v29  ;;  %3166 = vmatprep.mubr.bf16.mxu0 %v4492_v30  ;;  %v4557_v29 = vcombine.low %v328_v18, %v336_v19  ;;  %v4572_v30 = vcombine.high %v343_v24, %v351_v25  ;;  %v416_v17 = vld [vmem:[%s6210_s12 + $0x5d8] sm:$0xff] }
  0xb8   : > { %3327 = vmatprep.mubr.bf16.mxu1 %v4494_v31  ;;  %5454 = vmatpush3.bf16.msra.mxu0 %v5994_v32  ;;  %v4574_v31 = vcombine.high %v344_v26, %v352_v27  ;;  %v359_v32 = vld [vmem:[%s6210_s12 + $0x410] sm:$0xff]  ;;  %v4638_v26 = vcombine.high %v408_v16, %v416_v17 }
  0xb9   : > { %5566 = vmatpush3.bf16.msra.mxu1 %v5996_v33  ;;  %5455 = vmatprep.subr.bf16.mxu0 %v5997_v34  ;;  %v367_v33 = vld [vmem:[%s6210_s12 + $0x450] sm:$0xff]  ;;  %v360_v34 = vld [vmem:[%s6210_s12 + $0x418] sm:$0xff] }
  0xba   : > { %5567 = vmatprep.subr.bf16.mxu1 %v5999_v35  ;;  %v368_v35 = vld [vmem:[%s6210_s12 + $0x458] sm:$0xff]  ;;  %v4588_v38 = vcombine.high %v359_v32, %v367_v33 }
  0xbc   : > { %5456 = vmatpush3.bf16.msra.mxu0 %v5998_v39  ;;  %v4590_v39 = vcombine.high %v360_v34, %v368_v35 }
  0xbd   : > { %5568 = vmatpush3.bf16.msra.mxu1 %v6000_v41  ;;  %5457 = vmatprep.subr.bf16.mxu0 %v6001_v42  ;;  %v383_v41 = vld [vmem:[%s6210_s12 + $0x4d0] sm:$0xff]  ;;  %v376_v42 = vld [vmem:[%s6210_s12 + $0x498] sm:$0xff] }
  0xbe   : > { %3167 = vmatmul.mubr.bf16.gmra.mxu0 %v4491_v43  ;;  %5569 = vmatprep.subr.bf16.mxu1 %v6003_v44  ;;  %v384_v43 = vld [vmem:[%s6210_s12 + $0x4d8] sm:$0xff]  ;;  %v4587_v44 = vcombine.low %v359_v32, %v367_v33 }
  0xbf   : > { %3328 = vmatmul.mubr.bf16.gmra.mxu1 %v4493_v45  ;;  %3174 = vmatprep.mubr.bf16.mxu0 %v4508_v46  ;;  %v4589_v45 = vcombine.low %v360_v34, %v368_v35  ;;  %v4604_v46 = vcombine.high %v375_v40, %v383_v41  ;;  %v423_v35 = vld [vmem:[%s6210_s12 + $0x610] sm:$0xff] }
  0xc0   : > { %3335 = vmatprep.mubr.bf16.mxu1 %v4510_v47  ;;  %5458 = vmatpush3.bf16.msra.mxu0 %v6002_v48  ;;  %v4606_v47 = vcombine.high %v376_v42, %v384_v43 }
  0xc1   : > { %5570 = vmatpush3.bf16.msra.mxu1 %v6004_v49  ;;  %5459 = vmatprep.subr.bf16.mxu0 %v6005_v50  ;;  %v6523_v50 = vld [vmem:[%s7184_s2] ss:$0 sm:$0xff] }
  0xc2   : > { %5571 = vmatprep.subr.bf16.mxu1 %v6007_v51 }
  0xc4   : > { %5460 = vmatpush3.bf16.msra.mxu0 %v6006_v55 }
  0xc5   : > { %5572 = vmatpush3.bf16.msra.mxu1 %v6008_v57  ;;  %5461 = vmatprep.subr.bf16.mxu0 %v6009_v58  ;;  %v400_v57 = vld [vmem:[%s6210_s12 + $0x558] sm:$0xff] }
  0xc6   : > { %3175 = vmatmul.mubr.bf16.gmra.mxu0 %v4507_v59  ;;  %5573 = vmatprep.subr.bf16.mxu1 %v6011_v60  ;;  %v4603_v60 = vcombine.low %v375_v40, %v383_v41  ;;  %v424_v40 = vld [vmem:[%s6210_s12 + $0x618] sm:$0xff] }
  0xc7   : > { %3336 = vmatmul.mubr.bf16.gmra.mxu1 %v4509_v61  ;;  %3182 = vmatprep.mubr.bf16.mxu0 %v4524_v62  ;;  %v432_v41 = vld [vmem:[%s6210_s12 + $0x658] sm:$0xff] }
  0xc8   : > { %3343 = vmatprep.mubr.bf16.mxu1 %v4526_v63  ;;  %5462 = vmatpush3.bf16.msra.mxu0 %v6010_v0  ;;  %v4605_v63 = vcombine.low %v376_v42, %v384_v43  ;;  %v4620_v0 = vcombine.high %v391_v52, %v399_v53 }
  0xc9   : > { %5574 = vmatpush3.bf16.msra.mxu1 %v6012_v1  ;;  %5463 = vmatprep.subr.bf16.mxu0 %v6013_v2  ;;  %v4622_v2 = vcombine.high %v392_v56, %v400_v57 }
  0xca   : > { %5575 = vmatprep.subr.bf16.mxu1 %v6015_v3 }
  0xcc   : > { %5464 = vmatpush3.bf16.msra.mxu0 %v6014_v7 }
  0xcd   : > { %5576 = vmatpush3.bf16.msra.mxu1 %v6016_v9  ;;  %5673 = vmatprep.subr.bf16.mxu0 %v6017_v10 }
  0xce   : > { %3183 = vmatmul.mubr.bf16.gmra.mxu0 %v4523_v11  ;;  %5785 = vmatprep.subr.bf16.mxu1 %v6019_v12  ;;  %v407_v11 = vld [vmem:[%s6210_s12 + $0x590] sm:$0xff] }
  0xcf   : > { %3344 = vmatmul.mubr.bf16.gmra.mxu1 %v4525_v13  ;;  %3190 = vmatprep.mubr.bf16.mxu0 %v4540_v14  ;;  %v415_v12 = vld [vmem:[%s6210_s12 + $0x5d0] sm:$0xff] }
  0xd0   : > { %3351 = vmatprep.mubr.bf16.mxu1 %v4542_v15  ;;  %v4636_v24 = vcombine.high %v407_v11, %v415_v12 }
  0xd6   : > { %3191 = vmatmul.mubr.bf16.gmra.mxu0 %v4539_v20  ;;  %v4619_v20 = vcombine.low %v391_v52, %v399_v53 }
  0xd7   : > { %3352 = vmatmul.mubr.bf16.gmra.mxu1 %v4541_v21  ;;  %3198 = vmatprep.mubr.bf16.mxu0 %v4556_v22 }
  0xd8   : > { %3359 = vmatprep.mubr.bf16.mxu1 %v4558_v23  ;;  %v4621_v23 = vcombine.low %v392_v56, %v400_v57 }
  0xde   : > { %3199 = vmatmul.mubr.bf16.gmra.mxu0 %v4555_v28 }
  0xdf   : > { %3360 = vmatmul.mubr.bf16.gmra.mxu1 %v4557_v29  ;;  %3206 = vmatprep.mubr.bf16.mxu0 %v4572_v30 }
  0xe0   : > { %3367 = vmatprep.mubr.bf16.mxu1 %v4574_v31 }
  0xe6   : > { %3207 = vmatmul.mubr.bf16.gmra.mxu0 %v4571_v36  ;;  %v431_v36 = vld [vmem:[%s6210_s12 + $0x650] sm:$0xff] }
  0xe7   : > { %3368 = vmatmul.mubr.bf16.gmra.mxu1 %v4573_v37  ;;  %3214 = vmatprep.mubr.bf16.mxu0 %v4588_v38 }
  0xe8   : > { %3375 = vmatprep.mubr.bf16.mxu1 %v4590_v39 }
  0xee   : > { %v5017_v48 = vpop.f32.mrf.mxu0  ;;  %3215 = vmatmul.mubr.bf16.gmra.mxu0 %v4587_v44  ;;  %v4635_v44 = vcombine.low %v407_v11, %v415_v12 }
  0xef   : > { %v5129_v49 = vpop.f32.mrf.mxu1  ;;  %3376 = vmatmul.mubr.bf16.gmra.mxu1 %v4589_v45  ;;  %3222 = vmatprep.mubr.bf16.mxu0 %v4604_v46 }
  0xf0   : > { %v5018_v51 = vpop.f32.mrf.mxu0  ;;  %3383 = vmatprep.mubr.bf16.mxu1 %v4606_v47  ;;  %v4637_v47 = vcombine.low %v408_v16, %v416_v17 }
  0xf1   : > { %v5019_v54 = vadd.f32 %v5018_v51, %v5017_v48  ;;  %v5130_v55 = vpop.f32.mrf.mxu1  ;;  %v4652_v48 = vcombine.high %v423_v35, %v431_v36  ;;  %v4654_v51 = vcombine.high %v424_v40, %v432_v41 }
  0xf2   : > { %v5131_v58 = vadd.f32 %v5130_v55, %v5129_v49  ;;  %v5020_v59 = vpop.f32.mrf.mxu0 }
  0xf3   : > { %v2831_v61 = vadd.f32 %v5019_v54, %v6523_v50  ;;  %v5132_v62 = vpop.f32.mrf.mxu1 }
  0xf4   : > { %v5021_v1 = vpop.f32.mrf.mxu0 }
  0xf5   : > { %v6530_v3 = vadd.f32 %v5131_v58, %v2831_v61  ;;  %v5022_v4 = vadd.f32 %v5021_v1, %v5020_v59  ;;  %v5133_v5 = vpop.f32.mrf.mxu1  ;;  %v447_v61 = vld [vmem:[%s6210_s12 + $0x6d0] sm:$0xff]  ;;  %v440_v1 = vld [vmem:[%s6210_s12 + $0x698] sm:$0xff] }
  0xf6   : > { %v5134_v6 = vadd.f32 %v5133_v5, %v5132_v62  ;;  %v5023_v7 = vpop.f32.mrf.mxu0  ;;  %3223 = vmatmul.mubr.bf16.gmra.mxu0 %v4603_v60  ;;  %v439_v60 = vld [vmem:[%s6210_s12 + $0x690] sm:$0xff] }
  0xf7   : > { %v2834_v8 = vadd.f32 %v5022_v4, %v6523_v50  ;;  %v5135_v9 = vpop.f32.mrf.mxu1  ;;  %3384 = vmatmul.mubr.bf16.gmra.mxu1 %v4605_v63  ;;  %3230 = vmatprep.mubr.bf16.mxu0 %v4620_v0 }
  0xf8   : > { %v5024_v10 = vpop.f32.mrf.mxu0  ;;  %3391 = vmatprep.mubr.bf16.mxu1 %v4622_v2  ;;  %v448_v2 = vld [vmem:[%s6210_s12 + $0x6d8] sm:$0xff] }
  0xf9   : > { %v6535_v13 = vadd.f32 %v5134_v6, %v2834_v8  ;;  %v5025_v14 = vadd.f32 %v5024_v10, %v5023_v7  ;;  %v5136_v15 = vpop.f32.mrf.mxu1  ;;  %v4651_v6 = vcombine.low %v423_v35, %v431_v36  ;;  %v4668_v10 = vcombine.high %v439_v60, %v447_v61 }
  0xfa   : > { %v5137_v18 = vadd.f32 %v5136_v15, %v5135_v9  ;;  %v5026_v19 = vpop.f32.mrf.mxu0  ;;  %v4653_v9 = vcombine.low %v424_v40, %v432_v41  ;;  %v4670_v12 = vcombine.high %v440_v1, %v448_v2  ;;  %v4669_v35 = vcombine.low %v440_v1, %v448_v2 }
  0xfb   : > { %v2839_v21 = vadd.f32 %v5025_v14, %v6523_v50  ;;  %v5138_v22 = vpop.f32.mrf.mxu1 }
  0xfc   : > { %v5027_v25 = vpop.f32.mrf.mxu0 }
  0xfd   : > { %v6540_v27 = vadd.f32 %v5137_v18, %v2839_v21  ;;  %v5028_v28 = vadd.f32 %v5027_v25, %v5026_v19  ;;  %v5139_v29 = vpop.f32.mrf.mxu1 }
  0xfe   : > { %v5140_v30 = vadd.f32 %v5139_v29, %v5138_v22  ;;  %v5029_v31 = vpop.f32.mrf.mxu0  ;;  %3231 = vmatmul.mubr.bf16.gmra.mxu0 %v4619_v20  ;;  %v455_v22 = vld [vmem:[%s6210_s12 + $0x710] sm:$0xff]  ;;  %v464_v29 = vld [vmem:[%s6210_s12 + $0x758] sm:$0xff] }
  0xff   : > { %v2842_v32 = vadd.f32 %v5028_v28, %v6523_v50  ;;  %v5141_v33 = vpop.f32.mrf.mxu1  ;;  %3392 = vmatmul.mubr.bf16.gmra.mxu1 %v4621_v23  ;;  %3238 = vmatprep.mubr.bf16.mxu0 %v4636_v24  ;;  %v463_v23 = vld [vmem:[%s6210_s12 + $0x750] sm:$0xff]  ;;  %v456_v28 = vld [vmem:[%s6210_s12 + $0x718] sm:$0xff] }
 0x100   : > { %v5030_v34 = vpop.f32.mrf.mxu0  ;;  %3399 = vmatprep.mubr.bf16.mxu1 %v4638_v26  ;;  %v4684_v36 = vcombine.high %v455_v22, %v463_v23 }
 0x101   : > { %v6545_v37 = vadd.f32 %v5140_v30, %v2842_v32  ;;  %v5031_v38 = vadd.f32 %v5030_v34, %v5029_v31  ;;  %v5142_v39 = vpop.f32.mrf.mxu1  ;;  %v4667_v32 = vcombine.low %v439_v60, %v447_v61 }
 0x102   : > { %v5143_v42 = vadd.f32 %v5142_v39, %v5141_v33  ;;  %v5032_v43 = vpop.f32.mrf.mxu0  ;;  %v4686_v39 = vcombine.high %v456_v28, %v464_v29 }
 0x103   : > { %v2847_v45 = vadd.f32 %v5031_v38, %v6523_v50  ;;  %v5144_v46 = vpop.f32.mrf.mxu1 }
 0x104   : > { %v5033_v49 = vpop.f32.mrf.mxu0 }
 0x105   : > { %v6550_v52 = vadd.f32 %v5143_v42, %v2847_v45  ;;  %v5034_v53 = vadd.f32 %v5033_v49, %v5032_v43  ;;  %v5145_v54 = vpop.f32.mrf.mxu1  ;;  %v479_v49 = vld [vmem:[%s6210_s12 + $0x7d0] sm:$0xff] }
 0x106   : > { %v5146_v55 = vadd.f32 %v5145_v54, %v5144_v46  ;;  %v5035_v56 = vpop.f32.mrf.mxu0  ;;  %3239 = vmatmul.mubr.bf16.gmra.mxu0 %v4635_v44 }
 0x107   : > { %v2850_v57 = vadd.f32 %v5034_v53, %v6523_v50  ;;  %v5147_v58 = vpop.f32.mrf.mxu1  ;;  %3400 = vmatmul.mubr.bf16.gmra.mxu1 %v4637_v47  ;;  %3246 = vmatprep.mubr.bf16.mxu0 %v4652_v48  ;;  %v471_v48 = vld [vmem:[%s6210_s12 + $0x790] sm:$0xff] }
 0x108   : > { %v5036_v59 = vpop.f32.mrf.mxu0  ;;  %3407 = vmatprep.mubr.bf16.mxu1 %v4654_v51 }
 0x109   : > { %v6555_v62 = vadd.f32 %v5146_v55, %v2850_v57  ;;  %v5037_v63 = vadd.f32 %v5036_v59, %v5035_v56  ;;  %v5148_v0 = vpop.f32.mrf.mxu1  ;;  %v472_v55 = vld [vmem:[%s6210_s12 + $0x798] sm:$0xff]  ;;  %v4683_v59 = vcombine.low %v455_v22, %v463_v23  ;;  %v4699_v23 = vcombine.low %v471_v48, %v479_v49 }
 0x10a   : > { %v5149_v4 = vadd.f32 %v5148_v0, %v5147_v58  ;;  %v5038_v5 = vpop.f32.mrf.mxu0  ;;  %v480_v56 = vld [vmem:[%s6210_s12 + $0x7d8] sm:$0xff]  ;;  %v4700_v0 = vcombine.high %v471_v48, %v479_v49 }
 0x10b   : > { %v2855_v7 = vadd.f32 %v5037_v63, %v6523_v50  ;;  %v5150_v8 = vpop.f32.mrf.mxu1  ;;  %v4685_v63 = vcombine.low %v456_v28, %v464_v29  ;;  %v4702_v2 = vcombine.high %v472_v55, %v480_v56  ;;  %v4701_v28 = vcombine.low %v472_v55, %v480_v56 }
 0x10c   : > { %v5039_v11 = vpop.f32.mrf.mxu0 }
 0x10d   : > { %v6560_v14 = vadd.f32 %v5149_v4, %v2855_v7  ;;  %v5040_v15 = vadd.f32 %v5039_v11, %v5038_v5  ;;  %v5151_v16 = vpop.f32.mrf.mxu1 }
 0x10e   : > { %v5152_v17 = vadd.f32 %v5151_v16, %v5150_v8  ;;  %v5041_v18 = vpop.f32.mrf.mxu0  ;;  %3247 = vmatmul.mubr.bf16.gmra.mxu0 %v4651_v6 }
 0x10f   : > { %v2858_v19 = vadd.f32 %v5040_v15, %v6523_v50  ;;  %v5153_v20 = vpop.f32.mrf.mxu1  ;;  %3408 = vmatmul.mubr.bf16.gmra.mxu1 %v4653_v9  ;;  %3254 = vmatprep.mubr.bf16.mxu0 %v4668_v10  ;;  %v241_v15 = vld [vmem:[%s6210_s12 + $0x60] sm:$0xff] }
 0x110   : > { %v5042_v21 = vpop.f32.mrf.mxu0  ;;  %3415 = vmatprep.mubr.bf16.mxu1 %v4670_v12  ;;  %v233_v12 = vld [vmem:[%s6210_s12 + $0x20] sm:$0xff] }
 0x111   : > { %v6565_v24 = vadd.f32 %v5152_v17, %v2858_v19  ;;  %v5043_v25 = vadd.f32 %v5042_v21, %v5041_v18  ;;  %v5154_v26 = vpop.f32.mrf.mxu1  ;;  %v234_v19 = vld [vmem:[%s6210_s12 + $0x28] sm:$0xff]  ;;  %v4464_v29 = vcombine.high %v233_v12, %v241_v15  ;;  %v4463_v49 = vcombine.low %v233_v12, %v241_v15  ;;  %v6022_v12 = vld [vmem:[%s7183_s1 + $0x330] sm:$0xff]  }
 0x112   : > { %v5155_v30 = vadd.f32 %v5154_v26, %v5153_v20  ;;  %v5044_v31 = vpop.f32.mrf.mxu0  ;;  %v242_v20 = vld [vmem:[%s6210_s12 + $0x68] sm:$0xff] }
 0x113   : > { %v2863_v33 = vadd.f32 %v5043_v25, %v6523_v50  ;;  %v5156_v34 = vpop.f32.mrf.mxu1 }
 0x114   : > { %v5045_v38 = vpop.f32.mrf.mxu0 }
 0x115   : > { %v6570_v40 = vadd.f32 %v5155_v30, %v2863_v33  ;;  %v5046_v41 = vadd.f32 %v5045_v38, %v5044_v31  ;;  %v5157_v42 = vpop.f32.mrf.mxu1  ;;  %v4466_v31 = vcombine.high %v234_v19, %v242_v20 }
 0x116   : > { %v5158_v43 = vadd.f32 %v5157_v42, %v5156_v34  ;;  %v5047_v44 = vpop.f32.mrf.mxu0  ;;  %3255 = vmatmul.mubr.bf16.gmra.mxu0 %v4667_v32 }
 0x117   : > { %v2866_v45 = vadd.f32 %v5046_v41, %v6523_v50  ;;  %v5159_v46 = vpop.f32.mrf.mxu1  ;;  %3416 = vmatmul.mubr.bf16.gmra.mxu1 %v4669_v35  ;;  %3262 = vmatprep.mubr.bf16.mxu0 %v4684_v36 }
 0x118   : > { %v5048_v47 = vpop.f32.mrf.mxu0  ;;  %3423 = vmatprep.mubr.bf16.mxu1 %v4686_v39 }
 0x119   : > { %v6575_v51 = vadd.f32 %v5158_v43, %v2866_v45  ;;  %v5049_v53 = vadd.f32 %v5048_v47, %v5047_v44  ;;  %v5160_v54 = vpop.f32.mrf.mxu1  ;;  %v6596_v45 = vld [vmem:[%s6210_s12 + $0xa0] sm:$0xff] }
 0x11a   : > { %v5161_v57 = vadd.f32 %v5160_v54, %v5159_v46  ;;  %v5050_v58 = vpop.f32.mrf.mxu0  ;;  %v6599_v46 = vld [vmem:[%s6210_s12 + $0xe0] sm:$0xff]  ;;  %v6605_v54 = vld [vmem:[%s6210_s12 + $0xe8] sm:$0xff] }
 0x11b   : > { %v2871_v60 = vadd.f32 %v5049_v53, %v6523_v50  ;;  %v5162_v61 = vpop.f32.mrf.mxu1  ;;  %v6602_v53 = vld [vmem:[%s6210_s12 + $0xa8] sm:$0xff] }
 0x11c   : > { %v5051_v1 = vpop.f32.mrf.mxu0 }
 0x11d   : > { %v6580_v4 = vadd.f32 %v5161_v57, %v2871_v60  ;;  %v5052_v5 = vadd.f32 %v5051_v1, %v5050_v58  ;;  %v5163_v6 = vpop.f32.mrf.mxu1  ;;  %v4465_v57 = vcombine.low %v234_v19, %v242_v20  ;;  %v6018_v58 = vld [vmem:[%s7183_s1 + $0x338] sm:$0xff]   ;;  %v6025_v19 = vld [vmem:[%s7183_s1 + $0x368] sm:$0xff]  }
 0x11e   : > { %v5164_v7 = vadd.f32 %v5163_v6, %v5162_v61  ;;  %v5053_v8 = vpop.f32.mrf.mxu0  ;;  %3263 = vmatmul.mubr.bf16.gmra.mxu0 %v4683_v59  ;;  %v6020_v60 = vld [vmem:[%s7183_s1 + $0x3b8] sm:$0xff]   ;;  %v4480_v61 = vcombine.high %v6596_v45, %v6599_v46 }
 0x11f   : > { %v2874_v9 = vadd.f32 %v5052_v5, %v6523_v50  ;;  %v5165_v10 = vpop.f32.mrf.mxu1  ;;  %3424 = vmatmul.mubr.bf16.gmra.mxu1 %v4685_v63  ;;  %3270 = vmatprep.mubr.bf16.mxu0 %v4700_v0  ;;  %v6021_v5 = vld [vmem:[%s7183_s1 + $0x370] sm:$0xff]  }
 0x120   : > { %v5054_v11 = vpop.f32.mrf.mxu0  ;;  %3431 = vmatprep.mubr.bf16.mxu1 %v4702_v2  ;;  %v4482_v2 = vcombine.high %v6602_v53, %v6605_v54 }
 0x121   : > { %v6585_v16 = vadd.f32 %v5164_v7, %v2874_v9  ;;  %v5055_v17 = vadd.f32 %v5054_v11, %v5053_v8  ;;  %v5166_v18 = vpop.f32.mrf.mxu1  ;;  %v6023_v8 = vld [vmem:[%s7183_s1 + $0x3f0] sm:$0xff]   ;;  %v6628_v11 = vld [vmem:[%s6210_s12 + $0x120] sm:$0xff] }
 0x122   : > { %v5167_v21 = vadd.f32 %v5166_v18, %v5165_v10  ;;  %v5056_v22 = vpop.f32.mrf.mxu0  ;;  %v6024_v18 = vld [vmem:[%s7183_s1 + $0x3b0] sm:$0xff]  }
 0x123   : > { %v2879_v25 = vadd.f32 %v5055_v17, %v6523_v50  ;;  %v5168_v26 = vpop.f32.mrf.mxu1  ;;  %v6634_v17 = vld [vmem:[%s6210_s12 + $0x160] sm:$0xff] }
 0x124   : > { %v5057_v30 = vpop.f32.mrf.mxu0 }
 0x125   : > { %v6590_v32 = vadd.f32 %v5167_v21, %v2879_v25  ;;  %v5058_v33 = vadd.f32 %v5057_v30, %v5056_v22  ;;  %v5169_v34 = vpop.f32.mrf.mxu1  ;;  %v6648_v25 = vld [vmem:[%s6210_s12 + $0x168] sm:$0xff]  ;;  %v4479_v30 = vcombine.low %v6596_v45, %v6599_v46  ;;  %v6029_v46 = vld [vmem:[%s7183_s1 + $0x360] sm:$0xff]  }
 0x126   : > { %v5170_v35 = vadd.f32 %v5169_v34, %v5168_v26  ;;  %v5059_v36 = vpop.f32.mrf.mxu0  ;;  %3271 = vmatmul.mubr.bf16.gmra.mxu0 %v4699_v23  ;;  %v6645_v23 = vld [vmem:[%s6210_s12 + $0x128] sm:$0xff]  ;;  %v4481_v34 = vcombine.low %v6602_v53, %v6605_v54 }
 0x127   : > { %v2882_v38 = vadd.f32 %v5058_v33, %v6523_v50  ;;  %v5171_v39 = vpop.f32.mrf.mxu1  ;;  %3432 = vmatmul.mubr.bf16.gmra.mxu1 %v4701_v28  ;;  %3472 = vmatprep.mubr.bf16.mxu0 %v4464_v29  ;;  %v6027_v26 = vld [vmem:[%s7183_s1 + $0x3e8] sm:$0xff]  }
 0x128   : > { %v5060_v41 = vpop.f32.mrf.mxu0  ;;  %3633 = vmatprep.mubr.bf16.mxu1 %v4466_v31  ;;  %v6028_v45 = vld [vmem:[%s7183_s1 + $0x3a8] sm:$0xff]  }
 0x129   : > { %v6593_v42 = vadd.f32 %v5170_v35, %v2882_v38  ;;  %v5061_v43 = vadd.f32 %v5060_v41, %v5059_v36  ;;  %v5172_v44 = vpop.f32.mrf.mxu1  ;;  %v4496_v35 = vcombine.high %v6628_v11, %v6634_v17  ;;  %v4498_v38 = vcombine.high %v6645_v23, %v6648_v25 }
 0x12a   : > { %v5173_v47 = vadd.f32 %v5172_v44, %v5171_v39  ;;  %v5062_v48 = vpop.f32.mrf.mxu0  ;;  %v6026_v39 = vld [vmem:[%s7183_s1 + $0x328] sm:$0xff]  }
 0x12b   : > { %v2887_v55 = vadd.f32 %v5061_v43, %v6523_v50  ;;  %v5174_v56 = vpop.f32.mrf.mxu1 }
 0x12c   : > { %v5063_v59 = vpop.f32.mrf.mxu0 }
 0x12d   : > { %v6616_v63 = vadd.f32 %v5173_v47, %v2887_v55  ;;  %v5064_v0 = vadd.f32 %v5063_v59, %v5062_v48  ;;  %v5175_v1 = vpop.f32.mrf.mxu1  ;;  %v6678_v55 = vld [vmem:[%s6210_s12 + $0x1a0] sm:$0xff] }
 0x12e   : > { %v5176_v6 = vadd.f32 %v5175_v1, %v5174_v56  ;;  %v5065_v7 = vpop.f32.mrf.mxu0  ;;  %3473 = vmatmul.mubr.bf16.vlgmr.msra.gmra.mxu0 %v4463_v49  ;;  %v6031_v49 = vld [vmem:[%s7183_s1 + $0x3e0] sm:$0xff]   ;;  %v6692_v1 = vld [vmem:[%s6210_s12 + $0x1e8] sm:$0xff] }
 0x12f   : > { %v2890_v9 = vadd.f32 %v5064_v0, %v6523_v50  ;;  %v5177_v10 = vpop.f32.mrf.mxu1  ;;  %3634 = vmatmul.mubr.bf16.vlgmr.msra.gmra.mxu1 %v4465_v57  ;;  %5674 = vmatpush3.bf16.msra.mxu0 %v6018_v58  ;;  %v6681_v57 = vld [vmem:[%s6210_s12 + $0x1e0] sm:$0xff]  ;;  %v6684_v58 = vld [vmem:[%s6210_s12 + $0x1a8] sm:$0xff] }
 0x130   : > { %v5066_v15 = vpop.f32.mrf.mxu0  ;;  %5786 = vmatpush3.bf16.msra.mxu1 %v6020_v60  ;;  %3480 = vmatprep.mubr.bf16.mxu0 %v4480_v61  ;;  %v6030_v59 = vld [vmem:[%s7183_s1 + $0x320] sm:$0xff]  }
 0x131   : > { %v6642_v20 = vadd.f32 %v5176_v6, %v2890_v9  ;;  %v5067_v21 = vadd.f32 %v5066_v15, %v5065_v7  ;;  %v5178_v22 = vpop.f32.mrf.mxu1  ;;  %3641 = vmatprep.mubr.bf16.mxu1 %v4482_v2  ;;  %5675 = vmatprep.subr.bf16.mxu0 %v6021_v5  ;;  %v6032_v2 = vld [vmem:[%s7183_s1 + $0x3a0] sm:$0xff]   ;;  %v6033_v5 = vld [vmem:[%s7183_s1 + $0x358] sm:$0xff]   ;;  %v4497_v15 = vcombine.low %v6645_v23, %v6648_v25  ;;  %v6037_v25 = vld [vmem:[%s7183_s1 + $0x350] sm:$0xff]  }
 0x132   : > { %v5179_v28 = vadd.f32 %v5178_v22, %v5177_v10  ;;  %v5068_v29 = vpop.f32.mrf.mxu0  ;;  %5787 = vmatprep.subr.bf16.mxu1 %v6023_v8  ;;  %v4495_v8 = vcombine.low %v6628_v11, %v6634_v17  ;;  %v6035_v9 = vld [vmem:[%s7183_s1 + $0x3d8] sm:$0xff]  }
 0x133   : > { %v2895_v31 = vadd.f32 %v5067_v21, %v6523_v50  ;;  %v5180_v33 = vpop.f32.mrf.mxu1  ;;  %5676 = vmatpush3.bf16.msra.mxu0 %v6022_v12  ;;  %v4514_v21 = vcombine.high %v6684_v58, %v6692_v1  ;;  %v6034_v11 = vld [vmem:[%s7183_s1 + $0x318] sm:$0xff]  }
 0x134   : > { %v5069_v36 = vpop.f32.mrf.mxu0  ;;  %5788 = vmatpush3.bf16.msra.mxu1 %v6024_v18  ;;  %5677 = vmatprep.subr.bf16.mxu0 %v6025_v19  ;;  %v4512_v18 = vcombine.high %v6678_v55, %v6681_v57  ;;  %v6036_v23 = vld [vmem:[%s7183_s1 + $0x398] sm:$0xff]  }
 0x135   : > { %v6665_v41 = vadd.f32 %v5179_v28, %v2895_v31  ;;  %v5070_v43 = vadd.f32 %v5069_v36, %v5068_v29  ;;  %v5181_v44 = vpop.f32.mrf.mxu1  ;;  %5789 = vmatprep.subr.bf16.mxu1 %v6027_v26  ;;  %v6731_v36 = vld [vmem:[%s6210_s12 + $0x260] sm:$0xff] }
 0x136   : > { %v5182_v47 = vadd.f32 %v5181_v44, %v5180_v33  ;;  %v5071_v48 = vpop.f32.mrf.mxu0  ;;  %3481 = vmatmul.mubr.bf16.gmra.mxu0 %v4479_v30  ;;  %v6039_v30 = vld [vmem:[%s7183_s1 + $0x3d0] sm:$0xff]  }
 0x137   : > { %v2898_v53 = vadd.f32 %v5070_v43, %v6523_v50  ;;  %v5183_v54 = vpop.f32.mrf.mxu1  ;;  %3642 = vmatmul.mubr.bf16.gmra.mxu1 %v4481_v34  ;;  %3488 = vmatprep.mubr.bf16.mxu0 %v4496_v35  ;;  %v6728_v34 = vld [vmem:[%s6210_s12 + $0x220] sm:$0xff] }
 0x138   : > { %v5072_v56 = vpop.f32.mrf.mxu0  ;;  %3649 = vmatprep.mubr.bf16.mxu1 %v4498_v38  ;;  %5678 = vmatpush3.bf16.msra.mxu0 %v6026_v39  ;;  %v6734_v38 = vld [vmem:[%s6210_s12 + $0x228] sm:$0xff]  ;;  %v6038_v39 = vld [vmem:[%s7183_s1 + $0x310] sm:$0xff]  }
 0x139   : > { %v6689_v60 = vadd.f32 %v5182_v47, %v2898_v53  ;;  %v5073_v61 = vadd.f32 %v5072_v56, %v5071_v48  ;;  %v5184_v0 = vpop.f32.mrf.mxu1  ;;  %5790 = vmatpush3.bf16.msra.mxu1 %v6028_v45  ;;  %5679 = vmatprep.subr.bf16.mxu0 %v6029_v46  ;;  %v6742_v46 = vld [vmem:[%s6210_s12 + $0x268] sm:$0xff]  ;;  %v6040_v47 = vld [vmem:[%s7183_s1 + $0x390] sm:$0xff]  }
 0x13a   : > { %v5185_v6 = vadd.f32 %v5184_v0, %v5183_v54  ;;  %v5074_v7 = vpop.f32.mrf.mxu0  ;;  %5791 = vmatprep.subr.bf16.mxu1 %v6031_v49  ;;  %v6041_v48 = vld [vmem:[%s7183_s1 + $0x348] sm:$0xff]   ;;  %v4511_v54 = vcombine.low %v6678_v55, %v6681_v57  ;;  %v4513_v0 = vcombine.low %v6684_v58, %v6692_v1  ;;  %v6045_v1 = vld [vmem:[%s7183_s1 + $0x340] sm:$0xff]  }
 0x13b   : > { %v2903_v10 = vadd.f32 %v5073_v61, %v6523_v50  ;;  %v5186_v12 = vpop.f32.mrf.mxu1  ;;  %v6043_v56 = vld [vmem:[%s7183_s1 + $0x3c8] sm:$0xff]  }
 0x13c   : > { %v5075_v19 = vpop.f32.mrf.mxu0  ;;  %5680 = vmatpush3.bf16.msra.mxu0 %v6030_v59  ;;  %v6042_v55 = vld [vmem:[%s7183_s1 + $0x308] sm:$0xff]  }
 0x13d   : > { %v6715_v17 = vadd.f32 %v5185_v6, %v2903_v10  ;;  %v5076_v22 = vadd.f32 %v5075_v19, %v5074_v7  ;;  %v5187_v26 = vpop.f32.mrf.mxu1  ;;  %5792 = vmatpush3.bf16.msra.mxu1 %v6032_v2  ;;  %5681 = vmatprep.subr.bf16.mxu0 %v6033_v5  ;;  %v4528_v2 = vcombine.high %v6728_v34, %v6731_v36  ;;  %v6044_v58 = vld [vmem:[%s7183_s1 + $0x388] sm:$0xff]  }
 0x13e   : > { %v5188_v28 = vadd.f32 %v5187_v26, %v5186_v12  ;;  %v5077_v29 = vpop.f32.mrf.mxu0  ;;  %3489 = vmatmul.mubr.bf16.gmra.mxu0 %v4495_v8  ;;  %5793 = vmatprep.subr.bf16.mxu1 %v6035_v9  ;;  %v4530_v6 = vcombine.high %v6734_v38, %v6742_v46  ;;  %v6047_v12 = vld [vmem:[%s7183_s1 + $0x3c0] sm:$0xff]  }
 0x13f   : > { %v2906_v31 = vadd.f32 %v5076_v22, %v6523_v50  ;;  %v5189_v33 = vpop.f32.mrf.mxu1  ;;  %3650 = vmatmul.mubr.bf16.gmra.mxu1 %v4497_v15  ;;  %3496 = vmatprep.mubr.bf16.mxu0 %v4512_v18  ;;  %v6046_v22 = vld [vmem:[%s7183_s1 + $0x300] sm:$0xff]  }
 0x140   : > { %v5078_v35 = vpop.f32.mrf.mxu0  ;;  %3657 = vmatprep.mubr.bf16.mxu1 %v4514_v21  ;;  %5682 = vmatpush3.bf16.msra.mxu0 %v6034_v11  ;;  %v313_v21 = vld [vmem:[%s6210_s12 + $0x2a0] sm:$0xff] }
 0x141   : > { %v6739_v43 = vadd.f32 %v5188_v28, %v2906_v31  ;;  %v5079_v44 = vadd.f32 %v5078_v35, %v5077_v29  ;;  %v5190_v45 = vpop.f32.mrf.mxu1  ;;  %5794 = vmatpush3.bf16.msra.mxu1 %v6036_v23  ;;  %5683 = vmatprep.subr.bf16.mxu0 %v6037_v25  ;;  %v321_v11 = vld [vmem:[%s6210_s12 + $0x2e0] sm:$0xff]  ;;  %v314_v28 = vld [vmem:[%s6210_s12 + $0x2a8] sm:$0xff]  ;;  %v4527_v35 = vcombine.low %v6728_v34, %v6731_v36 }
 0x142   : > { %v5191_v49 = vadd.f32 %v5190_v45, %v5189_v33  ;;  %v5080_v53 = vpop.f32.mrf.mxu0  ;;  %5795 = vmatprep.subr.bf16.mxu1 %v6039_v30  ;;  %v322_v29 = vld [vmem:[%s6210_s12 + $0x2e8] sm:$0xff]  ;;  %v6048_v30 = vld [vmem:[%s7183_s1 + $0x380] sm:$0xff]   ;;  %v4529_v45 = vcombine.low %v6734_v38, %v6742_v46 }
 0x143   : > { %v2911_v59 = vadd.f32 %v5079_v44, %v6523_v50  ;;  %v5192_v61 = vpop.f32.mrf.mxu1  ;;  %v329_v46 = vld [vmem:[%s6210_s12 + $0x320] sm:$0xff] }
 0x144   : > { %v5081_v5 = vpop.f32.mrf.mxu0  ;;  %5684 = vmatpush3.bf16.msra.mxu0 %v6038_v39 }
 0x145   : > { %v6765_v57 = vadd.f32 %v5191_v49, %v2911_v59  ;;  %v5082_v7 = vadd.f32 %v5081_v5, %v5080_v53  ;;  %v5193_v8 = vpop.f32.mrf.mxu1  ;;  %5796 = vmatpush3.bf16.msra.mxu1 %v6040_v47  ;;  %5685 = vmatprep.subr.bf16.mxu0 %v6041_v48  ;;  %v4544_v47 = vcombine.high %v313_v21, %v321_v11 }
 0x146   : > { %v5194_v9 = vadd.f32 %v5193_v8, %v5192_v61  ;;  %v5083_v10 = vpop.f32.mrf.mxu0  ;;  %3497 = vmatmul.mubr.bf16.gmra.mxu0 %v4511_v54  ;;  %5797 = vmatprep.subr.bf16.mxu1 %v6043_v56  ;;  %v4546_v49 = vcombine.high %v314_v28, %v322_v29 }
 0x147   : > { %v2914_v15 = vadd.f32 %v5082_v7, %v6523_v50  ;;  %v5195_v18 = vpop.f32.mrf.mxu1  ;;  %3658 = vmatmul.mubr.bf16.gmra.mxu1 %v4513_v0  ;;  %3504 = vmatprep.mubr.bf16.mxu0 %v4528_v2  ;;  %v337_v0 = vld [vmem:[%s6210_s12 + $0x360] sm:$0xff]  ;;  %v338_v7 = vld [vmem:[%s6210_s12 + $0x368] sm:$0xff] }
 0x148   : > { %v5084_v19 = vpop.f32.mrf.mxu0  ;;  %3665 = vmatprep.mubr.bf16.mxu1 %v4530_v6  ;;  %5686 = vmatpush3.bf16.msra.mxu0 %v6042_v55  ;;  %v330_v55 = vld [vmem:[%s6210_s12 + $0x328] sm:$0xff] }
 0x149   : > { %v6782_v26 = vadd.f32 %v5194_v9, %v2914_v15  ;;  %v5085_v23 = vadd.f32 %v5084_v19, %v5083_v10  ;;  %v5196_v25 = vpop.f32.mrf.mxu1  ;;  %5798 = vmatpush3.bf16.msra.mxu1 %v6044_v58  ;;  %5687 = vmatprep.subr.bf16.mxu0 %v6045_v1  ;;  %v4543_v1 = vcombine.low %v313_v21, %v321_v11 }
 0x14a   : > { %v5197_v31 = vadd.f32 %v5196_v25, %v5195_v18  ;;  %v5086_v33 = vpop.f32.mrf.mxu0  ;;  %5799 = vmatprep.subr.bf16.mxu1 %v6047_v12  ;;  %v4545_v12 = vcombine.low %v314_v28, %v322_v29  ;;  %v4560_v15 = vcombine.high %v329_v46, %v337_v0  ;;  %v4562_v19 = vcombine.high %v330_v55, %v338_v7  ;;  %v345_v29 = vld [vmem:[%s6210_s12 + $0x3a0] sm:$0xff] }
 0x14b   : > { %v2919_v39 = vadd.f32 %v5085_v23, %v6523_v50  ;;  %v5198_v44 = vpop.f32.mrf.mxu1 }
 0x14c   : > { %v5087_v48 = vpop.f32.mrf.mxu0  ;;  %5688 = vmatpush3.bf16.msra.mxu0 %v6046_v22 }
 0x14d   : > { %v6794_v53 = vadd.f32 %v5197_v31, %v2919_v39  ;;  %v5088_v54 = vadd.f32 %v5087_v48, %v5086_v33  ;;  %v5199_v56 = vpop.f32.mrf.mxu1  ;;  %5800 = vmatpush3.bf16.msra.mxu1 %v6048_v30  ;;  %v353_v33 = vld [vmem:[%s6210_s12 + $0x3e0] sm:$0xff] }
 0x14e   : > { %v5200_v34 = vadd.f32 %v5199_v56, %v5198_v44  ;;  %v5089_v36 = vpop.f32.mrf.mxu0  ;;  %3505 = vmatmul.mubr.bf16.gmra.mxu0 %v4527_v35 }
 0x14f   : > { %v2922_v59 = vadd.f32 %v5088_v54, %v6523_v50  ;;  %v5201_v61 = vpop.f32.mrf.mxu1  ;;  %3666 = vmatmul.mubr.bf16.gmra.mxu1 %v4529_v45  ;;  %3512 = vmatprep.mubr.bf16.mxu0 %v4544_v47  ;;  %v346_v45 = vld [vmem:[%s6210_s12 + $0x3a8] sm:$0xff]  ;;  %v4559_v54 = vcombine.low %v329_v46, %v337_v0 }
 0x150   : > { %v5090_v38 = vpop.f32.mrf.mxu0  ;;  %3673 = vmatprep.mubr.bf16.mxu1 %v4546_v49  ;;  %v354_v47 = vld [vmem:[%s6210_s12 + $0x3e8] sm:$0xff] }
 0x151   : > { %v6799_v2 = vadd.f32 %v5200_v34, %v2922_v59  ;;  %v5091_v5 = vadd.f32 %v5090_v38, %v5089_v36  ;;  %v5202_v6 = vpop.f32.mrf.mxu1  ;;  %v4561_v36 = vcombine.low %v330_v55, %v338_v7  ;;  %v4576_v59 = vcombine.high %v345_v29, %v353_v33  ;;  %v361_v7 = vld [vmem:[%s6210_s12 + $0x420] sm:$0xff] }
 0x152   : > { %v5203_v8 = vadd.f32 %v5202_v6, %v5201_v61  ;;  %v5092_v58 = vpop.f32.mrf.mxu0  ;;  %v4578_v38 = vcombine.high %v346_v45, %v354_v47 }
 0x153   : > { %v2927_v9 = vadd.f32 %v5091_v5, %v6523_v50  ;;  %v5204_v10 = vpop.f32.mrf.mxu1 }
 0x154   : > { %v5093_v18 = vpop.f32.mrf.mxu0 }
 0x155   : > { %v6804_v22 = vadd.f32 %v5203_v8, %v2927_v9  ;;  %v5094_v23 = vadd.f32 %v5093_v18, %v5092_v58  ;;  %v5205_v25 = vpop.f32.mrf.mxu1  ;;  %v369_v9 = vld [vmem:[%s6210_s12 + $0x460] sm:$0xff]  ;;  %v362_v18 = vld [vmem:[%s6210_s12 + $0x428] sm:$0xff] }
 0x156   : > { %v5206_v30 = vadd.f32 %v5205_v25, %v5204_v10  ;;  %v5095_v31 = vpop.f32.mrf.mxu0  ;;  %3513 = vmatmul.mubr.bf16.gmra.mxu0 %v4543_v1 }
 0x157   : > { %v2930_v21 = vadd.f32 %v5094_v23, %v6523_v50  ;;  %v5207_v11 = vpop.f32.mrf.mxu1  ;;  %3674 = vmatmul.mubr.bf16.gmra.mxu1 %v4545_v12  ;;  %3520 = vmatprep.mubr.bf16.mxu0 %v4560_v15 }
 0x158   : > { %v5096_v28 = vpop.f32.mrf.mxu0  ;;  %3681 = vmatprep.mubr.bf16.mxu1 %v4562_v19  ;;  %v370_v19 = vld [vmem:[%s6210_s12 + $0x468] sm:$0xff] }
 0x159   : > { %v6809_v35 = vadd.f32 %v5206_v30, %v2930_v21  ;;  %v5097_v39 = vadd.f32 %v5096_v28, %v5095_v31  ;;  %v5208_v44 = vpop.f32.mrf.mxu1  ;;  %v4575_v30 = vcombine.low %v345_v29, %v353_v33  ;;  %v4592_v28 = vcombine.high %v361_v7, %v369_v9 }
 0x15a   : > { %v5209_v48 = vadd.f32 %v5208_v44, %v5207_v11  ;;  %v5098_v49 = vpop.f32.mrf.mxu0  ;;  %v4577_v11 = vcombine.low %v346_v45, %v354_v47  ;;  %v4594_v44 = vcombine.high %v362_v18, %v370_v19  ;;  %v377_v47 = vld [vmem:[%s6210_s12 + $0x4a0] sm:$0xff] }
 0x15b   : > { %v2935_v56 = vadd.f32 %v5097_v39, %v6523_v50  ;;  %v5210_v34 = vpop.f32.mrf.mxu1 }
 0x15c   : > { %v5099_v61 = vpop.f32.mrf.mxu0 }
 0x15d   : > { %v6814_v5 = vadd.f32 %v5209_v48, %v2935_v56  ;;  %v5100_v6 = vadd.f32 %v5099_v61, %v5098_v49  ;;  %v5211_v8 = vpop.f32.mrf.mxu1 }
 0x15e   : > { %v5212_v58 = vadd.f32 %v5211_v8, %v5210_v34  ;;  %v5101_v1 = vpop.f32.mrf.mxu0  ;;  %3521 = vmatmul.mubr.bf16.gmra.mxu0 %v4559_v54  ;;  %v386_v8 = vld [vmem:[%s6210_s12 + $0x4e8] sm:$0xff] }
 0x15f   : > { %v2938_v46 = vadd.f32 %v5100_v6, %v6523_v50  ;;  %v5213_v0 = vpop.f32.mrf.mxu1  ;;  %3682 = vmatmul.mubr.bf16.gmra.mxu1 %v4561_v36  ;;  %3528 = vmatprep.mubr.bf16.mxu0 %v4576_v59  ;;  %v385_v36 = vld [vmem:[%s6210_s12 + $0x4e0] sm:$0xff]  ;;  %v378_v6 = vld [vmem:[%s6210_s12 + $0x4a8] sm:$0xff] }
 0x160   : > { %v5102_v55 = vpop.f32.mrf.mxu0  ;;  %3689 = vmatprep.mubr.bf16.mxu1 %v4578_v38 }
 0x161   : > { %v6819_v10 = vadd.f32 %v5212_v58, %v2938_v46  ;;  %v5103_v12 = vadd.f32 %v5102_v55, %v5101_v1  ;;  %v5214_v15 = vpop.f32.mrf.mxu1  ;;  %v4591_v46 = vcombine.low %v361_v7, %v369_v9 }
 0x162   : > { %v5215_v23 = vadd.f32 %v5214_v15, %v5213_v0  ;;  %v5104_v25 = vpop.f32.mrf.mxu0  ;;  %v4608_v15 = vcombine.high %v377_v47, %v385_v36 }
 0x163   : > { %v2943_v31 = vadd.f32 %v5103_v12, %v6523_v50  ;;  %v5216_v21 = vpop.f32.mrf.mxu1  ;;  %v4593_v12 = vcombine.low %v362_v18, %v370_v19  ;;  %v393_v19 = vld [vmem:[%s6210_s12 + $0x520] sm:$0xff] }
 0x164   : > { %v5105_v39 = vpop.f32.mrf.mxu0 }
 0x165   : > { %v6824_v48 = vadd.f32 %v5215_v23, %v2943_v31  ;;  %v5106_v49 = vadd.f32 %v5105_v39, %v5104_v25  ;;  %v5217_v54 = vpop.f32.mrf.mxu1  ;;  %v4610_v25 = vcombine.high %v378_v6, %v386_v8  ;;  %v401_v39 = vld [vmem:[%s6210_s12 + $0x560] sm:$0xff] }
 0x166   : > { %v5218_v56 = vadd.f32 %v5217_v54, %v5216_v21  ;;  %v5107_v34 = vpop.f32.mrf.mxu0  ;;  %3529 = vmatmul.mubr.bf16.gmra.mxu0 %v4575_v30 }
 0x167   : > { %v2946_v29 = vadd.f32 %v5106_v49, %v6523_v50  ;;  %v5219_v33 = vpop.f32.mrf.mxu1  ;;  %3690 = vmatmul.mubr.bf16.gmra.mxu1 %v4577_v11  ;;  %3536 = vmatprep.mubr.bf16.mxu0 %v4592_v28 }
 0x168   : > { %v5108_v45 = vpop.f32.mrf.mxu0  ;;  %3697 = vmatprep.mubr.bf16.mxu1 %v4594_v44 }
 0x169   : > { %v6829_v59 = vadd.f32 %v5218_v56, %v2946_v29  ;;  %v5109_v61 = vadd.f32 %v5108_v45, %v5107_v34  ;;  %v5220_v38 = vpop.f32.mrf.mxu1  ;;  %v394_v56 = vld [vmem:[%s6210_s12 + $0x528] sm:$0xff]  ;;  %v4607_v45 = vcombine.low %v377_v47, %v385_v36 }
 0x16a   : > { %v5221_v58 = vadd.f32 %v5220_v38, %v5219_v33  ;;  %v5110_v1 = vpop.f32.mrf.mxu0  ;;  %v402_v34 = vld [vmem:[%s6210_s12 + $0x568] sm:$0xff] }
 0x16b   : > { %v2951_v0 = vadd.f32 %v5109_v61, %v6523_v50  ;;  %v5222_v55 = vpop.f32.mrf.mxu1 }
 0x16c   : > { %v5111_v23 = vpop.f32.mrf.mxu0 }
 0x16d   : > { %v6834_v30 = vadd.f32 %v5221_v58, %v2951_v0  ;;  %v5112_v31 = vadd.f32 %v5111_v23, %v5110_v1  ;;  %v5223_v21 = vpop.f32.mrf.mxu1  ;;  %v4624_v58 = vcombine.high %v393_v19, %v401_v39 }
 0x16e   : > { %v5224_v11 = vadd.f32 %v5223_v21, %v5222_v55  ;;  %v5241_v28 = vpop.f32.mrf.mxu0  ;;  %3537 = vmatmul.mubr.bf16.gmra.mxu0 %v4591_v46  ;;  %v4626_v46 = vcombine.high %v394_v56, %v402_v34 }
 0x16f   : > { %v2954_v7 = vadd.f32 %v5112_v31, %v6523_v50  ;;  %v5353_v9 = vpop.f32.mrf.mxu1  ;;  %3698 = vmatmul.mubr.bf16.gmra.mxu1 %v4593_v12  ;;  %3544 = vmatprep.mubr.bf16.mxu0 %v4608_v15  ;;  %v4609_v50 = vcombine.low %v378_v6, %v386_v8  ;;  %v409_v6 = vld [vmem:[%s6210_s12 + $0x5a0] sm:$0xff] }
 0x170   : > { %v5242_v18 = vpop.f32.mrf.mxu0  ;;  %3705 = vmatprep.mubr.bf16.mxu1 %v4610_v25  ;;  %v417_v8 = vld [vmem:[%s6210_s12 + $0x5e0] sm:$0xff] }
 0x171   : > { %v6839_v44 = vadd.f32 %v5224_v11, %v2954_v7  ;;  %v5243_v49 = vadd.f32 %v5242_v18, %v5241_v28  ;;  %v5354_v54 = vpop.f32.mrf.mxu1  ;;  %v410_v11 = vld [vmem:[%s6210_s12 + $0x5a8] sm:$0xff]  ;;  %v4623_v18 = vcombine.low %v393_v19, %v401_v39 }
 0x172   : > { %v5355_v29 = vadd.f32 %v5354_v54, %v5353_v9  ;;  %v5244_v33 = vpop.f32.mrf.mxu0  ;;  %v418_v28 = vld [vmem:[%s6210_s12 + $0x5e8] sm:$0xff] }
 0x173   : > { %v3153_v61 = vadd.f32 %v5243_v49, %v6530_v3  ;;  %v5356_v38 = vpop.f32.mrf.mxu1 }
 0x174   : > { %v5245_v1 = vpop.f32.mrf.mxu0 }
 0x175   : > { %v6844_v0 = vadd.f32 %v5355_v29, %v3153_v61  ;;  %v5246_v55 = vadd.f32 %v5245_v1, %v5244_v33  ;;  %v5357_v12 = vpop.f32.mrf.mxu1  ;;  %v4640_v29 = vcombine.high %v409_v6, %v417_v8 }
 0x176   : > { %v5358_v15 = vadd.f32 %v5357_v12, %v5356_v38  ;;  %v5247_v23 = vpop.f32.mrf.mxu0  ;;  %3545 = vmatmul.mubr.bf16.gmra.mxu0 %v4607_v45  ;;  %v4642_v45 = vcombine.high %v410_v11, %v418_v28 }
 0x177   : > { %v3156_v47 = vadd.f32 %v5246_v55, %v6535_v13  ;;  %v5359_v36 = vpop.f32.mrf.mxu1  ;;  %3706 = vmatmul.mubr.bf16.gmra.mxu1 %v4609_v50  ;;  %3552 = vmatprep.mubr.bf16.mxu0 %v4624_v58  ;;  %v4625_v13 = vcombine.low %v394_v56, %v402_v34  ;;  %v425_v56 = vld [vmem:[%s6210_s12 + $0x620] sm:$0xff] }
 0x178   : > { %v5248_v3 = vpop.f32.mrf.mxu0  ;;  %3713 = vmatprep.mubr.bf16.mxu1 %v4626_v46  ;;  %v433_v34 = vld [vmem:[%s6210_s12 + $0x660] sm:$0xff] }
 0x179   : > { %v6849_v25 = vadd.f32 %v5358_v15, %v3156_v47  ;;  %v5249_v31 = vadd.f32 %v5248_v3, %v5247_v23  ;;  %v5360_v21 = vpop.f32.mrf.mxu1  ;;  %v426_v15 = vld [vmem:[%s6210_s12 + $0x628] sm:$0xff]  ;;  %v4639_v3 = vcombine.low %v409_v6, %v417_v8 }
 0x17a   : > { %v5361_v7 = vadd.f32 %v5360_v21, %v5359_v36  ;;  %v5250_v9 = vpop.f32.mrf.mxu0  ;;  %v434_v23 = vld [vmem:[%s6210_s12 + $0x668] sm:$0xff] }
 0x17b   : > { %v3161_v49 = vadd.f32 %v5249_v31, %v6540_v27  ;;  %v5362_v54 = vpop.f32.mrf.mxu1 }
 0x17c   : > { %v5251_v33 = vpop.f32.mrf.mxu0 }
 0x17d   : > { %v6854_v61 = vadd.f32 %v5361_v7, %v3161_v49  ;;  %v5252_v38 = vadd.f32 %v5251_v33, %v5250_v9  ;;  %v5363_v50 = vpop.f32.mrf.mxu1  ;;  %v4656_v7 = vcombine.high %v425_v56, %v433_v34 }
 0x17e   : > { %v5364_v58 = vadd.f32 %v5363_v50, %v5362_v54  ;;  %v5253_v1 = vpop.f32.mrf.mxu0  ;;  %3553 = vmatmul.mubr.bf16.gmra.mxu0 %v4623_v18  ;;  %v4658_v18 = vcombine.high %v426_v15, %v434_v23 }
 0x17f   : > { %v3164_v19 = vadd.f32 %v5252_v38, %v6545_v37  ;;  %v5365_v39 = vpop.f32.mrf.mxu1  ;;  %3714 = vmatmul.mubr.bf16.gmra.mxu1 %v4625_v13  ;;  %3560 = vmatprep.mubr.bf16.mxu0 %v4640_v29  ;;  %v4641_v37 = vcombine.low %v410_v11, %v418_v28  ;;  %v441_v11 = vld [vmem:[%s6210_s12 + $0x6a0] sm:$0xff] }
 0x180   : > { %v5254_v27 = vpop.f32.mrf.mxu0  ;;  %3721 = vmatprep.mubr.bf16.mxu1 %v4642_v45  ;;  %v449_v28 = vld [vmem:[%s6210_s12 + $0x6e0] sm:$0xff] }
 0x181   : > { %v6859_v46 = vadd.f32 %v5364_v58, %v3164_v19  ;;  %v5255_v55 = vadd.f32 %v5254_v27, %v5253_v1  ;;  %v5366_v12 = vpop.f32.mrf.mxu1  ;;  %v442_v58 = vld [vmem:[%s6210_s12 + $0x6a8] sm:$0xff]  ;;  %v4655_v27 = vcombine.low %v425_v56, %v433_v34 }
 0x182   : > { %v5367_v47 = vadd.f32 %v5366_v12, %v5365_v39  ;;  %v5256_v36 = vpop.f32.mrf.mxu0  ;;  %v450_v1 = vld [vmem:[%s6210_s12 + $0x6e8] sm:$0xff] }
 0x183   : > { %v3169_v31 = vadd.f32 %v5255_v55, %v6550_v52  ;;  %v5368_v21 = vpop.f32.mrf.mxu1 }
 0x184   : > { %v5257_v9 = vpop.f32.mrf.mxu0 }
 0x185   : > { %v6864_v49 = vadd.f32 %v5367_v47, %v3169_v31  ;;  %v5258_v54 = vadd.f32 %v5257_v9, %v5256_v36  ;;  %v5369_v13 = vpop.f32.mrf.mxu1  ;;  %v4672_v47 = vcombine.high %v441_v11, %v449_v28 }
 0x186   : > { %v5370_v29 = vadd.f32 %v5369_v13, %v5368_v21  ;;  %v5259_v33 = vpop.f32.mrf.mxu0  ;;  %3561 = vmatmul.mubr.bf16.gmra.mxu0 %v4639_v3  ;;  %v4674_v3 = vcombine.high %v442_v58, %v450_v1 }
 0x187   : > { %v3172_v6 = vadd.f32 %v5258_v54, %v6555_v62  ;;  %v5371_v8 = vpop.f32.mrf.mxu1  ;;  %3722 = vmatmul.mubr.bf16.gmra.mxu1 %v4641_v37  ;;  %3568 = vmatprep.mubr.bf16.mxu0 %v4656_v7  ;;  %v4657_v62 = vcombine.low %v426_v15, %v434_v23  ;;  %v457_v15 = vld [vmem:[%s6210_s12 + $0x720] sm:$0xff] }
 0x188   : > { %v5260_v52 = vpop.f32.mrf.mxu0  ;;  %3729 = vmatprep.mubr.bf16.mxu1 %v4658_v18  ;;  %v465_v23 = vld [vmem:[%s6210_s12 + $0x760] sm:$0xff] }
 0x189   : > { %v6869_v45 = vadd.f32 %v5370_v29, %v3172_v6  ;;  %v5261_v38 = vadd.f32 %v5260_v52, %v5259_v33  ;;  %v5372_v50 = vpop.f32.mrf.mxu1  ;;  %v458_v29 = vld [vmem:[%s6210_s12 + $0x728] sm:$0xff]  ;;  %v4671_v52 = vcombine.low %v441_v11, %v449_v28 }
 0x18a   : > { %v5373_v19 = vadd.f32 %v5372_v50, %v5371_v8  ;;  %v5262_v39 = vpop.f32.mrf.mxu0  ;;  %v466_v33 = vld [vmem:[%s6210_s12 + $0x768] sm:$0xff] }
 0x18b   : > { %v3177_v55 = vadd.f32 %v5261_v38, %v6560_v14  ;;  %v5374_v12 = vpop.f32.mrf.mxu1 }
 0x18c   : > { %v5263_v36 = vpop.f32.mrf.mxu0 }
 0x18d   : > { %v6874_v31 = vadd.f32 %v5373_v19, %v3177_v55  ;;  %v5264_v21 = vadd.f32 %v5263_v36, %v5262_v39  ;;  %v5375_v37 = vpop.f32.mrf.mxu1  ;;  %v4688_v19 = vcombine.high %v457_v15, %v465_v23 }
 0x18e   : > { %v5376_v7 = vadd.f32 %v5375_v37, %v5374_v12  ;;  %v5265_v9 = vpop.f32.mrf.mxu0  ;;  %3569 = vmatmul.mubr.bf16.gmra.mxu0 %v4655_v27  ;;  %v4690_v27 = vcombine.high %v458_v29, %v466_v33 }
 0x18f   : > { %v3180_v56 = vadd.f32 %v5264_v21, %v6565_v24  ;;  %v5377_v34 = vpop.f32.mrf.mxu1  ;;  %3730 = vmatmul.mubr.bf16.gmra.mxu1 %v4657_v62  ;;  %3576 = vmatprep.mubr.bf16.mxu0 %v4672_v47  ;;  %v4673_v24 = vcombine.low %v442_v58, %v450_v1  ;;  %v473_v58 = vld [vmem:[%s6210_s12 + $0x7a0] sm:$0xff] }
 0x190   : > { %v5266_v14 = vpop.f32.mrf.mxu0  ;;  %3737 = vmatprep.mubr.bf16.mxu1 %v4674_v3  ;;  %v481_v1 = vld [vmem:[%s6210_s12 + $0x7e0] sm:$0xff] }
 0x191   : > { %v6879_v18 = vadd.f32 %v5376_v7, %v3180_v56  ;;  %v5267_v54 = vadd.f32 %v5266_v14, %v5265_v9  ;;  %v5378_v13 = vpop.f32.mrf.mxu1  ;;  %v474_v7 = vld [vmem:[%s6210_s12 + $0x7a8] sm:$0xff]  ;;  %v4687_v14 = vcombine.low %v457_v15, %v465_v23 }
 0x192   : > { %v5379_v6 = vadd.f32 %v5378_v13, %v5377_v34  ;;  %v5268_v8 = vpop.f32.mrf.mxu0  ;;  %v482_v9 = vld [vmem:[%s6210_s12 + $0x7e8] sm:$0xff] }
 0x193   : > { %v3185_v38 = vadd.f32 %v5267_v54, %v6570_v40  ;;  %v5380_v50 = vpop.f32.mrf.mxu1 }
 0x194   : > { %v5269_v39 = vpop.f32.mrf.mxu0 }
 0x195   : > { %v6884_v55 = vadd.f32 %v5379_v6, %v3185_v38  ;;  %v5270_v12 = vadd.f32 %v5269_v39, %v5268_v8  ;;  %v5381_v62 = vpop.f32.mrf.mxu1  ;;  %v4704_v6 = vcombine.high %v473_v58, %v481_v1 }
 0x196   : > { %v5382_v47 = vadd.f32 %v5381_v62, %v5380_v50  ;;  %v5271_v36 = vpop.f32.mrf.mxu0  ;;  %3577 = vmatmul.mubr.bf16.gmra.mxu0 %v4671_v52  ;;  %v4706_v52 = vcombine.high %v474_v7, %v482_v9 }
 0x197   : > { %v3188_v11 = vadd.f32 %v5270_v12, %v6575_v51  ;;  %v5383_v28 = vpop.f32.mrf.mxu1  ;;  %3738 = vmatmul.mubr.bf16.gmra.mxu1 %v4673_v24  ;;  %3584 = vmatprep.mubr.bf16.mxu0 %v4688_v19  ;;  %v4689_v51 = vcombine.low %v458_v29, %v466_v33  ;;  %v235_v29 = vld [vmem:[%s6210_s12 + $0x30] sm:$0xff] }
 0x198   : > { %v5272_v40 = vpop.f32.mrf.mxu0  ;;  %3745 = vmatprep.mubr.bf16.mxu1 %v4690_v27  ;;  %v243_v33 = vld [vmem:[%s6210_s12 + $0x70] sm:$0xff] }
 0x199   : > { %v6889_v3 = vadd.f32 %v5382_v47, %v3188_v11  ;;  %v5273_v21 = vadd.f32 %v5272_v40, %v5271_v36  ;;  %v5384_v37 = vpop.f32.mrf.mxu1  ;;  %v236_v47 = vld [vmem:[%s6210_s12 + $0x38] sm:$0xff]  ;;  %v4703_v40 = vcombine.low %v473_v58, %v481_v1 }
 0x19a   : > { %v5385_v56 = vadd.f32 %v5384_v37, %v5383_v28  ;;  %v5274_v34 = vpop.f32.mrf.mxu0  ;;  %v244_v36 = vld [vmem:[%s6210_s12 + $0x78] sm:$0xff] }
 0x19b   : > { %v3193_v54 = vadd.f32 %v5273_v21, %v6580_v4  ;;  %v5386_v13 = vpop.f32.mrf.mxu1 }
 0x19c   : > { %v5275_v8 = vpop.f32.mrf.mxu0 }
 0x19d   : > { %v6894_v38 = vadd.f32 %v5385_v56, %v3193_v54  ;;  %v5276_v50 = vadd.f32 %v5275_v8, %v5274_v34  ;;  %v5387_v24 = vpop.f32.mrf.mxu1  ;;  %v4468_v56 = vcombine.high %v235_v29, %v243_v33 }
 0x19e   : > { %v5388_v19 = vadd.f32 %v5387_v24, %v5386_v13  ;;  %v5277_v39 = vpop.f32.mrf.mxu0  ;;  %3585 = vmatmul.mubr.bf16.gmra.mxu0 %v4687_v14  ;;  %v4470_v14 = vcombine.high %v236_v47, %v244_v36 }
 0x19f   : > { %v3196_v15 = vadd.f32 %v5276_v50, %v6585_v16  ;;  %v5389_v23 = vpop.f32.mrf.mxu1  ;;  %3746 = vmatmul.mubr.bf16.gmra.mxu1 %v4689_v51  ;;  %3592 = vmatprep.mubr.bf16.mxu0 %v4704_v6  ;;  %v4705_v16 = vcombine.low %v474_v7, %v482_v9  ;;  %v251_v7 = vld [vmem:[%s6210_s12 + $0xb0] sm:$0xff] }
 0x1a0   : > { %v5278_v4 = vpop.f32.mrf.mxu0  ;;  %3753 = vmatprep.mubr.bf16.mxu1 %v4706_v52  ;;  %v259_v9 = vld [vmem:[%s6210_s12 + $0xf0] sm:$0xff] }
 0x1a1   : > { %v6899_v27 = vadd.f32 %v5388_v19, %v3196_v15  ;;  %v5279_v12 = vadd.f32 %v5278_v4, %v5277_v39  ;;  %v5390_v62 = vpop.f32.mrf.mxu1  ;;  %v252_v19 = vld [vmem:[%s6210_s12 + $0xb8] sm:$0xff]  ;;  %v4467_v4 = vcombine.low %v235_v29, %v243_v33 }
 0x1a2   : > { %v5391_v11 = vadd.f32 %v5390_v62, %v5389_v23  ;;  %v5280_v28 = vpop.f32.mrf.mxu0  ;;  %v260_v39 = vld [vmem:[%s6210_s12 + $0xf8] sm:$0xff] }
 0x1a3   : > { %v3201_v21 = vadd.f32 %v5279_v12, %v6590_v32  ;;  %v5392_v37 = vpop.f32.mrf.mxu1 }
 0x1a4   : > { %v5281_v34 = vpop.f32.mrf.mxu0 }
 0x1a5   : > { %v6904_v54 = vadd.f32 %v5391_v11, %v3201_v21  ;;  %v5282_v13 = vadd.f32 %v5281_v34, %v5280_v28  ;;  %v5393_v51 = vpop.f32.mrf.mxu1  ;;  %v4484_v11 = vcombine.high %v251_v7, %v259_v9 }
 0x1a6   : > { %v5394_v6 = vadd.f32 %v5393_v51, %v5392_v37  ;;  %v5283_v8 = vpop.f32.mrf.mxu0  ;;  %3593 = vmatmul.mubr.bf16.gmra.mxu0 %v4703_v40  ;;  %v4486_v40 = vcombine.high %v252_v19, %v260_v39 }
 0x1a7   : > { %v3204_v58 = vadd.f32 %v5282_v13, %v6593_v42  ;;  %v5395_v1 = vpop.f32.mrf.mxu1  ;;  %3754 = vmatmul.mubr.bf16.gmra.mxu1 %v4705_v16  ;;  %3794 = vmatprep.mubr.bf16.mxu0 %v4468_v56  ;;  %v4469_v42 = vcombine.low %v236_v47, %v244_v36  ;;  %v267_v47 = vld [vmem:[%s6210_s12 + $0x130] sm:$0xff] }
 0x1a8   : > { %v5284_v32 = vpop.f32.mrf.mxu0  ;;  %3955 = vmatprep.mubr.bf16.mxu1 %v4470_v14  ;;  %v275_v36 = vld [vmem:[%s6210_s12 + $0x170] sm:$0xff] }
 0x1a9   : > { %v6909_v52 = vadd.f32 %v5394_v6, %v3204_v58  ;;  %v5285_v50 = vadd.f32 %v5284_v32, %v5283_v8  ;;  %v5396_v24 = vpop.f32.mrf.mxu1  ;;  %v268_v6 = vld [vmem:[%s6210_s12 + $0x138] sm:$0xff]  ;;  %v4483_v32 = vcombine.low %v251_v7, %v259_v9 }
 0x1aa   : > { %v5397_v15 = vadd.f32 %v5396_v24, %v5395_v1  ;;  %v5286_v23 = vpop.f32.mrf.mxu0  ;;  %v276_v8 = vld [vmem:[%s6210_s12 + $0x178] sm:$0xff] }
 0x1ab   : > { %v3209_v12 = vadd.f32 %v5285_v50, %v6616_v63  ;;  %v5398_v62 = vpop.f32.mrf.mxu1 }
 0x1ac   : > { %v5287_v28 = vpop.f32.mrf.mxu0 }
 0x1ad   : > { %v6914_v21 = vadd.f32 %v5397_v15, %v3209_v12  ;;  %v5288_v37 = vadd.f32 %v5287_v28, %v5286_v23  ;;  %v5399_v16 = vpop.f32.mrf.mxu1  ;;  %v4500_v15 = vcombine.high %v267_v47, %v275_v36 }
 0x1ae   : > { %v5400_v56 = vadd.f32 %v5399_v16, %v5398_v62  ;;  %v5289_v34 = vpop.f32.mrf.mxu0  ;;  %3795 = vmatmul.mubr.bf16.vlgmr.msra.gmra.mxu0 %v4467_v4  ;;  %v4502_v4 = vcombine.high %v268_v6, %v276_v8 }
 0x1af   : > { %v3212_v29 = vadd.f32 %v5288_v37, %v6642_v20  ;;  %v5401_v33 = vpop.f32.mrf.mxu1  ;;  %3956 = vmatmul.mubr.bf16.vlgmr.msra.gmra.mxu1 %v4469_v42  ;;  %3802 = vmatprep.mubr.bf16.mxu0 %v4484_v11  ;;  %v4485_v20 = vcombine.low %v252_v19, %v260_v39  ;;  %v283_v19 = vld [vmem:[%s6210_s12 + $0x1b0] sm:$0xff] }
 0x1b0   : > { %v5290_v63 = vpop.f32.mrf.mxu0  ;;  %3963 = vmatprep.mubr.bf16.mxu1 %v4486_v40  ;;  %v291_v39 = vld [vmem:[%s6210_s12 + $0x1f0] sm:$0xff] }
 0x1b1   : > { %v6919_v14 = vadd.f32 %v5400_v56, %v3212_v29  ;;  %v5291_v13 = vadd.f32 %v5290_v63, %v5289_v34  ;;  %v5402_v51 = vpop.f32.mrf.mxu1  ;;  %v284_v56 = vld [vmem:[%s6210_s12 + $0x1b8] sm:$0xff]  ;;  %v4499_v63 = vcombine.low %v267_v47, %v275_v36 }
 0x1b2   : > { %v5403_v58 = vadd.f32 %v5402_v51, %v5401_v33  ;;  %v5292_v1 = vpop.f32.mrf.mxu0  ;;  %v292_v34 = vld [vmem:[%s6210_s12 + $0x1f8] sm:$0xff] }
 0x1b3   : > { %v3217_v50 = vadd.f32 %v5291_v13, %v6665_v41  ;;  %v5404_v24 = vpop.f32.mrf.mxu1 }
 0x1b4   : > { %v5293_v23 = vpop.f32.mrf.mxu0 }
 0x1b5   : > { %v6924_v12 = vadd.f32 %v5403_v58, %v3217_v50  ;;  %v5294_v62 = vadd.f32 %v5293_v23, %v5292_v1  ;;  %v5405_v42 = vpop.f32.mrf.mxu1  ;;  %v4516_v58 = vcombine.high %v283_v19, %v291_v39 }
 0x1b6   : > { %v5406_v11 = vadd.f32 %v5405_v42, %v5404_v24  ;;  %v5295_v28 = vpop.f32.mrf.mxu0  ;;  %3803 = vmatmul.mubr.bf16.gmra.mxu0 %v4483_v32  ;;  %v4518_v32 = vcombine.high %v284_v56, %v292_v34 }
 0x1b7   : > { %v3220_v7 = vadd.f32 %v5294_v62, %v6689_v60  ;;  %v5407_v9 = vpop.f32.mrf.mxu1  ;;  %3964 = vmatmul.mubr.bf16.gmra.mxu1 %v4485_v20  ;;  %3810 = vmatprep.mubr.bf16.mxu0 %v4500_v15  ;;  %v4501_v60 = vcombine.low %v268_v6, %v276_v8  ;;  %v299_v6 = vld [vmem:[%s6210_s12 + $0x230] sm:$0xff] }
 0x1b8   : > { %v5296_v41 = vpop.f32.mrf.mxu0  ;;  %3971 = vmatprep.mubr.bf16.mxu1 %v4502_v4  ;;  %v307_v8 = vld [vmem:[%s6210_s12 + $0x270] sm:$0xff] }
 0x1b9   : > { %v6929_v40 = vadd.f32 %v5406_v11, %v3220_v7  ;;  %v5297_v37 = vadd.f32 %v5296_v41, %v5295_v28  ;;  %v5408_v16 = vpop.f32.mrf.mxu1  ;;  %v300_v11 = vld [vmem:[%s6210_s12 + $0x238] sm:$0xff]  ;;  %v4515_v41 = vcombine.low %v283_v19, %v291_v39 }
 0x1ba   : > { %v5409_v29 = vadd.f32 %v5408_v16, %v5407_v9  ;;  %v5298_v33 = vpop.f32.mrf.mxu0  ;;  %v308_v28 = vld [vmem:[%s6210_s12 + $0x278] sm:$0xff] }
 0x1bb   : > { %v3225_v13 = vadd.f32 %v5297_v37, %v6715_v17  ;;  %v5410_v51 = vpop.f32.mrf.mxu1 }
 0x1bc   : > { %v5299_v1 = vpop.f32.mrf.mxu0 }
 0x1bd   : > { %v6934_v50 = vadd.f32 %v5409_v29, %v3225_v13  ;;  %v5300_v24 = vadd.f32 %v5299_v1, %v5298_v33  ;;  %v5411_v20 = vpop.f32.mrf.mxu1  ;;  %v4532_v29 = vcombine.high %v299_v6, %v307_v8 }
 0x1be   : > { %v5412_v15 = vadd.f32 %v5411_v20, %v5410_v51  ;;  %v5301_v23 = vpop.f32.mrf.mxu0  ;;  %3811 = vmatmul.mubr.bf16.gmra.mxu0 %v4499_v63  ;;  %v4534_v63 = vcombine.high %v300_v11, %v308_v28 }
 0x1bf   : > { %v3228_v47 = vadd.f32 %v5300_v24, %v6739_v43  ;;  %v5413_v36 = vpop.f32.mrf.mxu1  ;;  %3972 = vmatmul.mubr.bf16.gmra.mxu1 %v4501_v60  ;;  %3818 = vmatprep.mubr.bf16.mxu0 %v4516_v58  ;;  %v4517_v43 = vcombine.low %v284_v56, %v292_v34  ;;  %v315_v56 = vld [vmem:[%s6210_s12 + $0x2b0] sm:$0xff] }
 0x1c0   : > { %v5302_v17 = vpop.f32.mrf.mxu0  ;;  %3979 = vmatprep.mubr.bf16.mxu1 %v4518_v32  ;;  %v323_v34 = vld [vmem:[%s6210_s12 + $0x2f0] sm:$0xff] }
 0x1c1   : > { %v6939_v4 = vadd.f32 %v5412_v15, %v3228_v47  ;;  %v5303_v62 = vadd.f32 %v5302_v17, %v5301_v23  ;;  %v5414_v42 = vpop.f32.mrf.mxu1  ;;  %v316_v15 = vld [vmem:[%s6210_s12 + $0x2b8] sm:$0xff]  ;;  %v4531_v17 = vcombine.low %v299_v6, %v307_v8 }
 0x1c2   : > { %v5415_v7 = vadd.f32 %v5414_v42, %v5413_v36  ;;  %v5304_v9 = vpop.f32.mrf.mxu0  ;;  %v324_v23 = vld [vmem:[%s6210_s12 + $0x2f8] sm:$0xff] }
 0x1c3   : > { %v3233_v37 = vadd.f32 %v5303_v62, %v6765_v57  ;;  %v5416_v16 = vpop.f32.mrf.mxu1 }
 0x1c4   : > { %v5305_v33 = vpop.f32.mrf.mxu0 }
 0x1c5   : > { %v6944_v13 = vadd.f32 %v5415_v7, %v3233_v37  ;;  %v5306_v51 = vadd.f32 %v5305_v33, %v5304_v9  ;;  %v5417_v60 = vpop.f32.mrf.mxu1  ;;  %v4548_v7 = vcombine.high %v315_v56, %v323_v34 }
 0x1c6   : > { %v5418_v58 = vadd.f32 %v5417_v60, %v5416_v16  ;;  %v5307_v1 = vpop.f32.mrf.mxu0  ;;  %3819 = vmatmul.mubr.bf16.gmra.mxu0 %v4515_v41  ;;  %v4550_v41 = vcombine.high %v316_v15, %v324_v23 }
 0x1c7   : > { %v3236_v19 = vadd.f32 %v5306_v51, %v6782_v26  ;;  %v5419_v39 = vpop.f32.mrf.mxu1  ;;  %3980 = vmatmul.mubr.bf16.gmra.mxu1 %v4517_v43  ;;  %3826 = vmatprep.mubr.bf16.mxu0 %v4532_v29  ;;  %v4533_v26 = vcombine.low %v300_v11, %v308_v28  ;;  %v331_v11 = vld [vmem:[%s6210_s12 + $0x330] sm:$0xff] }
 0x1c8   : > { %v5308_v57 = vpop.f32.mrf.mxu0  ;;  %3987 = vmatprep.mubr.bf16.mxu1 %v4534_v63  ;;  %v339_v28 = vld [vmem:[%s6210_s12 + $0x370] sm:$0xff] }
 0x1c9   : > { %v6949_v32 = vadd.f32 %v5418_v58, %v3236_v19  ;;  %v5309_v24 = vadd.f32 %v5308_v57, %v5307_v1  ;;  %v5420_v20 = vpop.f32.mrf.mxu1  ;;  %v332_v58 = vld [vmem:[%s6210_s12 + $0x338] sm:$0xff]  ;;  %v4547_v57 = vcombine.low %v315_v56, %v323_v34 }
 0x1ca   : > { %v5421_v47 = vadd.f32 %v5420_v20, %v5419_v39  ;;  %v5310_v36 = vpop.f32.mrf.mxu0  ;;  %v340_v1 = vld [vmem:[%s6210_s12 + $0x378] sm:$0xff] }
 0x1cb   : > { %v3241_v62 = vadd.f32 %v5309_v24, %v6794_v53  ;;  %v5422_v42 = vpop.f32.mrf.mxu1 }
 0x1cc   : > { %v5311_v9 = vpop.f32.mrf.mxu0 }
 0x1cd   : > { %v6954_v37 = vadd.f32 %v5421_v47, %v3241_v62  ;;  %v5312_v16 = vadd.f32 %v5311_v9, %v5310_v36  ;;  %v5423_v43 = vpop.f32.mrf.mxu1  ;;  %v4564_v47 = vcombine.high %v331_v11, %v339_v28 }
 0x1ce   : > { %v5424_v29 = vadd.f32 %v5423_v43, %v5422_v42  ;;  %v5313_v33 = vpop.f32.mrf.mxu0  ;;  %3827 = vmatmul.mubr.bf16.gmra.mxu0 %v4531_v17  ;;  %v4566_v17 = vcombine.high %v332_v58, %v340_v1 }
 0x1cf   : > { %v3244_v6 = vadd.f32 %v5312_v16, %v6799_v2  ;;  %v5425_v8 = vpop.f32.mrf.mxu1  ;;  %3988 = vmatmul.mubr.bf16.gmra.mxu1 %v4533_v26  ;;  %3834 = vmatprep.mubr.bf16.mxu0 %v4548_v7  ;;  %v4549_v2 = vcombine.low %v316_v15, %v324_v23  ;;  %v347_v15 = vld [vmem:[%s6210_s12 + $0x3b0] sm:$0xff] }
 0x1d0   : > { %v5314_v53 = vpop.f32.mrf.mxu0  ;;  %3995 = vmatprep.mubr.bf16.mxu1 %v4550_v41  ;;  %v355_v23 = vld [vmem:[%s6210_s12 + $0x3f0] sm:$0xff] }
 0x1d1   : > { %v6959_v63 = vadd.f32 %v5424_v29, %v3244_v6  ;;  %v5315_v51 = vadd.f32 %v5314_v53, %v5313_v33  ;;  %v5426_v60 = vpop.f32.mrf.mxu1  ;;  %v348_v29 = vld [vmem:[%s6210_s12 + $0x3b8] sm:$0xff]  ;;  %v4563_v53 = vcombine.low %v331_v11, %v339_v28 }
 0x1d2   : > { %v5427_v19 = vadd.f32 %v5426_v60, %v5425_v8  ;;  %v5316_v39 = vpop.f32.mrf.mxu0  ;;  %v356_v33 = vld [vmem:[%s6210_s12 + $0x3f8] sm:$0xff] }
 0x1d3   : > { %v3249_v24 = vadd.f32 %v5315_v51, %v6804_v22  ;;  %v5428_v20 = vpop.f32.mrf.mxu1 }
 0x1d4   : > { %v5317_v36 = vpop.f32.mrf.mxu0 }
 0x1d5   : > { %v6964_v62 = vadd.f32 %v5427_v19, %v3249_v24  ;;  %v5318_v42 = vadd.f32 %v5317_v36, %v5316_v39  ;;  %v5429_v26 = vpop.f32.mrf.mxu1  ;;  %v4580_v19 = vcombine.high %v347_v15, %v355_v23 }
 0x1d6   : > { %v5430_v7 = vadd.f32 %v5429_v26, %v5428_v20  ;;  %v5319_v9 = vpop.f32.mrf.mxu0  ;;  %3835 = vmatmul.mubr.bf16.gmra.mxu0 %v4547_v57  ;;  %v4582_v57 = vcombine.high %v348_v29, %v356_v33 }
 0x1d7   : > { %v3252_v56 = vadd.f32 %v5318_v42, %v6809_v35  ;;  %v5431_v34 = vpop.f32.mrf.mxu1  ;;  %3996 = vmatmul.mubr.bf16.gmra.mxu1 %v4549_v2  ;;  %3842 = vmatprep.mubr.bf16.mxu0 %v4564_v47  ;;  %v4565_v35 = vcombine.low %v332_v58, %v340_v1  ;;  %v363_v58 = vld [vmem:[%s6210_s12 + $0x430] sm:$0xff] }
 0x1d8   : > { %v5320_v22 = vpop.f32.mrf.mxu0  ;;  %4003 = vmatprep.mubr.bf16.mxu1 %v4566_v17  ;;  %v371_v1 = vld [vmem:[%s6210_s12 + $0x470] sm:$0xff] }
 0x1d9   : > { %v6969_v41 = vadd.f32 %v5430_v7, %v3252_v56  ;;  %v5321_v16 = vadd.f32 %v5320_v22, %v5319_v9  ;;  %v5432_v43 = vpop.f32.mrf.mxu1  ;;  %v364_v7 = vld [vmem:[%s6210_s12 + $0x438] sm:$0xff]  ;;  %v4579_v22 = vcombine.low %v347_v15, %v355_v23 }
 0x1da   : > { %v5433_v6 = vadd.f32 %v5432_v43, %v5431_v34  ;;  %v5322_v8 = vpop.f32.mrf.mxu0  ;;  %v372_v9 = vld [vmem:[%s6210_s12 + $0x478] sm:$0xff] }
 0x1db   : > { %v3257_v51 = vadd.f32 %v5321_v16, %v6814_v5  ;;  %v5434_v60 = vpop.f32.mrf.mxu1 }
 0x1dc   : > { %v5323_v39 = vpop.f32.mrf.mxu0 }
 0x1dd   : > { %v6974_v24 = vadd.f32 %v5433_v6, %v3257_v51  ;;  %v5324_v20 = vadd.f32 %v5323_v39, %v5322_v8  ;;  %v5435_v2 = vpop.f32.mrf.mxu1  ;;  %v4596_v6 = vcombine.high %v363_v58, %v371_v1 }
 0x1de   : > { %v5436_v47 = vadd.f32 %v5435_v2, %v5434_v60  ;;  %v5325_v36 = vpop.f32.mrf.mxu0  ;;  %3843 = vmatmul.mubr.bf16.gmra.mxu0 %v4563_v53  ;;  %v4598_v53 = vcombine.high %v364_v7, %v372_v9 }
 0x1df   : > { %v3260_v11 = vadd.f32 %v5324_v20, %v6819_v10  ;;  %v5437_v28 = vpop.f32.mrf.mxu1  ;;  %4004 = vmatmul.mubr.bf16.gmra.mxu1 %v4565_v35  ;;  %3850 = vmatprep.mubr.bf16.mxu0 %v4580_v19  ;;  %v4581_v10 = vcombine.low %v348_v29, %v356_v33  ;;  %v379_v29 = vld [vmem:[%s6210_s12 + $0x4b0] sm:$0xff] }
 0x1e0   : > { %v5326_v5 = vpop.f32.mrf.mxu0  ;;  %4011 = vmatprep.mubr.bf16.mxu1 %v4582_v57  ;;  %v387_v33 = vld [vmem:[%s6210_s12 + $0x4f0] sm:$0xff] }
 0x1e1   : > { %v6979_v17 = vadd.f32 %v5436_v47, %v3260_v11  ;;  %v5327_v42 = vadd.f32 %v5326_v5, %v5325_v36  ;;  %v5438_v26 = vpop.f32.mrf.mxu1  ;;  %v380_v47 = vld [vmem:[%s6210_s12 + $0x4b8] sm:$0xff]  ;;  %v4595_v5 = vcombine.low %v363_v58, %v371_v1 }
 0x1e2   : > { %v5439_v56 = vadd.f32 %v5438_v26, %v5437_v28  ;;  %v5328_v34 = vpop.f32.mrf.mxu0  ;;  %v388_v36 = vld [vmem:[%s6210_s12 + $0x4f8] sm:$0xff] }
 0x1e3   : > { %v3265_v16 = vadd.f32 %v5327_v42, %v6824_v48  ;;  %v5440_v43 = vpop.f32.mrf.mxu1 }
 0x1e4   : > { %v5329_v8 = vpop.f32.mrf.mxu0 }
 0x1e5   : > { %v6984_v51 = vadd.f32 %v5439_v56, %v3265_v16  ;;  %v5330_v60 = vadd.f32 %v5329_v8, %v5328_v34  ;;  %v5441_v35 = vpop.f32.mrf.mxu1  ;;  %v4612_v56 = vcombine.high %v379_v29, %v387_v33 }
 0x1e6   : > { %v5442_v19 = vadd.f32 %v5441_v35, %v5440_v43  ;;  %v5331_v39 = vpop.f32.mrf.mxu0  ;;  %3851 = vmatmul.mubr.bf16.gmra.mxu0 %v4579_v22  ;;  %v4614_v22 = vcombine.high %v380_v47, %v388_v36 }
 0x1e7   : > { %v3268_v15 = vadd.f32 %v5330_v60, %v6829_v59  ;;  %v5443_v23 = vpop.f32.mrf.mxu1  ;;  %4012 = vmatmul.mubr.bf16.gmra.mxu1 %v4581_v10  ;;  %3858 = vmatprep.mubr.bf16.mxu0 %v4596_v6  ;;  %v4597_v59 = vcombine.low %v364_v7, %v372_v9  ;;  %v395_v7 = vld [vmem:[%s6210_s12 + $0x530] sm:$0xff] }
 0x1e8   : > { %v5332_v48 = vpop.f32.mrf.mxu0  ;;  %4019 = vmatprep.mubr.bf16.mxu1 %v4598_v53  ;;  %v403_v9 = vld [vmem:[%s6210_s12 + $0x570] sm:$0xff] }
 0x1e9   : > { %v6989_v57 = vadd.f32 %v5442_v19, %v3268_v15  ;;  %v5333_v20 = vadd.f32 %v5332_v48, %v5331_v39  ;;  %v5444_v2 = vpop.f32.mrf.mxu1  ;;  %v396_v19 = vld [vmem:[%s6210_s12 + $0x538] sm:$0xff]  ;;  %v4611_v48 = vcombine.low %v379_v29, %v387_v33 }
 0x1ea   : > { %v5445_v11 = vadd.f32 %v5444_v2, %v5443_v23  ;;  %v5334_v28 = vpop.f32.mrf.mxu0  ;;  %v404_v39 = vld [vmem:[%s6210_s12 + $0x578] sm:$0xff] }
 0x1eb   : > { %v3273_v42 = vadd.f32 %v5333_v20, %v6834_v30  ;;  %v5446_v26 = vpop.f32.mrf.mxu1 }
 0x1ec   : > { %v5335_v34 = vpop.f32.mrf.mxu0 }
 0x1ed   : > { %v6994_v16 = vadd.f32 %v5445_v11, %v3273_v42  ;;  %v5336_v43 = vadd.f32 %v5335_v34, %v5334_v28  ;;  %v5447_v10 = vpop.f32.mrf.mxu1  ;;  %v4628_v11 = vcombine.high %v395_v7, %v403_v9 }
 0x1ee   : > { %v5448_v6 = vadd.f32 %v5447_v10, %v5446_v26  ;;  %v5465_v8 = vpop.f32.mrf.mxu0  ;;  %3859 = vmatmul.mubr.bf16.gmra.mxu0 %v4595_v5  ;;  %v4630_v5 = vcombine.high %v396_v19, %v404_v39 }
 0x1ef   : > { %v3276_v58 = vadd.f32 %v5336_v43, %v6839_v44  ;;  %v5577_v1 = vpop.f32.mrf.mxu1  ;;  %4020 = vmatmul.mubr.bf16.gmra.mxu1 %v4597_v59  ;;  %3866 = vmatprep.mubr.bf16.mxu0 %v4612_v56  ;;  %v4613_v44 = vcombine.low %v380_v47, %v388_v36  ;;  %v411_v47 = vld [vmem:[%s6210_s12 + $0x5b0] sm:$0xff] }
 0x1f0   : > { %v5466_v30 = vpop.f32.mrf.mxu0  ;;  %4027 = vmatprep.mubr.bf16.mxu1 %v4614_v22  ;;  %v419_v36 = vld [vmem:[%s6210_s12 + $0x5f0] sm:$0xff] }
 0x1f1   : > { %v6999_v53 = vadd.f32 %v5448_v6, %v3276_v58  ;;  %v5467_v60 = vadd.f32 %v5466_v30, %v5465_v8  ;;  %v5578_v35 = vpop.f32.mrf.mxu1  ;;  %v412_v6 = vld [vmem:[%s6210_s12 + $0x5b8] sm:$0xff]  ;;  %v4627_v30 = vcombine.low %v395_v7, %v403_v9 }
 0x1f2   : > { %v5579_v15 = vadd.f32 %v5578_v35, %v5577_v1  ;;  %v5468_v23 = vpop.f32.mrf.mxu0  ;;  %v420_v8 = vld [vmem:[%s6210_s12 + $0x5f8] sm:$0xff] }
 0x1f3   : > { %v3475_v20 = vadd.f32 %v5467_v60, %v6844_v0  ;;  %v5580_v2 = vpop.f32.mrf.mxu1 }
 0x1f4   : > { %v5469_v28 = vpop.f32.mrf.mxu0 }
 0x1f5   : > { %v7004_v42 = vadd.f32 %v5579_v15, %v3475_v20  ;;  %v5470_v26 = vadd.f32 %v5469_v28, %v5468_v23  ;;  %v5581_v59 = vpop.f32.mrf.mxu1  ;;  %v4644_v15 = vcombine.high %v411_v47, %v419_v36 }
 0x1f6   : > { %v5582_v56 = vadd.f32 %v5581_v59, %v5580_v2  ;;  %v5471_v34 = vpop.f32.mrf.mxu0  ;;  %3867 = vmatmul.mubr.bf16.gmra.mxu0 %v4611_v48  ;;  %v4646_v48 = vcombine.high %v412_v6, %v420_v8 }
 0x1f7   : > { %v3478_v29 = vadd.f32 %v5470_v26, %v6849_v25  ;;  %v5583_v33 = vpop.f32.mrf.mxu1  ;;  %4028 = vmatmul.mubr.bf16.gmra.mxu1 %v4613_v44  ;;  %3874 = vmatprep.mubr.bf16.mxu0 %v4628_v11  ;;  %v4629_v25 = vcombine.low %v396_v19, %v404_v39  ;;  %v427_v19 = vld [vmem:[%s6210_s12 + $0x630] sm:$0xff] }
 0x1f8   : > { %v5472_v0 = vpop.f32.mrf.mxu0  ;;  %4035 = vmatprep.mubr.bf16.mxu1 %v4630_v5  ;;  %v435_v39 = vld [vmem:[%s6210_s12 + $0x670] sm:$0xff] }
 0x1f9   : > { %v7009_v22 = vadd.f32 %v5582_v56, %v3478_v29  ;;  %v5473_v43 = vadd.f32 %v5472_v0, %v5471_v34  ;;  %v5584_v10 = vpop.f32.mrf.mxu1  ;;  %v428_v56 = vld [vmem:[%s6210_s12 + $0x638] sm:$0xff]  ;;  %v4643_v0 = vcombine.low %v411_v47, %v419_v36 }
 0x1fa   : > { %v5585_v58 = vadd.f32 %v5584_v10, %v5583_v33  ;;  %v5474_v1 = vpop.f32.mrf.mxu0  ;;  %v436_v34 = vld [vmem:[%s6210_s12 + $0x678] sm:$0xff] }
 0x1fb   : > { %v3483_v60 = vadd.f32 %v5473_v43, %v6854_v61  ;;  %v5586_v35 = vpop.f32.mrf.mxu1 }
 0x1fc   : > { %v5475_v23 = vpop.f32.mrf.mxu0 }
 0x1fd   : > { %v7014_v20 = vadd.f32 %v5585_v58, %v3483_v60  ;;  %v5476_v2 = vadd.f32 %v5475_v23, %v5474_v1  ;;  %v5587_v44 = vpop.f32.mrf.mxu1  ;;  %v4660_v58 = vcombine.high %v427_v19, %v435_v39 }
 0x1fe   : > { %v5588_v11 = vadd.f32 %v5587_v44, %v5586_v35  ;;  %v5477_v28 = vpop.f32.mrf.mxu0  ;;  %3875 = vmatmul.mubr.bf16.gmra.mxu0 %v4627_v30  ;;  %v4662_v30 = vcombine.high %v428_v56, %v436_v34 }
 0x1ff   : > { %v3486_v7 = vadd.f32 %v5476_v2, %v6859_v46  ;;  %v5589_v9 = vpop.f32.mrf.mxu1  ;;  %4036 = vmatmul.mubr.bf16.gmra.mxu1 %v4629_v25  ;;  %3882 = vmatprep.mubr.bf16.mxu0 %v4644_v15  ;;  %v4645_v46 = vcombine.low %v412_v6, %v420_v8  ;;  %v443_v6 = vld [vmem:[%s6210_s12 + $0x6b0] sm:$0xff] }
 0x200   : > { %v5478_v61 = vpop.f32.mrf.mxu0  ;;  %4043 = vmatprep.mubr.bf16.mxu1 %v4646_v48  ;;  %v451_v8 = vld [vmem:[%s6210_s12 + $0x6f0] sm:$0xff] }
 0x201   : > { %v7019_v5 = vadd.f32 %v5588_v11, %v3486_v7  ;;  %v5479_v26 = vadd.f32 %v5478_v61, %v5477_v28  ;;  %v5590_v59 = vpop.f32.mrf.mxu1  ;;  %v444_v11 = vld [vmem:[%s6210_s12 + $0x6b8] sm:$0xff]  ;;  %v4659_v61 = vcombine.low %v427_v19, %v435_v39 }
 0x202   : > { %v5591_v29 = vadd.f32 %v5590_v59, %v5589_v9  ;;  %v5480_v33 = vpop.f32.mrf.mxu0  ;;  %v452_v28 = vld [vmem:[%s6210_s12 + $0x6f8] sm:$0xff] }
 0x203   : > { %v3491_v43 = vadd.f32 %v5479_v26, %v6864_v49  ;;  %v5592_v10 = vpop.f32.mrf.mxu1 }
 0x204   : > { %v5481_v1 = vpop.f32.mrf.mxu0 }
 0x205   : > { %v7024_v60 = vadd.f32 %v5591_v29, %v3491_v43  ;;  %v5482_v35 = vadd.f32 %v5481_v1, %v5480_v33  ;;  %v5593_v25 = vpop.f32.mrf.mxu1  ;;  %v4676_v29 = vcombine.high %v443_v6, %v451_v8 }
 0x206   : > { %v5594_v15 = vadd.f32 %v5593_v25, %v5592_v10  ;;  %v5483_v23 = vpop.f32.mrf.mxu0  ;;  %3883 = vmatmul.mubr.bf16.gmra.mxu0 %v4643_v0  ;;  %v4678_v0 = vcombine.high %v444_v11, %v452_v28 }
 0x207   : > { %v3494_v47 = vadd.f32 %v5482_v35, %v6869_v45  ;;  %v5595_v36 = vpop.f32.mrf.mxu1  ;;  %4044 = vmatmul.mubr.bf16.gmra.mxu1 %v4645_v46  ;;  %3890 = vmatprep.mubr.bf16.mxu0 %v4660_v58  ;;  %v4661_v45 = vcombine.low %v428_v56, %v436_v34  ;;  %v459_v56 = vld [vmem:[%s6210_s12 + $0x730] sm:$0xff] }
 0x208   : > { %v5484_v49 = vpop.f32.mrf.mxu0  ;;  %4051 = vmatprep.mubr.bf16.mxu1 %v4662_v30  ;;  %v467_v34 = vld [vmem:[%s6210_s12 + $0x770] sm:$0xff] }
 0x209   : > { %v7029_v48 = vadd.f32 %v5594_v15, %v3494_v47  ;;  %v5485_v2 = vadd.f32 %v5484_v49, %v5483_v23  ;;  %v5596_v44 = vpop.f32.mrf.mxu1  ;;  %v460_v15 = vld [vmem:[%s6210_s12 + $0x738] sm:$0xff]  ;;  %v4675_v49 = vcombine.low %v443_v6, %v451_v8 }
 0x20a   : > { %v5597_v7 = vadd.f32 %v5596_v44, %v5595_v36  ;;  %v5486_v9 = vpop.f32.mrf.mxu0  ;;  %v468_v23 = vld [vmem:[%s6210_s12 + $0x778] sm:$0xff] }
 0x20b   : > { %v3499_v26 = vadd.f32 %v5485_v2, %v6874_v31  ;;  %v5598_v59 = vpop.f32.mrf.mxu1 }
 0x20c   : > { %v5487_v33 = vpop.f32.mrf.mxu0 }
 0x20d   : > { %v7034_v43 = vadd.f32 %v5597_v7, %v3499_v26  ;;  %v5488_v10 = vadd.f32 %v5487_v33, %v5486_v9  ;;  %v5599_v46 = vpop.f32.mrf.mxu1  ;;  %v4692_v7 = vcombine.high %v459_v56, %v467_v34 }
 0x20e   : > { %v5600_v58 = vadd.f32 %v5599_v46, %v5598_v59  ;;  %v5489_v1 = vpop.f32.mrf.mxu0  ;;  %3891 = vmatmul.mubr.bf16.gmra.mxu0 %v4659_v61  ;;  %v4694_v61 = vcombine.high %v460_v15, %v468_v23 }
 0x20f   : > { %v3502_v19 = vadd.f32 %v5488_v10, %v6879_v18  ;;  %v5601_v39 = vpop.f32.mrf.mxu1  ;;  %4052 = vmatmul.mubr.bf16.gmra.mxu1 %v4661_v45  ;;  %3898 = vmatprep.mubr.bf16.mxu0 %v4676_v29  ;;  %v4677_v18 = vcombine.low %v444_v11, %v452_v28  ;;  %v475_v11 = vld [vmem:[%s6210_s12 + $0x7b0] sm:$0xff] }
 0x210   : > { %v5490_v31 = vpop.f32.mrf.mxu0  ;;  %4059 = vmatprep.mubr.bf16.mxu1 %v4678_v0  ;;  %v483_v28 = vld [vmem:[%s6210_s12 + $0x7f0] sm:$0xff] }
 0x211   : > { %v7039_v30 = vadd.f32 %v5600_v58, %v3502_v19  ;;  %v5491_v35 = vadd.f32 %v5490_v31, %v5489_v1  ;;  %v5602_v25 = vpop.f32.mrf.mxu1  ;;  %v476_v58 = vld [vmem:[%s6210_s12 + $0x7b8] sm:$0xff]  ;;  %v4691_v31 = vcombine.low %v459_v56, %v467_v34 }
 0x212   : > { %v5603_v47 = vadd.f32 %v5602_v25, %v5601_v39  ;;  %v5492_v36 = vpop.f32.mrf.mxu0  ;;  %v484_v1 = vld [vmem:[%s6210_s12 + $0x7f8] sm:$0xff]  ;;  %s4453_s12 = sshll.u32 %s7191_s25, 2 }
 0x213   : > { %v3507_v2 = vadd.f32 %v5491_v35, %v6884_v55  ;;  %v5604_v44 = vpop.f32.mrf.mxu1  ;;  %s7126_s9 = scalar_lea.vmem %s7185_s3, %s4453_s12 }
 0x214   : > { %v5493_v9 = vpop.f32.mrf.mxu0 }
 0x215   : > { %v7044_v26 = vadd.f32 %v5603_v47, %v3507_v2  ;;  %v5494_v59 = vadd.f32 %v5493_v9, %v5492_v36  ;;  %v5605_v45 = vpop.f32.mrf.mxu1  ;;  %v4708_v47 = vcombine.high %v475_v11, %v483_v28 }
 0x216   : > { %v5606_v29 = vadd.f32 %v5605_v45, %v5604_v44  ;;  %v5495_v33 = vpop.f32.mrf.mxu0  ;;  %3899 = vmatmul.mubr.bf16.gmra.mxu0 %v4675_v49  ;;  %v4710_v49 = vcombine.high %v476_v58, %v484_v1 }
 0x217   : > { %v3510_v6 = vadd.f32 %v5494_v59, %v6889_v3  ;;  %v5607_v8 = vpop.f32.mrf.mxu1  ;;  %4060 = vmatmul.mubr.bf16.gmra.mxu1 %v4677_v18  ;;  %3906 = vmatprep.mubr.bf16.mxu0 %v4692_v7  ;;  %v4693_v3 = vcombine.low %v460_v15, %v468_v23 }
 0x218   : > { %v5496_v55 = vpop.f32.mrf.mxu0  ;;  %4067 = vmatprep.mubr.bf16.mxu1 %v4694_v61 }
 0x219   : > { %v7049_v0 = vadd.f32 %v5606_v29, %v3510_v6  ;;  %v5497_v10 = vadd.f32 %v5496_v55, %v5495_v33  ;;  %v5608_v46 = vpop.f32.mrf.mxu1  ;;  %v4707_v29 = vcombine.low %v475_v11, %v483_v28 }
 0x21a   : > { %v5609_v19 = vadd.f32 %v5608_v46, %v5607_v8  ;;  %v5498_v39 = vpop.f32.mrf.mxu0  ;;  %v4709_v8 = vcombine.low %v476_v58, %v484_v1 }
 0x21b   : > { %v3515_v35 = vadd.f32 %v5497_v10, %v6894_v38  ;;  %v5610_v25 = vpop.f32.mrf.mxu1 }
 0x21c   : > { %v5499_v36 = vpop.f32.mrf.mxu0 }
 0x21d   : > { %v7054_v2 = vadd.f32 %v5609_v19, %v3515_v35  ;;  %v5500_v44 = vadd.f32 %v5499_v36, %v5498_v39  ;;  %v5611_v18 = vpop.f32.mrf.mxu1 }
 0x21e   : > { %v5612_v7 = vadd.f32 %v5611_v18, %v5610_v25  ;;  %v5501_v9 = vpop.f32.mrf.mxu0  ;;  %3907 = vmatmul.mubr.bf16.gmra.mxu0 %v4691_v31 }
 0x21f   : > { %v3518_v61 = vadd.f32 %v5500_v44, %v6899_v27  ;;  %v5613_v59 = vpop.f32.mrf.mxu1  ;;  %4068 = vmatmul.mubr.bf16.gmra.mxu1 %v4693_v3  ;;  %3914 = vmatprep.mubr.bf16.mxu0 %v4708_v47 }
 0x220   : > { %v5502_v56 = vpop.f32.mrf.mxu0  ;;  %4075 = vmatprep.mubr.bf16.mxu1 %v4710_v49 }
 0x221   : > { %v7057_v38 = vadd.f32 %v5612_v7, %v3518_v61  ;;  %v5503_v34 = vadd.f32 %v5502_v56, %v5501_v9  ;;  %v5614_v15 = vpop.f32.mrf.mxu1 }
 0x222   : > { %v5615_v23 = vadd.f32 %v5614_v15, %v5613_v59  ;;  %v5504_v45 = vpop.f32.mrf.mxu0 }
 0x223   : > { %v3523_v33 = vadd.f32 %v5503_v34, %v6904_v54  ;;  %v5616_v6 = vpop.f32.mrf.mxu1 }
 0x224   : > { %v5505_v55 = vpop.f32.mrf.mxu0 }
 0x225   : > { %v7060_v10 = vadd.f32 %v5615_v23, %v3523_v33  ;;  %v5506_v27 = vadd.f32 %v5505_v55, %v5504_v45  ;;  %v5617_v46 = vpop.f32.mrf.mxu1 }
 0x226   : > { %v5618_v19 = vadd.f32 %v5617_v46, %v5616_v6  ;;  %v5507_v39 = vpop.f32.mrf.mxu0  ;;  %3915 = vmatmul.mubr.bf16.gmra.mxu0 %v4707_v29 }
 0x227   : > { %v3526_v31 = vadd.f32 %v5506_v27, %v6909_v52  ;;  %v5619_v35 = vpop.f32.mrf.mxu1  ;;  %4076 = vmatmul.mubr.bf16.gmra.mxu1 %v4709_v8 }
 0x228   : > { %v5508_v25 = vpop.f32.mrf.mxu0 }
 0x229   : > { %v7063_v3 = vadd.f32 %v5618_v19, %v3526_v31  ;;  %v5509_v11 = vadd.f32 %v5508_v25, %v5507_v39  ;;  %v5620_v28 = vpop.f32.mrf.mxu1 }
 0x22a   : > { %v5621_v54 = vadd.f32 %v5620_v28, %v5619_v35  ;;  %v5510_v47 = vpop.f32.mrf.mxu0 }
 0x22b   : > { %v3531_v58 = vadd.f32 %v5509_v11, %v6914_v21  ;;  %v5622_v1 = vpop.f32.mrf.mxu1 }
 0x22c   : > { %v5511_v36 = vpop.f32.mrf.mxu0 }
 0x22d   : > { %v7066_v49 = vadd.f32 %v5621_v54, %v3531_v58  ;;  %v5512_v44 = vadd.f32 %v5511_v36, %v5510_v47  ;;  %v5623_v18 = vpop.f32.mrf.mxu1 }
 0x22e   : > { %v5624_v7 = vadd.f32 %v5623_v18, %v5622_v1  ;;  %v5513_v9 = vpop.f32.mrf.mxu0 }
 0x22f   : > { %v3534_v52 = vadd.f32 %v5512_v44, %v6919_v14  ;;  %v5625_v61 = vpop.f32.mrf.mxu1 }
 0x230   : > { %v5514_v59 = vpop.f32.mrf.mxu0 }
 0x231   : > { %v7069_v56 = vadd.f32 %v5624_v7, %v3534_v52  ;;  %v5515_v34 = vadd.f32 %v5514_v59, %v5513_v9  ;;  %v5626_v15 = vpop.f32.mrf.mxu1 }
 0x232   : > { %v5627_v23 = vadd.f32 %v5626_v15, %v5625_v61  ;;  %v5516_v45 = vpop.f32.mrf.mxu0 }
 0x233   : > { %v3539_v21 = vadd.f32 %v5515_v34, %v6924_v12  ;;  %v5628_v29 = vpop.f32.mrf.mxu1 }
 0x234   : > { %v5517_v33 = vpop.f32.mrf.mxu0 }
 0x235   : > { %v7072_v6 = vadd.f32 %v5627_v23, %v3539_v21  ;;  %v5518_v8 = vadd.f32 %v5517_v33, %v5516_v45  ;;  %v5629_v55 = vpop.f32.mrf.mxu1 }
 0x236   : > { %v5630_v27 = vadd.f32 %v5629_v55, %v5628_v29  ;;  %v5519_v46 = vpop.f32.mrf.mxu0 }
 0x237   : > { %v3542_v14 = vadd.f32 %v5518_v8, %v6929_v40  ;;  %v5631_v19 = vpop.f32.mrf.mxu1 }
 0x238   : > { %v5520_v39 = vpop.f32.mrf.mxu0 }
 0x239   : > { %v7075_v31 = vadd.f32 %v5630_v27, %v3542_v14  ;;  %v5521_v35 = vadd.f32 %v5520_v39, %v5519_v46  ;;  %v5632_v25 = vpop.f32.mrf.mxu1 }
 0x23a   : > { %v5633_v11 = vadd.f32 %v5632_v25, %v5631_v19  ;;  %v5522_v28 = vpop.f32.mrf.mxu0 }
 0x23b   : > { %v3547_v12 = vadd.f32 %v5521_v35, %v6934_v50  ;;  %v5634_v54 = vpop.f32.mrf.mxu1 }
 0x23c   : > { %v5523_v47 = vpop.f32.mrf.mxu0 }
 0x23d   : > { %v7078_v58 = vadd.f32 %v5633_v11, %v3547_v12  ;;  %v5524_v1 = vadd.f32 %v5523_v47, %v5522_v28  ;;  %v5635_v36 = vpop.f32.mrf.mxu1 }
 0x23e   : > { %v5636_v44 = vadd.f32 %v5635_v36, %v5634_v54  ;;  %v5525_v18 = vpop.f32.mrf.mxu0 }
 0x23f   : > { %v3550_v40 = vadd.f32 %v5524_v1, %v6939_v4  ;;  %v5637_v7 = vpop.f32.mrf.mxu1 }
 0x240   : > { %v5526_v9 = vpop.f32.mrf.mxu0 }
 0x241   : > { %v7081_v52 = vadd.f32 %v5636_v44, %v3550_v40  ;;  %v5527_v61 = vadd.f32 %v5526_v9, %v5525_v18  ;;  %v5638_v59 = vpop.f32.mrf.mxu1 }
 0x242   : > { %v5639_v34 = vadd.f32 %v5638_v59, %v5637_v7  ;;  %v5528_v15 = vpop.f32.mrf.mxu0 }
 0x243   : > { %v3555_v50 = vadd.f32 %v5527_v61, %v6944_v13  ;;  %v5640_v23 = vpop.f32.mrf.mxu1 }
 0x244   : > { %v5529_v45 = vpop.f32.mrf.mxu0 }
 0x245   : > { %v7084_v21 = vadd.f32 %v5639_v34, %v3555_v50  ;;  %v5530_v29 = vadd.f32 %v5529_v45, %v5528_v15  ;;  %v5641_v33 = vpop.f32.mrf.mxu1 }
 0x246   : > { %v5642_v8 = vadd.f32 %v5641_v33, %v5640_v23  ;;  %v5531_v55 = vpop.f32.mrf.mxu0 }
 0x247   : > { %v3558_v4 = vadd.f32 %v5530_v29, %v6949_v32  ;;  %v5643_v27 = vpop.f32.mrf.mxu1 }
 0x248   : > { %v5532_v46 = vpop.f32.mrf.mxu0 }
 0x249   : > { %v7087_v14 = vadd.f32 %v5642_v8, %v3558_v4  ;;  %v5533_v19 = vadd.f32 %v5532_v46, %v5531_v55  ;;  %v5644_v39 = vpop.f32.mrf.mxu1 }
 0x24a   : > { %v5645_v35 = vadd.f32 %v5644_v39, %v5643_v27  ;;  %v5534_v25 = vpop.f32.mrf.mxu0 }
 0x24b   : > { %v3563_v13 = vadd.f32 %v5533_v19, %v6954_v37  ;;  %v5646_v11 = vpop.f32.mrf.mxu1 }
 0x24c   : > { %v5535_v28 = vpop.f32.mrf.mxu0 }
 0x24d   : > { %v7090_v12 = vadd.f32 %v5645_v35, %v3563_v13  ;;  %v5536_v54 = vadd.f32 %v5535_v28, %v5534_v25  ;;  %v5647_v47 = vpop.f32.mrf.mxu1 }
 0x24e   : > { %v5648_v1 = vadd.f32 %v5647_v47, %v5646_v11  ;;  %v5537_v36 = vpop.f32.mrf.mxu0 }
 0x24f   : > { %v3566_v32 = vadd.f32 %v5536_v54, %v6959_v63  ;;  %v5649_v44 = vpop.f32.mrf.mxu1 }
 0x250   : > { %v5538_v18 = vpop.f32.mrf.mxu0 }
 0x251   : > { %v7093_v40 = vadd.f32 %v5648_v1, %v3566_v32  ;;  %v5539_v7 = vadd.f32 %v5538_v18, %v5537_v36  ;;  %v5650_v9 = vpop.f32.mrf.mxu1 }
 0x252   : > { %v5651_v61 = vadd.f32 %v5650_v9, %v5649_v44  ;;  %v5540_v59 = vpop.f32.mrf.mxu0 }
 0x253   : > { %v3571_v37 = vadd.f32 %v5539_v7, %v6964_v62  ;;  %v5652_v34 = vpop.f32.mrf.mxu1 }
 0x254   : > { %v5541_v15 = vpop.f32.mrf.mxu0 }
 0x255   : > { %v7096_v50 = vadd.f32 %v5651_v61, %v3571_v37  ;;  %v5542_v23 = vadd.f32 %v5541_v15, %v5540_v59  ;;  %v5653_v45 = vpop.f32.mrf.mxu1 }
 0x256   : > { %v5654_v29 = vadd.f32 %v5653_v45, %v5652_v34  ;;  %v5543_v33 = vpop.f32.mrf.mxu0 }
 0x257   : > { %v3574_v63 = vadd.f32 %v5542_v23, %v6969_v41  ;;  %v5655_v8 = vpop.f32.mrf.mxu1 }
 0x258   : > { %v5544_v55 = vpop.f32.mrf.mxu0 }
 0x259   : > { %v7099_v4 = vadd.f32 %v5654_v29, %v3574_v63  ;;  %v5545_v27 = vadd.f32 %v5544_v55, %v5543_v33  ;;  %v5656_v46 = vpop.f32.mrf.mxu1 }
 0x25a   : > { %v5657_v19 = vadd.f32 %v5656_v46, %v5655_v8  ;;  %v5546_v39 = vpop.f32.mrf.mxu0 }
 0x25b   : > { %v3579_v62 = vadd.f32 %v5545_v27, %v6974_v24  ;;  %v5658_v35 = vpop.f32.mrf.mxu1 }
 0x25c   : > { %v5547_v25 = vpop.f32.mrf.mxu0 }
 0x25d   : > { %v7102_v13 = vadd.f32 %v5657_v19, %v3579_v62  ;;  %v5548_v11 = vadd.f32 %v5547_v25, %v5546_v39  ;;  %v5659_v28 = vpop.f32.mrf.mxu1 }
 0x25e   : > { %v5660_v54 = vadd.f32 %v5659_v28, %v5658_v35  ;;  %v5549_v47 = vpop.f32.mrf.mxu0 }
 0x25f   : > { %v3582_v41 = vadd.f32 %v5548_v11, %v6979_v17  ;;  %v5661_v1 = vpop.f32.mrf.mxu1 }
 0x260   : > { %v5550_v36 = vpop.f32.mrf.mxu0 }
 0x261   : > { %v7105_v32 = vadd.f32 %v5660_v54, %v3582_v41  ;;  %v5551_v44 = vadd.f32 %v5550_v36, %v5549_v47  ;;  %v5662_v18 = vpop.f32.mrf.mxu1 }
 0x262   : > { %v5663_v7 = vadd.f32 %v5662_v18, %v5661_v1  ;;  %v5552_v9 = vpop.f32.mrf.mxu0 }
 0x263   : > { %v3587_v24 = vadd.f32 %v5551_v44, %v6984_v51  ;;  %v5664_v61 = vpop.f32.mrf.mxu1 }
 0x264   : > { %v5553_v59 = vpop.f32.mrf.mxu0 }
 0x265   : > { %v7108_v37 = vadd.f32 %v5663_v7, %v3587_v24  ;;  %v5554_v34 = vadd.f32 %v5553_v59, %v5552_v9  ;;  %v5665_v15 = vpop.f32.mrf.mxu1 }
 0x266   : > { %v5666_v23 = vadd.f32 %v5665_v15, %v5664_v61  ;;  %v5555_v45 = vpop.f32.mrf.mxu0 }
 0x267   : > { %v3590_v17 = vadd.f32 %v5554_v34, %v6989_v57  ;;  %v5667_v29 = vpop.f32.mrf.mxu1 }
 0x268   : > { %v5556_v33 = vpop.f32.mrf.mxu0 }
 0x269   : > { %v7111_v63 = vadd.f32 %v5666_v23, %v3590_v17  ;;  %v5557_v8 = vadd.f32 %v5556_v33, %v5555_v45  ;;  %v5668_v55 = vpop.f32.mrf.mxu1 }
 0x26a   : > { %v5669_v27 = vadd.f32 %v5668_v55, %v5667_v29  ;;  %v5558_v46 = vpop.f32.mrf.mxu0 }
 0x26b   : > { %v3595_v51 = vadd.f32 %v5557_v8, %v6994_v16  ;;  %v5670_v19 = vpop.f32.mrf.mxu1 }
 0x26c   : > { %v5559_v39 = vpop.f32.mrf.mxu0 }
 0x26d   : > { %v7114_v62 = vadd.f32 %v5669_v27, %v3595_v51  ;;  %v5560_v35 = vadd.f32 %v5559_v39, %v5558_v46  ;;  %v5671_v25 = vpop.f32.mrf.mxu1 }
 0x26e   : > { %v5672_v11 = vadd.f32 %v5671_v25, %v5670_v19  ;;  %v5689_v28 = vpop.f32.mrf.mxu0 }
 0x26f   : > { %v3598_v57 = vadd.f32 %v5560_v35, %v6999_v53  ;;  %v5801_v54 = vpop.f32.mrf.mxu1 }
 0x270   : > { %v5690_v47 = vpop.f32.mrf.mxu0 }
 0x271   : > { %v7117_v41 = vadd.f32 %v5672_v11, %v3598_v57  ;;  %v5691_v1 = vadd.f32 %v5690_v47, %v5689_v28  ;;  %v5802_v36 = vpop.f32.mrf.mxu1 }
 0x272   : > { %v5692_v44 = vpop.f32.mrf.mxu0  ;;  %v5803_v16 = vadd.f32 %v5802_v36, %v5801_v54 }
 0x273   : > { %v3797_v18 = vadd.f32 %v5691_v1, %v7004_v42  ;;  %v5804_v7 = vpop.f32.mrf.mxu1 }
 0x274   : > { %v5693_v9 = vpop.f32.mrf.mxu0 }
 0x275   : > { %v3958_v24 = vadd.f32 %v5803_v16, %v3797_v18  ;;  %v5694_v61 = vadd.f32 %v5693_v9, %v5692_v44  ;;  %v5805_v59 = vpop.f32.mrf.mxu1 }
 0x276   : > { %v5695_v34 = vpop.f32.mrf.mxu0  ;;  %v5806_v53 = vadd.f32 %v5805_v59, %v5804_v7 }
 0x277   : > { %v3800_v15 = vadd.f32 %v5694_v61, %v7009_v22  ;;  %v5807_v23 = vpop.f32.mrf.mxu1  ;;  %v4116_v17 = vmul.f32 0.2, %v3958_v24  ;;  %vm4084_vm0 = vcmp.ge.f32.partialorder %v3958_v24, 0.0 }
 0x278   : > { %v5696_v45 = vpop.f32.mrf.mxu0 }
 0x279   : > { %v3961_v29 = vadd.f32 %v5806_v53, %v3800_v15  ;;  %v5697_v33 = vadd.f32 %v5696_v45, %v5695_v34  ;;  %v5808_v8 = vpop.f32.mrf.mxu1  ;;  %v4148_v39 = vsel %vm4084_vm0, %v3958_v24, %v4116_v17 }
 0x27a   : > { %v5698_v42 = vpop.f32.mrf.mxu0  ;;  %v5809_v46 = vadd.f32 %v5808_v8, %v5807_v23 }
 0x27b   : > { %vm4085_vm1 = vcmp.ge.f32.partialorder %v3961_v29, 0.0  ;;  %v4117_v55 = vmul.f32 0.2, %v3961_v29  ;;  %v3805_v27 = vadd.f32 %v5697_v33, %v7014_v20  ;;  %v5810_v51 = vpop.f32.mrf.mxu1 }
 0x27c   : > { %v5699_v19 = vpop.f32.mrf.mxu0 }
 0x27d   : > { %v4149_v22 = vsel %vm4085_vm1, %v3961_v29, %v4117_v55  ;;  %v3966_v35 = vadd.f32 %v5809_v46, %v3805_v27  ;;  %v5700_v25 = vadd.f32 %v5699_v19, %v5698_v42  ;;  %v5811_v11 = vpop.f32.mrf.mxu1 }
 0x27e   : > { %v4909_v28 = vpack.c.bf16 %v4149_v22, %v4148_v39  ;;  %v5701_v57 = vpop.f32.mrf.mxu0  ;;  %v5812_v47 = vadd.f32 %v5811_v11, %v5810_v51 }
 0x27f   : > { %v3808_v54 = vadd.f32 %v5700_v25, %v7019_v5  ;;  %v5813_v20 = vpop.f32.mrf.mxu1  ;;  %v4118_v36 = vmul.f32 0.2, %v3966_v35  ;;  %vm4086_vm2 = vcmp.ge.f32.partialorder %v3966_v35, 0.0 }
 0x280   : > { %4910 = vst [vmem:[%s7126_s9] sm:$0xff] %v4909_v28   ;;  %v5702_v1 = vpop.f32.mrf.mxu0 }
 0x281   : > { %v3969_v44 = vadd.f32 %v5812_v47, %v3808_v54  ;;  %v5703_v18 = vadd.f32 %v5702_v1, %v5701_v57  ;;  %v5814_v16 = vpop.f32.mrf.mxu1  ;;  %v4150_v15 = vsel %vm4086_vm2, %v3966_v35, %v4118_v36 }
 0x282   : > { %v5704_v7 = vpop.f32.mrf.mxu0  ;;  %v5815_v61 = vadd.f32 %v5814_v16, %v5813_v20 }
 0x283   : > { %vm4087_vm3 = vcmp.ge.f32.partialorder %v3969_v44, 0.0  ;;  %v4119_v9 = vmul.f32 0.2, %v3969_v44  ;;  %v3813_v24 = vadd.f32 %v5703_v18, %v7024_v60  ;;  %v5816_v59 = vpop.f32.mrf.mxu1 }
 0x284   : > { %v5705_v34 = vpop.f32.mrf.mxu0 }
 0x285   : > { %v4151_v5 = vsel %vm4087_vm3, %v3969_v44, %v4119_v9  ;;  %v3974_v53 = vadd.f32 %v5815_v61, %v3813_v24  ;;  %v5706_v23 = vadd.f32 %v5705_v34, %v5704_v7  ;;  %v5817_v45 = vpop.f32.mrf.mxu1 }
 0x286   : > { %v4914_v17 = vpack.c.bf16 %v4151_v5, %v4150_v15  ;;  %v5707_v29 = vpop.f32.mrf.mxu0  ;;  %v5818_v8 = vadd.f32 %v5817_v45, %v5816_v59 }
 0x287   : > { %v3816_v33 = vadd.f32 %v5706_v23, %v7029_v48  ;;  %v5819_v42 = vpop.f32.mrf.mxu1  ;;  %v4120_v27 = vmul.f32 0.2, %v3974_v53  ;;  %vm4088_vm4 = vcmp.ge.f32.partialorder %v3974_v53, 0.0 }
 0x288   : > { %4986 = vst [vmem:[%s7126_s9 + $0x8] sm:$0xff] %v4914_v17   ;;  %v5708_v55 = vpop.f32.mrf.mxu0 }
 0x289   : > { %v3977_v46 = vadd.f32 %v5818_v8, %v3816_v33  ;;  %v5709_v51 = vadd.f32 %v5708_v55, %v5707_v29  ;;  %v5820_v60 = vpop.f32.mrf.mxu1  ;;  %v4152_v28 = vsel %vm4088_vm4, %v3974_v53, %v4120_v27 }
 0x28a   : > { %v5710_v19 = vpop.f32.mrf.mxu0  ;;  %v5821_v35 = vadd.f32 %v5820_v60, %v5819_v42 }
 0x28b   : > { %vm4089_vm5 = vcmp.ge.f32.partialorder %v3977_v46, 0.0  ;;  %v4121_v39 = vmul.f32 0.2, %v3977_v46  ;;  %v3821_v22 = vadd.f32 %v5709_v51, %v7034_v43  ;;  %v5822_v25 = vpop.f32.mrf.mxu1 }
 0x28c   : > { %v5711_v11 = vpop.f32.mrf.mxu0 }
 0x28d   : > { %v4153_v48 = vsel %vm4089_vm5, %v3977_v46, %v4121_v39  ;;  %v3982_v57 = vadd.f32 %v5821_v35, %v3821_v22  ;;  %v5712_v54 = vadd.f32 %v5711_v11, %v5710_v19  ;;  %v5823_v47 = vpop.f32.mrf.mxu1 }
 0x28e   : > { %v4919_v20 = vpack.c.bf16 %v4153_v48, %v4152_v28  ;;  %v5713_v1 = vpop.f32.mrf.mxu0  ;;  %v5824_v44 = vadd.f32 %v5823_v47, %v5822_v25 }
 0x28f   : > { %v3824_v36 = vadd.f32 %v5712_v54, %v7039_v30  ;;  %v5825_v18 = vpop.f32.mrf.mxu1  ;;  %v4122_v7 = vmul.f32 0.2, %v3982_v57  ;;  %vm4090_vm6 = vcmp.ge.f32.partialorder %v3982_v57, 0.0 }
 0x290   : > { %4987 = vst [vmem:[%s7126_s9 + $0x10] sm:$0xff] %v4919_v20   ;;  %v5714_v16 = vpop.f32.mrf.mxu0 }
 0x291   : > { %v3985_v9 = vadd.f32 %v5824_v44, %v3824_v36  ;;  %v5715_v24 = vadd.f32 %v5714_v16, %v5713_v1  ;;  %v5826_v43 = vpop.f32.mrf.mxu1  ;;  %v4154_v23 = vsel %vm4090_vm6, %v3982_v57, %v4122_v7 }
 0x292   : > { %v5716_v61 = vpop.f32.mrf.mxu0  ;;  %v5827_v15 = vadd.f32 %v5826_v43, %v5825_v18 }
 0x293   : > { %vm4091_vm7 = vcmp.ge.f32.partialorder %v3985_v9, 0.0  ;;  %v4123_v59 = vmul.f32 0.2, %v3985_v9  ;;  %v3829_v34 = vadd.f32 %v5715_v24, %v7044_v26  ;;  %v5828_v5 = vpop.f32.mrf.mxu1 }
 0x294   : > { %v5717_v53 = vpop.f32.mrf.mxu0 }
 0x295   : > { %v4155_v30 = vsel %vm4091_vm7, %v3985_v9, %v4123_v59  ;;  %v3990_v45 = vadd.f32 %v5827_v15, %v3829_v34  ;;  %v5718_v17 = vadd.f32 %v5717_v53, %v5716_v61  ;;  %v5829_v29 = vpop.f32.mrf.mxu1 }
 0x296   : > { %v4924_v33 = vpack.c.bf16 %v4155_v30, %v4154_v23  ;;  %v5719_v8 = vpop.f32.mrf.mxu0  ;;  %v5830_v55 = vadd.f32 %v5829_v29, %v5828_v5 }
 0x297   : > { %v3832_v42 = vadd.f32 %v5718_v17, %v7049_v0  ;;  %v5831_v27 = vpop.f32.mrf.mxu1  ;;  %v4124_v51 = vmul.f32 0.2, %v3990_v45  ;;  %vm4092_vm8 = vcmp.ge.f32.partialorder %v3990_v45, 0.0 }
 0x298   : > { %4988 = vst [vmem:[%s7126_s9 + $0x18] sm:$0xff] %v4924_v33   ;;  %v5720_v46 = vpop.f32.mrf.mxu0 }
 0x299   : > { %v3993_v60 = vadd.f32 %v5830_v55, %v3832_v42  ;;  %v5721_v19 = vadd.f32 %v5720_v46, %v5719_v8  ;;  %v5832_v26 = vpop.f32.mrf.mxu1  ;;  %v4156_v48 = vsel %vm4092_vm8, %v3990_v45, %v4124_v51 }
 0x29a   : > { %v5722_v39 = vpop.f32.mrf.mxu0  ;;  %v5833_v25 = vadd.f32 %v5832_v26, %v5831_v27 }
 0x29b   : > { %vm4093_vm9 = vcmp.ge.f32.partialorder %v3993_v60, 0.0  ;;  %v4125_v22 = vmul.f32 0.2, %v3993_v60  ;;  %v3837_v35 = vadd.f32 %v5721_v19, %v7054_v2  ;;  %v5834_v11 = vpop.f32.mrf.mxu1 }
 0x29c   : > { %v5723_v28 = vpop.f32.mrf.mxu0 }
 0x29d   : > { %v4157_v0 = vsel %vm4093_vm9, %v3993_v60, %v4125_v22  ;;  %v3998_v57 = vadd.f32 %v5833_v25, %v3837_v35  ;;  %v5724_v54 = vadd.f32 %v5723_v28, %v5722_v39  ;;  %v5835_v47 = vpop.f32.mrf.mxu1 }
 0x29e   : > { %v4929_v20 = vpack.c.bf16 %v4157_v0, %v4156_v48  ;;  %v5725_v1 = vpop.f32.mrf.mxu0  ;;  %v5836_v44 = vadd.f32 %v5835_v47, %v5834_v11 }
 0x29f   : > { %v3840_v36 = vadd.f32 %v5724_v54, %v7057_v38  ;;  %v5837_v18 = vpop.f32.mrf.mxu1  ;;  %v4126_v7 = vmul.f32 0.2, %v3998_v57  ;;  %vm4094_vm10 = vcmp.ge.f32.partialorder %v3998_v57, 0.0 }
 0x2a0   : > { %4989 = vst [vmem:[%s7126_s9 + $0x20] sm:$0xff] %v4929_v20   ;;  %v5726_v16 = vpop.f32.mrf.mxu0 }
 0x2a1   : > { %v4001_v9 = vadd.f32 %v5836_v44, %v3840_v36  ;;  %v5727_v24 = vadd.f32 %v5726_v16, %v5725_v1  ;;  %v5838_v2 = vpop.f32.mrf.mxu1  ;;  %v4158_v53 = vsel %vm4094_vm10, %v3998_v57, %v4126_v7 }
 0x2a2   : > { %v5728_v43 = vpop.f32.mrf.mxu0  ;;  %v5839_v34 = vadd.f32 %v5838_v2, %v5837_v18 }
 0x2a3   : > { %vm4095_vm11 = vcmp.ge.f32.partialorder %v4001_v9, 0.0  ;;  %v4127_v61 = vmul.f32 0.2, %v4001_v9  ;;  %v3845_v59 = vadd.f32 %v5727_v24, %v7060_v10  ;;  %v5840_v15 = vpop.f32.mrf.mxu1 }
 0x2a4   : > { %v5729_v5 = vpop.f32.mrf.mxu0 }
 0x2a5   : > { %v4159_v38 = vsel %vm4095_vm11, %v4001_v9, %v4127_v61  ;;  %v4006_v23 = vadd.f32 %v5839_v34, %v3845_v59  ;;  %v5730_v30 = vadd.f32 %v5729_v5, %v5728_v43  ;;  %v5841_v45 = vpop.f32.mrf.mxu1 }
 0x2a6   : > { %v4934_v17 = vpack.c.bf16 %v4159_v38, %v4158_v53  ;;  %v5731_v29 = vpop.f32.mrf.mxu0  ;;  %v5842_v8 = vadd.f32 %v5841_v45, %v5840_v15 }
 0x2a7   : > { %v3848_v33 = vadd.f32 %v5730_v30, %v7063_v3  ;;  %v5843_v42 = vpop.f32.mrf.mxu1  ;;  %v4128_v27 = vmul.f32 0.2, %v4006_v23  ;;  %vm4096_vm12 = vcmp.ge.f32.partialorder %v4006_v23, 0.0 }
 0x2a8   : > { %4990 = vst [vmem:[%s7126_s9 + $0x28] sm:$0xff] %v4934_v17   ;;  %v5732_v55 = vpop.f32.mrf.mxu0 }
 0x2a9   : > { %v4009_v46 = vadd.f32 %v5842_v8, %v3848_v33  ;;  %v5733_v51 = vadd.f32 %v5732_v55, %v5731_v29  ;;  %v5844_v10 = vpop.f32.mrf.mxu1  ;;  %v4160_v25 = vsel %vm4096_vm12, %v4006_v23, %v4128_v27 }
 0x2aa   : > { %v5734_v60 = vpop.f32.mrf.mxu0  ;;  %v5845_v39 = vadd.f32 %v5844_v10, %v5843_v42 }
 0x2ab   : > { %vm4097_vm13 = vcmp.ge.f32.partialorder %v4009_v46, 0.0  ;;  %v4129_v19 = vmul.f32 0.2, %v4009_v46  ;;  %v3853_v26 = vadd.f32 %v5733_v51, %v7066_v49  ;;  %v5846_v22 = vpop.f32.mrf.mxu1 }
 0x2ac   : > { %v5735_v35 = vpop.f32.mrf.mxu0 }
 0x2ad   : > { %v4161_v3 = vsel %vm4097_vm13, %v4009_v46, %v4129_v19  ;;  %v4014_v11 = vadd.f32 %v5845_v39, %v3853_v26  ;;  %v5736_v28 = vadd.f32 %v5735_v35, %v5734_v60  ;;  %v5847_v48 = vpop.f32.mrf.mxu1 }
 0x2ae   : > { %v4939_v0 = vpack.c.bf16 %v4161_v3, %v4160_v25  ;;  %v5737_v57 = vpop.f32.mrf.mxu0  ;;  %v5848_v47 = vadd.f32 %v5847_v48, %v5846_v22 }
 0x2af   : > { %v3856_v54 = vadd.f32 %v5736_v28, %v7069_v56  ;;  %v5849_v20 = vpop.f32.mrf.mxu1  ;;  %v4130_v36 = vmul.f32 0.2, %v4014_v11  ;;  %vm4098_vm14 = vcmp.ge.f32.partialorder %v4014_v11, 0.0 }
 0x2b0   : > { %4991 = vst [vmem:[%s7126_s9 + $0x30] sm:$0xff] %v4939_v0   ;;  %v5738_v1 = vpop.f32.mrf.mxu0 }
 0x2b1   : > { %v4017_v44 = vadd.f32 %v5848_v47, %v3856_v54  ;;  %v5739_v18 = vadd.f32 %v5738_v1, %v5737_v57  ;;  %v5850_v49 = vpop.f32.mrf.mxu1  ;;  %v4162_v61 = vsel %vm4098_vm14, %v4014_v11, %v4130_v36 }
 0x2b2   : > { %v5740_v16 = vpop.f32.mrf.mxu0  ;;  %v5851_v24 = vadd.f32 %v5850_v49, %v5849_v20 }
 0x2b3   : > { %vm4099_vm15 = vcmp.ge.f32.partialorder %v4017_v44, 0.0  ;;  %v4131_v7 = vmul.f32 0.2, %v4017_v44  ;;  %v3861_v9 = vadd.f32 %v5739_v18, %v7072_v6  ;;  %v5852_v2 = vpop.f32.mrf.mxu1 }
 0x2b4   : > { %v5741_v43 = vpop.f32.mrf.mxu0 }
 0x2b5   : > { %v4163_v56 = vsel %vm4099_vm15, %v4017_v44, %v4131_v7  ;;  %v4022_v59 = vadd.f32 %v5851_v24, %v3861_v9  ;;  %v5742_v34 = vadd.f32 %v5741_v43, %v5740_v16  ;;  %v5853_v15 = vpop.f32.mrf.mxu1 }
 0x2b6   : > { %v4944_v5 = vpack.c.bf16 %v4163_v56, %v4162_v61  ;;  %v5743_v53 = vpop.f32.mrf.mxu0  ;;  %v5854_v23 = vadd.f32 %v5853_v15, %v5852_v2 }
 0x2b7   : > { %v3864_v38 = vadd.f32 %v5742_v34, %v7075_v31  ;;  %v5855_v30 = vpop.f32.mrf.mxu1  ;;  %v4132_v17 = vmul.f32 0.2, %v4022_v59  ;;  %vm4100_vm0 = vcmp.ge.f32.partialorder %v4022_v59, 0.0 }
 0x2b8   : > { %4992 = vst [vmem:[%s7126_s9 + $0x38] sm:$0xff] %v4944_v5   ;;  %v5744_v45 = vpop.f32.mrf.mxu0 }
 0x2b9   : > { %v4025_v29 = vadd.f32 %v5854_v23, %v3864_v38  ;;  %v5745_v33 = vadd.f32 %v5744_v45, %v5743_v53  ;;  %v5856_v6 = vpop.f32.mrf.mxu1  ;;  %v4164_v10 = vsel %vm4100_vm0, %v4022_v59, %v4132_v17 }
 0x2ba   : > { %v5746_v8 = vpop.f32.mrf.mxu0  ;;  %v5857_v27 = vadd.f32 %v5856_v6, %v5855_v30 }
 0x2bb   : > { %vm4101_vm1 = vcmp.ge.f32.partialorder %v4025_v29, 0.0  ;;  %v4133_v42 = vmul.f32 0.2, %v4025_v29  ;;  %v3869_v55 = vadd.f32 %v5745_v33, %v7078_v58  ;;  %v5858_v46 = vpop.f32.mrf.mxu1 }
 0x2bc   : > { %v5747_v51 = vpop.f32.mrf.mxu0 }
 0x2bd   : > { %v4165_v31 = vsel %vm4101_vm1, %v4025_v29, %v4133_v42  ;;  %v4030_v60 = vadd.f32 %v5857_v27, %v3869_v55  ;;  %v5748_v19 = vadd.f32 %v5747_v51, %v5746_v8  ;;  %v5859_v26 = vpop.f32.mrf.mxu1 }
 0x2be   : > { %v4949_v39 = vpack.c.bf16 %v4165_v31, %v4164_v10  ;;  %v5749_v22 = vpop.f32.mrf.mxu0  ;;  %v5860_v25 = vadd.f32 %v5859_v26, %v5858_v46 }
 0x2bf   : > { %v3872_v35 = vadd.f32 %v5748_v19, %v7081_v52  ;;  %v5861_v3 = vpop.f32.mrf.mxu1  ;;  %v4134_v28 = vmul.f32 0.2, %v4030_v60  ;;  %vm4102_vm2 = vcmp.ge.f32.partialorder %v4030_v60, 0.0 }
 0x2c0   : > { %4993 = vst [vmem:[%s7126_s9 + $0x40] sm:$0xff] %v4949_v39   ;;  %v5750_v11 = vpop.f32.mrf.mxu0 }
 0x2c1   : > { %v4033_v48 = vadd.f32 %v5860_v25, %v3872_v35  ;;  %v5751_v0 = vadd.f32 %v5750_v11, %v5749_v22  ;;  %v5862_v58 = vpop.f32.mrf.mxu1  ;;  %v4166_v44 = vsel %vm4102_vm2, %v4030_v60, %v4134_v28 }
 0x2c2   : > { %v5752_v57 = vpop.f32.mrf.mxu0  ;;  %v5863_v20 = vadd.f32 %v5862_v58, %v5861_v3 }
 0x2c3   : > { %vm4103_vm3 = vcmp.ge.f32.partialorder %v4033_v48, 0.0  ;;  %v4135_v54 = vmul.f32 0.2, %v4033_v48  ;;  %v3877_v47 = vadd.f32 %v5751_v0, %v7084_v21  ;;  %v5864_v1 = vpop.f32.mrf.mxu1 }
 0x2c4   : > { %v5753_v36 = vpop.f32.mrf.mxu0 }
 0x2c5   : > { %v4167_v52 = vsel %vm4103_vm3, %v4033_v48, %v4135_v54  ;;  %v4038_v18 = vadd.f32 %v5863_v20, %v3877_v47  ;;  %v5754_v49 = vadd.f32 %v5753_v36, %v5752_v57  ;;  %v5865_v16 = vpop.f32.mrf.mxu1 }
 0x2c6   : > { %v4954_v7 = vpack.c.bf16 %v4167_v52, %v4166_v44  ;;  %v5755_v9 = vpop.f32.mrf.mxu0  ;;  %v5866_v2 = vadd.f32 %v5865_v16, %v5864_v1 }
 0x2c7   : > { %v3880_v24 = vadd.f32 %v5754_v49, %v7087_v14  ;;  %v5867_v43 = vpop.f32.mrf.mxu1  ;;  %v4136_v56 = vmul.f32 0.2, %v4038_v18  ;;  %vm4104_vm4 = vcmp.ge.f32.partialorder %v4038_v18, 0.0 }
 0x2c8   : > { %4994 = vst [vmem:[%s7126_s9 + $0x48] sm:$0xff] %v4954_v7   ;;  %v5756_v61 = vpop.f32.mrf.mxu0 }
 0x2c9   : > { %v4041_v59 = vadd.f32 %v5866_v2, %v3880_v24  ;;  %v5757_v34 = vadd.f32 %v5756_v61, %v5755_v9  ;;  %v5868_v21 = vpop.f32.mrf.mxu1  ;;  %v4168_v45 = vsel %vm4104_vm4, %v4038_v18, %v4136_v56 }
 0x2ca   : > { %v5758_v15 = vpop.f32.mrf.mxu0  ;;  %v5869_v38 = vadd.f32 %v5868_v21, %v5867_v43 }
 0x2cb   : > { %vm4105_vm5 = vcmp.ge.f32.partialorder %v4041_v59, 0.0  ;;  %v4137_v5 = vmul.f32 0.2, %v4041_v59  ;;  %v3885_v53 = vadd.f32 %v5757_v34, %v7090_v12  ;;  %v5870_v23 = vpop.f32.mrf.mxu1 }
 0x2cc   : > { %v5759_v30 = vpop.f32.mrf.mxu0 }
 0x2cd   : > { %v4169_v14 = vsel %vm4105_vm5, %v4041_v59, %v4137_v5  ;;  %v4046_v17 = vadd.f32 %v5869_v38, %v3885_v53  ;;  %v5760_v29 = vadd.f32 %v5759_v30, %v5758_v15  ;;  %v5871_v33 = vpop.f32.mrf.mxu1 }
 0x2ce   : > { %v4959_v6 = vpack.c.bf16 %v4169_v14, %v4168_v45  ;;  %v5761_v8 = vpop.f32.mrf.mxu0  ;;  %v5872_v55 = vadd.f32 %v5871_v33, %v5870_v23 }
 0x2cf   : > { %v3888_v42 = vadd.f32 %v5760_v29, %v7093_v40  ;;  %v5873_v27 = vpop.f32.mrf.mxu1  ;;  %v4138_v51 = vmul.f32 0.2, %v4046_v17  ;;  %vm4106_vm6 = vcmp.ge.f32.partialorder %v4046_v17, 0.0 }
 0x2d0   : > { %4995 = vst [vmem:[%s7126_s9 + $0x50] sm:$0xff] %v4959_v6   ;;  %v5762_v46 = vpop.f32.mrf.mxu0 }
 0x2d1   : > { %v4049_v10 = vadd.f32 %v5872_v55, %v3888_v42  ;;  %v5763_v31 = vadd.f32 %v5762_v46, %v5761_v8  ;;  %v5874_v12 = vpop.f32.mrf.mxu1  ;;  %v4170_v25 = vsel %vm4106_vm6, %v4046_v17, %v4138_v51 }
 0x2d2   : > { %v5764_v60 = vpop.f32.mrf.mxu0  ;;  %v5875_v39 = vadd.f32 %v5874_v12, %v5873_v27 }
 0x2d3   : > { %vm4107_vm7 = vcmp.ge.f32.partialorder %v4049_v10, 0.0  ;;  %v4139_v19 = vmul.f32 0.2, %v4049_v10  ;;  %v3893_v26 = vadd.f32 %v5763_v31, %v7096_v50  ;;  %v5876_v22 = vpop.f32.mrf.mxu1 }
 0x2d4   : > { %v5765_v35 = vpop.f32.mrf.mxu0 }
 0x2d5   : > { %v4171_v40 = vsel %vm4107_vm7, %v4049_v10, %v4139_v19  ;;  %v4054_v3 = vadd.f32 %v5875_v39, %v3893_v26  ;;  %v5766_v11 = vadd.f32 %v5765_v35, %v5764_v60  ;;  %v5877_v28 = vpop.f32.mrf.mxu1 }
 0x2d6   : > { %v4964_v48 = vpack.c.bf16 %v4171_v40, %v4170_v25  ;;  %v5767_v0 = vpop.f32.mrf.mxu0  ;;  %v5878_v57 = vadd.f32 %v5877_v28, %v5876_v22 }
 0x2d7   : > { %v3896_v58 = vadd.f32 %v5766_v11, %v7099_v4  ;;  %v5879_v54 = vpop.f32.mrf.mxu1  ;;  %v4140_v20 = vmul.f32 0.2, %v4054_v3  ;;  %vm4108_vm8 = vcmp.ge.f32.partialorder %v4054_v3, 0.0 }
 0x2d8   : > { %4996 = vst [vmem:[%s7126_s9 + $0x58] sm:$0xff] %v4964_v48   ;;  %v5768_v47 = vpop.f32.mrf.mxu0 }
 0x2d9   : > { %v4057_v1 = vadd.f32 %v5878_v57, %v3896_v58  ;;  %v5769_v36 = vadd.f32 %v5768_v47, %v5767_v0  ;;  %v5880_v50 = vpop.f32.mrf.mxu1  ;;  %v4172_v9 = vsel %vm4108_vm8, %v4054_v3, %v4140_v20 }
 0x2da   : > { %v5770_v44 = vpop.f32.mrf.mxu0  ;;  %v5881_v49 = vadd.f32 %v5880_v50, %v5879_v54 }
 0x2db   : > { %vm4109_vm9 = vcmp.ge.f32.partialorder %v4057_v1, 0.0  ;;  %v4141_v52 = vmul.f32 0.2, %v4057_v1  ;;  %v3901_v18 = vadd.f32 %v5769_v36, %v7102_v13  ;;  %v5882_v16 = vpop.f32.mrf.mxu1 }
 0x2dc   : > { %v5771_v7 = vpop.f32.mrf.mxu0 }
 0x2dd   : > { %v4173_v4 = vsel %vm4109_vm9, %v4057_v1, %v4141_v52  ;;  %v4062_v24 = vadd.f32 %v5881_v49, %v3901_v18  ;;  %v5772_v2 = vadd.f32 %v5771_v7, %v5770_v44  ;;  %v5883_v43 = vpop.f32.mrf.mxu1 }
 0x2de   : > { %v4969_v61 = vpack.c.bf16 %v4173_v4, %v4172_v9  ;;  %v5773_v56 = vpop.f32.mrf.mxu0  ;;  %v5884_v34 = vadd.f32 %v5883_v43, %v5882_v16 }
 0x2df   : > { %v3904_v59 = vadd.f32 %v5772_v2, %v7105_v32  ;;  %v5885_v21 = vpop.f32.mrf.mxu1  ;;  %v4142_v5 = vmul.f32 0.2, %v4062_v24  ;;  %vm4110_vm10 = vcmp.ge.f32.partialorder %v4062_v24, 0.0 }
 0x2e0   : > { %4997 = vst [vmem:[%s7126_s9 + $0x60] sm:$0xff] %v4969_v61   ;;  %v5774_v15 = vpop.f32.mrf.mxu0 }
 0x2e1   : > { %v4065_v53 = vadd.f32 %v5884_v34, %v3904_v59  ;;  %v5775_v38 = vadd.f32 %v5774_v15, %v5773_v56  ;;  %v5886_v13 = vpop.f32.mrf.mxu1  ;;  %v4174_v33 = vsel %vm4110_vm10, %v4062_v24, %v4142_v5 }
 0x2e2   : > { %v5776_v23 = vpop.f32.mrf.mxu0  ;;  %v5887_v14 = vadd.f32 %v5886_v13, %v5885_v21 }
 0x2e3   : > { %vm4111_vm11 = vcmp.ge.f32.partialorder %v4065_v53, 0.0  ;;  %v4143_v30 = vmul.f32 0.2, %v4065_v53  ;;  %v3909_v45 = vadd.f32 %v5775_v38, %v7108_v37  ;;  %v5888_v17 = vpop.f32.mrf.mxu1 }
 0x2e4   : > { %v5777_v29 = vpop.f32.mrf.mxu0 }
 0x2e5   : > { %v4175_v32 = vsel %vm4111_vm11, %v4065_v53, %v4143_v30  ;;  %v4070_v6 = vadd.f32 %v5887_v14, %v3909_v45  ;;  %v5778_v8 = vadd.f32 %v5777_v29, %v5776_v23  ;;  %v5889_v42 = vpop.f32.mrf.mxu1 }
 0x2e6   : > { %v4974_v55 = vpack.c.bf16 %v4175_v32, %v4174_v33  ;;  %v5779_v27 = vpop.f32.mrf.mxu0  ;;  %v5890_v51 = vadd.f32 %v5889_v42, %v5888_v17 }
 0x2e7   : > { %v3912_v46 = vadd.f32 %v5778_v8, %v7111_v63  ;;  %v5891_v10 = vpop.f32.mrf.mxu1  ;;  %v4144_v12 = vmul.f32 0.2, %v4070_v6  ;;  %vm4112_vm12 = vcmp.ge.f32.partialorder %v4070_v6, 0.0 }
 0x2e8   : > { %4998 = vst [vmem:[%s7126_s9 + $0x68] sm:$0xff] %v4974_v55   ;;  %v5780_v31 = vpop.f32.mrf.mxu0 }
 0x2e9   : > { %v4073_v60 = vadd.f32 %v5890_v51, %v3912_v46  ;;  %v5781_v19 = vadd.f32 %v5780_v31, %v5779_v27  ;;  %v5892_v37 = vpop.f32.mrf.mxu1  ;;  %v4176_v3 = vsel %vm4112_vm12, %v4070_v6, %v4144_v12 }
 0x2ea   : > { %v5782_v26 = vpop.f32.mrf.mxu0  ;;  %v5893_v35 = vadd.f32 %v5892_v37, %v5891_v10 }
 0x2eb   : > { %vm4113_vm13 = vcmp.ge.f32.partialorder %v4073_v60, 0.0  ;;  %v4145_v39 = vmul.f32 0.2, %v4073_v60  ;;  %v3917_v22 = vadd.f32 %v5781_v19, %v7114_v62  ;;  %v5894_v25 = vpop.f32.mrf.mxu1 }
 0x2ec   : > { %v5783_v40 = vpop.f32.mrf.mxu0 }
 0x2ed   : > { %v4177_v63 = vsel %vm4113_vm13, %v4073_v60, %v4145_v39  ;;  %v4078_v11 = vadd.f32 %v5893_v35, %v3917_v22  ;;  %v5784_v28 = vadd.f32 %v5783_v40, %v5782_v26  ;;  %v5895_v48 = vpop.f32.mrf.mxu1 }
 0x2ee   : > { %v4979_v0 = vpack.c.bf16 %v4177_v63, %v4176_v3  ;;  %v5896_v57 = vadd.f32 %v5895_v48, %v5894_v25 }
 0x2ef   : > { %v3920_v58 = vadd.f32 %v5784_v28, %v7117_v41  ;;  %v4146_v54 = vmul.f32 0.2, %v4078_v11  ;;  %vm4114_vm14 = vcmp.ge.f32.partialorder %v4078_v11, 0.0 }
 0x2f0   : > { %4999 = vst [vmem:[%s7126_s9 + $0x70] sm:$0xff] %v4979_v0  }
 0x2f1   : > { %v4081_v47 = vadd.f32 %v5896_v57, %v3920_v58  ;;  %v4178_v62 = vsel %vm4114_vm14, %v4078_v11, %v4146_v54 }
 0x2f3   : > { %vm4115_vm15 = vcmp.ge.f32.partialorder %v4081_v47, 0.0  ;;  %v4147_v20 = vmul.f32 0.2, %v4081_v47 }
 0x2f5   : > { %v4179_v1 = vsel %vm4115_vm15, %v4081_v47, %v4147_v20 }
 0x2f6   : > { %v4984_v36 = vpack.c.bf16 %v4179_v1, %v4178_v62 }
 0x2f8   : > { %5000 = vst [vmem:[%s7126_s9 + $0x78] sm:$0xff] %v4984_v36  }
 0x2f9 PF: > { %s13_s14 = sadd.s32 1, %s6071_s14   ;;  %s7186_s12 = smov %s6067_s13 }
 0x2fa   : > { %p10_p5 = scmp.ge.s32.totalorder %s13_s14, 4   ;;  %s7187_s13 = smov %s7189_s15 }
 0x2fc   :  { %12 = sbr.rel (!%p10_p5) target bundleno = 2 (0x2), region = 68 }

// kernel: discriminator_forward.5
= control target key start
LH: loop header
LB: loop body
LE: loop exit
PB: predicated region body
PF: predicated region fallthrough
CT: control target
= control target key end

     0   :  { %s6060_s1 = inlined_call_operand.vmem [shape: bf16[2048,256], index: 1, kind: input, shape index: {}]   ;;  %s6061_s0 = inlined_call_operand.vmem [shape: bf16[128,2048], index: 0, kind: input, shape index: {}]   ;;  %s6062_s2 = inlined_call_operand.vmem [shape: f32[1,256], index: 2, kind: input, shape index: {}]   ;;  %s6063_s3 = inlined_call_operand.vmem [shape: bf16[64,256], index: 3, kind: input, shape index: {}]   ;;  %s6064_s4 = inlined_call_operand.<no memory space> [shape: f32[1,1], index: 4, kind: input, shape index: {}]   ;;  %s6065_s5 = inlined_call_operand.vmem [shape: f32[2,128], index: 5, kind: output, shape index: {}]  }
   0x1   :  { %v3883_v0 = vld [vmem:[%s6060_s1 + $0x74] ss:$8 sps:$4 sm:$0xff]   ;;  %v3887_v2 = vld [vmem:[%s6060_s1 + $0x70] ss:$8 sps:$4 sm:$0xff]   ;;  %v3889_v4 = vld [vmem:[%s6060_s1 + $0x64] ss:$8 sps:$4 sm:$0xff]  }
   0x2   :  { %v3885_v1 = vld [vmem:[%s6060_s1 + $0x174] ss:$8 sps:$4 sm:$0xff]   ;;  %2338 = vmatprep.subr.bf16.mxu0 %v3883_v0  ;;  %v3888_v3 = vld [vmem:[%s6060_s1 + $0x170] ss:$8 sps:$4 sm:$0xff]   ;;  %v3891_v5 = vld [vmem:[%s6060_s1 + $0x164] ss:$8 sps:$4 sm:$0xff]  }
   0x3   :  { %2451 = vmatprep.subr.bf16.mxu1 %v3885_v1  ;;  %2339 = vmatpush1.bf16.msra.mxu0 %v3887_v2  ;;  %v3893_v6 = vld [vmem:[%s6060_s1 + $0x60] ss:$8 sps:$4 sm:$0xff]   ;;  %v3895_v8 = vld [vmem:[%s6060_s1 + $0x54] ss:$8 sps:$4 sm:$0xff]   ;;  %v3899_v10 = vld [vmem:[%s6060_s1 + $0x50] ss:$8 sps:$4 sm:$0xff]  }
   0x4   :  { %2452 = vmatpush1.bf16.msra.mxu1 %v3888_v3  ;;  %2340 = vmatprep.subr.bf16.mxu0 %v3889_v4  ;;  %v3894_v7 = vld [vmem:[%s6060_s1 + $0x160] ss:$8 sps:$4 sm:$0xff]   ;;  %v3897_v9 = vld [vmem:[%s6060_s1 + $0x154] ss:$8 sps:$4 sm:$0xff]   ;;  %v3900_v11 = vld [vmem:[%s6060_s1 + $0x150] ss:$8 sps:$4 sm:$0xff]  }
   0x5   :  { %2453 = vmatprep.subr.bf16.mxu1 %v3891_v5  ;;  %v3901_v12 = vld [vmem:[%s6060_s1 + $0x44] ss:$8 sps:$4 sm:$0xff]   ;;  %v3905_v14 = vld [vmem:[%s6060_s1 + $0x40] ss:$8 sps:$4 sm:$0xff]   ;;  %v3907_v16 = vld [vmem:[%s6060_s1 + $0x34] ss:$8 sps:$4 sm:$0xff]  }
   0x6   :  { %v3903_v13 = vld [vmem:[%s6060_s1 + $0x144] ss:$8 sps:$4 sm:$0xff]   ;;  %v3906_v15 = vld [vmem:[%s6060_s1 + $0x140] ss:$8 sps:$4 sm:$0xff]   ;;  %v3909_v17 = vld [vmem:[%s6060_s1 + $0x134] ss:$8 sps:$4 sm:$0xff]  }
   0x7   :  { %2341 = vmatpush1.bf16.msra.mxu0 %v3893_v6  ;;  %v3911_v18 = vld [vmem:[%s6060_s1 + $0x30] ss:$8 sps:$4 sm:$0xff]   ;;  %v3913_v20 = vld [vmem:[%s6060_s1 + $0x24] ss:$8 sps:$4 sm:$0xff]   ;;  %v3917_v22 = vld [vmem:[%s6060_s1 + $0x20] ss:$8 sps:$4 sm:$0xff]  }
   0x8   :  { %2454 = vmatpush1.bf16.msra.mxu1 %v3894_v7  ;;  %2342 = vmatprep.subr.bf16.mxu0 %v3895_v8  ;;  %v3912_v19 = vld [vmem:[%s6060_s1 + $0x130] ss:$8 sps:$4 sm:$0xff]   ;;  %v3915_v21 = vld [vmem:[%s6060_s1 + $0x124] ss:$8 sps:$4 sm:$0xff]   ;;  %v3918_v23 = vld [vmem:[%s6060_s1 + $0x120] ss:$8 sps:$4 sm:$0xff]  }
   0x9   :  { %2455 = vmatprep.subr.bf16.mxu1 %v3897_v9  ;;  %v3919_v24 = vld [vmem:[%s6060_s1 + $0x14] ss:$8 sps:$4 sm:$0xff]   ;;  %v3923_v26 = vld [vmem:[%s6060_s1 + $0x10] ss:$8 sps:$4 sm:$0xff]   ;;  %v3925_v28 = vld [vmem:[%s6060_s1 + $0x4] ss:$8 sps:$4 sm:$0xff]  }
   0xa   :  { %v3921_v25 = vld [vmem:[%s6060_s1 + $0x114] ss:$8 sps:$4 sm:$0xff]   ;;  %v3924_v27 = vld [vmem:[%s6060_s1 + $0x110] ss:$8 sps:$4 sm:$0xff]   ;;  %v3927_v29 = vld [vmem:[%s6060_s1 + $0x104] ss:$8 sps:$4 sm:$0xff]  }
   0xb   :  { %2343 = vmatpush1.bf16.msra.mxu0 %v3899_v10  ;;  %v3929_v30 = vld [vmem:[%s6060_s1] ss:$8 sps:$4 sm:$0xff]   ;;  %v3931_v32 = vld [vmem:[%s6060_s1 + $0xf4] ss:$8 sps:$4 sm:$0xff]   ;;  %v3935_v34 = vld [vmem:[%s6060_s1 + $0xf0] ss:$8 sps:$4 sm:$0xff]  }
   0xc   :  { %2456 = vmatpush1.bf16.msra.mxu1 %v3900_v11  ;;  %2344 = vmatprep.subr.bf16.mxu0 %v3901_v12  ;;  %v3930_v31 = vld [vmem:[%s6060_s1 + $0x100] ss:$8 sps:$4 sm:$0xff]   ;;  %v3933_v33 = vld [vmem:[%s6060_s1 + $0x1f4] ss:$8 sps:$4 sm:$0xff]   ;;  %v3936_v35 = vld [vmem:[%s6060_s1 + $0x1f0] ss:$8 sps:$4 sm:$0xff]  }
   0xd   :  { %2457 = vmatprep.subr.bf16.mxu1 %v3903_v13  ;;  %v3937_v36 = vld [vmem:[%s6060_s1 + $0xe4] ss:$8 sps:$4 sm:$0xff]   ;;  %v3941_v38 = vld [vmem:[%s6060_s1 + $0xe0] ss:$8 sps:$4 sm:$0xff]   ;;  %v3943_v40 = vld [vmem:[%s6060_s1 + $0xd4] ss:$8 sps:$4 sm:$0xff]  }
   0xe   :  { %v3939_v37 = vld [vmem:[%s6060_s1 + $0x1e4] ss:$8 sps:$4 sm:$0xff]   ;;  %v3942_v39 = vld [vmem:[%s6060_s1 + $0x1e0] ss:$8 sps:$4 sm:$0xff]   ;;  %v3945_v41 = vld [vmem:[%s6060_s1 + $0x1d4] ss:$8 sps:$4 sm:$0xff]  }
   0xf   :  { %2345 = vmatpush1.bf16.msra.mxu0 %v3905_v14  ;;  %v3947_v42 = vld [vmem:[%s6060_s1 + $0xd0] ss:$8 sps:$4 sm:$0xff]   ;;  %v3949_v44 = vld [vmem:[%s6060_s1 + $0xc4] ss:$8 sps:$4 sm:$0xff]   ;;  %v3953_v46 = vld [vmem:[%s6060_s1 + $0xc0] ss:$8 sps:$4 sm:$0xff]  }
  0x10   :  { %2458 = vmatpush1.bf16.msra.mxu1 %v3906_v15  ;;  %2346 = vmatprep.subr.bf16.mxu0 %v3907_v16  ;;  %v3948_v43 = vld [vmem:[%s6060_s1 + $0x1d0] ss:$8 sps:$4 sm:$0xff]   ;;  %v3951_v45 = vld [vmem:[%s6060_s1 + $0x1c4] ss:$8 sps:$4 sm:$0xff]   ;;  %v3954_v47 = vld [vmem:[%s6060_s1 + $0x1c0] ss:$8 sps:$4 sm:$0xff]  }
  0x11   :  { %2459 = vmatprep.subr.bf16.mxu1 %v3909_v17  ;;  %v22_v48 = vld [vmem:[%s6061_s0] sm:$0xff]  ;;  %v23_v50 = vld [vmem:[%s6061_s0 + $0x8] sm:$0xff]  ;;  %v3955_v52 = vld [vmem:[%s6060_s1 + $0xb4] ss:$8 sps:$4 sm:$0xff]  }
  0x12   :  { %v30_v49 = vld [vmem:[%s6061_s0 + $0x40] sm:$0xff]  ;;  %v31_v51 = vld [vmem:[%s6061_s0 + $0x48] sm:$0xff]  ;;  %v3957_v54 = vld [vmem:[%s6060_s1 + $0x1b4] ss:$8 sps:$4 sm:$0xff]  }
  0x13   :  { %2347 = vmatpush1.bf16.msra.mxu0 %v3911_v18  ;;  %v3497_v53 = vcombine.high %v22_v48, %v30_v49  ;;  %v3499_v55 = vcombine.high %v23_v50, %v31_v51  ;;  %v3959_v56 = vld [vmem:[%s6060_s1 + $0xb0] ss:$8 sps:$4 sm:$0xff]   ;;  %v3961_v58 = vld [vmem:[%s6060_s1 + $0xa4] ss:$8 sps:$4 sm:$0xff]   ;;  %v3965_v60 = vld [vmem:[%s6060_s1 + $0xa0] ss:$8 sps:$4 sm:$0xff]   ;;  %v3496_v11 = vcombine.low %v22_v48, %v30_v49  ;;  %v3498_v12 = vcombine.low %v23_v50, %v31_v51 }
  0x14   :  { %2460 = vmatpush1.bf16.msra.mxu1 %v3912_v19  ;;  %2348 = vmatprep.subr.bf16.mxu0 %v3913_v20  ;;  %v3960_v57 = vld [vmem:[%s6060_s1 + $0x1b0] ss:$8 sps:$4 sm:$0xff]   ;;  %v3963_v59 = vld [vmem:[%s6060_s1 + $0x1a4] ss:$8 sps:$4 sm:$0xff]   ;;  %v3966_v61 = vld [vmem:[%s6060_s1 + $0x1a0] ss:$8 sps:$4 sm:$0xff]  }
  0x15   :  { %2461 = vmatprep.subr.bf16.mxu1 %v3915_v21  ;;  %2370 = vmatprep.mubr.bf16.mxu0 %v3497_v53  ;;  %v3967_v62 = vld [vmem:[%s6060_s1 + $0x94] ss:$8 sps:$4 sm:$0xff]   ;;  %v3971_v0 = vld [vmem:[%s6060_s1 + $0x90] ss:$8 sps:$4 sm:$0xff]   ;;  %v3973_v2 = vld [vmem:[%s6060_s1 + $0x84] ss:$8 sps:$4 sm:$0xff]  }
  0x16   :  { %2483 = vmatprep.mubr.bf16.mxu1 %v3499_v55  ;;  %v3969_v63 = vld [vmem:[%s6060_s1 + $0x194] ss:$8 sps:$4 sm:$0xff]   ;;  %v3972_v1 = vld [vmem:[%s6060_s1 + $0x190] ss:$8 sps:$4 sm:$0xff]   ;;  %v3975_v3 = vld [vmem:[%s6060_s1 + $0x184] ss:$8 sps:$4 sm:$0xff]  }
  0x17   :  { %2349 = vmatpush1.bf16.msra.mxu0 %v3917_v22  ;;  %v3977_v4 = vld [vmem:[%s6060_s1 + $0x80] ss:$8 sps:$4 sm:$0xff]   ;;  %v3981_v6 = vld [vmem:[%s6060_s1 + $0x274] ss:$8 sps:$4 sm:$0xff]   ;;  %v3979_v8 = vld [vmem:[%s6060_s1 + $0x270] ss:$8 sps:$4 sm:$0xff]  }
  0x18   :  { %2462 = vmatpush1.bf16.msra.mxu1 %v3918_v23  ;;  %2350 = vmatprep.subr.bf16.mxu0 %v3919_v24  ;;  %v3978_v5 = vld [vmem:[%s6060_s1 + $0x180] ss:$8 sps:$4 sm:$0xff]   ;;  %v3984_v7 = vld [vmem:[%s6060_s1 + $0x374] ss:$8 sps:$4 sm:$0xff]   ;;  %v3982_v9 = vld [vmem:[%s6060_s1 + $0x370] ss:$8 sps:$4 sm:$0xff]  }
  0x19   :  { %2463 = vmatprep.subr.bf16.mxu1 %v3921_v25  ;;  %v38_v10 = vld [vmem:[%s6061_s0 + $0x80] sm:$0xff]  ;;  %v39_v14 = vld [vmem:[%s6061_s0 + $0x88] sm:$0xff]  ;;  %v3993_v22 = vld [vmem:[%s6060_s1 + $0x254] ss:$8 sps:$4 sm:$0xff]  }
  0x1a   :  { %v46_v13 = vld [vmem:[%s6061_s0 + $0xc0] sm:$0xff]  ;;  %v47_v15 = vld [vmem:[%s6061_s0 + $0xc8] sm:$0xff]  ;;  %v3996_v23 = vld [vmem:[%s6060_s1 + $0x354] ss:$8 sps:$4 sm:$0xff]  }
  0x1b   :  { %2351 = vmatpush1.bf16.msra.mxu0 %v3923_v26  ;;  %v3987_v16 = vld [vmem:[%s6060_s1 + $0x264] ss:$8 sps:$4 sm:$0xff]   ;;  %v3513_v18 = vcombine.high %v38_v10, %v46_v13  ;;  %v3515_v19 = vcombine.high %v39_v14, %v47_v15  ;;  %v3985_v20 = vld [vmem:[%s6060_s1 + $0x260] ss:$8 sps:$4 sm:$0xff]   ;;  %v3991_v24 = vld [vmem:[%s6060_s1 + $0x250] ss:$8 sps:$4 sm:$0xff]  }
  0x1c   :  { %2464 = vmatpush1.bf16.msra.mxu1 %v3924_v27  ;;  %2352 = vmatprep.subr.bf16.mxu0 %v3925_v28  ;;  %v3990_v17 = vld [vmem:[%s6060_s1 + $0x364] ss:$8 sps:$4 sm:$0xff]   ;;  %v3988_v21 = vld [vmem:[%s6060_s1 + $0x360] ss:$8 sps:$4 sm:$0xff]   ;;  %v3994_v25 = vld [vmem:[%s6060_s1 + $0x350] ss:$8 sps:$4 sm:$0xff]   ;;  %v3512_v28 = vcombine.low %v38_v10, %v46_v13 }
  0x1d   :  { %2465 = vmatprep.subr.bf16.mxu1 %v3927_v29  ;;  %v54_v26 = vld [vmem:[%s6061_s0 + $0x100] sm:$0xff]  ;;  %v3514_v29 = vcombine.low %v39_v14, %v47_v15  ;;  %v4020_v55 = vld [vmem:[%s6060_s1 + $0x314] ss:$8 sps:$4 sm:$0xff]   ;;  %v111_v13 = vld [vmem:[%s6061_s0 + $0x2c8] sm:$0xff] }
  0x1e   :  { %v62_v27 = vld [vmem:[%s6061_s0 + $0x140] sm:$0xff]  ;;  %v4027_v14 = vld [vmem:[%s6060_s1 + $0x2f0] ss:$8 sps:$4 sm:$0xff]  }
  0x1f   :  { %2353 = vmatpush1.bf16.msra.mxu0 %v3929_v30  ;;  %v55_v30 = vld [vmem:[%s6061_s0 + $0x108] sm:$0xff]  ;;  %v4030_v15 = vld [vmem:[%s6060_s1 + $0x3f0] ss:$8 sps:$4 sm:$0xff]  }
  0x20   :  { %2466 = vmatpush1.bf16.msra.mxu1 %v3930_v31  ;;  %2354 = vmatprep.subr.bf16.mxu0 %v3931_v32  ;;  %v63_v31 = vld [vmem:[%s6061_s0 + $0x148] sm:$0xff] }
  0x21   :  { %2467 = vmatprep.subr.bf16.mxu1 %v3933_v33  ;;  %v3999_v32 = vld [vmem:[%s6060_s1 + $0x244] ss:$8 sps:$4 sm:$0xff]   ;;  %v4012_v53 = vld [vmem:[%s6060_s1 + $0x320] ss:$8 sps:$4 sm:$0xff]  }
  0x22   :  { %v4002_v33 = vld [vmem:[%s6060_s1 + $0x344] ss:$8 sps:$4 sm:$0xff]  }
  0x23   :  { %2355 = vmatpush2.bf16.msra.mxu0 %v3935_v34  ;;  %v3529_v34 = vcombine.high %v54_v26, %v62_v27  ;;  %v4011_v48 = vld [vmem:[%s6060_s1 + $0x224] ss:$8 sps:$4 sm:$0xff]  }
  0x24   :  { %2468 = vmatpush2.bf16.msra.mxu1 %v3936_v35  ;;  %2356 = vmatprep.subr.bf16.mxu0 %v3937_v36  ;;  %v3531_v35 = vcombine.high %v55_v30, %v63_v31  ;;  %v3997_v36 = vld [vmem:[%s6060_s1 + $0x240] ss:$8 sps:$4 sm:$0xff]   ;;  %v4014_v49 = vld [vmem:[%s6060_s1 + $0x324] ss:$8 sps:$4 sm:$0xff]  }
  0x25   :  { %2469 = vmatprep.subr.bf16.mxu1 %v3939_v37  ;;  %v4000_v37 = vld [vmem:[%s6060_s1 + $0x340] ss:$8 sps:$4 sm:$0xff]  }
  0x27   :  { %2357 = vmatpush2.bf16.msra.mxu0 %v3941_v38  ;;  %v4005_v38 = vld [vmem:[%s6060_s1 + $0x234] ss:$8 sps:$4 sm:$0xff]  }
  0x28   :  { %2470 = vmatpush2.bf16.msra.mxu1 %v3942_v39  ;;  %2358 = vmatprep.subr.bf16.mxu0 %v3943_v40  ;;  %v4008_v39 = vld [vmem:[%s6060_s1 + $0x334] ss:$8 sps:$4 sm:$0xff]   ;;  %v4003_v40 = vld [vmem:[%s6060_s1 + $0x230] ss:$8 sps:$4 sm:$0xff]  }
  0x29   :  { %2471 = vmatprep.subr.bf16.mxu1 %v3945_v41  ;;  %v4006_v41 = vld [vmem:[%s6060_s1 + $0x330] ss:$8 sps:$4 sm:$0xff]  }
  0x2b   :  { %2359 = vmatpush2.bf16.msra.mxu0 %v3947_v42  ;;  %v70_v42 = vld [vmem:[%s6061_s0 + $0x180] sm:$0xff] }
  0x2c   :  { %2472 = vmatpush2.bf16.msra.mxu1 %v3948_v43  ;;  %2360 = vmatprep.subr.bf16.mxu0 %v3949_v44  ;;  %v78_v43 = vld [vmem:[%s6061_s0 + $0x1c0] sm:$0xff]  ;;  %v3528_v44 = vcombine.low %v54_v26, %v62_v27 }
  0x2d   :  { %2473 = vmatprep.subr.bf16.mxu1 %v3951_v45  ;;  %v3530_v45 = vcombine.low %v55_v30, %v63_v31  ;;  %v3545_v50 = vcombine.high %v70_v42, %v78_v43  ;;  %v118_v26 = vld [vmem:[%s6061_s0 + $0x300] sm:$0xff]  ;;  %v119_v30 = vld [vmem:[%s6061_s0 + $0x308] sm:$0xff] }
  0x2e   :  { %v127_v31 = vld [vmem:[%s6061_s0 + $0x348] sm:$0xff] }
  0x2f   :  { %2361 = vmatpush2.bf16.msra.mxu0 %v3953_v46  ;;  %v71_v46 = vld [vmem:[%s6061_s0 + $0x188] sm:$0xff] }
  0x30   :  { %2474 = vmatpush2.bf16.msra.mxu1 %v3954_v47  ;;  %2362 = vmatprep.subr.bf16.mxu0 %v3955_v52  ;;  %v79_v47 = vld [vmem:[%s6061_s0 + $0x1c8] sm:$0xff] }
  0x31   :  { %2475 = vmatprep.subr.bf16.mxu1 %v3957_v54  ;;  %v3547_v51 = vcombine.high %v71_v46, %v79_v47  ;;  %v4009_v52 = vld [vmem:[%s6060_s1 + $0x220] ss:$8 sps:$4 sm:$0xff]   ;;  %v4017_v54 = vld [vmem:[%s6060_s1 + $0x214] ss:$8 sps:$4 sm:$0xff]  }
  0x33   :  { %2363 = vmatpush2.bf16.msra.mxu0 %v3959_v56  ;;  %v4015_v56 = vld [vmem:[%s6060_s1 + $0x210] ss:$8 sps:$4 sm:$0xff]  }
  0x34   :  { %2476 = vmatpush2.bf16.msra.mxu1 %v3960_v57  ;;  %2364 = vmatprep.subr.bf16.mxu0 %v3961_v58  ;;  %v86_v57 = vld [vmem:[%s6061_s0 + $0x200] sm:$0xff] }
  0x35   :  { %2477 = vmatprep.subr.bf16.mxu1 %v3963_v59  ;;  %v94_v58 = vld [vmem:[%s6061_s0 + $0x240] sm:$0xff]  ;;  %v3544_v59 = vcombine.low %v70_v42, %v78_v43 }
  0x36   :  { %v3560_v10 = vcombine.low %v86_v57, %v94_v58  ;;  %v134_v42 = vld [vmem:[%s6061_s0 + $0x380] sm:$0xff] }
  0x37   :  { %2365 = vmatpush2.bf16.msra.mxu0 %v3965_v60  ;;  %v3546_v60 = vcombine.low %v71_v46, %v79_v47  ;;  %v142_v43 = vld [vmem:[%s6061_s0 + $0x3c0] sm:$0xff]  ;;  %v135_v46 = vld [vmem:[%s6061_s0 + $0x388] sm:$0xff] }
  0x38   :  { %2478 = vmatpush2.bf16.msra.mxu1 %v3966_v61  ;;  %2366 = vmatprep.subr.bf16.mxu0 %v3967_v62  ;;  %v87_v61 = vld [vmem:[%s6061_s0 + $0x208] sm:$0xff] }
  0x39   :  { %2479 = vmatprep.subr.bf16.mxu1 %v3969_v63  ;;  %v95_v62 = vld [vmem:[%s6061_s0 + $0x248] sm:$0xff]  ;;  %v4018_v63 = vld [vmem:[%s6060_s1 + $0x310] ss:$8 sps:$4 sm:$0xff]  }
  0x3a   :  { %v143_v47 = vld [vmem:[%s6061_s0 + $0x3c8] sm:$0xff] }
  0x3b   :  { %2367 = vmatpush2.bf16.msra.mxu0 %v3971_v0  ;;  %v4023_v0 = vld [vmem:[%s6060_s1 + $0x204] ss:$8 sps:$4 sm:$0xff]  }
  0x3c   :  { %2480 = vmatpush2.bf16.msra.mxu1 %v3972_v1  ;;  %2368 = vmatprep.subr.bf16.mxu0 %v3973_v2  ;;  %v4026_v1 = vld [vmem:[%s6060_s1 + $0x304] ss:$8 sps:$4 sm:$0xff]   ;;  %v3561_v2 = vcombine.high %v86_v57, %v94_v58  ;;  %v4066_v57 = vld [vmem:[%s6060_s1 + $0x390] ss:$8 sps:$4 sm:$0xff]  }
  0x3d   :  { %2481 = vmatprep.subr.bf16.mxu1 %v3975_v3  ;;  %v3563_v3 = vcombine.high %v87_v61, %v95_v62  ;;  %v24_v58 = vld [vmem:[%s6061_s0 + $0x10] sm:$0xff] }
  0x3f   :  { %2369 = vmatpush2.bf16.msra.mxu0 %v3977_v4  ;;  %v4021_v4 = vld [vmem:[%s6060_s1 + $0x200] ss:$8 sps:$4 sm:$0xff]  }
  0x40   :  { %2482 = vmatpush2.bf16.msra.mxu1 %v3978_v5  ;;  %2564 = vmatprep.subr.bf16.mxu0 %v3981_v6  ;;  %v4024_v5 = vld [vmem:[%s6060_s1 + $0x300] ss:$8 sps:$4 sm:$0xff]   ;;  %v4029_v6 = vld [vmem:[%s6060_s1 + $0x2f4] ss:$8 sps:$4 sm:$0xff]  }
  0x41   :  { %2677 = vmatprep.subr.bf16.mxu1 %v3984_v7  ;;  %v4032_v7 = vld [vmem:[%s6060_s1 + $0x3f4] ss:$8 sps:$4 sm:$0xff]  }
  0x42   :  { %2371 = vmatmul.mubr.bf16.vlgmr.msra.gmra.mxu0 %v3496_v11  ;;  %v3562_v11 = vcombine.low %v87_v61, %v95_v62  ;;  %v3610_v61 = vcombine.low %v135_v46, %v143_v47  ;;  %v25_v62 = vld [vmem:[%s6061_s0 + $0x18] sm:$0xff] }
  0x43   :  { %2484 = vmatmul.mubr.bf16.vlgmr.msra.gmra.mxu1 %v3498_v12  ;;  %2565 = vmatpush1.bf16.msra.mxu0 %v3979_v8  ;;  %v102_v8 = vld [vmem:[%s6061_s0 + $0x280] sm:$0xff]  ;;  %v103_v12 = vld [vmem:[%s6061_s0 + $0x288] sm:$0xff] }
  0x44   :  { %2678 = vmatpush1.bf16.msra.mxu1 %v3982_v9  ;;  %2566 = vmatprep.subr.bf16.mxu0 %v3987_v16  ;;  %v110_v9 = vld [vmem:[%s6061_s0 + $0x2c0] sm:$0xff] }
  0x45   :  { %2679 = vmatprep.subr.bf16.mxu1 %v3990_v17  ;;  %2380 = vmatprep.mubr.bf16.mxu0 %v3513_v18  ;;  %v4035_v16 = vld [vmem:[%s6060_s1 + $0x2e4] ss:$8 sps:$4 sm:$0xff]   ;;  %v3577_v18 = vcombine.high %v102_v8, %v110_v9  ;;  %v3576_v27 = vcombine.low %v102_v8, %v110_v9  ;;  %v4075_v8 = vld [vmem:[%s6060_s1 + $0x470] ss:$8 sps:$4 sm:$0xff]  }
  0x46   :  { %2493 = vmatprep.mubr.bf16.mxu1 %v3515_v19  ;;  %v4038_v17 = vld [vmem:[%s6060_s1 + $0x3e4] ss:$8 sps:$4 sm:$0xff]   ;;  %v3579_v19 = vcombine.high %v103_v12, %v111_v13  ;;  %v40_v9 = vld [vmem:[%s6061_s0 + $0x90] sm:$0xff] }
  0x47   :  { %2567 = vmatpush1.bf16.msra.mxu0 %v3985_v20  ;;  %v4033_v20 = vld [vmem:[%s6060_s1 + $0x2e0] ss:$8 sps:$4 sm:$0xff]  }
  0x48   :  { %2680 = vmatpush1.bf16.msra.mxu1 %v3988_v21  ;;  %2568 = vmatprep.subr.bf16.mxu0 %v3993_v22  ;;  %v4036_v21 = vld [vmem:[%s6060_s1 + $0x3e0] ss:$8 sps:$4 sm:$0xff]   ;;  %v4041_v22 = vld [vmem:[%s6060_s1 + $0x2d4] ss:$8 sps:$4 sm:$0xff]  }
  0x49   :  { %2681 = vmatprep.subr.bf16.mxu1 %v3996_v23  ;;  %v4044_v23 = vld [vmem:[%s6060_s1 + $0x3d4] ss:$8 sps:$4 sm:$0xff]  }
  0x4a   :  { %2381 = vmatmul.mubr.bf16.gmra.mxu0 %v3512_v28  ;;  %v3578_v28 = vcombine.low %v103_v12, %v111_v13  ;;  %v41_v13 = vld [vmem:[%s6061_s0 + $0x98] sm:$0xff] }
  0x4b   :  { %2494 = vmatmul.mubr.bf16.gmra.mxu1 %v3514_v29  ;;  %2569 = vmatpush1.bf16.msra.mxu0 %v3991_v24  ;;  %v4039_v24 = vld [vmem:[%s6060_s1 + $0x2d0] ss:$8 sps:$4 sm:$0xff]   ;;  %v126_v29 = vld [vmem:[%s6061_s0 + $0x340] sm:$0xff] }
  0x4c   :  { %2682 = vmatpush1.bf16.msra.mxu1 %v3994_v25  ;;  %2570 = vmatprep.subr.bf16.mxu0 %v3999_v32  ;;  %v4042_v25 = vld [vmem:[%s6060_s1 + $0x3d0] ss:$8 sps:$4 sm:$0xff]   ;;  %v4047_v32 = vld [vmem:[%s6060_s1 + $0x2c4] ss:$8 sps:$4 sm:$0xff]  }
  0x4d   :  { %2683 = vmatprep.subr.bf16.mxu1 %v4002_v33  ;;  %2390 = vmatprep.mubr.bf16.mxu0 %v3529_v34  ;;  %v4050_v33 = vld [vmem:[%s6060_s1 + $0x3c4] ss:$8 sps:$4 sm:$0xff]   ;;  %v3593_v34 = vcombine.high %v118_v26, %v126_v29 }
  0x4e   :  { %2503 = vmatprep.mubr.bf16.mxu1 %v3531_v35  ;;  %v3595_v35 = vcombine.high %v119_v30, %v127_v31 }
  0x4f   :  { %2571 = vmatpush1.bf16.msra.mxu0 %v3997_v36  ;;  %v4045_v36 = vld [vmem:[%s6060_s1 + $0x2c0] ss:$8 sps:$4 sm:$0xff]  }
  0x50   :  { %2684 = vmatpush1.bf16.msra.mxu1 %v4000_v37  ;;  %2572 = vmatprep.subr.bf16.mxu0 %v4005_v38  ;;  %v4048_v37 = vld [vmem:[%s6060_s1 + $0x3c0] ss:$8 sps:$4 sm:$0xff]   ;;  %v4053_v38 = vld [vmem:[%s6060_s1 + $0x2b4] ss:$8 sps:$4 sm:$0xff]  }
  0x51   :  { %2685 = vmatprep.subr.bf16.mxu1 %v4008_v39  ;;  %v4056_v39 = vld [vmem:[%s6060_s1 + $0x3b4] ss:$8 sps:$4 sm:$0xff]  }
  0x52   :  { %2391 = vmatmul.mubr.bf16.gmra.mxu0 %v3528_v44  ;;  %v3592_v44 = vcombine.low %v118_v26, %v126_v29  ;;  %v65_v29 = vld [vmem:[%s6061_s0 + $0x158] sm:$0xff] }
  0x53   :  { %2504 = vmatmul.mubr.bf16.gmra.mxu1 %v3530_v45  ;;  %2573 = vmatpush1.bf16.msra.mxu0 %v4003_v40  ;;  %v4051_v40 = vld [vmem:[%s6060_s1 + $0x2b0] ss:$8 sps:$4 sm:$0xff]   ;;  %v3594_v45 = vcombine.low %v119_v30, %v127_v31 }
  0x54   :  { %2686 = vmatpush1.bf16.msra.mxu1 %v4006_v41  ;;  %2574 = vmatprep.subr.bf16.mxu0 %v4011_v48  ;;  %v4054_v41 = vld [vmem:[%s6060_s1 + $0x3b0] ss:$8 sps:$4 sm:$0xff]   ;;  %v4059_v48 = vld [vmem:[%s6060_s1 + $0x2a4] ss:$8 sps:$4 sm:$0xff]  }
  0x55   :  { %2687 = vmatprep.subr.bf16.mxu1 %v4014_v49  ;;  %2400 = vmatprep.mubr.bf16.mxu0 %v3545_v50  ;;  %v4062_v49 = vld [vmem:[%s6060_s1 + $0x3a4] ss:$8 sps:$4 sm:$0xff]   ;;  %v3609_v50 = vcombine.high %v134_v42, %v142_v43  ;;  %v4087_v30 = vld [vmem:[%s6060_s1 + $0x450] ss:$8 sps:$4 sm:$0xff]  }
  0x56   :  { %2513 = vmatprep.mubr.bf16.mxu1 %v3547_v51  ;;  %v3611_v51 = vcombine.high %v135_v46, %v143_v47  ;;  %v4090_v31 = vld [vmem:[%s6060_s1 + $0x550] ss:$8 sps:$4 sm:$0xff]  }
  0x57   :  { %2575 = vmatpush1.bf16.msra.mxu0 %v4009_v52  ;;  %v4057_v52 = vld [vmem:[%s6060_s1 + $0x2a0] ss:$8 sps:$4 sm:$0xff]   ;;  %v73_v46 = vld [vmem:[%s6061_s0 + $0x198] sm:$0xff] }
  0x58   :  { %2688 = vmatpush1.bf16.msra.mxu1 %v4012_v53  ;;  %2576 = vmatprep.subr.bf16.mxu0 %v4017_v54  ;;  %v4060_v53 = vld [vmem:[%s6060_s1 + $0x3a0] ss:$8 sps:$4 sm:$0xff]   ;;  %v4065_v54 = vld [vmem:[%s6060_s1 + $0x294] ss:$8 sps:$4 sm:$0xff]  }
  0x59   :  { %2689 = vmatprep.subr.bf16.mxu1 %v4020_v55  ;;  %v4068_v55 = vld [vmem:[%s6060_s1 + $0x394] ss:$8 sps:$4 sm:$0xff]  }
  0x5a   :  { %2401 = vmatmul.mubr.bf16.gmra.mxu0 %v3544_v59  ;;  %v32_v59 = vld [vmem:[%s6061_s0 + $0x50] sm:$0xff]  ;;  %v81_v47 = vld [vmem:[%s6061_s0 + $0x1d8] sm:$0xff] }
  0x5b   :  { %2514 = vmatmul.mubr.bf16.gmra.mxu1 %v3546_v60  ;;  %2577 = vmatpush1.bf16.msra.mxu0 %v4015_v56  ;;  %v4063_v56 = vld [vmem:[%s6060_s1 + $0x290] ss:$8 sps:$4 sm:$0xff]   ;;  %v3608_v60 = vcombine.low %v134_v42, %v142_v43 }
  0x5c   :  { %2690 = vmatpush1.bf16.msra.mxu1 %v4018_v63  ;;  %2578 = vmatprep.subr.bf16.mxu0 %v4023_v0  ;;  %v33_v63 = vld [vmem:[%s6061_s0 + $0x58] sm:$0xff]  ;;  %v4071_v0 = vld [vmem:[%s6060_s1 + $0x284] ss:$8 sps:$4 sm:$0xff]   ;;  %v72_v42 = vld [vmem:[%s6061_s0 + $0x190] sm:$0xff] }
  0x5d   :  { %2691 = vmatprep.subr.bf16.mxu1 %v4026_v1  ;;  %2410 = vmatprep.mubr.bf16.mxu0 %v3561_v2  ;;  %v4074_v1 = vld [vmem:[%s6060_s1 + $0x384] ss:$8 sps:$4 sm:$0xff]   ;;  %v3501_v2 = vcombine.high %v24_v58, %v32_v59  ;;  %v3502_v12 = vcombine.low %v25_v62, %v33_v63 }
  0x5e   :  { %2523 = vmatprep.mubr.bf16.mxu1 %v3563_v3  ;;  %v3503_v3 = vcombine.high %v25_v62, %v33_v63  ;;  %v89_v62 = vld [vmem:[%s6061_s0 + $0x218] sm:$0xff] }
  0x5f   :  { %2579 = vmatpush1.bf16.msra.mxu0 %v4021_v4  ;;  %v4069_v4 = vld [vmem:[%s6060_s1 + $0x280] ss:$8 sps:$4 sm:$0xff]   ;;  %v97_v63 = vld [vmem:[%s6061_s0 + $0x258] sm:$0xff] }
  0x60   :  { %2692 = vmatpush1.bf16.msra.mxu1 %v4024_v5  ;;  %2580 = vmatprep.subr.bf16.mxu0 %v4029_v6  ;;  %v4072_v5 = vld [vmem:[%s6060_s1 + $0x380] ss:$8 sps:$4 sm:$0xff]   ;;  %v4077_v6 = vld [vmem:[%s6060_s1 + $0x474] ss:$8 sps:$4 sm:$0xff]  }
  0x61   :  { %2693 = vmatprep.subr.bf16.mxu1 %v4032_v7  ;;  %v4080_v7 = vld [vmem:[%s6060_s1 + $0x574] ss:$8 sps:$4 sm:$0xff]  }
  0x62   :  { %2411 = vmatmul.mubr.bf16.gmra.mxu0 %v3560_v10  ;;  %v48_v10 = vld [vmem:[%s6061_s0 + $0xd0] sm:$0xff] }
  0x63   :  { %2524 = vmatmul.mubr.bf16.gmra.mxu1 %v3562_v11  ;;  %2581 = vmatpush2.bf16.msra.mxu0 %v4027_v14  ;;  %v3500_v11 = vcombine.low %v24_v58, %v32_v59  ;;  %v49_v14 = vld [vmem:[%s6061_s0 + $0xd8] sm:$0xff]  ;;  %v3516_v26 = vcombine.low %v40_v9, %v48_v10  ;;  %v88_v58 = vld [vmem:[%s6061_s0 + $0x210] sm:$0xff] }
  0x64   :  { %2694 = vmatpush2.bf16.msra.mxu1 %v4030_v15  ;;  %2582 = vmatprep.subr.bf16.mxu0 %v4035_v16  ;;  %v4078_v15 = vld [vmem:[%s6060_s1 + $0x570] ss:$8 sps:$4 sm:$0xff]   ;;  %v4083_v16 = vld [vmem:[%s6060_s1 + $0x464] ss:$8 sps:$4 sm:$0xff]  }
  0x65   :  { %2695 = vmatprep.subr.bf16.mxu1 %v4038_v17  ;;  %2420 = vmatprep.mubr.bf16.mxu0 %v3577_v18  ;;  %v4086_v17 = vld [vmem:[%s6060_s1 + $0x564] ss:$8 sps:$4 sm:$0xff]   ;;  %v3517_v18 = vcombine.high %v40_v9, %v48_v10  ;;  %v96_v59 = vld [vmem:[%s6061_s0 + $0x250] sm:$0xff] }
  0x66   :  { %2533 = vmatprep.mubr.bf16.mxu1 %v3579_v19  ;;  %v3519_v19 = vcombine.high %v41_v13, %v49_v14  ;;  %v4126_v9 = vld [vmem:[%s6060_s1 + $0x5f0] ss:$8 sps:$4 sm:$0xff]  }
  0x67   :  { %2583 = vmatpush2.bf16.msra.mxu0 %v4033_v20  ;;  %v4081_v20 = vld [vmem:[%s6060_s1 + $0x460] ss:$8 sps:$4 sm:$0xff]   ;;  %v104_v10 = vld [vmem:[%s6061_s0 + $0x290] sm:$0xff] }
  0x68   :  { %2696 = vmatpush2.bf16.msra.mxu1 %v4036_v21  ;;  %2584 = vmatprep.subr.bf16.mxu0 %v4041_v22  ;;  %v4084_v21 = vld [vmem:[%s6060_s1 + $0x560] ss:$8 sps:$4 sm:$0xff]   ;;  %v4089_v22 = vld [vmem:[%s6060_s1 + $0x454] ss:$8 sps:$4 sm:$0xff]  }
  0x69   :  { %2697 = vmatprep.subr.bf16.mxu1 %v4044_v23  ;;  %v4092_v23 = vld [vmem:[%s6060_s1 + $0x554] ss:$8 sps:$4 sm:$0xff]  }
  0x6a   :  { %2421 = vmatmul.mubr.bf16.gmra.mxu0 %v3576_v27  ;;  %v3518_v27 = vcombine.low %v41_v13, %v49_v14  ;;  %v3566_v13 = vcombine.low %v89_v62, %v97_v63  ;;  %v105_v14 = vld [vmem:[%s6061_s0 + $0x298] sm:$0xff] }
  0x6b   :  { %2534 = vmatmul.mubr.bf16.gmra.mxu1 %v3578_v28  ;;  %2585 = vmatpush2.bf16.msra.mxu0 %v4039_v24  ;;  %v56_v24 = vld [vmem:[%s6061_s0 + $0x110] sm:$0xff]  ;;  %v57_v28 = vld [vmem:[%s6061_s0 + $0x118] sm:$0xff] }
  0x6c   :  { %2698 = vmatpush2.bf16.msra.mxu1 %v4042_v25  ;;  %2586 = vmatprep.subr.bf16.mxu0 %v4047_v32  ;;  %v64_v25 = vld [vmem:[%s6061_s0 + $0x150] sm:$0xff]  ;;  %v4095_v32 = vld [vmem:[%s6060_s1 + $0x444] ss:$8 sps:$4 sm:$0xff]  }
  0x6d   :  { %2699 = vmatprep.subr.bf16.mxu1 %v4050_v33  ;;  %2430 = vmatprep.mubr.bf16.mxu0 %v3593_v34  ;;  %v4098_v33 = vld [vmem:[%s6060_s1 + $0x544] ss:$8 sps:$4 sm:$0xff]   ;;  %v3533_v34 = vcombine.high %v56_v24, %v64_v25  ;;  %v3532_v43 = vcombine.low %v56_v24, %v64_v25  ;;  %v4135_v24 = vld [vmem:[%s6060_s1 + $0x4d0] ss:$8 sps:$4 sm:$0xff]  }
  0x6e   :  { %2543 = vmatprep.mubr.bf16.mxu1 %v3595_v35  ;;  %v3535_v35 = vcombine.high %v57_v28, %v65_v29  ;;  %v120_v25 = vld [vmem:[%s6061_s0 + $0x310] sm:$0xff] }
  0x6f   :  { %2587 = vmatpush2.bf16.msra.mxu0 %v4045_v36  ;;  %v4093_v36 = vld [vmem:[%s6060_s1 + $0x440] ss:$8 sps:$4 sm:$0xff]  }
  0x70   :  { %2700 = vmatpush2.bf16.msra.mxu1 %v4048_v37  ;;  %2588 = vmatprep.subr.bf16.mxu0 %v4053_v38  ;;  %v4096_v37 = vld [vmem:[%s6060_s1 + $0x540] ss:$8 sps:$4 sm:$0xff]   ;;  %v4101_v38 = vld [vmem:[%s6060_s1 + $0x434] ss:$8 sps:$4 sm:$0xff]  }
  0x71   :  { %2701 = vmatprep.subr.bf16.mxu1 %v4056_v39  ;;  %v4104_v39 = vld [vmem:[%s6060_s1 + $0x534] ss:$8 sps:$4 sm:$0xff]  }
  0x72   :  { %2431 = vmatmul.mubr.bf16.gmra.mxu0 %v3592_v44  ;;  %v3534_v44 = vcombine.low %v57_v28, %v65_v29  ;;  %v121_v29 = vld [vmem:[%s6061_s0 + $0x318] sm:$0xff] }
  0x73   :  { %2544 = vmatmul.mubr.bf16.gmra.mxu1 %v3594_v45  ;;  %2589 = vmatpush2.bf16.msra.mxu0 %v4051_v40  ;;  %v4099_v40 = vld [vmem:[%s6060_s1 + $0x430] ss:$8 sps:$4 sm:$0xff]  }
  0x74   :  { %2702 = vmatpush2.bf16.msra.mxu1 %v4054_v41  ;;  %2590 = vmatprep.subr.bf16.mxu0 %v4059_v48  ;;  %v4102_v41 = vld [vmem:[%s6060_s1 + $0x530] ss:$8 sps:$4 sm:$0xff]   ;;  %v4107_v48 = vld [vmem:[%s6060_s1 + $0x424] ss:$8 sps:$4 sm:$0xff]  }
  0x75   :  { %2703 = vmatprep.subr.bf16.mxu1 %v4062_v49  ;;  %2440 = vmatprep.mubr.bf16.mxu0 %v3609_v50  ;;  %v80_v45 = vld [vmem:[%s6061_s0 + $0x1d0] sm:$0xff]  ;;  %v4110_v49 = vld [vmem:[%s6060_s1 + $0x524] ss:$8 sps:$4 sm:$0xff]  }
  0x76   :  { %2553 = vmatprep.mubr.bf16.mxu1 %v3611_v51  ;;  %v3549_v50 = vcombine.high %v72_v42, %v80_v45  ;;  %v3551_v51 = vcombine.high %v73_v46, %v81_v47 }
  0x77   :  { %2591 = vmatpush2.bf16.msra.mxu0 %v4057_v52  ;;  %v4105_v52 = vld [vmem:[%s6060_s1 + $0x420] ss:$8 sps:$4 sm:$0xff]  }
  0x78   :  { %2704 = vmatpush2.bf16.msra.mxu1 %v4060_v53  ;;  %2592 = vmatprep.subr.bf16.mxu0 %v4065_v54  ;;  %v4108_v53 = vld [vmem:[%s6060_s1 + $0x520] ss:$8 sps:$4 sm:$0xff]   ;;  %v4113_v54 = vld [vmem:[%s6060_s1 + $0x414] ss:$8 sps:$4 sm:$0xff]  }
  0x79   :  { %2705 = vmatprep.subr.bf16.mxu1 %v4068_v55  ;;  %v4116_v55 = vld [vmem:[%s6060_s1 + $0x514] ss:$8 sps:$4 sm:$0xff]  }
  0x7a   :  { %2441 = vmatmul.mubr.bf16.gmra.mxu0 %v3608_v60  ;;  %v3548_v60 = vcombine.low %v72_v42, %v80_v45  ;;  %v145_v45 = vld [vmem:[%s6061_s0 + $0x3d8] sm:$0xff] }
  0x7b   :  { %2554 = vmatmul.mubr.bf16.gmra.mxu1 %v3610_v61  ;;  %2593 = vmatpush2.bf16.msra.mxu0 %v4063_v56  ;;  %v4111_v56 = vld [vmem:[%s6060_s1 + $0x410] ss:$8 sps:$4 sm:$0xff]   ;;  %v3550_v61 = vcombine.low %v73_v46, %v81_v47 }
  0x7c   :  { %2706 = vmatpush2.bf16.msra.mxu1 %v4066_v57  ;;  %2594 = vmatprep.subr.bf16.mxu0 %v4071_v0  ;;  %v4114_v57 = vld [vmem:[%s6060_s1 + $0x510] ss:$8 sps:$4 sm:$0xff]   ;;  %v4119_v0 = vld [vmem:[%s6060_s1 + $0x404] ss:$8 sps:$4 sm:$0xff]  }
  0x7d   :  { %2707 = vmatprep.subr.bf16.mxu1 %v4074_v1  ;;  %2596 = vmatprep.mubr.bf16.mxu0 %v3501_v2  ;;  %v4122_v1 = vld [vmem:[%s6060_s1 + $0x504] ss:$8 sps:$4 sm:$0xff]   ;;  %v3565_v2 = vcombine.high %v88_v58, %v96_v59  ;;  %v4147_v46 = vld [vmem:[%s6060_s1 + $0x4b0] ss:$8 sps:$4 sm:$0xff]  }
  0x7e   :  { %2709 = vmatprep.mubr.bf16.mxu1 %v3503_v3  ;;  %v3567_v3 = vcombine.high %v89_v62, %v97_v63  ;;  %v4150_v47 = vld [vmem:[%s6060_s1 + $0x5b0] ss:$8 sps:$4 sm:$0xff]   ;;  %v27_v62 = vld [vmem:[%s6061_s0 + $0x28] sm:$0xff] }
  0x7f   :  { %2595 = vmatpush2.bf16.msra.mxu0 %v4069_v4  ;;  %v4117_v4 = vld [vmem:[%s6060_s1 + $0x400] ss:$8 sps:$4 sm:$0xff]  }
  0x80   :  { %2708 = vmatpush2.bf16.msra.mxu1 %v4072_v5  ;;  %2790 = vmatprep.subr.bf16.mxu0 %v4077_v6  ;;  %v4120_v5 = vld [vmem:[%s6060_s1 + $0x500] ss:$8 sps:$4 sm:$0xff]   ;;  %v4125_v6 = vld [vmem:[%s6060_s1 + $0x4f4] ss:$8 sps:$4 sm:$0xff]  }
  0x81   :  { %2903 = vmatprep.subr.bf16.mxu1 %v4080_v7  ;;  %v4128_v7 = vld [vmem:[%s6060_s1 + $0x5f4] ss:$8 sps:$4 sm:$0xff]   ;;  %v35_v63 = vld [vmem:[%s6061_s0 + $0x68] sm:$0xff] }
  0x82   :  { %2597 = vmatmul.mubr.bf16.vlgmr.msra.gmra.mxu0 %v3500_v11  ;;  %v112_v11 = vld [vmem:[%s6061_s0 + $0x2d0] sm:$0xff] }
  0x83   :  { %2710 = vmatmul.mubr.bf16.vlgmr.msra.gmra.mxu1 %v3502_v12  ;;  %2791 = vmatpush1.bf16.msra.mxu0 %v4075_v8  ;;  %v4123_v8 = vld [vmem:[%s6060_s1 + $0x4f0] ss:$8 sps:$4 sm:$0xff]   ;;  %v3564_v12 = vcombine.low %v88_v58, %v96_v59  ;;  %v26_v58 = vld [vmem:[%s6061_s0 + $0x20] sm:$0xff] }
  0x84   :  { %2904 = vmatpush1.bf16.msra.mxu1 %v4078_v15  ;;  %2792 = vmatprep.subr.bf16.mxu0 %v4083_v16  ;;  %v113_v15 = vld [vmem:[%s6061_s0 + $0x2d8] sm:$0xff]  ;;  %v4131_v16 = vld [vmem:[%s6060_s1 + $0x4e4] ss:$8 sps:$4 sm:$0xff]  }
  0x85   :  { %2905 = vmatprep.subr.bf16.mxu1 %v4086_v17  ;;  %2606 = vmatprep.mubr.bf16.mxu0 %v3517_v18  ;;  %v4134_v17 = vld [vmem:[%s6060_s1 + $0x5e4] ss:$8 sps:$4 sm:$0xff]   ;;  %v3581_v18 = vcombine.high %v104_v10, %v112_v11  ;;  %v3582_v28 = vcombine.low %v105_v14, %v113_v15 }
  0x86   :  { %2719 = vmatprep.mubr.bf16.mxu1 %v3519_v19  ;;  %v3583_v19 = vcombine.high %v105_v14, %v113_v15  ;;  %v43_v14 = vld [vmem:[%s6061_s0 + $0xa8] sm:$0xff] }
  0x87   :  { %2793 = vmatpush1.bf16.msra.mxu0 %v4081_v20  ;;  %v4129_v20 = vld [vmem:[%s6060_s1 + $0x4e0] ss:$8 sps:$4 sm:$0xff]  }
  0x88   :  { %2906 = vmatpush1.bf16.msra.mxu1 %v4084_v21  ;;  %2794 = vmatprep.subr.bf16.mxu0 %v4089_v22  ;;  %v4132_v21 = vld [vmem:[%s6060_s1 + $0x5e0] ss:$8 sps:$4 sm:$0xff]   ;;  %v4137_v22 = vld [vmem:[%s6060_s1 + $0x4d4] ss:$8 sps:$4 sm:$0xff]  }
  0x89   :  { %2907 = vmatprep.subr.bf16.mxu1 %v4092_v23  ;;  %v4140_v23 = vld [vmem:[%s6060_s1 + $0x5d4] ss:$8 sps:$4 sm:$0xff]   ;;  %v51_v15 = vld [vmem:[%s6061_s0 + $0xe8] sm:$0xff] }
  0x8a   :  { %2607 = vmatmul.mubr.bf16.gmra.mxu0 %v3516_v26  ;;  %v128_v26 = vld [vmem:[%s6061_s0 + $0x350] sm:$0xff] }
  0x8b   :  { %2720 = vmatmul.mubr.bf16.gmra.mxu1 %v3518_v27  ;;  %2795 = vmatpush1.bf16.msra.mxu0 %v4087_v30  ;;  %v3580_v27 = vcombine.low %v104_v10, %v112_v11  ;;  %v129_v30 = vld [vmem:[%s6061_s0 + $0x358] sm:$0xff]  ;;  %v3596_v42 = vcombine.low %v120_v25, %v128_v26  ;;  %v42_v10 = vld [vmem:[%s6061_s0 + $0xa0] sm:$0xff] }
  0x8c   :  { %2908 = vmatpush1.bf16.msra.mxu1 %v4090_v31  ;;  %2796 = vmatprep.subr.bf16.mxu0 %v4095_v32  ;;  %v4138_v31 = vld [vmem:[%s6060_s1 + $0x5d0] ss:$8 sps:$4 sm:$0xff]   ;;  %v4143_v32 = vld [vmem:[%s6060_s1 + $0x4c4] ss:$8 sps:$4 sm:$0xff]  }
  0x8d   :  { %2909 = vmatprep.subr.bf16.mxu1 %v4098_v33  ;;  %2616 = vmatprep.mubr.bf16.mxu0 %v3533_v34  ;;  %v4146_v33 = vld [vmem:[%s6060_s1 + $0x5c4] ss:$8 sps:$4 sm:$0xff]   ;;  %v3597_v34 = vcombine.high %v120_v25, %v128_v26  ;;  %v4186_v25 = vld [vmem:[%s6060_s1 + $0x750] ss:$8 sps:$4 sm:$0xff]  }
  0x8e   :  { %2729 = vmatprep.mubr.bf16.mxu1 %v3535_v35  ;;  %v3599_v35 = vcombine.high %v121_v29, %v129_v30  ;;  %v50_v11 = vld [vmem:[%s6061_s0 + $0xe0] sm:$0xff] }
  0x8f   :  { %2797 = vmatpush1.bf16.msra.mxu0 %v4093_v36  ;;  %v4141_v36 = vld [vmem:[%s6060_s1 + $0x4c0] ss:$8 sps:$4 sm:$0xff]  }
  0x90   :  { %2910 = vmatpush1.bf16.msra.mxu1 %v4096_v37  ;;  %2798 = vmatprep.subr.bf16.mxu0 %v4101_v38  ;;  %v4144_v37 = vld [vmem:[%s6060_s1 + $0x5c0] ss:$8 sps:$4 sm:$0xff]   ;;  %v4149_v38 = vld [vmem:[%s6060_s1 + $0x4b4] ss:$8 sps:$4 sm:$0xff]  }
  0x91   :  { %2911 = vmatprep.subr.bf16.mxu1 %v4104_v39  ;;  %v4152_v39 = vld [vmem:[%s6060_s1 + $0x5b4] ss:$8 sps:$4 sm:$0xff]   ;;  %v58_v26 = vld [vmem:[%s6061_s0 + $0x120] sm:$0xff] }
  0x92   :  { %2617 = vmatmul.mubr.bf16.gmra.mxu0 %v3532_v43  ;;  %v3598_v43 = vcombine.low %v121_v29, %v129_v30  ;;  %v3522_v29 = vcombine.low %v43_v14, %v51_v15  ;;  %v59_v30 = vld [vmem:[%s6061_s0 + $0x128] sm:$0xff] }
  0x93   :  { %2730 = vmatmul.mubr.bf16.gmra.mxu1 %v3534_v44  ;;  %2799 = vmatpush1.bf16.msra.mxu0 %v4099_v40  ;;  %v136_v40 = vld [vmem:[%s6061_s0 + $0x390] sm:$0xff]  ;;  %v137_v44 = vld [vmem:[%s6061_s0 + $0x398] sm:$0xff] }
  0x94   :  { %2912 = vmatpush1.bf16.msra.mxu1 %v4102_v41  ;;  %2800 = vmatprep.subr.bf16.mxu0 %v4107_v48  ;;  %v144_v41 = vld [vmem:[%s6061_s0 + $0x3d0] sm:$0xff]  ;;  %v4155_v48 = vld [vmem:[%s6060_s1 + $0x4a4] ss:$8 sps:$4 sm:$0xff]  }
  0x95   :  { %2913 = vmatprep.subr.bf16.mxu1 %v4110_v49  ;;  %2626 = vmatprep.mubr.bf16.mxu0 %v3549_v50  ;;  %v4158_v49 = vld [vmem:[%s6060_s1 + $0x5a4] ss:$8 sps:$4 sm:$0xff]   ;;  %v3613_v50 = vcombine.high %v136_v40, %v144_v41  ;;  %v3612_v59 = vcombine.low %v136_v40, %v144_v41 }
  0x96   :  { %2739 = vmatprep.mubr.bf16.mxu1 %v3551_v51  ;;  %v3615_v51 = vcombine.high %v137_v44, %v145_v45  ;;  %v74_v40 = vld [vmem:[%s6061_s0 + $0x1a0] sm:$0xff] }
  0x97   :  { %2801 = vmatpush1.bf16.msra.mxu0 %v4105_v52  ;;  %v4153_v52 = vld [vmem:[%s6060_s1 + $0x4a0] ss:$8 sps:$4 sm:$0xff]  }
  0x98   :  { %2914 = vmatpush1.bf16.msra.mxu1 %v4108_v53  ;;  %2802 = vmatprep.subr.bf16.mxu0 %v4113_v54  ;;  %v4156_v53 = vld [vmem:[%s6060_s1 + $0x5a0] ss:$8 sps:$4 sm:$0xff]   ;;  %v4161_v54 = vld [vmem:[%s6060_s1 + $0x494] ss:$8 sps:$4 sm:$0xff]  }
  0x99   :  { %2915 = vmatprep.subr.bf16.mxu1 %v4116_v55  ;;  %v4164_v55 = vld [vmem:[%s6060_s1 + $0x594] ss:$8 sps:$4 sm:$0xff]  }
  0x9a   :  { %2627 = vmatmul.mubr.bf16.gmra.mxu0 %v3548_v60  ;;  %v3614_v60 = vcombine.low %v137_v44, %v145_v45  ;;  %v75_v44 = vld [vmem:[%s6061_s0 + $0x1a8] sm:$0xff] }
  0x9b   :  { %2740 = vmatmul.mubr.bf16.gmra.mxu1 %v3550_v61  ;;  %2803 = vmatpush1.bf16.msra.mxu0 %v4111_v56  ;;  %v4159_v56 = vld [vmem:[%s6060_s1 + $0x490] ss:$8 sps:$4 sm:$0xff]   ;;  %v34_v61 = vld [vmem:[%s6061_s0 + $0x60] sm:$0xff]  ;;  %v83_v45 = vld [vmem:[%s6061_s0 + $0x1e8] sm:$0xff] }
  0x9c   :  { %2916 = vmatpush1.bf16.msra.mxu1 %v4114_v57  ;;  %2804 = vmatprep.subr.bf16.mxu0 %v4119_v0  ;;  %v4162_v57 = vld [vmem:[%s6060_s1 + $0x590] ss:$8 sps:$4 sm:$0xff]   ;;  %v4167_v0 = vld [vmem:[%s6060_s1 + $0x484] ss:$8 sps:$4 sm:$0xff]  }
  0x9d   :  { %2917 = vmatprep.subr.bf16.mxu1 %v4122_v1  ;;  %2636 = vmatprep.mubr.bf16.mxu0 %v3565_v2  ;;  %v4170_v1 = vld [vmem:[%s6060_s1 + $0x584] ss:$8 sps:$4 sm:$0xff]   ;;  %v3505_v2 = vcombine.high %v26_v58, %v34_v61 }
  0x9e   :  { %2749 = vmatprep.mubr.bf16.mxu1 %v3567_v3  ;;  %v3507_v3 = vcombine.high %v27_v62, %v35_v63 }
  0x9f   :  { %2805 = vmatpush1.bf16.msra.mxu0 %v4117_v4  ;;  %v4165_v4 = vld [vmem:[%s6060_s1 + $0x480] ss:$8 sps:$4 sm:$0xff]  }
  0xa0   :  { %2918 = vmatpush1.bf16.msra.mxu1 %v4120_v5  ;;  %2806 = vmatprep.subr.bf16.mxu0 %v4125_v6  ;;  %v4168_v5 = vld [vmem:[%s6060_s1 + $0x580] ss:$8 sps:$4 sm:$0xff]   ;;  %v4173_v6 = vld [vmem:[%s6060_s1 + $0x674] ss:$8 sps:$4 sm:$0xff]  }
  0xa1   :  { %2919 = vmatprep.subr.bf16.mxu1 %v4128_v7  ;;  %v4176_v7 = vld [vmem:[%s6060_s1 + $0x774] ss:$8 sps:$4 sm:$0xff]  }
  0xa2   :  { %2637 = vmatmul.mubr.bf16.gmra.mxu0 %v3564_v12  ;;  %v3504_v12 = vcombine.low %v26_v58, %v34_v61  ;;  %v3554_v58 = vcombine.low %v75_v44, %v83_v45  ;;  %v99_v61 = vld [vmem:[%s6061_s0 + $0x268] sm:$0xff] }
  0xa3   :  { %2750 = vmatmul.mubr.bf16.gmra.mxu1 %v3566_v13  ;;  %2807 = vmatpush2.bf16.msra.mxu0 %v4123_v8  ;;  %v4171_v8 = vld [vmem:[%s6060_s1 + $0x670] ss:$8 sps:$4 sm:$0xff]   ;;  %v3506_v13 = vcombine.low %v27_v62, %v35_v63 }
  0xa4   :  { %2920 = vmatpush2.bf16.msra.mxu1 %v4126_v9  ;;  %2808 = vmatprep.subr.bf16.mxu0 %v4131_v16  ;;  %v4174_v9 = vld [vmem:[%s6060_s1 + $0x770] ss:$8 sps:$4 sm:$0xff]   ;;  %v4179_v16 = vld [vmem:[%s6060_s1 + $0x664] ss:$8 sps:$4 sm:$0xff]  }
  0xa5   :  { %2921 = vmatprep.subr.bf16.mxu1 %v4134_v17  ;;  %2646 = vmatprep.mubr.bf16.mxu0 %v3581_v18  ;;  %v4182_v17 = vld [vmem:[%s6060_s1 + $0x764] ss:$8 sps:$4 sm:$0xff]   ;;  %v3521_v18 = vcombine.high %v42_v10, %v50_v11  ;;  %v4207_v62 = vld [vmem:[%s6060_s1 + $0x610] ss:$8 sps:$4 sm:$0xff]  }
  0xa6   :  { %2759 = vmatprep.mubr.bf16.mxu1 %v3583_v19  ;;  %v3523_v19 = vcombine.high %v43_v14, %v51_v15  ;;  %v4210_v63 = vld [vmem:[%s6060_s1 + $0x710] ss:$8 sps:$4 sm:$0xff]  }
  0xa7   :  { %2809 = vmatpush2.bf16.msra.mxu0 %v4129_v20  ;;  %v4177_v20 = vld [vmem:[%s6060_s1 + $0x660] ss:$8 sps:$4 sm:$0xff]   ;;  %v4219_v14 = vld [vmem:[%s6060_s1 + $0x6f0] ss:$8 sps:$4 sm:$0xff]  }
  0xa8   :  { %2922 = vmatpush2.bf16.msra.mxu1 %v4132_v21  ;;  %2810 = vmatprep.subr.bf16.mxu0 %v4137_v22  ;;  %v4180_v21 = vld [vmem:[%s6060_s1 + $0x760] ss:$8 sps:$4 sm:$0xff]   ;;  %v4185_v22 = vld [vmem:[%s6060_s1 + $0x654] ss:$8 sps:$4 sm:$0xff]   ;;  %v4222_v15 = vld [vmem:[%s6060_s1 + $0x7f0] ss:$8 sps:$4 sm:$0xff]  }
  0xa9   :  { %2923 = vmatprep.subr.bf16.mxu1 %v4140_v23  ;;  %v4188_v23 = vld [vmem:[%s6060_s1 + $0x754] ss:$8 sps:$4 sm:$0xff]  }
  0xaa   :  { %2647 = vmatmul.mubr.bf16.gmra.mxu0 %v3580_v27  ;;  %v66_v27 = vld [vmem:[%s6061_s0 + $0x160] sm:$0xff] }
  0xab   :  { %2760 = vmatmul.mubr.bf16.gmra.mxu1 %v3582_v28  ;;  %2811 = vmatpush2.bf16.msra.mxu0 %v4135_v24  ;;  %v4183_v24 = vld [vmem:[%s6060_s1 + $0x650] ss:$8 sps:$4 sm:$0xff]   ;;  %v3520_v28 = vcombine.low %v42_v10, %v50_v11  ;;  %v3536_v41 = vcombine.low %v58_v26, %v66_v27  ;;  %v114_v11 = vld [vmem:[%s6061_s0 + $0x2e0] sm:$0xff] }
  0xac   :  { %2924 = vmatpush2.bf16.msra.mxu1 %v4138_v31  ;;  %2812 = vmatprep.subr.bf16.mxu0 %v4143_v32  ;;  %v67_v31 = vld [vmem:[%s6061_s0 + $0x168] sm:$0xff] }
  0xad   :  { %2925 = vmatprep.subr.bf16.mxu1 %v4146_v33  ;;  %2656 = vmatprep.mubr.bf16.mxu0 %v3597_v34  ;;  %v4191_v32 = vld [vmem:[%s6060_s1 + $0x644] ss:$8 sps:$4 sm:$0xff]   ;;  %v3537_v34 = vcombine.high %v58_v26, %v66_v27 }
  0xae   :  { %2769 = vmatprep.mubr.bf16.mxu1 %v3599_v35  ;;  %v4194_v33 = vld [vmem:[%s6060_s1 + $0x744] ss:$8 sps:$4 sm:$0xff]   ;;  %v3539_v35 = vcombine.high %v59_v30, %v67_v31 }
  0xaf   :  { %2813 = vmatpush2.bf16.msra.mxu0 %v4141_v36  ;;  %v4189_v36 = vld [vmem:[%s6060_s1 + $0x640] ss:$8 sps:$4 sm:$0xff]  }
  0xb0   :  { %2926 = vmatpush2.bf16.msra.mxu1 %v4144_v37  ;;  %2814 = vmatprep.subr.bf16.mxu0 %v4149_v38  ;;  %v4192_v37 = vld [vmem:[%s6060_s1 + $0x740] ss:$8 sps:$4 sm:$0xff]   ;;  %v4197_v38 = vld [vmem:[%s6060_s1 + $0x634] ss:$8 sps:$4 sm:$0xff]  }
  0xb1   :  { %2927 = vmatprep.subr.bf16.mxu1 %v4152_v39  ;;  %v4200_v39 = vld [vmem:[%s6060_s1 + $0x734] ss:$8 sps:$4 sm:$0xff]   ;;  %v130_v27 = vld [vmem:[%s6061_s0 + $0x360] sm:$0xff] }
  0xb2   :  { %2657 = vmatmul.mubr.bf16.gmra.mxu0 %v3596_v42  ;;  %v3538_v42 = vcombine.low %v59_v30, %v67_v31  ;;  %v4231_v30 = vld [vmem:[%s6060_s1 + $0x6d0] ss:$8 sps:$4 sm:$0xff]  }
  0xb3   :  { %2770 = vmatmul.mubr.bf16.gmra.mxu1 %v3598_v43  ;;  %2815 = vmatpush2.bf16.msra.mxu0 %v4147_v46  ;;  %v82_v43 = vld [vmem:[%s6061_s0 + $0x1e0] sm:$0xff]  ;;  %v4195_v46 = vld [vmem:[%s6060_s1 + $0x630] ss:$8 sps:$4 sm:$0xff]  }
  0xb4   :  { %2928 = vmatpush2.bf16.msra.mxu1 %v4150_v47  ;;  %2816 = vmatprep.subr.bf16.mxu0 %v4155_v48  ;;  %v4198_v47 = vld [vmem:[%s6060_s1 + $0x730] ss:$8 sps:$4 sm:$0xff]   ;;  %v4203_v48 = vld [vmem:[%s6060_s1 + $0x624] ss:$8 sps:$4 sm:$0xff]  }
  0xb5   :  { %2929 = vmatprep.subr.bf16.mxu1 %v4158_v49  ;;  %2666 = vmatprep.mubr.bf16.mxu0 %v3613_v50  ;;  %v4206_v49 = vld [vmem:[%s6060_s1 + $0x724] ss:$8 sps:$4 sm:$0xff]   ;;  %v3553_v50 = vcombine.high %v74_v40, %v82_v43  ;;  %v4234_v31 = vld [vmem:[%s6060_s1 + $0x7d0] ss:$8 sps:$4 sm:$0xff]  }
  0xb6   :  { %2779 = vmatprep.mubr.bf16.mxu1 %v3615_v51  ;;  %v3555_v51 = vcombine.high %v75_v44, %v83_v45  ;;  %v139_v44 = vld [vmem:[%s6061_s0 + $0x3a8] sm:$0xff] }
  0xb7   :  { %2817 = vmatpush2.bf16.msra.mxu0 %v4153_v52  ;;  %v4201_v52 = vld [vmem:[%s6060_s1 + $0x620] ss:$8 sps:$4 sm:$0xff]  }
  0xb8   :  { %2930 = vmatpush2.bf16.msra.mxu1 %v4156_v53  ;;  %2818 = vmatprep.subr.bf16.mxu0 %v4161_v54  ;;  %v4204_v53 = vld [vmem:[%s6060_s1 + $0x720] ss:$8 sps:$4 sm:$0xff]   ;;  %v4209_v54 = vld [vmem:[%s6060_s1 + $0x614] ss:$8 sps:$4 sm:$0xff]  }
  0xb9   :  { %2931 = vmatprep.subr.bf16.mxu1 %v4164_v55  ;;  %v4212_v55 = vld [vmem:[%s6060_s1 + $0x714] ss:$8 sps:$4 sm:$0xff]   ;;  %v147_v45 = vld [vmem:[%s6061_s0 + $0x3e8] sm:$0xff] }
  0xba   :  { %2667 = vmatmul.mubr.bf16.gmra.mxu0 %v3612_v59  ;;  %v98_v59 = vld [vmem:[%s6061_s0 + $0x260] sm:$0xff] }
  0xbb   :  { %2780 = vmatmul.mubr.bf16.gmra.mxu1 %v3614_v60  ;;  %2819 = vmatpush2.bf16.msra.mxu0 %v4159_v56  ;;  %v90_v56 = vld [vmem:[%s6061_s0 + $0x220] sm:$0xff]  ;;  %v91_v60 = vld [vmem:[%s6061_s0 + $0x228] sm:$0xff] }
  0xbc   :  { %2932 = vmatpush2.bf16.msra.mxu1 %v4162_v57  ;;  %2820 = vmatprep.subr.bf16.mxu0 %v4167_v0  ;;  %v3552_v57 = vcombine.low %v74_v40, %v82_v43  ;;  %v4215_v0 = vld [vmem:[%s6060_s1 + $0x604] ss:$8 sps:$4 sm:$0xff]   ;;  %v3570_v10 = vcombine.low %v91_v60, %v99_v61 }
  0xbd   :  { %2933 = vmatprep.subr.bf16.mxu1 %v4170_v1  ;;  %2822 = vmatprep.mubr.bf16.mxu0 %v3505_v2  ;;  %v4218_v1 = vld [vmem:[%s6060_s1 + $0x704] ss:$8 sps:$4 sm:$0xff]   ;;  %v3569_v2 = vcombine.high %v90_v56, %v98_v59 }
  0xbe   :  { %2935 = vmatprep.mubr.bf16.mxu1 %v3507_v3  ;;  %v3571_v3 = vcombine.high %v91_v60, %v99_v61  ;;  %v138_v40 = vld [vmem:[%s6061_s0 + $0x3a0] sm:$0xff]  ;;  %v36_v60 = vld [vmem:[%s6061_s0 + $0x70] sm:$0xff]  ;;  %v29_v61 = vld [vmem:[%s6061_s0 + $0x38] sm:$0xff] }
  0xbf   :  { %2821 = vmatpush2.bf16.msra.mxu0 %v4165_v4  ;;  %v4213_v4 = vld [vmem:[%s6060_s1 + $0x600] ss:$8 sps:$4 sm:$0xff]  }
  0xc0   :  { %2934 = vmatpush2.bf16.msra.mxu1 %v4168_v5  ;;  %3016 = vmatprep.subr.bf16.mxu0 %v4173_v6  ;;  %v4216_v5 = vld [vmem:[%s6060_s1 + $0x700] ss:$8 sps:$4 sm:$0xff]   ;;  %v4221_v6 = vld [vmem:[%s6060_s1 + $0x6f4] ss:$8 sps:$4 sm:$0xff]  }
  0xc1   :  { %3129 = vmatprep.subr.bf16.mxu1 %v4176_v7  ;;  %v4224_v7 = vld [vmem:[%s6060_s1 + $0x7f4] ss:$8 sps:$4 sm:$0xff]   ;;  %v146_v43 = vld [vmem:[%s6061_s0 + $0x3e0] sm:$0xff] }
  0xc2   :  { %2823 = vmatmul.mubr.bf16.vlgmr.msra.gmra.mxu0 %v3504_v12  ;;  %v107_v12 = vld [vmem:[%s6061_s0 + $0x2a8] sm:$0xff] }
  0xc3   :  { %2936 = vmatmul.mubr.bf16.vlgmr.msra.gmra.mxu1 %v3506_v13  ;;  %3017 = vmatpush1.bf16.msra.mxu0 %v4171_v8  ;;  %v106_v8 = vld [vmem:[%s6061_s0 + $0x2a0] sm:$0xff]  ;;  %v115_v13 = vld [vmem:[%s6061_s0 + $0x2e8] sm:$0xff] }
  0xc4   :  { %3130 = vmatpush1.bf16.msra.mxu1 %v4174_v9  ;;  %3018 = vmatprep.subr.bf16.mxu0 %v4179_v16  ;;  %v3568_v9 = vcombine.low %v90_v56, %v98_v59  ;;  %v4227_v16 = vld [vmem:[%s6060_s1 + $0x6e4] ss:$8 sps:$4 sm:$0xff]   ;;  %v3586_v26 = vcombine.low %v107_v12, %v115_v13  ;;  %v4260_v56 = vld [vmem:[%s6060_s1 + $0x794] ss:$8 sps:$4 sm:$0xff]   ;;  %v3618_v59 = vcombine.low %v139_v44, %v147_v45 }
  0xc5   :  { %3131 = vmatprep.subr.bf16.mxu1 %v4182_v17  ;;  %2832 = vmatprep.mubr.bf16.mxu0 %v3521_v18  ;;  %v4230_v17 = vld [vmem:[%s6060_s1 + $0x7e4] ss:$8 sps:$4 sm:$0xff]   ;;  %v3585_v18 = vcombine.high %v106_v8, %v114_v11 }
  0xc6   :  { %2945 = vmatprep.mubr.bf16.mxu1 %v3523_v19  ;;  %v3587_v19 = vcombine.high %v107_v12, %v115_v13  ;;  %v45_v12 = vld [vmem:[%s6061_s0 + $0xb8] sm:$0xff] }
  0xc7   :  { %3019 = vmatpush1.bf16.msra.mxu0 %v4177_v20  ;;  %v4225_v20 = vld [vmem:[%s6060_s1 + $0x6e0] ss:$8 sps:$4 sm:$0xff]   ;;  %v53_v13 = vld [vmem:[%s6061_s0 + $0xf8] sm:$0xff] }
  0xc8   :  { %3132 = vmatpush1.bf16.msra.mxu1 %v4180_v21  ;;  %3020 = vmatprep.subr.bf16.mxu0 %v4185_v22  ;;  %v4228_v21 = vld [vmem:[%s6060_s1 + $0x7e0] ss:$8 sps:$4 sm:$0xff]   ;;  %v4233_v22 = vld [vmem:[%s6060_s1 + $0x6d4] ss:$8 sps:$4 sm:$0xff]  }
  0xc9   :  { %3133 = vmatprep.subr.bf16.mxu1 %v4188_v23  ;;  %v4236_v23 = vld [vmem:[%s6060_s1 + $0x7d4] ss:$8 sps:$4 sm:$0xff]  }
  0xca   :  { %2833 = vmatmul.mubr.bf16.gmra.mxu0 %v3520_v28  ;;  %v123_v28 = vld [vmem:[%s6061_s0 + $0x328] sm:$0xff] }
  0xcb   :  { %2946 = vmatmul.mubr.bf16.gmra.mxu1 %v3522_v29  ;;  %3021 = vmatpush1.bf16.msra.mxu0 %v4183_v24  ;;  %v122_v24 = vld [vmem:[%s6061_s0 + $0x320] sm:$0xff]  ;;  %v131_v29 = vld [vmem:[%s6061_s0 + $0x368] sm:$0xff] }
  0xcc   :  { %3134 = vmatpush1.bf16.msra.mxu1 %v4186_v25  ;;  %3022 = vmatprep.subr.bf16.mxu0 %v4191_v32  ;;  %v3584_v25 = vcombine.low %v106_v8, %v114_v11  ;;  %v4239_v32 = vld [vmem:[%s6060_s1 + $0x6c4] ss:$8 sps:$4 sm:$0xff]   ;;  %v406_v8 = vld [vmem:[%s6062_s2] sm:$0x3]  ;;  %v52_v11 = vld [vmem:[%s6061_s0 + $0xf0] sm:$0xff] }
  0xcd   :  { %3135 = vmatprep.subr.bf16.mxu1 %v4194_v33  ;;  %2842 = vmatprep.mubr.bf16.mxu0 %v3537_v34  ;;  %v4242_v33 = vld [vmem:[%s6060_s1 + $0x7c4] ss:$8 sps:$4 sm:$0xff]   ;;  %v3601_v34 = vcombine.high %v122_v24, %v130_v27 }
  0xce   :  { %2955 = vmatprep.mubr.bf16.mxu1 %v3539_v35  ;;  %v3603_v35 = vcombine.high %v123_v28, %v131_v29 }
  0xcf   :  { %3023 = vmatpush1.bf16.msra.mxu0 %v4189_v36  ;;  %v4237_v36 = vld [vmem:[%s6060_s1 + $0x6c0] ss:$8 sps:$4 sm:$0xff]  }
  0xd0   :  { %3136 = vmatpush1.bf16.msra.mxu1 %v4192_v37  ;;  %3024 = vmatprep.subr.bf16.mxu0 %v4197_v38  ;;  %v4240_v37 = vld [vmem:[%s6060_s1 + $0x7c0] ss:$8 sps:$4 sm:$0xff]   ;;  %v4245_v38 = vld [vmem:[%s6060_s1 + $0x6b4] ss:$8 sps:$4 sm:$0xff]  }
  0xd1   :  { %3137 = vmatprep.subr.bf16.mxu1 %v4200_v39  ;;  %v4248_v39 = vld [vmem:[%s6060_s1 + $0x7b4] ss:$8 sps:$4 sm:$0xff]  }
  0xd2   :  { %2843 = vmatmul.mubr.bf16.gmra.mxu0 %v3536_v41  ;;  %v3600_v41 = vcombine.low %v122_v24, %v130_v27  ;;  %v60_v24 = vld [vmem:[%s6061_s0 + $0x130] sm:$0xff] }
  0xd3   :  { %2956 = vmatmul.mubr.bf16.gmra.mxu1 %v3538_v42  ;;  %3025 = vmatpush1.bf16.msra.mxu0 %v4195_v46  ;;  %v3602_v42 = vcombine.low %v123_v28, %v131_v29  ;;  %v4243_v46 = vld [vmem:[%s6060_s1 + $0x6b0] ss:$8 sps:$4 sm:$0xff]  }
  0xd4   :  { %3138 = vmatpush1.bf16.msra.mxu1 %v4198_v47  ;;  %3026 = vmatprep.subr.bf16.mxu0 %v4203_v48  ;;  %v4246_v47 = vld [vmem:[%s6060_s1 + $0x7b0] ss:$8 sps:$4 sm:$0xff]   ;;  %v4251_v48 = vld [vmem:[%s6060_s1 + $0x6a4] ss:$8 sps:$4 sm:$0xff]  }
  0xd5   :  { %3139 = vmatprep.subr.bf16.mxu1 %v4206_v49  ;;  %2852 = vmatprep.mubr.bf16.mxu0 %v3553_v50  ;;  %v4254_v49 = vld [vmem:[%s6060_s1 + $0x7a4] ss:$8 sps:$4 sm:$0xff]   ;;  %v3617_v50 = vcombine.high %v138_v40, %v146_v43  ;;  %v68_v27 = vld [vmem:[%s6061_s0 + $0x170] sm:$0xff]  ;;  %v61_v28 = vld [vmem:[%s6061_s0 + $0x138] sm:$0xff] }
  0xd6   :  { %2965 = vmatprep.mubr.bf16.mxu1 %v3555_v51  ;;  %v3619_v51 = vcombine.high %v139_v44, %v147_v45  ;;  %v69_v29 = vld [vmem:[%s6061_s0 + $0x178] sm:$0xff] }
  0xd7   :  { %3027 = vmatpush1.bf16.msra.mxu0 %v4201_v52  ;;  %v4249_v52 = vld [vmem:[%s6060_s1 + $0x6a0] ss:$8 sps:$4 sm:$0xff]  }
  0xd8   :  { %3140 = vmatpush1.bf16.msra.mxu1 %v4204_v53  ;;  %3028 = vmatprep.subr.bf16.mxu0 %v4209_v54  ;;  %v4252_v53 = vld [vmem:[%s6060_s1 + $0x7a0] ss:$8 sps:$4 sm:$0xff]   ;;  %v408_v54 = vlaneseq }
  0xd9   :  { %3141 = vmatprep.subr.bf16.mxu1 %v4212_v55  ;;  %v4257_v55 = vld [vmem:[%s6060_s1 + $0x694] ss:$8 sps:$4 sm:$0xff]  }
  0xda   :  { %2853 = vmatmul.mubr.bf16.gmra.mxu0 %v3552_v57  ;;  %v28_v57 = vld [vmem:[%s6061_s0 + $0x30] sm:$0xff] }
  0xdb   :  { %2966 = vmatmul.mubr.bf16.gmra.mxu1 %v3554_v58  ;;  %3029 = vmatpush1.bf16.msra.mxu0 %v4207_v62  ;;  %v3616_v58 = vcombine.low %v138_v40, %v146_v43  ;;  %v37_v62 = vld [vmem:[%s6061_s0 + $0x78] sm:$0xff] }
  0xdc   :  { %3142 = vmatpush1.bf16.msra.mxu1 %v4210_v63  ;;  %3030 = vmatprep.subr.bf16.mxu0 %v4215_v0  ;;  %v4255_v63 = vld [vmem:[%s6060_s1 + $0x690] ss:$8 sps:$4 sm:$0xff]  }
  0xdd   :  { %3143 = vmatprep.subr.bf16.mxu1 %v4218_v1  ;;  %2862 = vmatprep.mubr.bf16.mxu0 %v3569_v2  ;;  %v4258_v0 = vld [vmem:[%s6060_s1 + $0x790] ss:$8 sps:$4 sm:$0xff]   ;;  %v409_v1 = vshrl.u32 %v408_v54, 7  ;;  %v4263_v2 = vld [vmem:[%s6060_s1 + $0x684] ss:$8 sps:$4 sm:$0xff]  }
  0xde   :  { %2975 = vmatprep.mubr.bf16.mxu1 %v3571_v3  ;;  %v4266_v3 = vld [vmem:[%s6060_s1 + $0x784] ss:$8 sps:$4 sm:$0xff]  }
  0xdf   :  { %3031 = vmatpush1.bf16.msra.mxu0 %v4213_v4  ;;  %v3509_v4 = vcombine.high %v28_v57, %v36_v60 }
  0xe0   :  { %3144 = vmatpush1.bf16.msra.mxu1 %v4216_v5  ;;  %3032 = vmatprep.subr.bf16.mxu0 %v4221_v6  ;;  %v3511_v5 = vcombine.high %v29_v61, %v37_v62  ;;  %v4261_v6 = vld [vmem:[%s6060_s1 + $0x680] ss:$8 sps:$4 sm:$0xff]  }
  0xe1   :  { %3145 = vmatprep.subr.bf16.mxu1 %v4224_v7  ;;  %v4264_v7 = vld [vmem:[%s6060_s1 + $0x780] ss:$8 sps:$4 sm:$0xff]  }
  0xe2   :  { %2863 = vmatmul.mubr.bf16.gmra.mxu0 %v3568_v9  ;;  %v5369_v9 = vsub.s32 0, %v409_v1 }
  0xe3   :  { %2976 = vmatmul.mubr.bf16.gmra.mxu1 %v3570_v10  ;;  %3033 = vmatpush2.bf16.msra.mxu0 %v4219_v14  ;;  %v44_v10 = vld [vmem:[%s6061_s0 + $0xb0] sm:$0xff]  ;;  %v414_v14 = vsub.s32 1, %v409_v1 }
  0xe4   :  { %3146 = vmatpush2.bf16.msra.mxu1 %v4222_v15  ;;  %3034 = vmatprep.subr.bf16.mxu0 %v4227_v16  ;;  %6068 = vst [vmem:[#allocation3_spill] sm:$0xff] %v5369_v9  ;;  %v3508_v15 = vcombine.low %v28_v57, %v36_v60  ;;  %v3510_v16 = vcombine.low %v29_v61, %v37_v62 }
  0xe5   :  { %3147 = vmatprep.subr.bf16.mxu1 %v4230_v17  ;;  %2872 = vmatprep.mubr.bf16.mxu0 %v3585_v18  ;;  %v5384_v17 = vrot.slane %v406_v8, %v5369_v9  ;;  %v3525_v18 = vcombine.high %v44_v10, %v52_v11 }
  0xe6   :  { %2985 = vmatprep.mubr.bf16.mxu1 %v3587_v19  ;;  %v3527_v19 = vcombine.high %v45_v12, %v53_v13 }
  0xe7   :  { %3035 = vmatpush2.bf16.msra.mxu0 %v4225_v20  ;;  %v5386_v20 = vrot.slane %v406_v8, %v414_v14  ;;  %v92_v8 = vld [vmem:[%s6061_s0 + $0x230] sm:$0xff]  ;;  %v101_v14 = vld [vmem:[%s6061_s0 + $0x278] sm:$0xff] }
  0xe8   :  { %3148 = vmatpush2.bf16.msra.mxu1 %v4228_v21  ;;  %3036 = vmatprep.subr.bf16.mxu0 %v4233_v22 }
  0xe9   :  { %3149 = vmatprep.subr.bf16.mxu1 %v4236_v23 }
  0xea   :  { %2873 = vmatmul.mubr.bf16.gmra.mxu0 %v3584_v25 }
  0xeb   :  { %2986 = vmatmul.mubr.bf16.gmra.mxu1 %v3586_v26  ;;  %3037 = vmatpush2.bf16.msra.mxu0 %v4231_v30 }
  0xec   :  { %3150 = vmatpush2.bf16.msra.mxu1 %v4234_v31  ;;  %3038 = vmatprep.subr.bf16.mxu0 %v4239_v32 }
  0xed   :  { %3151 = vmatprep.subr.bf16.mxu1 %v4242_v33  ;;  %2882 = vmatprep.mubr.bf16.mxu0 %v3601_v34  ;;  %v3524_v34 = vcombine.low %v44_v10, %v52_v11 }
  0xee   :  { %2995 = vmatprep.mubr.bf16.mxu1 %v3603_v35  ;;  %v3526_v35 = vcombine.low %v45_v12, %v53_v13  ;;  %v100_v12 = vld [vmem:[%s6061_s0 + $0x270] sm:$0xff]  ;;  %v93_v13 = vld [vmem:[%s6061_s0 + $0x238] sm:$0xff] }
  0xef   :  { %3039 = vmatpush2.bf16.msra.mxu0 %v4237_v36 }
  0xf0   :  { %3152 = vmatpush2.bf16.msra.mxu1 %v4240_v37  ;;  %3040 = vmatprep.subr.bf16.mxu0 %v4245_v38  ;;  %v3541_v38 = vcombine.high %v60_v24, %v68_v27 }
  0xf1   :  { %3153 = vmatprep.subr.bf16.mxu1 %v4248_v39  ;;  %v3543_v39 = vcombine.high %v61_v28, %v69_v29 }
  0xf2   :  { %2883 = vmatmul.mubr.bf16.gmra.mxu0 %v3600_v41 }
  0xf3   :  { %2996 = vmatmul.mubr.bf16.gmra.mxu1 %v3602_v42  ;;  %3041 = vmatpush2.bf16.msra.mxu0 %v4243_v46 }
  0xf4   :  { %3154 = vmatpush2.bf16.msra.mxu1 %v4246_v47  ;;  %3042 = vmatprep.subr.bf16.mxu0 %v4251_v48  ;;  %v76_v48 = vld [vmem:[%s6061_s0 + $0x1b0] sm:$0xff] }
  0xf5   :  { %3155 = vmatprep.subr.bf16.mxu1 %v4254_v49  ;;  %2892 = vmatprep.mubr.bf16.mxu0 %v3617_v50 }
  0xf6   :  { %3005 = vmatprep.mubr.bf16.mxu1 %v3619_v51  ;;  %v84_v51 = vld [vmem:[%s6061_s0 + $0x1f0] sm:$0xff] }
  0xf7   :  { %3043 = vmatpush2.bf16.msra.mxu0 %v4249_v52  ;;  %v77_v52 = vld [vmem:[%s6061_s0 + $0x1b8] sm:$0xff]  ;;  %v3557_v62 = vcombine.high %v76_v48, %v84_v51 }
  0xf8   :  { %3156 = vmatpush2.bf16.msra.mxu1 %v4252_v53  ;;  %3044 = vmatprep.subr.bf16.mxu0 %v4257_v55  ;;  %v85_v53 = vld [vmem:[%s6061_s0 + $0x1f8] sm:$0xff] }
  0xf9   :  { %3157 = vmatprep.subr.bf16.mxu1 %v4260_v56 }
  0xfa   :  { %2893 = vmatmul.mubr.bf16.gmra.mxu0 %v3616_v58  ;;  %v3540_v58 = vcombine.low %v60_v24, %v68_v27 }
  0xfb   :  { %3006 = vmatmul.mubr.bf16.gmra.mxu1 %v3618_v59  ;;  %3045 = vmatpush2.bf16.msra.mxu0 %v4255_v63  ;;  %v3542_v59 = vcombine.low %v61_v28, %v69_v29  ;;  %v3559_v63 = vcombine.high %v77_v52, %v85_v53 }
  0xfc   :  { %3158 = vmatpush2.bf16.msra.mxu1 %v4258_v0  ;;  %3046 = vmatprep.subr.bf16.mxu0 %v4263_v2 }
  0xfd   :  { %3159 = vmatprep.subr.bf16.mxu1 %v4266_v3  ;;  %3048 = vmatprep.mubr.bf16.mxu0 %v3509_v4 }
  0xfe   :  { %3161 = vmatprep.mubr.bf16.mxu1 %v3511_v5 }
  0xff   :  { %3047 = vmatpush2.bf16.msra.mxu0 %v4261_v6 }
 0x100   :  { %3160 = vmatpush2.bf16.msra.mxu1 %v4264_v7 }
 0x102   :  { %v2372_v21 = vpop.f32.mrf.mxu0  ;;  %3049 = vmatmul.mubr.bf16.vlgmr.msra.gmra.mxu0 %v3508_v15 }
 0x103   :  { %v2485_v22 = vpop.f32.mrf.mxu1  ;;  %3162 = vmatmul.mubr.bf16.vlgmr.msra.gmra.mxu1 %v3510_v16  ;;  %v2373_v23 = vadd.f32 %v2372_v21, %v5384_v17  ;;  %3058 = vmatprep.mubr.bf16.mxu0 %v3525_v18  ;;  %v3556_v21 = vcombine.low %v76_v48, %v84_v51 }
 0x104   :  { %3171 = vmatprep.mubr.bf16.mxu1 %v3527_v19  ;;  %v2374_v25 = vpop.f32.mrf.mxu0 }
 0x105   :  { %v2487_v26 = vpop.f32.mrf.mxu1  ;;  %v5401_v30 = vadd.f32 %v2485_v22, %v2373_v23  ;;  %v2375_v31 = vadd.f32 %v2374_v25, %v5386_v20  ;;  %v3558_v22 = vcombine.low %v77_v52, %v85_v53  ;;  %v3573_v25 = vcombine.high %v92_v8, %v100_v12 }
 0x106   :  { %v2376_v32 = vpop.f32.mrf.mxu0 }
 0x107   :  { %v2489_v33 = vpop.f32.mrf.mxu1  ;;  %v5404_v36 = vadd.f32 %v2487_v26, %v2375_v31  ;;  %v2377_v37 = vadd.f32 %v2376_v32, %v5384_v17  ;;  %v3575_v26 = vcombine.high %v93_v13, %v101_v14 }
 0x108   :  { %v2378_v40 = vpop.f32.mrf.mxu0 }
 0x109   :  { %v2491_v41 = vpop.f32.mrf.mxu1  ;;  %v5407_v42 = vadd.f32 %v2489_v33, %v2377_v37  ;;  %v2379_v43 = vadd.f32 %v2378_v40, %v5386_v20  ;;  %v108_v37 = vld [vmem:[%s6061_s0 + $0x2b0] sm:$0xff] }
 0x10a   :  { %v2382_v44 = vpop.f32.mrf.mxu0  ;;  %3059 = vmatmul.mubr.bf16.gmra.mxu0 %v3524_v34  ;;  %v116_v40 = vld [vmem:[%s6061_s0 + $0x2f0] sm:$0xff] }
 0x10b   :  { %v2495_v45 = vpop.f32.mrf.mxu1  ;;  %3172 = vmatmul.mubr.bf16.gmra.mxu1 %v3526_v35  ;;  %v5410_v46 = vadd.f32 %v2491_v41, %v2379_v43  ;;  %v2383_v47 = vadd.f32 %v2382_v44, %v5384_v17  ;;  %3068 = vmatprep.mubr.bf16.mxu0 %v3541_v38  ;;  %v109_v41 = vld [vmem:[%s6061_s0 + $0x2b8] sm:$0xff]  ;;  %v3589_v53 = vcombine.high %v108_v37, %v116_v40 }
 0x10c   :  { %3181 = vmatprep.mubr.bf16.mxu1 %v3543_v39  ;;  %v2384_v49 = vpop.f32.mrf.mxu0  ;;  %v117_v43 = vld [vmem:[%s6061_s0 + $0x2f8] sm:$0xff] }
 0x10d   :  { %v2497_v50 = vpop.f32.mrf.mxu1  ;;  %v5425_v54 = vadd.f32 %v2495_v45, %v2383_v47  ;;  %v2385_v55 = vadd.f32 %v2384_v49, %v5386_v20  ;;  %v3572_v49 = vcombine.low %v92_v8, %v100_v12  ;;  %v133_v8 = vld [vmem:[%s6061_s0 + $0x378] sm:$0xff] }
 0x10e   :  { %v2386_v56 = vpop.f32.mrf.mxu0 }
 0x10f   :  { %v2499_v57 = vpop.f32.mrf.mxu1  ;;  %v5428_v60 = vadd.f32 %v2497_v50, %v2385_v55  ;;  %v2387_v61 = vadd.f32 %v2386_v56, %v5384_v17  ;;  %v3574_v50 = vcombine.low %v93_v13, %v101_v14  ;;  %v3591_v55 = vcombine.high %v109_v41, %v117_v43 }
 0x110   :  { %v2388_v0 = vpop.f32.mrf.mxu0  ;;  %v3588_v14 = vcombine.low %v108_v37, %v116_v40  ;;  %v141_v40 = vld [vmem:[%s6061_s0 + $0x3b8] sm:$0xff] }
 0x111   :  { %v2501_v1 = vpop.f32.mrf.mxu1  ;;  %v5431_v2 = vadd.f32 %v2499_v57, %v2387_v61  ;;  %v2389_v3 = vadd.f32 %v2388_v0, %v5386_v20 }
 0x112   :  { %v2392_v4 = vpop.f32.mrf.mxu0  ;;  %3069 = vmatmul.mubr.bf16.gmra.mxu0 %v3540_v58 }
 0x113   :  { %v2505_v5 = vpop.f32.mrf.mxu1  ;;  %3182 = vmatmul.mubr.bf16.gmra.mxu1 %v3542_v59  ;;  %v5434_v6 = vadd.f32 %v2501_v1, %v2389_v3  ;;  %v2393_v7 = vadd.f32 %v2392_v4, %v5384_v17  ;;  %3078 = vmatprep.mubr.bf16.mxu0 %v3557_v62  ;;  %v124_v1 = vld [vmem:[%s6061_s0 + $0x330] sm:$0xff] }
 0x114   :  { %3191 = vmatprep.mubr.bf16.mxu1 %v3559_v63  ;;  %v2394_v10 = vpop.f32.mrf.mxu0 }
 0x115   :  { %v2507_v11 = vpop.f32.mrf.mxu1  ;;  %v5449_v15 = vadd.f32 %v2505_v5, %v2393_v7  ;;  %v2395_v16 = vadd.f32 %v2394_v10, %v5386_v20  ;;  %v132_v5 = vld [vmem:[%s6061_s0 + $0x370] sm:$0xff]  ;;  %v125_v7 = vld [vmem:[%s6061_s0 + $0x338] sm:$0xff] }
 0x116   :  { %v2396_v18 = vpop.f32.mrf.mxu0 }
 0x117   :  { %v2509_v19 = vpop.f32.mrf.mxu1  ;;  %v5452_v23 = vadd.f32 %v2507_v11, %v2395_v16  ;;  %v2397_v24 = vadd.f32 %v2396_v18, %v5384_v17  ;;  %v3590_v16 = vcombine.low %v109_v41, %v117_v43  ;;  %v149_v41 = vld [vmem:[%s6061_s0 + $0x3f8] sm:$0xff] }
 0x118   :  { %v2398_v27 = vpop.f32.mrf.mxu0 }
 0x119   :  { %v2511_v28 = vpop.f32.mrf.mxu1  ;;  %v5455_v29 = vadd.f32 %v2509_v19, %v2397_v24  ;;  %v2399_v31 = vadd.f32 %v2398_v27, %v5386_v20 }
 0x11a   :  { %v2402_v32 = vpop.f32.mrf.mxu0  ;;  %3079 = vmatmul.mubr.bf16.gmra.mxu0 %v3556_v21  ;;  %v3605_v21 = vcombine.high %v124_v1, %v132_v5 }
 0x11b   :  { %v2515_v33 = vpop.f32.mrf.mxu1  ;;  %3192 = vmatmul.mubr.bf16.gmra.mxu1 %v3558_v22  ;;  %v5458_v34 = vadd.f32 %v2511_v28, %v2399_v31  ;;  %v2403_v35 = vadd.f32 %v2402_v32, %v5384_v17  ;;  %3088 = vmatprep.mubr.bf16.mxu0 %v3573_v25  ;;  %v3607_v22 = vcombine.high %v125_v7, %v133_v8 }
 0x11c   :  { %3201 = vmatprep.mubr.bf16.mxu1 %v3575_v26  ;;  %v2404_v38 = vpop.f32.mrf.mxu0 }
 0x11d   :  { %v2517_v39 = vpop.f32.mrf.mxu1  ;;  %v5473_v44 = vadd.f32 %v2515_v33, %v2403_v35  ;;  %v2405_v45 = vadd.f32 %v2404_v38, %v5386_v20  ;;  %v140_v35 = vld [vmem:[%s6061_s0 + $0x3b0] sm:$0xff] }
 0x11e   :  { %v2406_v47 = vpop.f32.mrf.mxu0 }
 0x11f   :  { %v2519_v48 = vpop.f32.mrf.mxu1  ;;  %v5476_v51 = vadd.f32 %v2517_v39, %v2405_v45  ;;  %v2407_v52 = vadd.f32 %v2406_v47, %v5384_v17  ;;  %v148_v39 = vld [vmem:[%s6061_s0 + $0x3f0] sm:$0xff] }
 0x120   :  { %v2408_v56 = vpop.f32.mrf.mxu0 }
 0x121   :  { %v2521_v57 = vpop.f32.mrf.mxu1  ;;  %v5479_v58 = vadd.f32 %v2519_v48, %v2407_v52  ;;  %v2409_v59 = vadd.f32 %v2408_v56, %v5386_v20  ;;  %v3623_v56 = vcombine.high %v141_v40, %v149_v41 }
 0x122   :  { %v2412_v61 = vpop.f32.mrf.mxu0  ;;  %3089 = vmatmul.mubr.bf16.gmra.mxu0 %v3572_v49  ;;  %v3604_v49 = vcombine.low %v124_v1, %v132_v5 }
 0x123   :  { %v2525_v62 = vpop.f32.mrf.mxu1  ;;  %3202 = vmatmul.mubr.bf16.gmra.mxu1 %v3574_v50  ;;  %v5482_v63 = vadd.f32 %v2521_v57, %v2409_v59  ;;  %v2413_v0 = vadd.f32 %v2412_v61, %v5384_v17  ;;  %3098 = vmatprep.mubr.bf16.mxu0 %v3589_v53  ;;  %v3606_v50 = vcombine.low %v125_v7, %v133_v8 }
 0x124   :  { %3211 = vmatprep.mubr.bf16.mxu1 %v3591_v55  ;;  %v2414_v3 = vpop.f32.mrf.mxu0  ;;  %v3621_v55 = vcombine.high %v140_v35, %v148_v39 }
 0x125   :  { %v2527_v4 = vpop.f32.mrf.mxu1  ;;  %v5497_v10 = vadd.f32 %v2525_v62, %v2413_v0  ;;  %v2415_v11 = vadd.f32 %v2414_v3, %v5386_v20 }
 0x126   :  { %v2416_v12 = vpop.f32.mrf.mxu0 }
 0x127   :  { %v2529_v13 = vpop.f32.mrf.mxu1  ;;  %v5500_v18 = vadd.f32 %v2527_v4, %v2415_v11  ;;  %v2417_v19 = vadd.f32 %v2416_v12, %v5384_v17 }
 0x128   :  { %v2418_v24 = vpop.f32.mrf.mxu0 }
 0x129   :  { %v2531_v25 = vpop.f32.mrf.mxu1  ;;  %v5503_v26 = vadd.f32 %v2529_v13, %v2417_v19  ;;  %v2419_v27 = vadd.f32 %v2418_v24, %v5386_v20 }
 0x12a   :  { %v2422_v28 = vpop.f32.mrf.mxu0  ;;  %3099 = vmatmul.mubr.bf16.gmra.mxu0 %v3588_v14  ;;  %v3620_v14 = vcombine.low %v140_v35, %v148_v39 }
 0x12b   :  { %v2535_v31 = vpop.f32.mrf.mxu1  ;;  %3212 = vmatmul.mubr.bf16.gmra.mxu1 %v3590_v16  ;;  %v5506_v32 = vadd.f32 %v2531_v25, %v2419_v27  ;;  %v2423_v33 = vadd.f32 %v2422_v28, %v5384_v17  ;;  %3108 = vmatprep.mubr.bf16.mxu0 %v3605_v21  ;;  %v3622_v16 = vcombine.low %v141_v40, %v149_v41 }
 0x12c   :  { %3221 = vmatprep.mubr.bf16.mxu1 %v3607_v22  ;;  %v2424_v37 = vpop.f32.mrf.mxu0 }
 0x12d   :  { %v2537_v38 = vpop.f32.mrf.mxu1  ;;  %v5521_v43 = vadd.f32 %v2535_v31, %v2423_v33  ;;  %v2425_v45 = vadd.f32 %v2424_v37, %v5386_v20 }
 0x12e   :  { %v2426_v47 = vpop.f32.mrf.mxu0 }
 0x12f   :  { %v2539_v48 = vpop.f32.mrf.mxu1  ;;  %v5524_v52 = vadd.f32 %v2537_v38, %v2425_v45  ;;  %v2427_v53 = vadd.f32 %v2426_v47, %v5384_v17 }
 0x130   :  { %v2428_v57 = vpop.f32.mrf.mxu0 }
 0x131   :  { %v2541_v59 = vpop.f32.mrf.mxu1  ;;  %v5527_v61 = vadd.f32 %v2539_v48, %v2427_v53  ;;  %v2429_v62 = vadd.f32 %v2428_v57, %v5386_v20 }
 0x132   :  { %v2432_v0 = vpop.f32.mrf.mxu0  ;;  %3109 = vmatmul.mubr.bf16.gmra.mxu0 %v3604_v49 }
 0x133   :  { %v2545_v3 = vpop.f32.mrf.mxu1  ;;  %3222 = vmatmul.mubr.bf16.gmra.mxu1 %v3606_v50  ;;  %v5530_v4 = vadd.f32 %v2541_v59, %v2429_v62  ;;  %v2433_v1 = vadd.f32 %v2432_v0, %v5384_v17  ;;  %3118 = vmatprep.mubr.bf16.mxu0 %v3621_v55 }
 0x134   :  { %3231 = vmatprep.mubr.bf16.mxu1 %v3623_v56  ;;  %v2434_v5 = vpop.f32.mrf.mxu0 }
 0x135   :  { %v2547_v7 = vpop.f32.mrf.mxu1  ;;  %v5533_v8 = vadd.f32 %v2545_v3, %v2433_v1  ;;  %v2435_v11 = vadd.f32 %v2434_v5, %v5386_v20 }
 0x136   :  { %v2436_v12 = vpop.f32.mrf.mxu0 }
 0x137   :  { %v2549_v13 = vpop.f32.mrf.mxu1  ;;  %v5536_v19 = vadd.f32 %v2547_v7, %v2435_v11  ;;  %v2437_v21 = vadd.f32 %v2436_v12, %v5384_v17 }
 0x138   :  { %v2438_v22 = vpop.f32.mrf.mxu0 }
 0x139   :  { %v2551_v24 = vpop.f32.mrf.mxu1  ;;  %v5539_v25 = vadd.f32 %v2549_v13, %v2437_v21  ;;  %v2439_v27 = vadd.f32 %v2438_v22, %v5386_v20 }
 0x13a   :  { %v2442_v28 = vpop.f32.mrf.mxu0  ;;  %3119 = vmatmul.mubr.bf16.gmra.mxu0 %v3620_v14 }
 0x13b   :  { %v2555_v31 = vpop.f32.mrf.mxu1  ;;  %3232 = vmatmul.mubr.bf16.gmra.mxu1 %v3622_v16  ;;  %v5542_v33 = vadd.f32 %v2551_v24, %v2439_v27  ;;  %v2443_v37 = vadd.f32 %v2442_v28, %v5384_v17 }
 0x13c   :  { %v2444_v35 = vpop.f32.mrf.mxu0 }
 0x13d   :  { %v2557_v38 = vpop.f32.mrf.mxu1  ;;  %v5545_v39 = vadd.f32 %v2555_v31, %v2443_v37  ;;  %v2445_v40 = vadd.f32 %v2444_v35, %v5386_v20 }
 0x13e   :  { %v2446_v41 = vpop.f32.mrf.mxu0 }
 0x13f   :  { %v2559_v45 = vpop.f32.mrf.mxu1  ;;  %v5548_v47 = vadd.f32 %v2557_v38, %v2445_v40  ;;  %v2447_v48 = vadd.f32 %v2446_v41, %v5384_v17 }
 0x140   :  { %v2448_v49 = vpop.f32.mrf.mxu0 }
 0x141   :  { %v2561_v50 = vpop.f32.mrf.mxu1  ;;  %v5551_v53 = vadd.f32 %v2559_v45, %v2447_v48  ;;  %v2449_v55 = vadd.f32 %v2448_v49, %v5386_v20 }
 0x142   :  { %v2598_v56 = vpop.f32.mrf.mxu0 }
 0x143   :  { %v2711_v57 = vpop.f32.mrf.mxu1  ;;  %v5554_v59 = vadd.f32 %v2561_v50, %v2449_v55  ;;  %v2599_v62 = vadd.f32 %v2598_v56, %v5401_v30 }
 0x144   :  { %v2600_v0 = vpop.f32.mrf.mxu0 }
 0x145   :  { %v2713_v3 = vpop.f32.mrf.mxu1  ;;  %v5557_v1 = vadd.f32 %v2711_v57, %v2599_v62  ;;  %v2601_v5 = vadd.f32 %v2600_v0, %v5404_v36 }
 0x146   :  { %v2602_v7 = vpop.f32.mrf.mxu0 }
 0x147   :  { %v2715_v17 = vpop.f32.mrf.mxu1  ;;  %v5560_v11 = vadd.f32 %v2713_v3, %v2601_v5  ;;  %v2603_v12 = vadd.f32 %v2602_v7, %v5407_v42 }
 0x148   :  { %v2604_v13 = vpop.f32.mrf.mxu0 }
 0x149   :  { %v2717_v20 = vpop.f32.mrf.mxu1  ;;  %v5563_v14 = vadd.f32 %v2715_v17, %v2603_v12  ;;  %v2605_v16 = vadd.f32 %v2604_v13, %v5410_v46 }
 0x14a   :  { %v2608_v21 = vpop.f32.mrf.mxu0 }
 0x14b   :  { %v2721_v30 = vpop.f32.mrf.mxu1  ;;  %v5566_v22 = vadd.f32 %v2717_v20, %v2605_v16  ;;  %v2609_v24 = vadd.f32 %v2608_v21, %v5425_v54 }
 0x14c   :  { %v2610_v27 = vpop.f32.mrf.mxu0 }
 0x14d   :  { %v2723_v36 = vpop.f32.mrf.mxu1  ;;  %v5569_v28 = vadd.f32 %v2721_v30, %v2609_v24  ;;  %v2611_v31 = vadd.f32 %v2610_v27, %v5428_v60 }
 0x14e   :  { %v2612_v37 = vpop.f32.mrf.mxu0 }
 0x14f   :  { %v2725_v42 = vpop.f32.mrf.mxu1  ;;  %v5572_v35 = vadd.f32 %v2723_v36, %v2611_v31  ;;  %v2613_v38 = vadd.f32 %v2612_v37, %v5431_v2 }
 0x150   :  { %v2614_v40 = vpop.f32.mrf.mxu0 }
 0x151   :  { %v2727_v46 = vpop.f32.mrf.mxu1  ;;  %v5575_v41 = vadd.f32 %v2725_v42, %v2613_v38  ;;  %v2615_v45 = vadd.f32 %v2614_v40, %v5434_v6 }
 0x152   :  { %v2618_v48 = vpop.f32.mrf.mxu0 }
 0x153   :  { %v2731_v54 = vpop.f32.mrf.mxu1  ;;  %v5578_v49 = vadd.f32 %v2727_v46, %v2615_v45  ;;  %v2619_v50 = vadd.f32 %v2618_v48, %v5449_v15 }
 0x154   :  { %v2620_v55 = vpop.f32.mrf.mxu0 }
 0x155   :  { %v2733_v60 = vpop.f32.mrf.mxu1  ;;  %v5581_v56 = vadd.f32 %v2731_v54, %v2619_v50  ;;  %v2621_v57 = vadd.f32 %v2620_v55, %v5452_v23 }
 0x156   :  { %v2622_v62 = vpop.f32.mrf.mxu0 }
 0x157   :  { %v2735_v2 = vpop.f32.mrf.mxu1  ;;  %v5584_v0 = vadd.f32 %v2733_v60, %v2621_v57  ;;  %v2623_v3 = vadd.f32 %v2622_v62, %v5455_v29 }
 0x158   :  { %v2624_v5 = vpop.f32.mrf.mxu0 }
 0x159   :  { %v2737_v6 = vpop.f32.mrf.mxu1  ;;  %v5587_v7 = vadd.f32 %v2735_v2, %v2623_v3  ;;  %v2625_v17 = vadd.f32 %v2624_v5, %v5458_v34 }
 0x15a   :  { %v2628_v12 = vpop.f32.mrf.mxu0 }
 0x15b   :  { %v2741_v15 = vpop.f32.mrf.mxu1  ;;  %v5590_v13 = vadd.f32 %v2737_v6, %v2625_v17  ;;  %v2629_v20 = vadd.f32 %v2628_v12, %v5473_v44 }
 0x15c   :  { %v2630_v16 = vpop.f32.mrf.mxu0 }
 0x15d   :  { %v2743_v23 = vpop.f32.mrf.mxu1  ;;  %v5593_v21 = vadd.f32 %v2741_v15, %v2629_v20  ;;  %v2631_v30 = vadd.f32 %v2630_v16, %v5476_v51 }
 0x15e   :  { %v2632_v24 = vpop.f32.mrf.mxu0 }
 0x15f   :  { %v2745_v29 = vpop.f32.mrf.mxu1  ;;  %v5596_v27 = vadd.f32 %v2743_v23, %v2631_v30  ;;  %v2633_v36 = vadd.f32 %v2632_v24, %v5479_v58 }
 0x160   :  { %v2634_v31 = vpop.f32.mrf.mxu0 }
 0x161   :  { %v2747_v34 = vpop.f32.mrf.mxu1  ;;  %v5599_v37 = vadd.f32 %v2745_v29, %v2633_v36  ;;  %v2635_v42 = vadd.f32 %v2634_v31, %v5482_v63 }
 0x162   :  { %v2638_v38 = vpop.f32.mrf.mxu0 }
 0x163   :  { %v2751_v44 = vpop.f32.mrf.mxu1  ;;  %v5602_v40 = vadd.f32 %v2747_v34, %v2635_v42  ;;  %v2639_v46 = vadd.f32 %v2638_v38, %v5497_v10 }
 0x164   :  { %v2640_v45 = vpop.f32.mrf.mxu0 }
 0x165   :  { %v2753_v51 = vpop.f32.mrf.mxu1  ;;  %v5605_v48 = vadd.f32 %v2751_v44, %v2639_v46  ;;  %v2641_v54 = vadd.f32 %v2640_v45, %v5500_v18 }
 0x166   :  { %v2642_v50 = vpop.f32.mrf.mxu0 }
 0x167   :  { %v2755_v58 = vpop.f32.mrf.mxu1  ;;  %v5608_v55 = vadd.f32 %v2753_v51, %v2641_v54  ;;  %v2643_v60 = vadd.f32 %v2642_v50, %v5503_v26 }
 0x168   :  { %v2644_v57 = vpop.f32.mrf.mxu0 }
 0x169   :  { %6069 = vst [vmem:[#allocation4_spill] sm:$0xff] %v5608_v55  ;;  %v2757_v63 = vpop.f32.mrf.mxu1  ;;  %v5611_v62 = vadd.f32 %v2755_v58, %v2643_v60  ;;  %v2645_v2 = vadd.f32 %v2644_v57, %v5506_v32 }
 0x16a   :  { %v2648_v3 = vpop.f32.mrf.mxu0 }
 0x16b   :  { %6070 = vst [vmem:[#allocation5_spill] sm:$0xff] %v5611_v62  ;;  %v2761_v10 = vpop.f32.mrf.mxu1  ;;  %v5614_v5 = vadd.f32 %v2757_v63, %v2645_v2  ;;  %v2649_v6 = vadd.f32 %v2648_v3, %v5521_v43 }
 0x16c   :  { %v2650_v17 = vpop.f32.mrf.mxu0 }
 0x16d   :  { %6071 = vst [vmem:[#allocation6_spill] sm:$0xff] %v5614_v5  ;;  %v2763_v18 = vpop.f32.mrf.mxu1  ;;  %v5617_v12 = vadd.f32 %v2761_v10, %v2649_v6  ;;  %v2651_v15 = vadd.f32 %v2650_v17, %v5524_v52 }
 0x16e   :  { %v2652_v20 = vpop.f32.mrf.mxu0 }
 0x16f   :  { %6072 = vst [vmem:[#allocation7_spill] sm:$0xff] %v5617_v12  ;;  %v2765_v26 = vpop.f32.mrf.mxu1  ;;  %v5620_v16 = vadd.f32 %v2763_v18, %v2651_v15  ;;  %v2653_v23 = vadd.f32 %v2652_v20, %v5527_v61 }
 0x170   :  { %v2654_v30 = vpop.f32.mrf.mxu0 }
 0x171   :  { %6073 = vst [vmem:[#allocation8_spill] sm:$0xff] %v5620_v16  ;;  %v2767_v32 = vpop.f32.mrf.mxu1  ;;  %v5623_v24 = vadd.f32 %v2765_v26, %v2653_v23  ;;  %v2655_v29 = vadd.f32 %v2654_v30, %v5530_v4 }
 0x172   :  { %v2658_v36 = vpop.f32.mrf.mxu0 }
 0x173   :  { %6074 = vst [vmem:[#allocation9_spill] sm:$0xff] %v5623_v24  ;;  %v2771_v43 = vpop.f32.mrf.mxu1  ;;  %v5626_v31 = vadd.f32 %v2767_v32, %v2655_v29  ;;  %v2659_v34 = vadd.f32 %v2658_v36, %v5533_v8 }
 0x174   :  { %v2660_v42 = vpop.f32.mrf.mxu0 }
 0x175   :  { %6075 = vst [vmem:[#allocation10_spill] sm:$0xff] %v5626_v31  ;;  %v2773_v52 = vpop.f32.mrf.mxu1  ;;  %v5629_v38 = vadd.f32 %v2771_v43, %v2659_v34  ;;  %v2661_v44 = vadd.f32 %v2660_v42, %v5536_v19 }
 0x176   :  { %v2662_v46 = vpop.f32.mrf.mxu0 }
 0x177   :  { %6076 = vst [vmem:[#allocation11_spill] sm:$0xff] %v5629_v38  ;;  %v2775_v61 = vpop.f32.mrf.mxu1  ;;  %v5632_v45 = vadd.f32 %v2773_v52, %v2661_v44  ;;  %v2663_v51 = vadd.f32 %v2662_v46, %v5539_v25 }
 0x178   :  { %v2664_v54 = vpop.f32.mrf.mxu0 }
 0x179   :  { %6077 = vst [vmem:[#allocation12_spill] sm:$0xff] %v5632_v45  ;;  %v2777_v4 = vpop.f32.mrf.mxu1  ;;  %v5635_v50 = vadd.f32 %v2775_v61, %v2663_v51  ;;  %v2665_v58 = vadd.f32 %v2664_v54, %v5542_v33 }
 0x17a   :  { %v2668_v60 = vpop.f32.mrf.mxu0 }
 0x17b   :  { %6078 = vst [vmem:[#allocation13_spill] sm:$0xff] %v5635_v50  ;;  %v2781_v8 = vpop.f32.mrf.mxu1  ;;  %v5638_v57 = vadd.f32 %v2777_v4, %v2665_v58  ;;  %v2669_v63 = vadd.f32 %v2668_v60, %v5545_v39 }
 0x17c   :  { %v2670_v2 = vpop.f32.mrf.mxu0 }
 0x17d   :  { %6079 = vst [vmem:[#allocation14_spill] sm:$0xff] %v5638_v57  ;;  %v2783_v19 = vpop.f32.mrf.mxu1  ;;  %v5641_v3 = vadd.f32 %v2781_v8, %v2669_v63  ;;  %v2671_v10 = vadd.f32 %v2670_v2, %v5548_v47 }
 0x17e   :  { %v2672_v6 = vpop.f32.mrf.mxu0 }
 0x17f   :  { %6080 = vst [vmem:[#allocation15_spill] sm:$0xff] %v5641_v3  ;;  %v2785_v25 = vpop.f32.mrf.mxu1  ;;  %v5644_v17 = vadd.f32 %v2783_v19, %v2671_v10  ;;  %v2673_v18 = vadd.f32 %v2672_v6, %v5551_v53 }
 0x180   :  { %v2674_v15 = vpop.f32.mrf.mxu0 }
 0x181   :  { %6081 = vst [vmem:[#allocation16_spill] sm:$0xff] %v5644_v17  ;;  %v2787_v33 = vpop.f32.mrf.mxu1  ;;  %v5647_v20 = vadd.f32 %v2785_v25, %v2673_v18  ;;  %v2675_v26 = vadd.f32 %v2674_v15, %v5554_v59 }
 0x182   :  { %v5650_v23 = vpop.f32.mrf.mxu0 }
 0x183   :  { %6082 = vst [vmem:[#allocation17_spill] sm:$0xff] %v5647_v20  ;;  %v5652_v39 = vpop.f32.mrf.mxu1  ;;  %v5654_v30 = vadd.f32 %v2787_v33, %v2675_v26 }
 0x184   :  { %v5656_v32 = vpop.f32.mrf.mxu0 }
 0x185   :  { %6083 = vst [vmem:[#allocation18_spill] sm:$0xff] %v5654_v30  ;;  %v5658_v47 = vpop.f32.mrf.mxu1 }
 0x186   :  { %v5660_v29 = vpop.f32.mrf.mxu0 }
 0x187   :  { %v5662_v36 = vpop.f32.mrf.mxu1 }
 0x188   :  { %v5664_v53 = vpop.f32.mrf.mxu0 }
 0x189   :  { %v5666_v43 = vpop.f32.mrf.mxu1 }
 0x18a   :  { %v5668_v34 = vpop.f32.mrf.mxu0 }
 0x18b   :  { %v5670_v59 = vpop.f32.mrf.mxu1 }
 0x18c   :  { %v5672_v42 = vpop.f32.mrf.mxu0 }
 0x18d   :  { %v5674_v52 = vpop.f32.mrf.mxu1 }
 0x18e   :  { %v5676_v44 = vpop.f32.mrf.mxu0 }
 0x18f   :  { %v5678_v46 = vpop.f32.mrf.mxu1 }
 0x190   :  { %v5680_v61 = vpop.f32.mrf.mxu0 }
 0x191   :  { %v5682_v51 = vpop.f32.mrf.mxu1 }
 0x192   :  { %v5684_v54 = vpop.f32.mrf.mxu0 }
 0x193   :  { %v5686_v4 = vpop.f32.mrf.mxu1 }
 0x194   :  { %v5688_v58 = vpop.f32.mrf.mxu0 }
 0x195   :  { %v5690_v60 = vpop.f32.mrf.mxu1 }
 0x196   :  { %v5692_v8 = vpop.f32.mrf.mxu0 }
 0x197   :  { %v5694_v63 = vpop.f32.mrf.mxu1 }
 0x198   :  { %v5696_v2 = vpop.f32.mrf.mxu0 }
 0x199   :  { %v5698_v19 = vpop.f32.mrf.mxu1 }
 0x19a   :  { %v5700_v10 = vpop.f32.mrf.mxu0 }
 0x19b   :  { %v5702_v6 = vpop.f32.mrf.mxu1 }
 0x19c   :  { %v5704_v25 = vpop.f32.mrf.mxu0 }
 0x19d   :  { %v5706_v18 = vpop.f32.mrf.mxu1 }
 0x19e   :  { %v5708_v15 = vpop.f32.mrf.mxu0 }
 0x19f   :  { %v5710_v33 = vpop.f32.mrf.mxu1 }
 0x1a0   :  { %v5712_v26 = vpop.f32.mrf.mxu0 }
 0x1a1   :  { %v5714_v9 = vpop.f32.mrf.mxu1 }
 0x1a2   :  { %v5716_v30 = vpop.f32.mrf.mxu0 }
 0x1a3   :  { %v5718_v20 = vpop.f32.mrf.mxu1 }
 0x1a4   :  { %6084 = vst [vmem:[#allocation19_spill] sm:$0xff] %v5718_v20  ;;  %v5720_v17 = vpop.f32.mrf.mxu0 }
 0x1a5   :  { %6085 = vst [vmem:[#allocation20_spill] sm:$0xff] %v5720_v17  ;;  %v5722_v3 = vpop.f32.mrf.mxu1  ;;  %v2829_v17 = vadd.f32 %v5660_v29, %v5563_v14  ;;  %v2835_v14 = vadd.f32 %v5668_v34, %v5569_v28 }
 0x1a6   :  { %6086 = vst [vmem:[#allocation21_spill] sm:$0xff] %v5722_v3  ;;  %v5724_v57 = vpop.f32.mrf.mxu0 }
 0x1a7   :  { %6087 = vst [vmem:[#allocation22_spill] sm:$0xff] %v5724_v57  ;;  %v5726_v50 = vpop.f32.mrf.mxu1  ;;  %v2942_v34 = vadd.f32 %v5662_v36, %v2829_v17  ;;  %v2845_v17 = vadd.f32 %v5684_v54, %v5581_v56  ;;  %v2847_v36 = vadd.f32 %v5688_v58, %v5584_v0  ;;  %v2855_v56 = vadd.f32 %v5700_v10, %v5593_v21 }
 0x1a8   :  { %6088 = vst [vmem:[#allocation23_spill] sm:$0xff] %v5726_v50  ;;  %v5728_v45 = vpop.f32.mrf.mxu0  ;;  %v2857_v0 = vadd.f32 %v5704_v25, %v5596_v27 }
 0x1a9   :  { %6089 = vst [vmem:[#allocation24_spill] sm:$0xff] %v5728_v45  ;;  %v5730_v38 = vpop.f32.mrf.mxu1 }
 0x1aa   :  { %6090 = vst [vmem:[#allocation25_spill] sm:$0xff] %v5730_v38  ;;  %v5732_v31 = vpop.f32.mrf.mxu0 }
 0x1ab   :  { %6091 = vst [vmem:[#allocation26_spill] sm:$0xff] %v5732_v31  ;;  %v5734_v24 = vpop.f32.mrf.mxu1 }
 0x1ac   :  { %6092 = vst [vmem:[#allocation27_spill] sm:$0xff] %v5734_v24  ;;  %v5736_v16 = vpop.f32.mrf.mxu0 }
 0x1ad   :  { %6093 = vst [vmem:[#allocation28_spill] sm:$0xff] %v5736_v16  ;;  %v5738_v12 = vpop.f32.mrf.mxu1 }
 0x1ae   :  { %6094 = vst [vmem:[#allocation29_spill] sm:$0xff] %v5738_v12  ;;  %v5740_v5 = vpop.f32.mrf.mxu0 }
 0x1af   :  { %6095 = vst [vmem:[#allocation30_spill] sm:$0xff] %v5740_v5  ;;  %v5742_v62 = vpop.f32.mrf.mxu1 }
 0x1b0   :  { %6096 = vst [vmem:[#allocation31_spill] sm:$0xff] %v5742_v62  ;;  %v5744_v3 = vpop.f32.mrf.mxu0 }
 0x1b1   :  { %6097 = vst [vmem:[#allocation32_spill] sm:$0xff] %v5744_v3  ;;  %v5746_v57 = vpop.f32.mrf.mxu1 }
 0x1b2   :  { %6098 = vst [vmem:[#allocation33_spill] sm:$0xff] %v5746_v57  ;;  %v5748_v50 = vpop.f32.mrf.mxu0 }
 0x1b3   :  { %6099 = vst [vmem:[#allocation34_spill] sm:$0xff] %v5748_v50  ;;  %v5750_v45 = vpop.f32.mrf.mxu1  ;;  %v5820_v50 = vld [vmem:[%s6063_s3 + $0x30] sm:$0xff] }
 0x1b4   :  { %6100 = vst [vmem:[#allocation35_spill] sm:$0xff] %v5750_v45  ;;  %v5752_v38 = vpop.f32.mrf.mxu0  ;;  %v5771_v45 = vld [vmem:[%s6063_s3] sm:$0xff]  ;;  %v3359_v28 = vunpack.c.h.bf16 %v5820_v50 }
 0x1b5   :  { %6101 = vst [vmem:[#allocation36_spill] sm:$0xff] %v5752_v38  ;;  %v5754_v31 = vpop.f32.mrf.mxu1  ;;  %v5835_v38 = vld [vmem:[%s6063_s3 + $0x38] sm:$0xff] }
 0x1b6   :  { %6102 = vst [vmem:[#allocation37_spill] sm:$0xff] %v5754_v31  ;;  %v5756_v24 = vpop.f32.mrf.mxu0  ;;  %v5776_v31 = vld [vmem:[%s6063_s3 + $0x8] sm:$0xff] }
 0x1b7   :  { %6103 = vst [vmem:[#allocation38_spill] sm:$0xff] %v5756_v24  ;;  %v5758_v16 = vpop.f32.mrf.mxu1 }
 0x1b8   :  { %6104 = vst [vmem:[#allocation39_spill] sm:$0xff] %v5758_v16  ;;  %v5760_v12 = vpop.f32.mrf.mxu0 }
 0x1b9   :  { %6105 = vst [vmem:[#allocation40_spill] sm:$0xff] %v5760_v12  ;;  %v5762_v5 = vpop.f32.mrf.mxu1  ;;  %v5797_v12 = vld [vmem:[%s6063_s3 + $0x20] sm:$0xff] }
 0x1ba   :  { %6106 = vst [vmem:[#allocation41_spill] sm:$0xff] %v5762_v5  ;;  %v5764_v62 = vpop.f32.mrf.mxu0  ;;  %v5785_v5 = vld [vmem:[%s6063_s3 + $0x10] sm:$0xff]  ;;  %v3355_v29 = vunpack.c.h.bf16 %v5797_v12 }
 0x1bb   :  { %6107 = vst [vmem:[#allocation42_spill] sm:$0xff] %v5764_v62  ;;  %v5766_v3 = vpop.f32.mrf.mxu1  ;;  %v2825_v62 = vadd.f32 %v5650_v23, %v5557_v1  ;;  %v2827_v1 = vadd.f32 %v5656_v32, %v5560_v11  ;;  %v2831_v11 = vadd.f32 %v5664_v53, %v5566_v22  ;;  %v2837_v22 = vadd.f32 %v5672_v42, %v5572_v35 }
 0x1bc   :  { %6108 = vst [vmem:[#allocation43_spill] sm:$0xff] %v5766_v3  ;;  %v5778_v24 = vpop.f32.mrf.mxu0  ;;  %v5790_v3 = vld [vmem:[%s6063_s3 + $0x18] sm:$0xff]  ;;  %v2839_v53 = vadd.f32 %v5676_v44, %v5575_v41  ;;  %v3360_v35 = vunpack.c.l.bf16 %v5835_v38  ;;  %v2841_v41 = vadd.f32 %v5680_v61, %v5578_v49  ;;  %v2849_v49 = vadd.f32 %v5692_v8, %v5587_v7 }
 0x1bd   :  { %6109 = vst [vmem:[#allocation44_spill] sm:$0xff] %v5778_v24  ;;  %v5780_v16 = vpop.f32.mrf.mxu1  ;;  %v2938_v57 = vadd.f32 %v5652_v39, %v2825_v62  ;;  %v2940_v62 = vadd.f32 %v5658_v47, %v2827_v1  ;;  %v2944_v42 = vadd.f32 %v5666_v43, %v2831_v11  ;;  %v2950_v47 = vadd.f32 %v5674_v52, %v2837_v22 }
 0x1be   :  { %6110 = vst [vmem:[#allocation45_spill] sm:$0xff] %v5780_v16  ;;  %v5799_v24 = vpop.f32.mrf.mxu0  ;;  %v2952_v1 = vadd.f32 %v5678_v46, %v2839_v53  ;;  %v2954_v52 = vadd.f32 %v5682_v51, %v2841_v41  ;;  %v2851_v46 = vadd.f32 %v5696_v2, %v5590_v13  ;;  %v2960_v22 = vadd.f32 %v5690_v60, %v2847_v36 }
 0x1bf   :  { %6111 = vst [vmem:[#allocation46_spill] sm:$0xff] %v5799_v24  ;;  %v5801_v16 = vpop.f32.mrf.mxu1  ;;  %v2948_v24 = vadd.f32 %v5670_v59, %v2835_v14  ;;  %v5875_v51 = vadd.f32 %v5694_v63, %v2849_v49 }
 0x1c0   :  { %6112 = vst [vmem:[#allocation47_spill] sm:$0xff] %v5801_v16  ;;  %v5815_v16 = vld [vmem:[%s6063_s3 + $0x28] sm:$0xff]  ;;  %v5826_v32 = vpop.f32.mrf.mxu0  ;;  %v5879_v53 = vadd.f32 %v5698_v19, %v2851_v46 }
 0x1c1   :  { %6113 = vst [vmem:[#allocation48_spill] sm:$0xff] %v5826_v32  ;;  %v5828_v55 = vpop.f32.mrf.mxu1  ;;  %v3361_v32 = vunpack.c.h.bf16 %v5835_v38 }
 0x1c2   :  { %6114 = vst [vmem:[#allocation49_spill] sm:$0xff] %v5828_v55  ;;  %v3050_v20 = vpop.f32.mrf.mxu0 }
 0x1c3   :  { %v3163_v23 = vpop.f32.mrf.mxu1  ;;  %v3051_v39 = vadd.f32 %v3050_v20, %v2938_v57 }
 0x1c4   :  { %v3052_v44 = vpop.f32.mrf.mxu0 }
 0x1c5   :  { %v3165_v55 = vpop.f32.mrf.mxu1  ;;  %v3164_v57 = vadd.f32 %v3163_v23, %v3051_v39  ;;  %v3053_v20 = vadd.f32 %v3052_v44, %v2940_v62  ;;  %v5882_v62 = vadd.f32 %v5702_v6, %v2855_v56 }
 0x1c6   :  { %v3054_v43 = vpop.f32.mrf.mxu0 }
 0x1c7   :  { %v3167_v61 = vpop.f32.mrf.mxu1  ;;  %vm3242_vm0 = vcmp.ge.f32.partialorder %v3164_v57, 0.0  ;;  %v3274_v11 = vmul.f32 0.2, %v3164_v57  ;;  %v3166_v59 = vadd.f32 %v3165_v55, %v3053_v20  ;;  %v3055_v14 = vadd.f32 %v3054_v43, %v2942_v34 }
 0x1c8   :  { %v3056_v54 = vpop.f32.mrf.mxu0  ;;  %v2958_v55 = vadd.f32 %v5686_v4, %v2845_v17  ;;  %v5885_v4 = vadd.f32 %v5706_v18, %v2857_v0  ;;  %v6116_v20 = vunpack.c.h.bf16 %v5771_v45 }
 0x1c9   :  { %v3169_v58 = vpop.f32.mrf.mxu1  ;;  %vm3243_vm1 = vcmp.ge.f32.partialorder %v3166_v59, 0.0  ;;  %v3275_v7 = vmul.f32 0.2, %v3166_v59  ;;  %v3168_v8 = vadd.f32 %v3167_v61, %v3055_v14  ;;  %v3057_v23 = vadd.f32 %v3056_v54, %v2944_v42 }
 0x1ca   :  { %v3060_v13 = vpop.f32.mrf.mxu0  ;;  %v3306_v21 = vsel %vm3242_vm0, %v3164_v57, %v3274_v11  ;;  %v6115_v57 = vunpack.c.l.bf16 %v5771_v45 }
 0x1cb   :  { %v3173_v2 = vpop.f32.mrf.mxu1  ;;  %vm3244_vm2 = vcmp.ge.f32.partialorder %v3168_v8, 0.0  ;;  %v3276_v10 = vmul.f32 0.2, %v3168_v8  ;;  %v3170_v27 = vadd.f32 %v3169_v58, %v3057_v23  ;;  %v3061_v25 = vadd.f32 %v3060_v13, %v2948_v24 }
 0x1cc   :  { %v3062_v60 = vpop.f32.mrf.mxu0  ;;  %v3307_v39 = vsel %vm3243_vm1, %v3166_v59, %v3275_v7  ;;  %v2859_v24 = vadd.f32 %v5708_v15, %v5599_v37  ;;  %v3362_v6 = vmul.f32 %v6115_v57, %v3306_v21  ;;  %v2865_v37 = vadd.f32 %v5716_v30, %v5605_v48 }
 0x1cd   :  { %v3175_v63 = vpop.f32.mrf.mxu1  ;;  %vm3245_vm3 = vcmp.ge.f32.partialorder %v3170_v27, 0.0  ;;  %v3277_v34 = vmul.f32 0.2, %v3170_v27  ;;  %v3174_v42 = vadd.f32 %v3173_v2, %v3061_v25  ;;  %v3063_v41 = vadd.f32 %v3062_v60, %v2950_v47 }
 0x1ce   :  { %v3064_v44 = vpop.f32.mrf.mxu0  ;;  %v3363_v18 = vmul.f32 %v6116_v20, %v3307_v39  ;;  %v3308_v17 = vsel %vm3244_vm2, %v3168_v8, %v3276_v10  ;;  %v2861_v47 = vadd.f32 %v5712_v26, %v5602_v40  ;;  %v5901_v0 = vadd.f32 %v5710_v33, %v2859_v24  ;;  %v6119_v33 = vld [vmem:[#allocation19_spill] sm:$0xff]  ;;  %v6120_v39 = vld [vmem:[#allocation4_spill] sm:$0xff] }
 0x1cf   :  { %v3177_v19 = vpop.f32.mrf.mxu1  ;;  %vm3246_vm4 = vcmp.ge.f32.partialorder %v3174_v42, 0.0  ;;  %v3278_v36 = vmul.f32 0.2, %v3174_v42  ;;  %v3176_v49 = vadd.f32 %v3175_v63, %v3063_v41  ;;  %v3065_v43 = vadd.f32 %v3064_v44, %v2952_v1 }
 0x1d0   :  { %v3066_v15 = vpop.f32.mrf.mxu0  ;;  %v3378_v11 = vadd.f32 %v3363_v18, %v3362_v6  ;;  %v3309_v59 = vsel %vm3245_vm3, %v3170_v27, %v3277_v34  ;;  %v6117_v40 = vunpack.c.l.bf16 %v5776_v31  ;;  %v6118_v48 = vunpack.c.h.bf16 %v5776_v31  ;;  %v6121_v34 = vld [vmem:[#allocation20_spill] sm:$0xff] }
 0x1d1   :  { %v3179_v61 = vpop.f32.mrf.mxu1  ;;  %vm3247_vm5 = vcmp.ge.f32.partialorder %v3176_v49, 0.0  ;;  %v3279_v14 = vmul.f32 0.2, %v3176_v49  ;;  %v3178_v46 = vadd.f32 %v3177_v19, %v3065_v43  ;;  %v3067_v56 = vadd.f32 %v3066_v15, %v2954_v52  ;;  %v6127_v43 = vld [vmem:[#allocation24_spill] sm:$0xff] }
 0x1d2   :  { %3379 = vadd.xlane.f32.xlu0 %v3378_v11  ;;  %v3070_v1 = vpop.f32.mrf.mxu0  ;;  %v3364_v26 = vmul.f32 %v6117_v40, %v3308_v17  ;;  %v3365_v30 = vmul.f32 %v6118_v48, %v3309_v59  ;;  %v3310_v58 = vsel %vm3246_vm4, %v3174_v42, %v3278_v36  ;;  %v5909_v52 = vadd.f32 %v5714_v9, %v2861_v47  ;;  %v6125_v17 = vld [vmem:[#allocation22_spill] sm:$0xff] }
 0x1d3   :  { %v3183_v54 = vpop.f32.mrf.mxu1  ;;  %vm3248_vm6 = vcmp.ge.f32.partialorder %v3178_v46, 0.0  ;;  %v3280_v7 = vmul.f32 0.2, %v3178_v46  ;;  %v3180_v8 = vadd.f32 %v3179_v61, %v3067_v56  ;;  %v3071_v23 = vadd.f32 %v3070_v1, %v2958_v55  ;;  %v6128_v56 = vld [vmem:[#allocation21_spill] sm:$0xff] }
 0x1d4   :  { %v5912_v13 = vadd.f32 %v6119_v33, %v2865_v37  ;;  %v3072_v2 = vpop.f32.mrf.mxu0  ;;  %v3381_v10 = vadd.f32 %v3365_v30, %v3364_v26  ;;  %v3311_v27 = vsel %vm3247_vm5, %v3176_v49, %v3279_v14  ;;  %v2867_v42 = vadd.f32 %v6121_v34, %v6120_v39  ;;  %v6126_v49 = vld [vmem:[#allocation6_spill] sm:$0xff]  ;;  %v6131_v33 = vld [vmem:[#allocation23_spill] sm:$0xff] }
 0x1d5   :  { %v3185_v21 = vpop.f32.mrf.mxu1  ;;  %vm3249_vm7 = vcmp.ge.f32.partialorder %v3180_v8, 0.0  ;;  %v3281_v25 = vmul.f32 0.2, %v3180_v8  ;;  %v3184_v60 = vadd.f32 %v3183_v54, %v3071_v23  ;;  %v3073_v63 = vadd.f32 %v3072_v2, %v2960_v22  ;;  %v6124_v22 = vld [vmem:[#allocation5_spill] sm:$0xff] }
 0x1d6   :  { %3382 = vadd.xlane.f32.xlu0 %v3381_v10  ;;  %v3074_v55 = vpop.f32.mrf.mxu0  ;;  %v6122_v9 = vunpack.c.l.bf16 %v5785_v5  ;;  %v6123_v44 = vunpack.c.h.bf16 %v5785_v5  ;;  %v3312_v57 = vsel %vm3248_vm6, %v3178_v46, %v3280_v7  ;;  %v2869_v36 = vadd.f32 %v6125_v17, %v6124_v22  ;;  %v6132_v2 = vld [vmem:[#allocation25_spill] sm:$0xff]  ;;  %v6137_v22 = vld [vmem:[#allocation28_spill] sm:$0xff] }
 0x1d7   :  { %v3187_v41 = vpop.f32.mrf.mxu1  ;;  %vm3250_vm8 = vcmp.ge.f32.partialorder %v3184_v60, 0.0  ;;  %v3282_v6 = vmul.f32 0.2, %v3184_v60  ;;  %v3186_v20 = vadd.f32 %v3185_v21, %v3073_v63  ;;  %v3075_v18 = vadd.f32 %v3074_v55, %v5875_v51  ;;  %v6134_v55 = vld [vmem:[#allocation26_spill] sm:$0xff] }
 0x1d8   :  { %v3366_v24 = vmul.f32 %v6122_v9, %v3310_v58  ;;  %v3367_v19 = vmul.f32 %v6123_v44, %v3311_v27  ;;  %v2871_v47 = vadd.f32 %v6127_v43, %v6126_v49  ;;  %v3076_v37 = vpop.f32.mrf.mxu0  ;;  %v3313_v11 = vsel %vm3249_vm7, %v3180_v8, %v3281_v25  ;;  %v6139_v49 = vld [vmem:[#allocation30_spill] sm:$0xff] }
 0x1d9   :  { %v3189_v15 = vpop.f32.mrf.mxu1  ;;  %vm3251_vm9 = vcmp.ge.f32.partialorder %v3186_v20, 0.0  ;;  %v3283_v59 = vmul.f32 0.2, %v3186_v20  ;;  %v3188_v14 = vadd.f32 %v3187_v41, %v3075_v18  ;;  %v3077_v46 = vadd.f32 %v3076_v37, %v5879_v53 }
 0x1da   :  { %v3384_v61 = vadd.f32 %v3367_v19, %v3366_v24  ;;  %v2980_v1 = vadd.f32 %v6128_v56, %v2867_v42  ;;  %v3080_v51 = vpop.f32.mrf.mxu0  ;;  %v6129_v40 = vunpack.c.l.bf16 %v5790_v3  ;;  %v6130_v48 = vunpack.c.h.bf16 %v5790_v3  ;;  %v6133_v42 = vld [vmem:[#allocation7_spill] sm:$0xff] }
 0x1db   :  { %v3193_v54 = vpop.f32.mrf.mxu1  ;;  %v3314_v58 = vsel %vm3250_vm8, %v3184_v60, %v3282_v6  ;;  %vm3252_vm10 = vcmp.ge.f32.partialorder %v3188_v14, 0.0  ;;  %v3284_v7 = vmul.f32 0.2, %v3188_v14  ;;  %v3190_v8 = vadd.f32 %v3189_v15, %v3077_v46  ;;  %v6140_v46 = vld [vmem:[#allocation27_spill] sm:$0xff] }
 0x1dc   :  { %3385 = vadd.xlane.f32.xlu0 %v3384_v61  ;;  %v3368_v26 = vmul.f32 %v6129_v40, %v3312_v57  ;;  %v3369_v30 = vmul.f32 %v6130_v48, %v3313_v11  ;;  %v3081_v23 = vadd.f32 %v3080_v51, %v5882_v62  ;;  %v2982_v53 = vadd.f32 %v6131_v33, %v2869_v36  ;;  %v3082_v10 = vpop.f32.mrf.mxu0  ;;  %v6138_v36 = vld [vmem:[#allocation9_spill] sm:$0xff]  ;;  %v6144_v33 = vld [vmem:[#allocation31_spill] sm:$0xff] }
 0x1dd   :  { %v5938_v21 = vadd.f32 %v6132_v2, %v2871_v47  ;;  %v3195_v27 = vpop.f32.mrf.mxu1  ;;  %v3315_v63 = vsel %vm3251_vm9, %v3186_v20, %v3283_v59  ;;  %vm3253_vm11 = vcmp.ge.f32.partialorder %v3190_v8, 0.0  ;;  %v3285_v39 = vmul.f32 0.2, %v3190_v8 }
 0x1de   :  { %v3387_v25 = vadd.f32 %v3369_v30, %v3368_v26  ;;  %v3194_v34 = vadd.f32 %v3193_v54, %v3081_v23  ;;  %v3083_v60 = vadd.f32 %v3082_v10, %v5885_v4  ;;  %v2875_v41 = vadd.f32 %v6134_v55, %v6133_v42  ;;  %v3084_v62 = vpop.f32.mrf.mxu0  ;;  %v6136_v4 = vld [vmem:[#allocation8_spill] sm:$0xff]  ;;  %v6143_v23 = vld [vmem:[#allocation29_spill] sm:$0xff]  ;;  %v6145_v55 = vld [vmem:[#allocation10_spill] sm:$0xff] }
 0x1df   :  { %v3197_v9 = vpop.f32.mrf.mxu1  ;;  %v6135_v24 = vunpack.c.l.bf16 %v5797_v12  ;;  %v3371_v19 = vmul.f32 %v3355_v29, %v3315_v63  ;;  %v3316_v57 = vsel %vm3252_vm10, %v3188_v14, %v3284_v7  ;;  %v3085_v18 = vadd.f32 %v3084_v62, %v5901_v0 }
 0x1e0   :  { %3388 = vadd.xlane.f32.xlu0 %v3387_v25  ;;  %vm3254_vm12 = vcmp.ge.f32.partialorder %v3194_v34, 0.0  ;;  %v3286_v6 = vmul.f32 0.2, %v3194_v34  ;;  %v3196_v20 = vadd.f32 %v3195_v27, %v3083_v60  ;;  %v2877_v17 = vadd.f32 %v6137_v22, %v6136_v4  ;;  %v3086_v47 = vpop.f32.mrf.mxu0  ;;  %v6150_v22 = vld [vmem:[#allocation12_spill] sm:$0xff] }
 0x1e1   :  { %v3370_v44 = vmul.f32 %v6135_v24, %v3314_v58  ;;  %v2879_v43 = vadd.f32 %v6139_v49, %v6138_v36  ;;  %v3199_v37 = vpop.f32.mrf.mxu1  ;;  %v3317_v61 = vsel %vm3253_vm11, %v3190_v8, %v3285_v39  ;;  %v3198_v59 = vadd.f32 %v3197_v9, %v3085_v18  ;;  %v6148_v18 = vld [vmem:[#allocation11_spill] sm:$0xff] }
 0x1e2   :  { %vm3255_vm13 = vcmp.ge.f32.partialorder %v3196_v20, 0.0  ;;  %v3287_v11 = vmul.f32 0.2, %v3196_v20  ;;  %v3087_v14 = vadd.f32 %v3086_v47, %v5909_v52  ;;  %v2988_v56 = vadd.f32 %v6140_v46, %v2875_v41  ;;  %v3090_v0 = vpop.f32.mrf.mxu0 }
 0x1e3   :  { %v3390_v15 = vadd.f32 %v3371_v19, %v3370_v44  ;;  %v3203_v51 = vpop.f32.mrf.mxu1  ;;  %v6141_v54 = vunpack.c.l.bf16 %v5815_v16  ;;  %v6142_v26 = vunpack.c.h.bf16 %v5815_v16  ;;  %v3318_v30 = vsel %vm3254_vm12, %v3194_v34, %v3286_v6  ;;  %v6146_v34 = vld [vmem:[#allocation32_spill] sm:$0xff] }
 0x1e4   :  { %vm3256_vm14 = vcmp.ge.f32.partialorder %v3198_v59, 0.0  ;;  %v3288_v58 = vmul.f32 0.2, %v3198_v59  ;;  %v3200_v7 = vadd.f32 %v3199_v37, %v3087_v14  ;;  %v3091_v8 = vadd.f32 %v3090_v0, %v5912_v13  ;;  %v3092_v10 = vpop.f32.mrf.mxu0 }
 0x1e5   :  { %3391 = vadd.xlane.f32.xlu0 %v3390_v15  ;;  %v3372_v40 = vmul.f32 %v6141_v54, %v3316_v57  ;;  %v3373_v48 = vmul.f32 %v6142_v26, %v3317_v61  ;;  %v2990_v52 = vadd.f32 %v6143_v23, %v2877_v17  ;;  %v2992_v2 = vadd.f32 %v6144_v33, %v2879_v43  ;;  %v3205_v27 = vpop.f32.mrf.mxu1  ;;  %v6151_v17 = vld [vmem:[#allocation36_spill] sm:$0xff] }
 0x1e6   :  { %v3319_v63 = vsel %vm3255_vm13, %v3196_v20, %v3287_v11  ;;  %vm3257_vm15 = vcmp.ge.f32.partialorder %v3200_v7, 0.0  ;;  %v3289_v39 = vmul.f32 0.2, %v3200_v7  ;;  %v3204_v60 = vadd.f32 %v3203_v51, %v3091_v8  ;;  %v3094_v62 = vpop.f32.mrf.mxu0 }
 0x1e7   :  { %v3393_v25 = vadd.f32 %v3373_v48, %v3372_v40  ;;  %v3093_v42 = vadd.f32 %v3092_v10, %v2980_v1  ;;  %v2881_v41 = vadd.f32 %v6146_v34, %v6145_v55  ;;  %v3207_v9 = vpop.f32.mrf.mxu1  ;;  %v6147_v13 = vunpack.c.l.bf16 %v5820_v50  ;;  %v6149_v1 = vld [vmem:[#allocation34_spill] sm:$0xff] }
 0x1e8   :  { %v3375_v44 = vmul.f32 %v3359_v28, %v3319_v63  ;;  %v3320_v19 = vsel %vm3256_vm14, %v3198_v59, %v3288_v58  ;;  %vm3258_vm0 = vcmp.ge.f32.partialorder %v3204_v60, 0.0  ;;  %v3290_v57 = vmul.f32 0.2, %v3204_v60  ;;  %v3096_v49 = vpop.f32.mrf.mxu0  ;;  %v6152_v59 = vld [vmem:[#allocation33_spill] sm:$0xff] }
 0x1e9   :  { %3394 = vadd.xlane.f32.xlu0 %v3393_v25  ;;  %v3374_v24 = vmul.f32 %v6147_v13, %v3318_v30  ;;  %v3206_v6 = vadd.f32 %v3205_v27, %v3093_v42  ;;  %v3095_v20 = vadd.f32 %v3094_v62, %v2982_v53  ;;  %v2885_v4 = vadd.f32 %v6149_v1, %v6148_v18  ;;  %v3209_v43 = vpop.f32.mrf.mxu1  ;;  %v6153_v30 = vld [vmem:[#allocation35_spill] sm:$0xff]  ;;  %v6156_v42 = vld [vmem:[#allocation38_spill] sm:$0xff] }
 0x1ea   :  { %v2887_v36 = vadd.f32 %v6151_v17, %v6150_v22  ;;  %v3321_v37 = vsel %vm3257_vm15, %v3200_v7, %v3289_v39  ;;  %v3097_v11 = vadd.f32 %v3096_v49, %v5938_v21  ;;  %v2994_v14 = vadd.f32 %v6152_v59, %v2881_v41  ;;  %v3100_v53 = vpop.f32.mrf.mxu0  ;;  %v6154_v21 = vld [vmem:[#allocation37_spill] sm:$0xff]  ;;  %v6162_v18 = vld [vmem:[#allocation42_spill] sm:$0xff] }
 0x1eb   :  { %v3396_v47 = vadd.f32 %v3375_v44, %v3374_v24  ;;  %vm3259_vm1 = vcmp.ge.f32.partialorder %v3206_v6, 0.0  ;;  %v3291_v15 = vmul.f32 0.2, %v3206_v6  ;;  %v3208_v61 = vadd.f32 %v3207_v9, %v3095_v20  ;;  %v3213_v46 = vpop.f32.mrf.mxu1  ;;  %v6155_v39 = vld [vmem:[#allocation13_spill] sm:$0xff]  ;;  %v6161_v20 = vld [vmem:[#allocation15_spill] sm:$0xff] }
 0x1ec   :  { %v3376_v0 = vmul.f32 %v3360_v35, %v3320_v19  ;;  %v3377_v51 = vmul.f32 %v3361_v32, %v3321_v37  ;;  %v3322_v54 = vsel %vm3258_vm0, %v3204_v60, %v3290_v57  ;;  %v3210_v26 = vadd.f32 %v3209_v43, %v3097_v11  ;;  %v3102_v8 = vpop.f32.mrf.mxu0  ;;  %v6159_v57 = vld [vmem:[#allocation14_spill] sm:$0xff] }
 0x1ed   :  { %3397 = vadd.xlane.f32.xlu0 %v3396_v47  ;;  %vm3260_vm2 = vcmp.ge.f32.partialorder %v3208_v61, 0.0  ;;  %v3292_v40 = vmul.f32 0.2, %v3208_v61  ;;  %v3101_v48 = vadd.f32 %v3100_v53, %v2988_v56  ;;  %v2998_v58 = vadd.f32 %v6153_v30, %v2885_v4  ;;  %v3215_v23 = vpop.f32.mrf.mxu1  ;;  %v6163_v47 = vld [vmem:[#allocation39_spill] sm:$0xff] }
 0x1ee   :  { %v3000_v7 = vadd.f32 %v6154_v21, %v2887_v36  ;;  %v3399_v33 = vadd.f32 %v3377_v51, %v3376_v0  ;;  %v3323_v10 = vsel %vm3259_vm1, %v3206_v6, %v3291_v15  ;;  %vm3261_vm3 = vcmp.ge.f32.partialorder %v3210_v26, 0.0  ;;  %v3104_v55 = vpop.f32.mrf.mxu0 }
 0x1ef   :  { %v3293_v27 = vmul.f32 0.2, %v3210_v26  ;;  %v3214_v25 = vadd.f32 %v3213_v46, %v3101_v48  ;;  %v3103_v63 = vadd.f32 %v3102_v8, %v2990_v52  ;;  %v2889_v60 = vadd.f32 %v6156_v42, %v6155_v39  ;;  %v3217_v34 = vpop.f32.mrf.mxu1  ;;  %v6160_v52 = vld [vmem:[#allocation40_spill] sm:$0xff] }
 0x1f0   :  { %v6157_v56 = vunpack.c.l.bf16 %v5771_v45  ;;  %v6158_v62 = vunpack.c.h.bf16 %v5771_v45  ;;  %v3324_v13 = vsel %vm3260_vm2, %v3208_v61, %v3292_v40  ;;  %v3105_v19 = vadd.f32 %v3104_v55, %v2992_v2  ;;  %v3106_v4 = vpop.f32.mrf.mxu0  ;;  %v6166_v40 = vld [vmem:[#allocation41_spill] sm:$0xff] }
 0x1f1   :  { %3400 = vadd.xlane.f32.xlu0 %v3399_v33  ;;  %vm3262_vm4 = vcmp.ge.f32.partialorder %v3214_v25, 0.0  ;;  %v3294_v24 = vmul.f32 0.2, %v3214_v25  ;;  %v3216_v44 = vadd.f32 %v3215_v23, %v3103_v63  ;;  %v2891_v6 = vadd.f32 %v6160_v52, %v6159_v57  ;;  %v3219_v22 = vpop.f32.mrf.mxu1  ;;  %v6169_v63 = vld [vmem:[#allocation44_spill] sm:$0xff] }
 0x1f2   :  { %v3427_v41 = vmul.f32 %v6157_v56, %v3322_v54  ;;  %v3428_v9 = vmul.f32 %v6158_v62, %v3323_v10  ;;  %v2895_v1 = vadd.f32 %v6162_v18, %v6161_v20  ;;  %v3325_v36 = vsel %vm3261_vm3, %v3210_v26, %v3293_v27  ;;  %v3110_v15 = vpop.f32.mrf.mxu0  ;;  %v6168_v27 = vld [vmem:[#allocation16_spill] sm:$0xff] }
 0x1f3   :  { %vm3263_vm5 = vcmp.ge.f32.partialorder %v3216_v44, 0.0  ;;  %v3295_v45 = vmul.f32 0.2, %v3216_v44  ;;  %v3218_v49 = vadd.f32 %v3217_v34, %v3105_v19  ;;  %v3107_v43 = vadd.f32 %v3106_v4, %v2994_v14  ;;  %v3223_v2 = vpop.f32.mrf.mxu1  ;;  %v6167_v14 = vld [vmem:[#allocation43_spill] sm:$0xff]  ;;  %v6175_v19 = vld [vmem:[#allocation48_spill] sm:$0xff] }
 0x1f4   :  { %v3443_v17 = vadd.f32 %v3428_v9, %v3427_v41  ;;  %v3002_v37 = vadd.f32 %v6163_v47, %v2889_v60  ;;  %v6164_v61 = vunpack.c.l.bf16 %v5776_v31  ;;  %v6165_v59 = vunpack.c.h.bf16 %v5776_v31  ;;  %v3112_v30 = vpop.f32.mrf.mxu0 }
 0x1f5   :  { %v3326_v46 = vsel %vm3262_vm4, %v3214_v25, %v3294_v24  ;;  %vm3264_vm6 = vcmp.ge.f32.partialorder %v3218_v49, 0.0  ;;  %v3296_v0 = vmul.f32 0.2, %v3218_v49  ;;  %v3220_v51 = vadd.f32 %v3219_v22, %v3107_v43  ;;  %v3225_v21 = vpop.f32.mrf.mxu1  ;;  %v6176_v22 = vld [vmem:[#allocation45_spill] sm:$0xff] }
 0x1f6   :  { %3444 = vadd.xlane.f32.xlu1 %v3443_v17  ;;  %v3429_v11 = vmul.f32 %v6164_v61, %v3324_v13  ;;  %v3430_v53 = vmul.f32 %v6165_v59, %v3325_v36  ;;  %v3111_v54 = vadd.f32 %v3110_v15, %v2998_v58  ;;  %v3004_v26 = vadd.f32 %v6166_v40, %v2891_v6  ;;  %v3114_v39 = vpop.f32.mrf.mxu0  ;;  %v6172_v13 = vld [vmem:[#allocation17_spill] sm:$0xff]  ;;  %v6179_v59 = vld [vmem:[#allocation47_spill] sm:$0xff] }
 0x1f7   :  { %v3008_v48 = vadd.f32 %v6167_v14, %v2895_v1  ;;  %v3327_v23 = vsel %vm3263_vm5, %v3216_v44, %v3295_v45  ;;  %vm3265_vm7 = vcmp.ge.f32.partialorder %v3220_v51, 0.0  ;;  %v3297_v33 = vmul.f32 0.2, %v3220_v51  ;;  %v3227_v42 = vpop.f32.mrf.mxu1  ;;  %v6174_v44 = vld [vmem:[#allocation18_spill] sm:$0xff] }
 0x1f8   :  { %v3446_v8 = vadd.f32 %v3430_v53, %v3429_v11  ;;  %v3224_v10 = vadd.f32 %v3223_v2, %v3111_v54  ;;  %v3113_v31 = vadd.f32 %v3112_v30, %v3000_v7  ;;  %v2897_v25 = vadd.f32 %v6169_v63, %v6168_v27  ;;  %v6173_v7 = vld [vmem:[#allocation46_spill] sm:$0xff]  ;;  %v3116_v52 = vpop.f32.mrf.mxu0 }
 0x1f9   :  { %v6170_v58 = vunpack.c.l.bf16 %v5785_v5  ;;  %v6171_v55 = vunpack.c.h.bf16 %v5785_v5  ;;  %v3328_v56 = vsel %vm3264_vm6, %v3218_v49, %v3296_v0  ;;  %v3115_v9 = vadd.f32 %v3114_v39, %v3002_v37  ;;  %v3229_v6 = vpop.f32.mrf.mxu1 }
 0x1fa   :  { %3447 = vadd.xlane.f32.xlu1 %v3446_v8  ;;  %vm3266_vm8 = vcmp.ge.f32.partialorder %v3224_v10, 0.0  ;;  %v3298_v41 = vmul.f32 0.2, %v3224_v10  ;;  %v3226_v62 = vadd.f32 %v3225_v21, %v3113_v31  ;;  %v2899_v24 = vadd.f32 %v6173_v7, %v6172_v13  ;;  %v3120_v36 = vpop.f32.mrf.mxu0 }
 0x1fb   :  { %v3431_v60 = vmul.f32 %v6170_v58, %v3326_v46  ;;  %v3432_v34 = vmul.f32 %v6171_v55, %v3327_v23  ;;  %v2901_v57 = vadd.f32 %v6175_v19, %v6174_v44  ;;  %v3329_v18 = vsel %vm3265_vm7, %v3220_v51, %v3297_v33  ;;  %v3233_v45 = vpop.f32.mrf.mxu1  ;;  %v6180_v46 = vld [vmem:[#allocation49_spill] sm:$0xff] }
 0x1fc   :  { %vm3267_vm9 = vcmp.ge.f32.partialorder %v3226_v62, 0.0  ;;  %v3299_v5 = vmul.f32 0.2, %v3226_v62  ;;  %v3228_v1 = vadd.f32 %v3227_v42, %v3115_v9  ;;  %v3117_v4 = vadd.f32 %v3116_v52, %v3004_v26  ;;  %v3122_v51 = vpop.f32.mrf.mxu0 }
 0x1fd   :  { %v3449_v20 = vadd.f32 %v3432_v34, %v3431_v60  ;;  %v3010_v17 = vadd.f32 %v6176_v22, %v2897_v25  ;;  %v6177_v49 = vunpack.c.l.bf16 %v5790_v3  ;;  %v6178_v47 = vunpack.c.h.bf16 %v5790_v3  ;;  %v3235_v54 = vpop.f32.mrf.mxu1 }
 0x1fe   :  { %v3330_v15 = vsel %vm3266_vm8, %v3224_v10, %v3298_v41  ;;  %vm3268_vm10 = vcmp.ge.f32.partialorder %v3228_v1, 0.0  ;;  %v3300_v2 = vmul.f32 0.2, %v3228_v1  ;;  %v3230_v61 = vadd.f32 %v3229_v6, %v3117_v4  ;;  %v3124_v21 = vpop.f32.mrf.mxu0 }
 0x1ff   :  { %3450 = vadd.xlane.f32.xlu1 %v3449_v20  ;;  %v3433_v43 = vmul.f32 %v6177_v49, %v3328_v56  ;;  %v3434_v37 = vmul.f32 %v6178_v47, %v3329_v18  ;;  %v3121_v11 = vadd.f32 %v3120_v36, %v3008_v48  ;;  %v3012_v53 = vadd.f32 %v6179_v59, %v2899_v24  ;;  %v3237_v8 = vpop.f32.mrf.mxu1 }
 0x200   :  { %v3014_v0 = vadd.f32 %v6180_v46, %v2901_v57  ;;  %v3331_v26 = vsel %vm3267_vm9, %v3226_v62, %v3299_v5  ;;  %vm3269_vm11 = vcmp.ge.f32.partialorder %v3230_v61, 0.0  ;;  %v3301_v14 = vmul.f32 0.2, %v3230_v61  ;;  %v3126_v39 = vpop.f32.mrf.mxu0 }
 0x201   :  { %v3452_v40 = vadd.f32 %v3434_v37, %v3433_v43  ;;  %v3234_v30 = vadd.f32 %v3233_v45, %v3121_v11  ;;  %v3123_v3 = vadd.f32 %v3122_v51, %v3010_v17  ;;  %v6181_v23 = vunpack.c.l.bf16 %v5797_v12 }
 0x202   :  { %v3436_v48 = vmul.f32 %v3355_v29, %v3331_v26  ;;  %v3332_v10 = vsel %vm3268_vm10, %v3228_v1, %v3300_v2  ;;  %v10_v31 = vstv %s6064_s4  ;;  %v3125_v25 = vadd.f32 %v3124_v21, %v3012_v53  ;;  %v3239_v29 = vpop.f32.mrf.mxu1 }
 0x203   :  { %3453 = vadd.xlane.f32.xlu1 %v3452_v40  ;;  %v3435_v33 = vmul.f32 %v6181_v23, %v3330_v15  ;;  %vm3270_vm12 = vcmp.ge.f32.partialorder %v3234_v30, 0.0  ;;  %v3302_v27 = vmul.f32 0.2, %v3234_v30  ;;  %v3236_v63 = vadd.f32 %v3235_v54, %v3123_v3  ;;  %11 = vst [vmem:[#allocation2] sm:$0x1] %v10_v31 }
 0x204   :  { %v3333_v58 = vsel %vm3269_vm11, %v3230_v61, %v3301_v14  ;;  %v3238_v55 = vadd.f32 %v3237_v8, %v3125_v25  ;;  %v3127_v12 = vadd.f32 %v3126_v39, %v3014_v0  ;;  %v6182_v34 = vunpack.c.l.bf16 %v5815_v16 }
 0x205   :  { %v3455_v42 = vadd.f32 %v3436_v48, %v3435_v33  ;;  %vm3271_vm13 = vcmp.ge.f32.partialorder %v3236_v63, 0.0  ;;  %v3303_v60 = vmul.f32 0.2, %v3236_v63  ;;  %v6183_v41 = vunpack.c.h.bf16 %v5815_v16 }
 0x206   :  { %v3437_v56 = vmul.f32 %v6182_v34, %v3332_v10  ;;  %v3334_v9 = vsel %vm3270_vm12, %v3234_v30, %v3302_v27  ;;  %vm3272_vm14 = vcmp.ge.f32.partialorder %v3238_v55, 0.0  ;;  %v3304_v13 = vmul.f32 0.2, %v3238_v55 }
 0x207   :  { %3456 = vadd.xlane.f32.xlu1 %v3455_v42  ;;  %v3438_v62 = vmul.f32 %v6183_v41, %v3333_v58  ;;  %v3240_v7 = vadd.f32 %v3239_v29, %v3127_v12  ;;  %v3335_v24 = vsel %vm3271_vm13, %v3236_v63, %v3303_v60  ;;  %v6184_v19 = vunpack.c.l.bf16 %v5820_v50 }
 0x208   :  { %v3440_v52 = vmul.f32 %v3359_v28, %v3335_v24  ;;  %v3336_v20 = vsel %vm3272_vm14, %v3238_v55, %v3304_v13  ;;  %v4267_v18 = vmov 0  }
 0x209   :  { %v3458_v44 = vadd.f32 %v3438_v62, %v3437_v56  ;;  %v3439_v57 = vmul.f32 %v6184_v19, %v3334_v9  ;;  %vm3273_vm15 = vcmp.ge.f32.partialorder %v3240_v7, 0.0  ;;  %v3305_v6 = vmul.f32 0.2, %v3240_v7  ;;  %3881 = vset.pattern.permute.xlu0 %v4267_v18  ;;  %3882 = vset.pattern.permute.xlu1 %v4267_v18  ;;  %v6185_v62 = vld [vmem:[#allocation3_spill] sm:$0xff] }
 0x20a   :  { %v3441_v1 = vmul.f32 %v3360_v35, %v3336_v20  ;;  %v3415_v26 = vld [vmem:[#allocation2] sm:$0x1] }
 0x20b   :  { %3459 = vadd.xlane.f32.xlu1 %v3458_v44  ;;  %v3461_v16 = vadd.f32 %v3440_v52, %v3439_v57  ;;  %v3337_v5 = vsel %vm3273_vm15, %v3240_v7, %v3305_v6  ;;  %v3480_v29 = vld [vmem:[#allocation2] sm:$0x1] }
 0x20c   :  { %v3442_v4 = vmul.f32 %v3361_v32, %v3337_v5 }
 0x20e   :  { %v3464_v22 = vadd.f32 %v3442_v4, %v3441_v1 }
 0x20f   :  { %3462 = vadd.xlane.f32.xlu1 %v3461_v16 }
 0x213   :  { %3465 = vadd.xlane.f32.xlu1 %v3464_v22 }
 0x25b   :  { %v3380_v50 = vpop.xlane.xlu0 %3379 }
 0x25f   :  { %v3383_v28 = vpop.xlane.xlu0 %3382 }
 0x260   :  { %v3402_v49 = vadd.f32 %v3383_v28, %v3380_v50 }
 0x265   :  { %v3386_v17 = vpop.xlane.xlu0 %3385 }
 0x266   :  { %v3403_v43 = vadd.f32 %v3402_v49, %v3386_v17 }
 0x269   :  { %v3389_v36 = vpop.xlane.xlu0 %3388 }
 0x26a   :  { %v3404_v37 = vadd.f32 %v3403_v43, %v3389_v36 }
 0x26e   :  { %v3392_v45 = vpop.xlane.xlu0 %3391 }
 0x26f   :  { %v3405_v15 = vadd.f32 %v3404_v37, %v3392_v45 }
 0x272   :  { %v3395_v47 = vpop.xlane.xlu0 %3394 }
 0x273   :  { %v3406_v61 = vadd.f32 %v3405_v15, %v3395_v47 }
 0x276   :  { %v3398_v2 = vpop.xlane.xlu0 %3397 }
 0x277   :  { %v3407_v11 = vadd.f32 %v3406_v61, %v3398_v2 }
 0x27a   :  { %v3401_v35 = vpop.xlane.xlu0 %3400 }
 0x27b   :  { %v3408_v59 = vadd.f32 %v3407_v11, %v3401_v35 }
 0x27d   :  { %v3409_v38 = vrot.slane %v3408_v59, 4 }
 0x27f   :  { %v3445_v32 = vpop.xlane.xlu1 %3444  ;;  %v3410_v53 = vadd.f32 %v3409_v38, %v3408_v59 }
 0x281   :  { %v3411_v46 = vrot.slane %v3410_v53, 2 }
 0x283   :  { %v3448_v0 = vpop.xlane.xlu1 %3447  ;;  %v3412_v51 = vadd.f32 %v3411_v46, %v3410_v53 }
 0x284   :  { %v3467_v8 = vadd.f32 %v3448_v0, %v3445_v32 }
 0x285   :  { %v3413_v54 = vrot.slane %v3412_v51, 1 }
 0x287   :  { %v3414_v14 = vadd.f32 %v3413_v54, %v3412_v51 }
 0x288   :  { %v3451_v40 = vpop.xlane.xlu1 %3450 }
 0x289   :  { %v3416_v30 = vadd.f32 %v3415_v26, %v3414_v14  ;;  %v3468_v23 = vadd.f32 %v3467_v8, %v3451_v40 }
 0x28b   :  { %3419 = vperm.xlu0 %3881, %v3416_v30  }
 0x28c   :  { %v3454_v3 = vpop.xlane.xlu1 %3453 }
 0x28d   :  { %v3469_v48 = vadd.f32 %v3468_v23, %v3454_v3 }
 0x290   :  { %v3457_v21 = vpop.xlane.xlu1 %3456 }
 0x291   :  { %v3470_v10 = vadd.f32 %v3469_v48, %v3457_v21 }
 0x294   :  { %v3460_v33 = vpop.xlane.xlu1 %3459 }
 0x295   :  { %v3471_v27 = vadd.f32 %v3470_v10, %v3460_v33 }
 0x298   :  { %v3463_v31 = vpop.xlane.xlu1 %3462 }
 0x299   :  { %v3472_v63 = vadd.f32 %v3471_v27, %v3463_v31 }
 0x29c   :  { %v3466_v25 = vpop.xlane.xlu1 %3465 }
 0x29d   :  { %v3473_v39 = vadd.f32 %v3472_v63, %v3466_v25 }
 0x29f   :  { %v3474_v42 = vrot.slane %v3473_v39, 4 }
 0x2a1   :  { %v3475_v58 = vadd.f32 %v3474_v42, %v3473_v39 }
 0x2a3   :  { %v3476_v60 = vrot.slane %v3475_v58, 2 }
 0x2a5   :  { %v3477_v55 = vadd.f32 %v3476_v60, %v3475_v58 }
 0x2a7   :  { %v3478_v12 = vrot.slane %v3477_v55, 1 }
 0x2a9   :  { %v3479_v34 = vadd.f32 %v3478_v12, %v3477_v55 }
 0x2ab   :  { %v3481_v56 = vadd.f32 %v3480_v29, %v3479_v34 }
 0x2ad   :  { %3484 = vperm.xlu1 %3882, %v3481_v56  }
 0x306   :  { %v3420_v41 = vpop.permute.xlu0 %3419 }
 0x307   :  { %v3425_v9 = vrot.slane %v3420_v41, %v6185_v62 }
 0x309   :  { %3426 = vst [vmem:[%s6065_s5] sm:$0x1] %v3425_v9 }
 0x328   :  { %v3485_v13 = vpop.permute.xlu1 %3484 }
 0x329   :  { %v3490_v7 = vrot.slane %v3485_v13, %v6185_v62 }
 0x32b   :  { %3491 = vst [vmem:[%s6065_s5 + $0x1] sm:$0x1] %v3490_v7 }

</bundles_post_ra>
